<compile_context>
chip_gen: v6e
topology: v6e:2x2x1
jax: 0.10.0
libtpu: 0.0.40
codegen_flags: <defaults>
</compile_context>

<pallas_src>
import numpy as np

import jax
import jax.numpy as jnp
from jax.experimental import pallas as pl
from jax.experimental.pallas import tpu as pltpu


def _round_up(n, m):
    return ((n + m - 1) // m) * m


def _compiler_params():
    # One grid axis over batch tiles; on v7x it shards across the 2 TCs.
    try:
        return pltpu.CompilerParams(dimension_semantics=("parallel",),
                                    vmem_limit_bytes=32 * 1024 * 1024)
    except TypeError:
        return pltpu.CompilerParams(dimension_semantics=("parallel",))


# ---------------------------------------------------------------------------
# The fused kernel: TB images per grid step, everything stays in VMEM.
# ---------------------------------------------------------------------------
def _net_kernel(x_ref, w1_ref, b1_ref, w2_ref, b2_ref,
                wf1_ref, bf1_ref, wf2_ref, bf2_ref, wf3_ref, bf3_ref,
                out_ref):
    f32 = jnp.float32
    TB = x_ref.shape[1]          # images per grid step (multiple of 8)

    # ---- conv1 (3->6, 5x5) + bias + relu ---------------------------------
    # x_ref: (32, TB, 96);  W1[ki]: (96, 256)
    # output lanes: even conv pixel wo=2we -> 6*we+co, odd -> 128+6*we+co
    a1 = jnp.zeros((28 * TB, 256), f32)
    for ki in range(5):
        xk = x_ref[ki:ki + 28, :, :].reshape(28 * TB, 96)   # no-op reshape
        a1 = a1 + jnp.dot(xk, w1_ref[ki], preferred_element_type=f32)
    c1 = jnp.maximum(a1 + b1_ref[...], 0.0).reshape(14, 2 * TB, 256)

    # ---- pool1 (2x2 max) --------------------------------------------------
    # H: rows 2g / 2g+1 are the two aligned sublane halves of c1[g].
    h1 = jnp.maximum(c1[:, :TB, :], c1[:, TB:, :])           # (14, TB, 256)
    # W: even/odd pixels live in the two 128-lane tiles (unused lanes are 0).
    p1 = jnp.maximum(h1[:, :, :128], h1[:, :, 128:])         # (14, TB, 128)

    # ---- conv2 (6->16, 5x5) + bias + relu ---------------------------------
    # p1 lanes: 6*wp + c (wp = pooled pixel 0..13); W2[ki]: (128, 256)
    a2 = jnp.zeros((10 * TB, 256), f32)
    for ki in range(5):
        pk = p1[ki:ki + 10, :, :].reshape(10 * TB, 128)
        a2 = a2 + jnp.dot(pk, w2_ref[ki], preferred_element_type=f32)
    c2 = jnp.maximum(a2 + b2_ref[...], 0.0).reshape(5, 2 * TB, 256)

    # ---- pool2 (2x2 max) --------------------------------------------------
    h2 = jnp.maximum(c2[:, :TB, :], c2[:, TB:, :])           # (5, TB, 256)
    p2 = jnp.maximum(h2[:, :, :128], h2[:, :, 128:])         # (5, TB, 128)

    # ---- fc1 (400->120): pool-2 layout + NCHW flatten folded into WF1 -----
    f = jnp.zeros((TB, 120), f32)
    for h in range(5):
        f = f + jnp.dot(p2[h], wf1_ref[h], preferred_element_type=f32)
    f = jnp.maximum(f + bf1_ref[...], 0.0)

    # ---- fc2 (120->84) + relu, fc3 (84->10) -------------------------------
    f = jnp.maximum(
        jnp.dot(f, wf2_ref[...], preferred_element_type=f32) + bf2_ref[...], 0.0)
    out_ref[...] = (jnp.dot(f, wf3_ref[...], preferred_element_type=f32)
                    + bf3_ref[...])


# ---------------------------------------------------------------------------
# Host-side (one-time) weight folding: conv taps -> band matrices with
# even/odd-pixel lane-tile split; pool-2 layout + NCHW flatten -> fc1.
# ---------------------------------------------------------------------------
def prepare_params(params):
    c1w = np.asarray(params["conv1_w"], np.float32)   # (6, 3, 5, 5)
    c1b = np.asarray(params["conv1_b"], np.float32)   # (6,)
    c2w = np.asarray(params["conv2_w"], np.float32)   # (16, 6, 5, 5)
    c2b = np.asarray(params["conv2_b"], np.float32)   # (16,)
    f1w = np.asarray(params["fc1_w"], np.float32)     # (120, 400)

    # conv1 band matrices: input lane = 3*w + c; output lane =
    # (wo % 2)*128 + (wo // 2)*6 + co  (even pixels tile 0, odd pixels tile 1)
    W1 = np.zeros((5, 96, 256), np.float32)
    B1 = np.zeros((1, 256), np.float32)
    for ki in range(5):
        for kj in range(5):
            for wo in range(28):
                col = (wo % 2) * 128 + (wo // 2) * 6
                W1[ki, (wo + kj) * 3:(wo + kj) * 3 + 3,
                   col:col + 6] = c1w[:, :, ki, kj].T
    for wo in range(28):
        col = (wo % 2) * 128 + (wo // 2) * 6
        B1[0, col:col + 6] = c1b

    # conv2 band matrices: input lane = 6*wp + c (pool1 output, wp 0..13);
    # output lane = (wo % 2)*128 + (wo // 2)*16 + co
    W2 = np.zeros((5, 128, 256), np.float32)
    B2 = np.zeros((1, 256), np.float32)
    for ki in range(5):
        for kj in range(5):
            for wo in range(10):
                col = (wo % 2) * 128 + (wo // 2) * 16
                W2[ki, 6 * (wo + kj):6 * (wo + kj) + 6,
                   col:col + 16] = c2w[:, :, ki, kj].T
    for wo in range(10):
        col = (wo % 2) * 128 + (wo // 2) * 16
        B2[0, col:col + 16] = c2b

    # fc1: pool2 output lane = 16*wp + co (wp 0..4); PyTorch flatten index
    # n = co*25 + h*5 + wp  -> one (128, 120) slab per pooled row h.
    WF1 = np.zeros((5, 128, 120), np.float32)
    for h in range(5):
        for wp in range(5):
            for co in range(16):
                WF1[h, 16 * wp + co, :] = f1w[:, co * 25 + h * 5 + wp]

    prep = {
        "W1": W1, "B1": B1, "W2": W2, "B2": B2, "WF1": WF1,
        "bf1": np.asarray(params["fc1_b"], np.float32).reshape(1, 120),
        "WF2": np.asarray(params["fc2_w"], np.float32).T.copy(),
        "bf2": np.asarray(params["fc2_b"], np.float32).reshape(1, 84),
        "WF3": np.asarray(params["fc3_w"], np.float32).T.copy(),
        "bf3": np.asarray(params["fc3_b"], np.float32).reshape(1, 10),
    }
    return {k: jnp.asarray(v) for k, v in prep.items()}


# ---------------------------------------------------------------------------
# Public forward: one fused pallas_call, batch-tiled grid.
# ---------------------------------------------------------------------------
def net_forward(x, prep, tb=64):
    """x: (B, 3, 32, 32) NCHW float32 -> logits (B, 10).

    `tb` = images per grid step (rounded to a multiple of 8).  On v7x keep
    tb <= B/2 so the grid has >= 2 steps and both TensorCores get work.
    """
    B = x.shape[0]
    TB = min(_round_up(tb, 8), _round_up(B, 8))
    Bp = _round_up(B, TB)

    # NCHW -> (H, B, W*C) lane-dense layout (layout glue only).
    xl = jnp.transpose(x, (2, 0, 3, 1)).reshape(32, B, 96)
    if Bp != B:
        xl = jnp.pad(xl, ((0, 0), (0, Bp - B), (0, 0)))

    out = pl.pallas_call(
        _net_kernel,
        out_shape=jax.ShapeDtypeStruct((Bp, 10), jnp.float32),
        grid=(Bp // TB,),
        in_specs=[
            pl.BlockSpec((32, TB, 96), lambda b: (0, b, 0)),    # batched input
            pl.BlockSpec((5, 96, 256), lambda b: (0, 0, 0)),    # W1 (resident)
            pl.BlockSpec((1, 256), lambda b: (0, 0)),           # b1
            pl.BlockSpec((5, 128, 256), lambda b: (0, 0, 0)),   # W2
            pl.BlockSpec((1, 256), lambda b: (0, 0)),           # b2
            pl.BlockSpec((5, 128, 120), lambda b: (0, 0, 0)),   # WF1
            pl.BlockSpec((1, 120), lambda b: (0, 0)),           # bf1
            pl.BlockSpec((120, 84), lambda b: (0, 0)),          # WF2
            pl.BlockSpec((1, 84), lambda b: (0, 0)),            # bf2
            pl.BlockSpec((84, 10), lambda b: (0, 0)),           # WF3
            pl.BlockSpec((1, 10), lambda b: (0, 0)),            # bf3
        ],
        out_specs=pl.BlockSpec((TB, 10), lambda b: (b, 0)),
        compiler_params=_compiler_params(),
    )(xl, prep["W1"], prep["B1"], prep["W2"], prep["B2"],
      prep["WF1"], prep["bf1"], prep["WF2"], prep["bf2"],
      prep["WF3"], prep["bf3"])
    return out[:B]


# ---------------------------------------------------------------------------
# Deterministic parameter init (PyTorch-default-style uniform)
# ---------------------------------------------------------------------------
def init_params(key):
    def uni(k, shape, fan_in):
        bound = 1.0 / jnp.sqrt(float(fan_in))
        return jax.random.uniform(k, shape, jnp.float32, -bound, bound)

    ks = jax.random.split(key, 10)
    return {
        "conv1_w": uni(ks[0], (6, 3, 5, 5), 3 * 5 * 5),
        "conv1_b": uni(ks[1], (6,), 3 * 5 * 5),
        "conv2_w": uni(ks[2], (16, 6, 5, 5), 6 * 5 * 5),
        "conv2_b": uni(ks[3], (16,), 6 * 5 * 5),
        "fc1_w": uni(ks[4], (120, 400), 400),
        "fc1_b": uni(ks[5], (120,), 400),
        "fc2_w": uni(ks[6], (84, 120), 120),
        "fc2_b": uni(ks[7], (84,), 120),
        "fc3_w": uni(ks[8], (10, 84), 84),
        "fc3_b": uni(ks[9], (10,), 84),
    }


# ---------------------------------------------------------------------------
# Pure-JAX reference (same semantics as the PyTorch module) for verification
# ---------------------------------------------------------------------------
def reference_forward(x, params):
    hi = jax.lax.Precision.HIGHEST

    def conv(x, w, b):
        y = jax.lax.conv_general_dilated(
            x, w, (1, 1), "VALID",
            dimension_numbers=("NCHW", "OIHW", "NCHW"), precision=hi)
        return y + b[None, :, None, None]

    def pool(x):
        B, C, H, W = x.shape
        return x.reshape(B, C, H // 2, 2, W // 2, 2).max(axis=(3, 5))

    y = pool(jax.nn.relu(conv(x, params["conv1_w"], params["conv1_b"])))
    y = pool(jax.nn.relu(conv(y, params["conv2_w"], params["conv2_b"])))
    y = y.reshape(x.shape[0], -1)
    y = jax.nn.relu(jnp.dot(y, params["fc1_w"].T, precision=hi) + params["fc1_b"])
    y = jax.nn.relu(jnp.dot(y, params["fc2_w"].T, precision=hi) + params["fc2_b"])
    return jnp.dot(y, params["fc3_w"].T, precision=hi) + params["fc3_b"]


if __name__ == "__main__":
    key = jax.random.PRNGKey(0)
    k_param, k_x = jax.random.split(key)
    params = init_params(k_param)
    prep = prepare_params(params)

    # Architecture requires 32x32x3 inputs (16*5*5 flatten). B=32 with tb=16
    # gives a 2-step grid (both v7x TensorCores busy) while staying small.
    x = jax.random.normal(k_x, (32, 3, 32, 32), jnp.float32)

    fwd = jax.jit(net_forward, static_argnames=("tb",))
    out = jax.block_until_ready(fwd(x, prep, tb=16))
    assert out.shape == (32, 10), out.shape

    ref = reference_forward(x, params)
    max_err = float(jnp.max(jnp.abs(out - ref)))
    assert jnp.allclose(out, ref, atol=2e-3, rtol=2e-3), max_err

    print("KERNEL_OK")
</pallas_src>

<mosaic_0001>
module attributes {stable_mosaic.version = 11 : i64} {
  func.func @_net_kernel(%arg0: i32, %arg1: memref<32x16x96xf32, #tpu.memory_space<vmem>>, %arg2: memref<5x96x256xf32, #tpu.memory_space<vmem>>, %arg3: memref<1x256xf32, #tpu.memory_space<vmem>>, %arg4: memref<5x128x256xf32, #tpu.memory_space<vmem>>, %arg5: memref<1x256xf32, #tpu.memory_space<vmem>>, %arg6: memref<5x128x120xf32, #tpu.memory_space<vmem>>, %arg7: memref<1x120xf32, #tpu.memory_space<vmem>>, %arg8: memref<120x84xf32, #tpu.memory_space<vmem>>, %arg9: memref<1x84xf32, #tpu.memory_space<vmem>>, %arg10: memref<84x10xf32, #tpu.memory_space<vmem>>, %arg11: memref<1x10xf32, #tpu.memory_space<vmem>>, %arg12: memref<16x10xf32, #tpu.memory_space<vmem>>) attributes {dimension_semantics = [#tpu.dimension_semantics<parallel>], iteration_bounds = array<i64: 2>, scalar_prefetch = 0 : i64, scratch_operands = 0 : i64, tpu.core_type = #tpu.core_type<tc>, window_params = [{transform_indices = @transform_0, window_bounds = array<i64: 32, 16, 96>}, {pipeline_mode = #tpu.pipeline_mode<synchronous>, transform_indices = @transform_1, window_bounds = array<i64: 5, 96, 256>}, {pipeline_mode = #tpu.pipeline_mode<synchronous>, transform_indices = @transform_2, window_bounds = array<i64: 1, 256>}, {pipeline_mode = #tpu.pipeline_mode<synchronous>, transform_indices = @transform_3, window_bounds = array<i64: 5, 128, 256>}, {pipeline_mode = #tpu.pipeline_mode<synchronous>, transform_indices = @transform_4, window_bounds = array<i64: 1, 256>}, {pipeline_mode = #tpu.pipeline_mode<synchronous>, transform_indices = @transform_5, window_bounds = array<i64: 5, 128, 120>}, {pipeline_mode = #tpu.pipeline_mode<synchronous>, transform_indices = @transform_6, window_bounds = array<i64: 1, 120>}, {pipeline_mode = #tpu.pipeline_mode<synchronous>, transform_indices = @transform_7, window_bounds = array<i64: 120, 84>}, {pipeline_mode = #tpu.pipeline_mode<synchronous>, transform_indices = @transform_8, window_bounds = array<i64: 1, 84>}, {pipeline_mode = #tpu.pipeline_mode<synchronous>, transform_indices = @transform_9, window_bounds = array<i64: 84, 10>}, {pipeline_mode = #tpu.pipeline_mode<synchronous>, transform_indices = @transform_10, window_bounds = array<i64: 1, 10>}, {transform_indices = @transform_11, window_bounds = array<i64: 16, 10>}]} {
    %cst = arith.constant 0.000000e+00 : f32
    %0 = vector.broadcast %cst : f32 to vector<448x256xf32>
    %c0 = arith.constant 0 : index
    %c0_0 = arith.constant 0 : index
    %c0_1 = arith.constant 0 : index
    %1 = vector.load %arg1[%c0, %c0_0, %c0_1] : memref<32x16x96xf32, #tpu.memory_space<vmem>>, vector<28x16x96xf32>
    %2 = vector.shape_cast %1 : vector<28x16x96xf32> to vector<448x96xf32>
    %c0_2 = arith.constant 0 : index
    %c0_3 = arith.constant 0 : index
    %c0_4 = arith.constant 0 : index
    %3 = vector.load %arg2[%c0_2, %c0_3, %c0_4] : memref<5x96x256xf32, #tpu.memory_space<vmem>>, vector<1x96x256xf32>
    %4 = vector.shape_cast %3 : vector<1x96x256xf32> to vector<96x256xf32>
    %cst_5 = arith.constant dense<0.000000e+00> : vector<448x256xf32>
    %5 = tpu.matmul %2, %4, %cst_5 {dimension_numbers = #tpu.dot_dimension_numbers<[1], [0], [0], [1], [0, 0, 1, 1], [], []>} : vector<448x96xf32>, vector<96x256xf32>, vector<448x256xf32> -> vector<448x256xf32>
    %6 = arith.addf %0, %5 : vector<448x256xf32>
    %c1 = arith.constant 1 : index
    %c0_6 = arith.constant 0 : index
    %c0_7 = arith.constant 0 : index
    %7 = vector.load %arg1[%c1, %c0_6, %c0_7] : memref<32x16x96xf32, #tpu.memory_space<vmem>>, vector<28x16x96xf32>
    %8 = vector.shape_cast %7 : vector<28x16x96xf32> to vector<448x96xf32>
    %c1_8 = arith.constant 1 : index
    %c0_9 = arith.constant 0 : index
    %c0_10 = arith.constant 0 : index
    %9 = vector.load %arg2[%c1_8, %c0_9, %c0_10] : memref<5x96x256xf32, #tpu.memory_space<vmem>>, vector<1x96x256xf32>
    %10 = vector.shape_cast %9 : vector<1x96x256xf32> to vector<96x256xf32>
    %cst_11 = arith.constant dense<0.000000e+00> : vector<448x256xf32>
    %11 = tpu.matmul %8, %10, %cst_11 {dimension_numbers = #tpu.dot_dimension_numbers<[1], [0], [0], [1], [0, 0, 1, 1], [], []>} : vector<448x96xf32>, vector<96x256xf32>, vector<448x256xf32> -> vector<448x256xf32>
    %12 = arith.addf %6, %11 : vector<448x256xf32>
    %c2 = arith.constant 2 : index
    %c0_12 = arith.constant 0 : index
    %c0_13 = arith.constant 0 : index
    %13 = vector.load %arg1[%c2, %c0_12, %c0_13] : memref<32x16x96xf32, #tpu.memory_space<vmem>>, vector<28x16x96xf32>
    %14 = vector.shape_cast %13 : vector<28x16x96xf32> to vector<448x96xf32>
    %c2_14 = arith.constant 2 : index
    %c0_15 = arith.constant 0 : index
    %c0_16 = arith.constant 0 : index
    %15 = vector.load %arg2[%c2_14, %c0_15, %c0_16] : memref<5x96x256xf32, #tpu.memory_space<vmem>>, vector<1x96x256xf32>
    %16 = vector.shape_cast %15 : vector<1x96x256xf32> to vector<96x256xf32>
    %cst_17 = arith.constant dense<0.000000e+00> : vector<448x256xf32>
    %17 = tpu.matmul %14, %16, %cst_17 {dimension_numbers = #tpu.dot_dimension_numbers<[1], [0], [0], [1], [0, 0, 1, 1], [], []>} : vector<448x96xf32>, vector<96x256xf32>, vector<448x256xf32> -> vector<448x256xf32>
    %18 = arith.addf %12, %17 : vector<448x256xf32>
    %c3 = arith.constant 3 : index
    %c0_18 = arith.constant 0 : index
    %c0_19 = arith.constant 0 : index
    %19 = vector.load %arg1[%c3, %c0_18, %c0_19] : memref<32x16x96xf32, #tpu.memory_space<vmem>>, vector<28x16x96xf32>
    %20 = vector.shape_cast %19 : vector<28x16x96xf32> to vector<448x96xf32>
    %c3_20 = arith.constant 3 : index
    %c0_21 = arith.constant 0 : index
    %c0_22 = arith.constant 0 : index
    %21 = vector.load %arg2[%c3_20, %c0_21, %c0_22] : memref<5x96x256xf32, #tpu.memory_space<vmem>>, vector<1x96x256xf32>
    %22 = vector.shape_cast %21 : vector<1x96x256xf32> to vector<96x256xf32>
    %cst_23 = arith.constant dense<0.000000e+00> : vector<448x256xf32>
    %23 = tpu.matmul %20, %22, %cst_23 {dimension_numbers = #tpu.dot_dimension_numbers<[1], [0], [0], [1], [0, 0, 1, 1], [], []>} : vector<448x96xf32>, vector<96x256xf32>, vector<448x256xf32> -> vector<448x256xf32>
    %24 = arith.addf %18, %23 : vector<448x256xf32>
    %c4 = arith.constant 4 : index
    %c0_24 = arith.constant 0 : index
    %c0_25 = arith.constant 0 : index
    %25 = vector.load %arg1[%c4, %c0_24, %c0_25] : memref<32x16x96xf32, #tpu.memory_space<vmem>>, vector<28x16x96xf32>
    %26 = vector.shape_cast %25 : vector<28x16x96xf32> to vector<448x96xf32>
    %c4_26 = arith.constant 4 : index
    %c0_27 = arith.constant 0 : index
    %c0_28 = arith.constant 0 : index
    %27 = vector.load %arg2[%c4_26, %c0_27, %c0_28] : memref<5x96x256xf32, #tpu.memory_space<vmem>>, vector<1x96x256xf32>
    %28 = vector.shape_cast %27 : vector<1x96x256xf32> to vector<96x256xf32>
    %cst_29 = arith.constant dense<0.000000e+00> : vector<448x256xf32>
    %29 = tpu.matmul %26, %28, %cst_29 {dimension_numbers = #tpu.dot_dimension_numbers<[1], [0], [0], [1], [0, 0, 1, 1], [], []>} : vector<448x96xf32>, vector<96x256xf32>, vector<448x256xf32> -> vector<448x256xf32>
    %30 = arith.addf %24, %29 : vector<448x256xf32>
    %c0_30 = arith.constant 0 : index
    %c0_31 = arith.constant 0 : index
    %31 = vector.load %arg3[%c0_30, %c0_31] : memref<1x256xf32, #tpu.memory_space<vmem>>, vector<1x256xf32>
    %32 = vector.broadcast %31 : vector<1x256xf32> to vector<448x256xf32>
    %33 = arith.addf %30, %32 : vector<448x256xf32>
    %cst_32 = arith.constant 0.000000e+00 : f32
    %34 = vector.broadcast %cst_32 : f32 to vector<448x256xf32>
    %35 = arith.maximumf %33, %34 : vector<448x256xf32>
    %36 = vector.shape_cast %35 : vector<448x256xf32> to vector<14x32x256xf32>
    %37 = vector.extract_strided_slice %36 {offsets = [0, 0, 0], sizes = [14, 16, 256], strides = [1, 1, 1]} : vector<14x32x256xf32> to vector<14x16x256xf32>
    %38 = vector.extract_strided_slice %36 {offsets = [0, 16, 0], sizes = [14, 16, 256], strides = [1, 1, 1]} : vector<14x32x256xf32> to vector<14x16x256xf32>
    %39 = arith.maximumf %37, %38 : vector<14x16x256xf32>
    %40 = vector.extract_strided_slice %39 {offsets = [0, 0, 0], sizes = [14, 16, 128], strides = [1, 1, 1]} : vector<14x16x256xf32> to vector<14x16x128xf32>
    %41 = vector.extract_strided_slice %39 {offsets = [0, 0, 128], sizes = [14, 16, 128], strides = [1, 1, 1]} : vector<14x16x256xf32> to vector<14x16x128xf32>
    %42 = arith.maximumf %40, %41 : vector<14x16x128xf32>
    %cst_33 = arith.constant 0.000000e+00 : f32
    %43 = vector.broadcast %cst_33 : f32 to vector<160x256xf32>
    %44 = vector.extract_strided_slice %42 {offsets = [0, 0, 0], sizes = [10, 16, 128], strides = [1, 1, 1]} : vector<14x16x128xf32> to vector<10x16x128xf32>
    %45 = vector.shape_cast %44 : vector<10x16x128xf32> to vector<160x128xf32>
    %c0_34 = arith.constant 0 : index
    %c0_35 = arith.constant 0 : index
    %c0_36 = arith.constant 0 : index
    %46 = vector.load %arg4[%c0_34, %c0_35, %c0_36] : memref<5x128x256xf32, #tpu.memory_space<vmem>>, vector<1x128x256xf32>
    %47 = vector.shape_cast %46 : vector<1x128x256xf32> to vector<128x256xf32>
    %cst_37 = arith.constant dense<0.000000e+00> : vector<160x256xf32>
    %48 = tpu.matmul %45, %47, %cst_37 {dimension_numbers = #tpu.dot_dimension_numbers<[1], [0], [0], [1], [0, 0, 1, 1], [], []>} : vector<160x128xf32>, vector<128x256xf32>, vector<160x256xf32> -> vector<160x256xf32>
    %49 = arith.addf %43, %48 : vector<160x256xf32>
    %50 = vector.extract_strided_slice %42 {offsets = [1, 0, 0], sizes = [10, 16, 128], strides = [1, 1, 1]} : vector<14x16x128xf32> to vector<10x16x128xf32>
    %51 = vector.shape_cast %50 : vector<10x16x128xf32> to vector<160x128xf32>
    %c1_38 = arith.constant 1 : index
    %c0_39 = arith.constant 0 : index
    %c0_40 = arith.constant 0 : index
    %52 = vector.load %arg4[%c1_38, %c0_39, %c0_40] : memref<5x128x256xf32, #tpu.memory_space<vmem>>, vector<1x128x256xf32>
    %53 = vector.shape_cast %52 : vector<1x128x256xf32> to vector<128x256xf32>
    %cst_41 = arith.constant dense<0.000000e+00> : vector<160x256xf32>
    %54 = tpu.matmul %51, %53, %cst_41 {dimension_numbers = #tpu.dot_dimension_numbers<[1], [0], [0], [1], [0, 0, 1, 1], [], []>} : vector<160x128xf32>, vector<128x256xf32>, vector<160x256xf32> -> vector<160x256xf32>
    %55 = arith.addf %49, %54 : vector<160x256xf32>
    %56 = vector.extract_strided_slice %42 {offsets = [2, 0, 0], sizes = [10, 16, 128], strides = [1, 1, 1]} : vector<14x16x128xf32> to vector<10x16x128xf32>
    %57 = vector.shape_cast %56 : vector<10x16x128xf32> to vector<160x128xf32>
    %c2_42 = arith.constant 2 : index
    %c0_43 = arith.constant 0 : index
    %c0_44 = arith.constant 0 : index
    %58 = vector.load %arg4[%c2_42, %c0_43, %c0_44] : memref<5x128x256xf32, #tpu.memory_space<vmem>>, vector<1x128x256xf32>
    %59 = vector.shape_cast %58 : vector<1x128x256xf32> to vector<128x256xf32>
    %cst_45 = arith.constant dense<0.000000e+00> : vector<160x256xf32>
    %60 = tpu.matmul %57, %59, %cst_45 {dimension_numbers = #tpu.dot_dimension_numbers<[1], [0], [0], [1], [0, 0, 1, 1], [], []>} : vector<160x128xf32>, vector<128x256xf32>, vector<160x256xf32> -> vector<160x256xf32>
    %61 = arith.addf %55, %60 : vector<160x256xf32>
    %62 = vector.extract_strided_slice %42 {offsets = [3, 0, 0], sizes = [10, 16, 128], strides = [1, 1, 1]} : vector<14x16x128xf32> to vector<10x16x128xf32>
    %63 = vector.shape_cast %62 : vector<10x16x128xf32> to vector<160x128xf32>
    %c3_46 = arith.constant 3 : index
    %c0_47 = arith.constant 0 : index
    %c0_48 = arith.constant 0 : index
    %64 = vector.load %arg4[%c3_46, %c0_47, %c0_48] : memref<5x128x256xf32, #tpu.memory_space<vmem>>, vector<1x128x256xf32>
    %65 = vector.shape_cast %64 : vector<1x128x256xf32> to vector<128x256xf32>
    %cst_49 = arith.constant dense<0.000000e+00> : vector<160x256xf32>
    %66 = tpu.matmul %63, %65, %cst_49 {dimension_numbers = #tpu.dot_dimension_numbers<[1], [0], [0], [1], [0, 0, 1, 1], [], []>} : vector<160x128xf32>, vector<128x256xf32>, vector<160x256xf32> -> vector<160x256xf32>
    %67 = arith.addf %61, %66 : vector<160x256xf32>
    %68 = vector.extract_strided_slice %42 {offsets = [4, 0, 0], sizes = [10, 16, 128], strides = [1, 1, 1]} : vector<14x16x128xf32> to vector<10x16x128xf32>
    %69 = vector.shape_cast %68 : vector<10x16x128xf32> to vector<160x128xf32>
    %c4_50 = arith.constant 4 : index
    %c0_51 = arith.constant 0 : index
    %c0_52 = arith.constant 0 : index
    %70 = vector.load %arg4[%c4_50, %c0_51, %c0_52] : memref<5x128x256xf32, #tpu.memory_space<vmem>>, vector<1x128x256xf32>
    %71 = vector.shape_cast %70 : vector<1x128x256xf32> to vector<128x256xf32>
    %cst_53 = arith.constant dense<0.000000e+00> : vector<160x256xf32>
    %72 = tpu.matmul %69, %71, %cst_53 {dimension_numbers = #tpu.dot_dimension_numbers<[1], [0], [0], [1], [0, 0, 1, 1], [], []>} : vector<160x128xf32>, vector<128x256xf32>, vector<160x256xf32> -> vector<160x256xf32>
    %73 = arith.addf %67, %72 : vector<160x256xf32>
    %c0_54 = arith.constant 0 : index
    %c0_55 = arith.constant 0 : index
    %74 = vector.load %arg5[%c0_54, %c0_55] : memref<1x256xf32, #tpu.memory_space<vmem>>, vector<1x256xf32>
    %75 = vector.broadcast %74 : vector<1x256xf32> to vector<160x256xf32>
    %76 = arith.addf %73, %75 : vector<160x256xf32>
    %cst_56 = arith.constant 0.000000e+00 : f32
    %77 = vector.broadcast %cst_56 : f32 to vector<160x256xf32>
    %78 = arith.maximumf %76, %77 : vector<160x256xf32>
    %79 = vector.shape_cast %78 : vector<160x256xf32> to vector<5x32x256xf32>
    %80 = vector.extract_strided_slice %79 {offsets = [0, 0, 0], sizes = [5, 16, 256], strides = [1, 1, 1]} : vector<5x32x256xf32> to vector<5x16x256xf32>
    %81 = vector.extract_strided_slice %79 {offsets = [0, 16, 0], sizes = [5, 16, 256], strides = [1, 1, 1]} : vector<5x32x256xf32> to vector<5x16x256xf32>
    %82 = arith.maximumf %80, %81 : vector<5x16x256xf32>
    %83 = vector.extract_strided_slice %82 {offsets = [0, 0, 0], sizes = [5, 16, 128], strides = [1, 1, 1]} : vector<5x16x256xf32> to vector<5x16x128xf32>
    %84 = vector.extract_strided_slice %82 {offsets = [0, 0, 128], sizes = [5, 16, 128], strides = [1, 1, 1]} : vector<5x16x256xf32> to vector<5x16x128xf32>
    %85 = arith.maximumf %83, %84 : vector<5x16x128xf32>
    %cst_57 = arith.constant 0.000000e+00 : f32
    %86 = vector.broadcast %cst_57 : f32 to vector<16x120xf32>
    %87 = vector.extract_strided_slice %85 {offsets = [0, 0, 0], sizes = [1, 16, 128], strides = [1, 1, 1]} : vector<5x16x128xf32> to vector<1x16x128xf32>
    %88 = vector.shape_cast %87 : vector<1x16x128xf32> to vector<16x128xf32>
    %c0_58 = arith.constant 0 : index
    %c0_59 = arith.constant 0 : index
    %c0_60 = arith.constant 0 : index
    %89 = vector.load %arg6[%c0_58, %c0_59, %c0_60] : memref<5x128x120xf32, #tpu.memory_space<vmem>>, vector<1x128x120xf32>
    %90 = vector.shape_cast %89 : vector<1x128x120xf32> to vector<128x120xf32>
    %cst_61 = arith.constant dense<0.000000e+00> : vector<16x120xf32>
    %91 = tpu.matmul %88, %90, %cst_61 {dimension_numbers = #tpu.dot_dimension_numbers<[1], [0], [0], [1], [0, 0, 1, 1], [], []>} : vector<16x128xf32>, vector<128x120xf32>, vector<16x120xf32> -> vector<16x120xf32>
    %92 = arith.addf %86, %91 : vector<16x120xf32>
    %93 = vector.extract_strided_slice %85 {offsets = [1, 0, 0], sizes = [1, 16, 128], strides = [1, 1, 1]} : vector<5x16x128xf32> to vector<1x16x128xf32>
    %94 = vector.shape_cast %93 : vector<1x16x128xf32> to vector<16x128xf32>
    %c1_62 = arith.constant 1 : index
    %c0_63 = arith.constant 0 : index
    %c0_64 = arith.constant 0 : index
    %95 = vector.load %arg6[%c1_62, %c0_63, %c0_64] : memref<5x128x120xf32, #tpu.memory_space<vmem>>, vector<1x128x120xf32>
    %96 = vector.shape_cast %95 : vector<1x128x120xf32> to vector<128x120xf32>
    %cst_65 = arith.constant dense<0.000000e+00> : vector<16x120xf32>
    %97 = tpu.matmul %94, %96, %cst_65 {dimension_numbers = #tpu.dot_dimension_numbers<[1], [0], [0], [1], [0, 0, 1, 1], [], []>} : vector<16x128xf32>, vector<128x120xf32>, vector<16x120xf32> -> vector<16x120xf32>
    %98 = arith.addf %92, %97 : vector<16x120xf32>
    %99 = vector.extract_strided_slice %85 {offsets = [2, 0, 0], sizes = [1, 16, 128], strides = [1, 1, 1]} : vector<5x16x128xf32> to vector<1x16x128xf32>
    %100 = vector.shape_cast %99 : vector<1x16x128xf32> to vector<16x128xf32>
    %c2_66 = arith.constant 2 : index
    %c0_67 = arith.constant 0 : index
    %c0_68 = arith.constant 0 : index
    %101 = vector.load %arg6[%c2_66, %c0_67, %c0_68] : memref<5x128x120xf32, #tpu.memory_space<vmem>>, vector<1x128x120xf32>
    %102 = vector.shape_cast %101 : vector<1x128x120xf32> to vector<128x120xf32>
    %cst_69 = arith.constant dense<0.000000e+00> : vector<16x120xf32>
    %103 = tpu.matmul %100, %102, %cst_69 {dimension_numbers = #tpu.dot_dimension_numbers<[1], [0], [0], [1], [0, 0, 1, 1], [], []>} : vector<16x128xf32>, vector<128x120xf32>, vector<16x120xf32> -> vector<16x120xf32>
    %104 = arith.addf %98, %103 : vector<16x120xf32>
    %105 = vector.extract_strided_slice %85 {offsets = [3, 0, 0], sizes = [1, 16, 128], strides = [1, 1, 1]} : vector<5x16x128xf32> to vector<1x16x128xf32>
    %106 = vector.shape_cast %105 : vector<1x16x128xf32> to vector<16x128xf32>
    %c3_70 = arith.constant 3 : index
    %c0_71 = arith.constant 0 : index
    %c0_72 = arith.constant 0 : index
    %107 = vector.load %arg6[%c3_70, %c0_71, %c0_72] : memref<5x128x120xf32, #tpu.memory_space<vmem>>, vector<1x128x120xf32>
    %108 = vector.shape_cast %107 : vector<1x128x120xf32> to vector<128x120xf32>
    %cst_73 = arith.constant dense<0.000000e+00> : vector<16x120xf32>
    %109 = tpu.matmul %106, %108, %cst_73 {dimension_numbers = #tpu.dot_dimension_numbers<[1], [0], [0], [1], [0, 0, 1, 1], [], []>} : vector<16x128xf32>, vector<128x120xf32>, vector<16x120xf32> -> vector<16x120xf32>
    %110 = arith.addf %104, %109 : vector<16x120xf32>
    %111 = vector.extract_strided_slice %85 {offsets = [4, 0, 0], sizes = [1, 16, 128], strides = [1, 1, 1]} : vector<5x16x128xf32> to vector<1x16x128xf32>
    %112 = vector.shape_cast %111 : vector<1x16x128xf32> to vector<16x128xf32>
    %c4_74 = arith.constant 4 : index
    %c0_75 = arith.constant 0 : index
    %c0_76 = arith.constant 0 : index
    %113 = vector.load %arg6[%c4_74, %c0_75, %c0_76] : memref<5x128x120xf32, #tpu.memory_space<vmem>>, vector<1x128x120xf32>
    %114 = vector.shape_cast %113 : vector<1x128x120xf32> to vector<128x120xf32>
    %cst_77 = arith.constant dense<0.000000e+00> : vector<16x120xf32>
    %115 = tpu.matmul %112, %114, %cst_77 {dimension_numbers = #tpu.dot_dimension_numbers<[1], [0], [0], [1], [0, 0, 1, 1], [], []>} : vector<16x128xf32>, vector<128x120xf32>, vector<16x120xf32> -> vector<16x120xf32>
    %116 = arith.addf %110, %115 : vector<16x120xf32>
    %c0_78 = arith.constant 0 : index
    %c0_79 = arith.constant 0 : index
    %117 = vector.load %arg7[%c0_78, %c0_79] : memref<1x120xf32, #tpu.memory_space<vmem>>, vector<1x120xf32>
    %118 = vector.broadcast %117 : vector<1x120xf32> to vector<16x120xf32>
    %119 = arith.addf %116, %118 : vector<16x120xf32>
    %cst_80 = arith.constant 0.000000e+00 : f32
    %120 = vector.broadcast %cst_80 : f32 to vector<16x120xf32>
    %121 = arith.maximumf %119, %120 : vector<16x120xf32>
    %c0_81 = arith.constant 0 : index
    %c0_82 = arith.constant 0 : index
    %122 = vector.load %arg8[%c0_81, %c0_82] : memref<120x84xf32, #tpu.memory_space<vmem>>, vector<120x84xf32>
    %cst_83 = arith.constant dense<0.000000e+00> : vector<16x84xf32>
    %123 = tpu.matmul %121, %122, %cst_83 {dimension_numbers = #tpu.dot_dimension_numbers<[1], [0], [0], [1], [0, 0, 1, 1], [], []>} : vector<16x120xf32>, vector<120x84xf32>, vector<16x84xf32> -> vector<16x84xf32>
    %c0_84 = arith.constant 0 : index
    %c0_85 = arith.constant 0 : index
    %124 = vector.load %arg9[%c0_84, %c0_85] : memref<1x84xf32, #tpu.memory_space<vmem>>, vector<1x84xf32>
    %125 = vector.broadcast %124 : vector<1x84xf32> to vector<16x84xf32>
    %126 = arith.addf %123, %125 : vector<16x84xf32>
    %cst_86 = arith.constant 0.000000e+00 : f32
    %127 = vector.broadcast %cst_86 : f32 to vector<16x84xf32>
    %128 = arith.maximumf %126, %127 : vector<16x84xf32>
    %c0_87 = arith.constant 0 : index
    %c0_88 = arith.constant 0 : index
    %129 = vector.load %arg10[%c0_87, %c0_88] : memref<84x10xf32, #tpu.memory_space<vmem>>, vector<84x10xf32>
    %cst_89 = arith.constant dense<0.000000e+00> : vector<16x10xf32>
    %130 = tpu.matmul %128, %129, %cst_89 {dimension_numbers = #tpu.dot_dimension_numbers<[1], [0], [0], [1], [0, 0, 1, 1], [], []>} : vector<16x84xf32>, vector<84x10xf32>, vector<16x10xf32> -> vector<16x10xf32>
    %c0_90 = arith.constant 0 : index
    %c0_91 = arith.constant 0 : index
    %131 = vector.load %arg11[%c0_90, %c0_91] : memref<1x10xf32, #tpu.memory_space<vmem>>, vector<1x10xf32>
    %132 = vector.broadcast %131 : vector<1x10xf32> to vector<16x10xf32>
    %133 = arith.addf %130, %132 : vector<16x10xf32>
    %c0_92 = arith.constant 0 : index
    %c0_93 = arith.constant 0 : index
    %134 = vector.load %arg12[%c0_92, %c0_93] : memref<16x10xf32, #tpu.memory_space<vmem>>, vector<16x10xf32>
    tpu.vector_store %arg12[%c0_92, %c0_93], %133 {strides = array<i32>} : memref<16x10xf32, #tpu.memory_space<vmem>>, vector<16x10xf32>,
    return
  }
  func.func @transform_0(%arg0: i32) -> (i32, i32, i32) {
    %c0_i32 = arith.constant 0 : i32
    %c0_i32_0 = arith.constant 0 : i32
    %c0_i32_1 = arith.constant 0 : i32
    return %c0_i32, %arg0, %c0_i32_0 : i32, i32, i32
  }
  func.func @transform_1(%arg0: i32) -> (i32, i32, i32) {
    %c0_i32 = arith.constant 0 : i32
    %c0_i32_0 = arith.constant 0 : i32
    %c0_i32_1 = arith.constant 0 : i32
    %c0_i32_2 = arith.constant 0 : i32
    return %c0_i32, %c0_i32_0, %c0_i32_1 : i32, i32, i32
  }
  func.func @transform_2(%arg0: i32) -> (i32, i32) {
    %c0_i32 = arith.constant 0 : i32
    %c0_i32_0 = arith.constant 0 : i32
    %c0_i32_1 = arith.constant 0 : i32
    return %c0_i32, %c0_i32_0 : i32, i32
  }
  func.func @transform_3(%arg0: i32) -> (i32, i32, i32) {
    %c0_i32 = arith.constant 0 : i32
    %c0_i32_0 = arith.constant 0 : i32
    %c0_i32_1 = arith.constant 0 : i32
    %c0_i32_2 = arith.constant 0 : i32
    return %c0_i32, %c0_i32_0, %c0_i32_1 : i32, i32, i32
  }
  func.func @transform_4(%arg0: i32) -> (i32, i32) {
    %c0_i32 = arith.constant 0 : i32
    %c0_i32_0 = arith.constant 0 : i32
    %c0_i32_1 = arith.constant 0 : i32
    return %c0_i32, %c0_i32_0 : i32, i32
  }
  func.func @transform_5(%arg0: i32) -> (i32, i32, i32) {
    %c0_i32 = arith.constant 0 : i32
    %c0_i32_0 = arith.constant 0 : i32
    %c0_i32_1 = arith.constant 0 : i32
    %c0_i32_2 = arith.constant 0 : i32
    return %c0_i32, %c0_i32_0, %c0_i32_1 : i32, i32, i32
  }
  func.func @transform_6(%arg0: i32) -> (i32, i32) {
    %c0_i32 = arith.constant 0 : i32
    %c0_i32_0 = arith.constant 0 : i32
    %c0_i32_1 = arith.constant 0 : i32
    return %c0_i32, %c0_i32_0 : i32, i32
  }
  func.func @transform_7(%arg0: i32) -> (i32, i32) {
    %c0_i32 = arith.constant 0 : i32
    %c0_i32_0 = arith.constant 0 : i32
    %c0_i32_1 = arith.constant 0 : i32
    return %c0_i32, %c0_i32_0 : i32, i32
  }
  func.func @transform_8(%arg0: i32) -> (i32, i32) {
    %c0_i32 = arith.constant 0 : i32
    %c0_i32_0 = arith.constant 0 : i32
    %c0_i32_1 = arith.constant 0 : i32
    return %c0_i32, %c0_i32_0 : i32, i32
  }
  func.func @transform_9(%arg0: i32) -> (i32, i32) {
    %c0_i32 = arith.constant 0 : i32
    %c0_i32_0 = arith.constant 0 : i32
    %c0_i32_1 = arith.constant 0 : i32
    return %c0_i32, %c0_i32_0 : i32, i32
  }
  func.func @transform_10(%arg0: i32) -> (i32, i32) {
    %c0_i32 = arith.constant 0 : i32
    %c0_i32_0 = arith.constant 0 : i32
    %c0_i32_1 = arith.constant 0 : i32
    return %c0_i32, %c0_i32_0 : i32, i32
  }
  func.func @transform_11(%arg0: i32) -> (i32, i32) {
    %c0_i32 = arith.constant 0 : i32
    %c0_i32_0 = arith.constant 0 : i32
    return %arg0, %c0_i32 : i32, i32
  }
}

</mosaic_0001>

<bundles_post_ra>
// kernel: net_forward.1
= control target key start
LH: loop header
LB: loop body
LE: loop exit
PB: predicated region body
PF: predicated region fallthrough
CT: control target
= control target key end

     0   :  { %s7946_s17 = smov 0   ;;  %s7948_s18 = smov 0   ;;  %s12005_s0 = inlined_call_operand.vmem [shape: f32[32,32,96], index: 0, kind: input, shape index: {}]   ;;  %s12006_s1 = inlined_call_operand.vmem [shape: f32[5,96,256], index: 1, kind: input, shape index: {}]   ;;  %s12007_s2 = inlined_call_operand.vmem [shape: f32[1,256], index: 2, kind: input, shape index: {}]   ;;  %s12008_s3 = inlined_call_operand.vmem [shape: f32[5,128,256], index: 3, kind: input, shape index: {}]   ;;  %s12009_s4 = inlined_call_operand.vmem [shape: f32[1,256], index: 4, kind: input, shape index: {}]   ;;  %s12010_s5 = inlined_call_operand.vmem [shape: f32[5,128,120], index: 5, kind: input, shape index: {}]   ;;  %s12011_s6 = inlined_call_operand.vmem [shape: f32[1,120], index: 6, kind: input, shape index: {}]   ;;  %s12012_s7 = inlined_call_operand.vmem [shape: f32[120,84], index: 7, kind: input, shape index: {}]   ;;  %s12013_s8 = inlined_call_operand.vmem [shape: f32[1,84], index: 8, kind: input, shape index: {}]   ;;  %s12014_s9 = inlined_call_operand.vmem [shape: f32[84,10], index: 9, kind: input, shape index: {}]   ;;  %s12015_s10 = inlined_call_operand.vmem [shape: f32[1,10], index: 10, kind: input, shape index: {}]   ;;  %s12016_s11 = inlined_call_operand.vmem [shape: f32[32,10], index: 11, kind: output, shape index: {}]  }
   0x1   :  { %s7950_s19 = smov 0  }
   0x2 LB: > { %s6669_s20 = sadd.s32 4294967295, %s7883_s19   ;;  %s7963_s21 = sadd.s32 1, %s7883_s19   ;;  %s7883_s19 = sphi %s7950_s19, %s12574_s19   ;;  %s7879_s18 = sphi %s7948_s18, %s12573_s18   ;;  %s7875_s17 = sphi %s7946_s17, %s12572_s17  }
   0x3   : > { %s25_s22 = ssub.s32 %s7883_s19, %s7963_s21  ;;  %s28_s23 = sadd.s32 1, %s7879_s18 }
   0x4   : > { %p26_p0 = scmp.eq.s32.totalorder %s25_s22, 0  ;;  %p35_p1 = scmp.ne.s32.totalorder %s7879_s18, %s7875_s17 }
   0x5   : > { %p36_p2 = scmp.eq.s32.totalorder %s7883_s19, 0  ;;  %p6672_p4 = scmp.ge.s32.totalorder %s7883_s19, 2 }
   0x6   : > { %s7972_s24 = scalar_select %p26_p0, %s7879_s18, %s28_s23  }
   0x7   : > { %p37_p3 = por %p36_p2, %p35_p1  ;;  %327 = sbr.rel (%p6672_p4) target bundleno = 48 (0x30), region = 56 }
   0xc   : > { %330 = sbr.rel (!%p37_p3) target bundleno = 48 (0x30), region = 60  ;;  %s332_s25 = sand.u32 (%p37_p3), 1, %s7879_s18  }
   0xd   : > { %s7482_s26 = sshll.u32 (%p37_p3), %s7883_s19, 4  ;;  %s6673_s27 = sshll.u32 (%p37_p3), %s332_s25, 9 }
   0xe   : > { %s7980_s30 = scalar_lea.vmem (%p37_p3), %s12005_s0, %s7482_s26  ;;  %s7985_s12 = scalar_lea.vmem (%p37_p3), [#allocation2], %s6673_s27 }
   0xf   : > { %v492_v0 = vld [vmem:[%s7980_s30] sm:$0xff] (%p37_p3)  ;;  %v494_v1 = vld [vmem:[%s7980_s30 + $0x8] sm:$0xff] (%p37_p3) }
  0x10   : > { %v496_v2 = vld [vmem:[%s7980_s30 + $0x20] sm:$0xff] (%p37_p3)  ;;  %493 = vst [vmem:[%s7985_s12] sm:$0xff] (%p37_p3), %v492_v0  ;;  %495 = vst [vmem:[%s7985_s12 + $0x8] sm:$0xff] (%p37_p3), %v494_v1  ;;  %v498_v3 = vld [vmem:[%s7980_s30 + $0x28] sm:$0xff] (%p37_p3) }
  0x11   : > { %497 = vst [vmem:[%s7985_s12 + $0x10] sm:$0xff] %v496_v2  ;;  %v500_v4 = vld [vmem:[%s7980_s30 + $0x40] sm:$0xff]  ;;  %v502_v5 = vld [vmem:[%s7980_s30 + $0x48] sm:$0xff]  ;;  %499 = vst [vmem:[%s7985_s12 + $0x18] sm:$0xff] %v498_v3 }
  0x12   : > { %501 = vst [vmem:[%s7985_s12 + $0x20] sm:$0xff] %v500_v4  ;;  %503 = vst [vmem:[%s7985_s12 + $0x28] sm:$0xff] %v502_v5  ;;  %v504_v6 = vld [vmem:[%s7980_s30 + $0x60] sm:$0xff]  ;;  %v506_v7 = vld [vmem:[%s7980_s30 + $0x68] sm:$0xff] }
  0x13   : > { %v508_v8 = vld [vmem:[%s7980_s30 + $0x80] sm:$0xff]  ;;  %505 = vst [vmem:[%s7985_s12 + $0x30] sm:$0xff] %v504_v6  ;;  %507 = vst [vmem:[%s7985_s12 + $0x38] sm:$0xff] %v506_v7  ;;  %v510_v9 = vld [vmem:[%s7980_s30 + $0x88] sm:$0xff] }
  0x14   : > { %509 = vst [vmem:[%s7985_s12 + $0x40] sm:$0xff] %v508_v8  ;;  %v512_v10 = vld [vmem:[%s7980_s30 + $0xa0] sm:$0xff]  ;;  %v514_v11 = vld [vmem:[%s7980_s30 + $0xa8] sm:$0xff]  ;;  %511 = vst [vmem:[%s7985_s12 + $0x48] sm:$0xff] %v510_v9 }
  0x15   : > { %513 = vst [vmem:[%s7985_s12 + $0x50] sm:$0xff] %v512_v10  ;;  %515 = vst [vmem:[%s7985_s12 + $0x58] sm:$0xff] %v514_v11  ;;  %v516_v12 = vld [vmem:[%s7980_s30 + $0xc0] sm:$0xff]  ;;  %v518_v13 = vld [vmem:[%s7980_s30 + $0xc8] sm:$0xff] }
  0x16   : > { %v520_v14 = vld [vmem:[%s7980_s30 + $0xe0] sm:$0xff]  ;;  %517 = vst [vmem:[%s7985_s12 + $0x60] sm:$0xff] %v516_v12  ;;  %519 = vst [vmem:[%s7985_s12 + $0x68] sm:$0xff] %v518_v13  ;;  %v522_v15 = vld [vmem:[%s7980_s30 + $0xe8] sm:$0xff] }
  0x17   : > { %521 = vst [vmem:[%s7985_s12 + $0x70] sm:$0xff] %v520_v14  ;;  %v524_v16 = vld [vmem:[%s7980_s30 + $0x100] sm:$0xff]  ;;  %v526_v17 = vld [vmem:[%s7980_s30 + $0x108] sm:$0xff]  ;;  %523 = vst [vmem:[%s7985_s12 + $0x78] sm:$0xff] %v522_v15 }
  0x18   : > { %525 = vst [vmem:[%s7985_s12 + $0x80] sm:$0xff] %v524_v16  ;;  %527 = vst [vmem:[%s7985_s12 + $0x88] sm:$0xff] %v526_v17  ;;  %v528_v18 = vld [vmem:[%s7980_s30 + $0x120] sm:$0xff]  ;;  %v530_v19 = vld [vmem:[%s7980_s30 + $0x128] sm:$0xff] }
  0x19   : > { %v532_v20 = vld [vmem:[%s7980_s30 + $0x140] sm:$0xff]  ;;  %529 = vst [vmem:[%s7985_s12 + $0x90] sm:$0xff] %v528_v18  ;;  %531 = vst [vmem:[%s7985_s12 + $0x98] sm:$0xff] %v530_v19  ;;  %v534_v21 = vld [vmem:[%s7980_s30 + $0x148] sm:$0xff] }
  0x1a   : > { %533 = vst [vmem:[%s7985_s12 + $0xa0] sm:$0xff] %v532_v20  ;;  %v536_v22 = vld [vmem:[%s7980_s30 + $0x160] sm:$0xff]  ;;  %v538_v23 = vld [vmem:[%s7980_s30 + $0x168] sm:$0xff]  ;;  %535 = vst [vmem:[%s7985_s12 + $0xa8] sm:$0xff] %v534_v21 }
  0x1b   : > { %537 = vst [vmem:[%s7985_s12 + $0xb0] sm:$0xff] %v536_v22  ;;  %539 = vst [vmem:[%s7985_s12 + $0xb8] sm:$0xff] %v538_v23  ;;  %v540_v24 = vld [vmem:[%s7980_s30 + $0x180] sm:$0xff]  ;;  %v542_v25 = vld [vmem:[%s7980_s30 + $0x188] sm:$0xff] }
  0x1c   : > { %v544_v26 = vld [vmem:[%s7980_s30 + $0x1a0] sm:$0xff]  ;;  %541 = vst [vmem:[%s7985_s12 + $0xc0] sm:$0xff] %v540_v24  ;;  %543 = vst [vmem:[%s7985_s12 + $0xc8] sm:$0xff] %v542_v25  ;;  %v546_v27 = vld [vmem:[%s7980_s30 + $0x1a8] sm:$0xff] }
  0x1d   : > { %545 = vst [vmem:[%s7985_s12 + $0xd0] sm:$0xff] %v544_v26  ;;  %v548_v28 = vld [vmem:[%s7980_s30 + $0x1c0] sm:$0xff]  ;;  %v550_v29 = vld [vmem:[%s7980_s30 + $0x1c8] sm:$0xff]  ;;  %547 = vst [vmem:[%s7985_s12 + $0xd8] sm:$0xff] %v546_v27 }
  0x1e   : > { %549 = vst [vmem:[%s7985_s12 + $0xe0] sm:$0xff] %v548_v28  ;;  %551 = vst [vmem:[%s7985_s12 + $0xe8] sm:$0xff] %v550_v29  ;;  %v552_v30 = vld [vmem:[%s7980_s30 + $0x1e0] sm:$0xff]  ;;  %v554_v31 = vld [vmem:[%s7980_s30 + $0x1e8] sm:$0xff] }
  0x1f   : > { %v556_v32 = vld [vmem:[%s7980_s30 + $0x200] sm:$0xff]  ;;  %553 = vst [vmem:[%s7985_s12 + $0xf0] sm:$0xff] %v552_v30  ;;  %555 = vst [vmem:[%s7985_s12 + $0xf8] sm:$0xff] %v554_v31  ;;  %v558_v33 = vld [vmem:[%s7980_s30 + $0x208] sm:$0xff] }
  0x20   : > { %557 = vst [vmem:[%s7985_s12 + $0x100] sm:$0xff] %v556_v32  ;;  %v560_v34 = vld [vmem:[%s7980_s30 + $0x220] sm:$0xff]  ;;  %v562_v35 = vld [vmem:[%s7980_s30 + $0x228] sm:$0xff]  ;;  %559 = vst [vmem:[%s7985_s12 + $0x108] sm:$0xff] %v558_v33 }
  0x21   : > { %561 = vst [vmem:[%s7985_s12 + $0x110] sm:$0xff] %v560_v34  ;;  %563 = vst [vmem:[%s7985_s12 + $0x118] sm:$0xff] %v562_v35  ;;  %v564_v36 = vld [vmem:[%s7980_s30 + $0x240] sm:$0xff]  ;;  %v566_v37 = vld [vmem:[%s7980_s30 + $0x248] sm:$0xff] }
  0x22   : > { %v568_v38 = vld [vmem:[%s7980_s30 + $0x260] sm:$0xff]  ;;  %565 = vst [vmem:[%s7985_s12 + $0x120] sm:$0xff] %v564_v36  ;;  %567 = vst [vmem:[%s7985_s12 + $0x128] sm:$0xff] %v566_v37  ;;  %v570_v39 = vld [vmem:[%s7980_s30 + $0x268] sm:$0xff] }
  0x23   : > { %569 = vst [vmem:[%s7985_s12 + $0x130] sm:$0xff] %v568_v38  ;;  %v572_v40 = vld [vmem:[%s7980_s30 + $0x280] sm:$0xff]  ;;  %v574_v41 = vld [vmem:[%s7980_s30 + $0x288] sm:$0xff]  ;;  %571 = vst [vmem:[%s7985_s12 + $0x138] sm:$0xff] %v570_v39 }
  0x24   : > { %573 = vst [vmem:[%s7985_s12 + $0x140] sm:$0xff] %v572_v40  ;;  %575 = vst [vmem:[%s7985_s12 + $0x148] sm:$0xff] %v574_v41  ;;  %v576_v42 = vld [vmem:[%s7980_s30 + $0x2a0] sm:$0xff]  ;;  %v578_v43 = vld [vmem:[%s7980_s30 + $0x2a8] sm:$0xff] }
  0x25   : > { %v580_v44 = vld [vmem:[%s7980_s30 + $0x2c0] sm:$0xff]  ;;  %577 = vst [vmem:[%s7985_s12 + $0x150] sm:$0xff] %v576_v42  ;;  %579 = vst [vmem:[%s7985_s12 + $0x158] sm:$0xff] %v578_v43  ;;  %v582_v45 = vld [vmem:[%s7980_s30 + $0x2c8] sm:$0xff] }
  0x26   : > { %581 = vst [vmem:[%s7985_s12 + $0x160] sm:$0xff] %v580_v44  ;;  %v584_v46 = vld [vmem:[%s7980_s30 + $0x2e0] sm:$0xff]  ;;  %v586_v47 = vld [vmem:[%s7980_s30 + $0x2e8] sm:$0xff]  ;;  %583 = vst [vmem:[%s7985_s12 + $0x168] sm:$0xff] %v582_v45 }
  0x27   : > { %585 = vst [vmem:[%s7985_s12 + $0x170] sm:$0xff] %v584_v46  ;;  %587 = vst [vmem:[%s7985_s12 + $0x178] sm:$0xff] %v586_v47  ;;  %v588_v48 = vld [vmem:[%s7980_s30 + $0x300] sm:$0xff]  ;;  %v590_v49 = vld [vmem:[%s7980_s30 + $0x308] sm:$0xff] }
  0x28   : > { %v592_v50 = vld [vmem:[%s7980_s30 + $0x320] sm:$0xff]  ;;  %589 = vst [vmem:[%s7985_s12 + $0x180] sm:$0xff] %v588_v48  ;;  %591 = vst [vmem:[%s7985_s12 + $0x188] sm:$0xff] %v590_v49  ;;  %v594_v51 = vld [vmem:[%s7980_s30 + $0x328] sm:$0xff] }
  0x29   : > { %593 = vst [vmem:[%s7985_s12 + $0x190] sm:$0xff] %v592_v50  ;;  %v596_v52 = vld [vmem:[%s7980_s30 + $0x340] sm:$0xff]  ;;  %v598_v53 = vld [vmem:[%s7980_s30 + $0x348] sm:$0xff]  ;;  %595 = vst [vmem:[%s7985_s12 + $0x198] sm:$0xff] %v594_v51 }
  0x2a   : > { %597 = vst [vmem:[%s7985_s12 + $0x1a0] sm:$0xff] %v596_v52  ;;  %599 = vst [vmem:[%s7985_s12 + $0x1a8] sm:$0xff] %v598_v53  ;;  %v600_v54 = vld [vmem:[%s7980_s30 + $0x360] sm:$0xff]  ;;  %v602_v55 = vld [vmem:[%s7980_s30 + $0x368] sm:$0xff] }
  0x2b   : > { %v604_v56 = vld [vmem:[%s7980_s30 + $0x380] sm:$0xff]  ;;  %601 = vst [vmem:[%s7985_s12 + $0x1b0] sm:$0xff] %v600_v54  ;;  %603 = vst [vmem:[%s7985_s12 + $0x1b8] sm:$0xff] %v602_v55  ;;  %v606_v57 = vld [vmem:[%s7980_s30 + $0x388] sm:$0xff] }
  0x2c   : > { %605 = vst [vmem:[%s7985_s12 + $0x1c0] sm:$0xff] %v604_v56  ;;  %v608_v58 = vld [vmem:[%s7980_s30 + $0x3a0] sm:$0xff]  ;;  %v610_v59 = vld [vmem:[%s7980_s30 + $0x3a8] sm:$0xff]  ;;  %607 = vst [vmem:[%s7985_s12 + $0x1c8] sm:$0xff] %v606_v57 }
  0x2d   : > { %609 = vst [vmem:[%s7985_s12 + $0x1d0] sm:$0xff] %v608_v58  ;;  %611 = vst [vmem:[%s7985_s12 + $0x1d8] sm:$0xff] %v610_v59  ;;  %v612_v60 = vld [vmem:[%s7980_s30 + $0x3c0] sm:$0xff]  ;;  %v614_v61 = vld [vmem:[%s7980_s30 + $0x3c8] sm:$0xff] }
  0x2e   : > { %v616_v62 = vld [vmem:[%s7980_s30 + $0x3e0] sm:$0xff]  ;;  %613 = vst [vmem:[%s7985_s12 + $0x1e0] sm:$0xff] %v612_v60  ;;  %615 = vst [vmem:[%s7985_s12 + $0x1e8] sm:$0xff] %v614_v61  ;;  %v618_v63 = vld [vmem:[%s7980_s30 + $0x3e8] sm:$0xff] }
  0x2f   : > { %617 = vst [vmem:[%s7985_s12 + $0x1f0] sm:$0xff] %v616_v62  ;;  %619 = vst [vmem:[%s7985_s12 + $0x1f8] sm:$0xff] %v618_v63 }
  0x30 PF: > { %p6676_p5 = scmp.ge.s32.totalorder %s7883_s19, 1  ;;  %p624_p6 = scmp.lt.s32.totalorder %s7883_s19, 3 }
  0x32   : > { %p625_p7 = pnand %p6676_p5, %p624_p6 }
  0x34   : > { %628 = sbr.rel (%p625_p7) target bundleno = 1969 (0x7b1), region = 98 }
  0x39   : > { %v6759_v0 = vld [vmem:[%s12006_s1 + $0x178] sm:$0xff]  ;;  %v6758_v2 = vld [vmem:[%s12006_s1 + $0x170] sm:$0xff]  ;;  %v6757_v4 = vld [vmem:[%s12006_s1 + $0x168] sm:$0xff]  ;;  %s631_s16 = sand.u32 1, %s7875_s17   ;;  %vm839_vm0 = vcmask 785408   ;;  %v12017_v50 = vmov 0.0  }
  0x3a   : > { %v756_v1 = vld [vmem:[%s12006_s1 + $0xb8] sm:$0xff]  ;;  %1016 = vmatprep.subr.mxu0 %v6759_v0  ;;  %v755_v3 = vld [vmem:[%s12006_s1 + $0xb0] sm:$0xff]  ;;  %v754_v5 = vld [vmem:[%s12006_s1 + $0xa8] sm:$0xff]  ;;  %s6677_s15 = sshll.u32 %s631_s16, 9  ;;  %1072 = vmatprep.mubr.f32.mxu0 %v12017_v50  ;;  %vm6525_vm1 = vcmask 1043456   ;;  %vm6416_vm2 = vcmask 982016  }
  0x3b   : > { %1585 = vmatprep.subr.mxu1 %v756_v1  ;;  %1017 = vmatpush1.msra.mxu0 %v6758_v2  ;;  %v6756_v6 = vld [vmem:[%s12006_s1 + $0x160] sm:$0xff]  ;;  %v6755_v8 = vld [vmem:[%s12006_s1 + $0x158] sm:$0xff]  ;;  %v6754_v10 = vld [vmem:[%s12006_s1 + $0x150] sm:$0xff]  ;;  %s8259_s26 = scalar_lea.vmem [#allocation2], %s6677_s15  ;;  %vm6518_vm3 = vcmask 687104   ;;  %s6678_s30 = sshll.u32 %s6669_s20, 1 }
  0x3c   : > { %1586 = vmatpush1.msra.mxu1 %v755_v3  ;;  %v753_v7 = vld [vmem:[%s12006_s1 + $0xa0] sm:$0xff]  ;;  %1018 = vmatprep.subr.mxu0 %v6757_v4  ;;  %v752_v9 = vld [vmem:[%s12006_s1 + $0x98] sm:$0xff]  ;;  %v751_v11 = vld [vmem:[%s12006_s1 + $0x90] sm:$0xff]  ;;  %p672_p8 = scmp.lt.s32.totalorder %s6678_s30, 3  ;;  %vm6604_vm4 = vcmask 80896  }
  0x3d   : > { %1587 = vmatprep.subr.mxu1 %v754_v5  ;;  %1019 = vmatpush1.msra.mxu0 %v6756_v6  ;;  %v6753_v12 = vld [vmem:[%s12006_s1 + $0x148] sm:$0xff]  ;;  %v6752_v14 = vld [vmem:[%s12006_s1 + $0x140] sm:$0xff]  ;;  %v6751_v16 = vld [vmem:[%s12006_s1 + $0x138] sm:$0xff] }
  0x3e   : > { %1588 = vmatpush1.msra.mxu1 %v753_v7  ;;  %v750_v13 = vld [vmem:[%s12006_s1 + $0x88] sm:$0xff]  ;;  %1020 = vmatprep.subr.mxu0 %v6755_v8  ;;  %v749_v15 = vld [vmem:[%s12006_s1 + $0x80] sm:$0xff]  ;;  %v748_v17 = vld [vmem:[%s12006_s1 + $0x78] sm:$0xff]  ;;  %s12576_s30 = smov (!%p672_p8, %s6678_s30), 3 }
  0x3f   : > { %1589 = vmatprep.subr.mxu1 %v752_v9  ;;  %1021 = vmatpush1.msra.mxu0 %v6754_v10  ;;  %v6750_v18 = vld [vmem:[%s12006_s1 + $0x130] sm:$0xff]  ;;  %v6749_v20 = vld [vmem:[%s12006_s1 + $0x128] sm:$0xff]  ;;  %v6748_v22 = vld [vmem:[%s12006_s1 + $0x120] sm:$0xff]  ;;  %s6679_s16 = sshll.u32 %s12576_s30, 3 }
  0x40   : > { %1590 = vmatpush1.msra.mxu1 %v751_v11  ;;  %1022 = vmatprep.subr.mxu0 %v6753_v12  ;;  %v747_v19 = vld [vmem:[%s12006_s1 + $0x70] sm:$0xff]  ;;  %v746_v21 = vld [vmem:[%s12006_s1 + $0x68] sm:$0xff]  ;;  %v745_v23 = vld [vmem:[%s12006_s1 + $0x60] sm:$0xff]  ;;  %s675_s22 = scalar_lea.vmem %s12016_s11, %s6679_s16 }
  0x41   : > { %1591 = vmatprep.subr.mxu1 %v750_v13  ;;  %1023 = vmatpush1.msra.mxu0 %v6752_v14  ;;  %v6747_v24 = vld [vmem:[%s12006_s1 + $0x118] sm:$0xff]  ;;  %v6746_v26 = vld [vmem:[%s12006_s1 + $0x110] sm:$0xff]  ;;  %v6745_v28 = vld [vmem:[%s12006_s1 + $0x108] sm:$0xff] }
  0x42   : > { %1592 = vmatpush1.msra.mxu1 %v749_v15  ;;  %1024 = vmatprep.subr.mxu0 %v6751_v16  ;;  %v744_v25 = vld [vmem:[%s12006_s1 + $0x58] sm:$0xff]  ;;  %v743_v27 = vld [vmem:[%s12006_s1 + $0x50] sm:$0xff]  ;;  %v742_v29 = vld [vmem:[%s12006_s1 + $0x48] sm:$0xff] }
  0x43   : > { %1593 = vmatprep.subr.mxu1 %v748_v17  ;;  %1025 = vmatpush1.msra.mxu0 %v6750_v18  ;;  %v6744_v30 = vld [vmem:[%s12006_s1 + $0x100] sm:$0xff]  ;;  %v6743_v32 = vld [vmem:[%s12006_s1 + $0xf8] sm:$0xff]  ;;  %v6742_v34 = vld [vmem:[%s12006_s1 + $0xf0] sm:$0xff] }
  0x44   : > { %1594 = vmatpush1.msra.mxu1 %v747_v19  ;;  %1026 = vmatprep.subr.mxu0 %v6749_v20  ;;  %v741_v31 = vld [vmem:[%s12006_s1 + $0x40] sm:$0xff]  ;;  %v740_v33 = vld [vmem:[%s12006_s1 + $0x38] sm:$0xff]  ;;  %v739_v35 = vld [vmem:[%s12006_s1 + $0x30] sm:$0xff] }
  0x45   : > { %1595 = vmatprep.subr.mxu1 %v746_v21  ;;  %1027 = vmatpush1.msra.mxu0 %v6748_v22  ;;  %v6741_v36 = vld [vmem:[%s12006_s1 + $0xe8] sm:$0xff]  ;;  %v6740_v38 = vld [vmem:[%s12006_s1 + $0xe0] sm:$0xff]  ;;  %v6739_v40 = vld [vmem:[%s12006_s1 + $0xd8] sm:$0xff] }
  0x46   : > { %1596 = vmatpush1.msra.mxu1 %v745_v23  ;;  %1028 = vmatprep.subr.mxu0 %v6747_v24  ;;  %v738_v37 = vld [vmem:[%s12006_s1 + $0x28] sm:$0xff]  ;;  %v737_v39 = vld [vmem:[%s12006_s1 + $0x20] sm:$0xff]  ;;  %v736_v41 = vld [vmem:[%s12006_s1 + $0x18] sm:$0xff] }
  0x47   : > { %1597 = vmatprep.subr.mxu1 %v744_v25  ;;  %1029 = vmatpush1.msra.mxu0 %v6746_v26  ;;  %v6738_v42 = vld [vmem:[%s12006_s1 + $0xd0] sm:$0xff]  ;;  %v6737_v44 = vld [vmem:[%s12006_s1 + $0xc8] sm:$0xff]  ;;  %v6736_v46 = vld [vmem:[%s12006_s1 + $0xc0] sm:$0xff] }
  0x48   : > { %1598 = vmatpush1.msra.mxu1 %v743_v27  ;;  %1030 = vmatprep.subr.mxu0 %v6745_v28  ;;  %v735_v43 = vld [vmem:[%s12006_s1 + $0x10] sm:$0xff]  ;;  %v734_v45 = vld [vmem:[%s12006_s1 + $0x8] sm:$0xff]  ;;  %v733_v47 = vld [vmem:[%s12006_s1] sm:$0xff] }
  0x49   : > { %1599 = vmatprep.subr.mxu1 %v742_v29  ;;  %1031 = vmatpush1.msra.mxu0 %v6744_v30  ;;  %v6680_v48 = vld [vmem:[%s8259_s26 + $0x10] sm:$0xff]  ;;  %v677_v49 = vld [vmem:[%s8259_s26] sm:$0xff]  ;;  %v6951_v51 = vld [vmem:[%s12006_s1 + $0x238] sm:$0xff] }
  0x4a   : > { %1600 = vmatpush1.msra.mxu1 %v741_v31  ;;  %1032 = vmatprep.subr.mxu0 %v6743_v32  ;;  %v6950_v52 = vld [vmem:[%s12006_s1 + $0x230] sm:$0xff]  ;;  %v6949_v53 = vld [vmem:[%s12006_s1 + $0x228] sm:$0xff]  ;;  %v6681_v54 = vld [vmem:[%s8259_s26 + $0x18] sm:$0xff] }
  0x4b   : > { %1601 = vmatprep.subr.mxu1 %v740_v33  ;;  %1033 = vmatpush1.msra.mxu0 %v6742_v34  ;;  %v678_v55 = vld [vmem:[%s8259_s26 + $0x8] sm:$0xff]  ;;  %v6948_v56 = vld [vmem:[%s12006_s1 + $0x220] sm:$0xff]  ;;  %v6947_v57 = vld [vmem:[%s12006_s1 + $0x218] sm:$0xff] }
  0x4c   : > { %1602 = vmatpush1.msra.mxu1 %v739_v35  ;;  %1034 = vmatprep.subr.mxu0 %v6741_v36  ;;  %v8291_v58 = vld [vmem:[%s8259_s26 + $0x20] sm:$0xff]  ;;  %v6946_v59 = vld [vmem:[%s12006_s1 + $0x210] sm:$0xff]  ;;  %v6945_v60 = vld [vmem:[%s12006_s1 + $0x208] sm:$0xff] }
  0x4d   : > { %1603 = vmatprep.subr.mxu1 %v738_v37  ;;  %1035 = vmatpush1.msra.mxu0 %v6740_v38  ;;  %v8305_v61 = vld [vmem:[%s8259_s26 + $0x28] sm:$0xff]  ;;  %v6944_v62 = vld [vmem:[%s12006_s1 + $0x200] sm:$0xff]  ;;  %v6943_v63 = vld [vmem:[%s12006_s1 + $0x1f8] sm:$0xff] }
  0x4e   : > { %1604 = vmatpush1.msra.mxu1 %v737_v39  ;;  %1036 = vmatprep.subr.mxu0 %v6739_v40  ;;  %v8319_v0 = vld [vmem:[%s8259_s26 + $0x30] sm:$0xff]  ;;  %v6941_v2 = vld [vmem:[%s12006_s1 + $0x1e8] sm:$0xff]  ;;  %v8334_v3 = vld [vmem:[%s8259_s26 + $0x38] sm:$0xff] }
  0x4f   : > { %1605 = vmatprep.subr.mxu1 %v736_v41  ;;  %1037 = vmatpush1.msra.mxu0 %v6738_v42  ;;  %v6942_v1 = vld [vmem:[%s12006_s1 + $0x1f0] sm:$0xff]  ;;  %v6940_v4 = vld [vmem:[%s12006_s1 + $0x1e0] sm:$0xff]  ;;  %v6939_v5 = vld [vmem:[%s12006_s1 + $0x1d8] sm:$0xff] }
  0x50   : > { %1606 = vmatpush1.msra.mxu1 %v735_v43  ;;  %1038 = vmatprep.subr.mxu0 %v6737_v44  ;;  %v8349_v6 = vld [vmem:[%s8259_s26 + $0x40] sm:$0xff]  ;;  %v6938_v7 = vld [vmem:[%s12006_s1 + $0x1d0] sm:$0xff]  ;;  %v6937_v8 = vld [vmem:[%s12006_s1 + $0x1c8] sm:$0xff] }
  0x51   : > { %1607 = vmatprep.subr.mxu1 %v734_v45  ;;  %1039 = vmatpush1.msra.mxu0 %v6736_v46  ;;  %v8364_v9 = vld [vmem:[%s8259_s26 + $0x48] sm:$0xff]  ;;  %v6936_v10 = vld [vmem:[%s12006_s1 + $0x1c0] sm:$0xff]  ;;  %v6935_v11 = vld [vmem:[%s12006_s1 + $0x1b8] sm:$0xff] }
  0x52   : > { %1608 = vmatpush1.msra.mxu1 %v733_v47  ;;  %1641 = vmatprep.mubr.f32.mxu1 %v12017_v50  ;;  %v8379_v12 = vld [vmem:[%s8259_s26 + $0x50] sm:$0xff]  ;;  %v8391_v14 = vld [vmem:[%s8259_s26 + $0x58] sm:$0xff]  ;;  %v8400_v15 = vld [vmem:[%s8259_s26 + $0x60] sm:$0xff] }
  0x53   : > { %6760 = vmatmul.mubr.msk.f32.vlgmr.msra.gmra.mxu0 %vm839_vm0, %v6680_v48  ;;  %6816 = vmatmul.mubr.msk.f32.vlgmr.msra.gmra.mxu1 %vm839_vm0, %v677_v49  ;;  %v6934_v13 = vld [vmem:[%s12006_s1 + $0x1b0] sm:$0xff]  ;;  %v6933_v16 = vld [vmem:[%s12006_s1 + $0x1a8] sm:$0xff]  ;;  %v6932_v17 = vld [vmem:[%s12006_s1 + $0x1a0] sm:$0xff] }
  0x54   : > { %2236 = vmatprep.subr.mxu0 %v6951_v51  ;;  %1078 = vmatprep.mubr.f32.mxu0 %v12017_v50  ;;  %v8415_v18 = vld [vmem:[%s8259_s26 + $0x68] sm:$0xff]  ;;  %v8424_v19 = vld [vmem:[%s8259_s26 + $0x70] sm:$0xff]  ;;  %v6693_v20 = vld [vmem:[%s8259_s26 + $0x78] sm:$0xff] }
  0x55   : > { %2237 = vmatpush1.msra.mxu0 %v6950_v52  ;;  %1647 = vmatprep.mubr.f32.mxu1 %v12017_v50  ;;  %v6694_v21 = vld [vmem:[%s8259_s26 + $0x80] sm:$0xff]  ;;  %v6695_v22 = vld [vmem:[%s8259_s26 + $0x88] sm:$0xff]  ;;  %v6931_v23 = vld [vmem:[%s12006_s1 + $0x198] sm:$0xff] }
  0x56   : > { %2238 = vmatprep.subr.mxu0 %v6949_v53  ;;  %v6930_v24 = vld [vmem:[%s12006_s1 + $0x190] sm:$0xff]  ;;  %v6697_v26 = vld [vmem:[%s8259_s26 + $0x98] sm:$0xff]  ;;  %v6698_v27 = vld [vmem:[%s8259_s26 + $0xa0] sm:$0xff] }
  0x57   : > { %6761 = vmatmul.mubr.msk.f32.gmra.mxu0 %vm839_vm0, %v6681_v54  ;;  %6817 = vmatmul.mubr.msk.f32.gmra.mxu1 %vm839_vm0, %v678_v55  ;;  %v6696_v25 = vld [vmem:[%s8259_s26 + $0x90] sm:$0xff]  ;;  %v6699_v28 = vld [vmem:[%s8259_s26 + $0xa8] sm:$0xff]  ;;  %v7087_v29 = vld [vmem:[%s12006_s1 + $0x2f8] sm:$0xff] }
  0x58   : > { %1084 = vmatprep.mubr.f32.mxu0 %v12017_v50  ;;  %1653 = vmatprep.mubr.f32.mxu1 %v12017_v50  ;;  %v7086_v30 = vld [vmem:[%s12006_s1 + $0x2f0] sm:$0xff]  ;;  %v7085_v31 = vld [vmem:[%s12006_s1 + $0x2e8] sm:$0xff]  ;;  %v7084_v32 = vld [vmem:[%s12006_s1 + $0x2e0] sm:$0xff] }
  0x59   : > { %2239 = vmatpush1.msra.mxu0 %v6948_v56  ;;  %2999 = vmatprep.subr.mxu1 %v7087_v29  ;;  %v6700_v33 = vld [vmem:[%s8259_s26 + $0xb0] sm:$0xff]  ;;  %v6929_v34 = vld [vmem:[%s12006_s1 + $0x188] sm:$0xff]  ;;  %v7083_v35 = vld [vmem:[%s12006_s1 + $0x2d8] sm:$0xff] }
  0x5a   : > { %2240 = vmatprep.subr.mxu0 %v6947_v57  ;;  %3000 = vmatpush1.msra.mxu1 %v7086_v30  ;;  %v6928_v36 = vld [vmem:[%s12006_s1 + $0x180] sm:$0xff]  ;;  %v7082_v37 = vld [vmem:[%s12006_s1 + $0x2d0] sm:$0xff]  ;;  %v6701_v38 = vld [vmem:[%s8259_s26 + $0xb8] sm:$0xff] }
  0x5b   : > { %6762 = vmatmul.mubr.msk.f32.gmra.mxu0 %vm839_vm0, %v8291_v58  ;;  %6818 = vmatmul.mubr.msk.f32.gmra.mxu1 %vm839_vm0, %v6680_v48  ;;  %v7081_v39 = vld [vmem:[%s12006_s1 + $0x2c8] sm:$0xff]  ;;  %v7080_v40 = vld [vmem:[%s12006_s1 + $0x2c0] sm:$0xff]  ;;  %v7079_v42 = vld [vmem:[%s12006_s1 + $0x2b8] sm:$0xff] }
  0x5c   : > { %1090 = vmatprep.mubr.f32.mxu0 %v12017_v50  ;;  %1659 = vmatprep.mubr.f32.mxu1 %v12017_v50  ;;  %v6702_v41 = vld [vmem:[%s8259_s26 + $0xc0] sm:$0xff]  ;;  %v7078_v43 = vld [vmem:[%s12006_s1 + $0x2b0] sm:$0xff]  ;;  %v6703_v44 = vld [vmem:[%s8259_s26 + $0xc8] sm:$0xff] }
  0x5d   : > { %2241 = vmatpush1.msra.mxu0 %v6946_v59  ;;  %3001 = vmatprep.subr.mxu1 %v7085_v31  ;;  %v7077_v45 = vld [vmem:[%s12006_s1 + $0x2a8] sm:$0xff]  ;;  %v7076_v46 = vld [vmem:[%s12006_s1 + $0x2a0] sm:$0xff]  ;;  %v6704_v47 = vld [vmem:[%s8259_s26 + $0xd0] sm:$0xff] }
  0x5e   : > { %2242 = vmatprep.subr.mxu0 %v6945_v60  ;;  %3002 = vmatpush1.msra.mxu1 %v7084_v32  ;;  %v7075_v48 = vld [vmem:[%s12006_s1 + $0x298] sm:$0xff]  ;;  %v7074_v49 = vld [vmem:[%s12006_s1 + $0x290] sm:$0xff]  ;;  %v7073_v53 = vld [vmem:[%s12006_s1 + $0x288] sm:$0xff] }
  0x5f   : > { %6763 = vmatmul.mubr.msk.f32.gmra.mxu0 %vm839_vm0, %v8305_v61  ;;  %6819 = vmatmul.mubr.msk.f32.gmra.mxu1 %vm839_vm0, %v6681_v54  ;;  %v6705_v51 = vld [vmem:[%s8259_s26 + $0xd8] sm:$0xff]  ;;  %v7072_v54 = vld [vmem:[%s12006_s1 + $0x280] sm:$0xff]  ;;  %v7070_v57 = vld [vmem:[%s12006_s1 + $0x270] sm:$0xff] }
  0x60   : > { %1096 = vmatprep.mubr.f32.mxu0 %v12017_v50  ;;  %1665 = vmatprep.mubr.f32.mxu1 %v12017_v50  ;;  %v7223_v52 = vld [vmem:[%s12006_s1 + $0x3b8] sm:$0xff]  ;;  %v6706_v55 = vld [vmem:[%s8259_s26 + $0xe0] sm:$0xff]  ;;  %v6707_v59 = vld [vmem:[%s8259_s26 + $0xe8] sm:$0xff] }
  0x61   : > { %2243 = vmatpush1.msra.mxu0 %v6944_v62  ;;  %3003 = vmatprep.subr.mxu1 %v7083_v35  ;;  %v7071_v56 = vld [vmem:[%s12006_s1 + $0x278] sm:$0xff]  ;;  %v7069_v60 = vld [vmem:[%s12006_s1 + $0x268] sm:$0xff]  ;;  %v7068_v62 = vld [vmem:[%s12006_s1 + $0x260] sm:$0xff] }
  0x62   : > { %2244 = vmatprep.subr.mxu0 %v6943_v63  ;;  %3004 = vmatpush1.msra.mxu1 %v7082_v37  ;;  %v6708_v63 = vld [vmem:[%s8259_s26 + $0xf0] sm:$0xff]  ;;  %v6725_v29 = vld [vmem:[%s8259_s26 + $0x178] sm:$0xff]  ;;  %v6726_v30 = vld [vmem:[%s8259_s26 + $0x180] sm:$0xff] }
  0x63   : > { %6764 = vmatmul.mubr.msk.f32.gmra.mxu0 %vm839_vm0, %v8319_v0  ;;  %6820 = vmatmul.mubr.msk.f32.gmra.mxu1 %vm839_vm0, %v8291_v58  ;;  %v6727_v31 = vld [vmem:[%s8259_s26 + $0x188] sm:$0xff]  ;;  %v6728_v32 = vld [vmem:[%s8259_s26 + $0x190] sm:$0xff] }
  0x64   : > { %1102 = vmatprep.mubr.f32.mxu0 %v12017_v50  ;;  %1671 = vmatprep.mubr.f32.mxu1 %v12017_v50 }
  0x65   : > { %2245 = vmatpush1.msra.mxu0 %v6942_v1  ;;  %3005 = vmatprep.subr.mxu1 %v7081_v39  ;;  %v7067_v1 = vld [vmem:[%s12006_s1 + $0x258] sm:$0xff] }
  0x66   : > { %2246 = vmatprep.subr.mxu0 %v6941_v2  ;;  %3006 = vmatpush1.msra.mxu1 %v7080_v40  ;;  %v7066_v2 = vld [vmem:[%s12006_s1 + $0x250] sm:$0xff] }
  0x67   : > { %6765 = vmatmul.mubr.msk.f32.gmra.mxu0 %vm839_vm0, %v8334_v3  ;;  %6821 = vmatmul.mubr.msk.f32.gmra.mxu1 %vm839_vm0, %v8305_v61 }
  0x68   : > { %1108 = vmatprep.mubr.f32.mxu0 %v12017_v50  ;;  %1677 = vmatprep.mubr.f32.mxu1 %v12017_v50 }
  0x69   : > { %2247 = vmatpush1.msra.mxu0 %v6940_v4  ;;  %3007 = vmatprep.subr.mxu1 %v7079_v42  ;;  %v6709_v4 = vld [vmem:[%s8259_s26 + $0xf8] sm:$0xff] }
  0x6a   : > { %2248 = vmatprep.subr.mxu0 %v6939_v5  ;;  %3008 = vmatpush1.msra.mxu1 %v7078_v43  ;;  %v7065_v5 = vld [vmem:[%s12006_s1 + $0x248] sm:$0xff]  ;;  %v6730_v43 = vld [vmem:[%s8259_s26 + $0x1a0] sm:$0xff] }
  0x6b   : > { %6766 = vmatmul.mubr.msk.f32.gmra.mxu0 %vm839_vm0, %v8349_v6  ;;  %6822 = vmatmul.mubr.msk.f32.gmra.mxu1 %vm839_vm0, %v8319_v0 }
  0x6c   : > { %1114 = vmatprep.mubr.f32.mxu0 %v12017_v50  ;;  %1683 = vmatprep.mubr.f32.mxu1 %v12017_v50 }
  0x6d   : > { %2249 = vmatpush1.msra.mxu0 %v6938_v7  ;;  %3009 = vmatprep.subr.mxu1 %v7077_v45  ;;  %v7064_v7 = vld [vmem:[%s12006_s1 + $0x240] sm:$0xff] }
  0x6e   : > { %2250 = vmatprep.subr.mxu0 %v6937_v8  ;;  %3010 = vmatpush1.msra.mxu1 %v7076_v46  ;;  %v6710_v8 = vld [vmem:[%s8259_s26 + $0x100] sm:$0xff] }
  0x6f   : > { %6767 = vmatmul.mubr.msk.f32.gmra.mxu0 %vm839_vm0, %v8364_v9  ;;  %6823 = vmatmul.mubr.msk.f32.gmra.mxu1 %vm839_vm0, %v8334_v3 }
  0x70   : > { %1120 = vmatprep.mubr.f32.mxu0 %v12017_v50  ;;  %1689 = vmatprep.mubr.f32.mxu1 %v12017_v50 }
  0x71   : > { %2251 = vmatpush1.msra.mxu0 %v6936_v10  ;;  %3011 = vmatprep.subr.mxu1 %v7075_v48  ;;  %v6711_v10 = vld [vmem:[%s8259_s26 + $0x108] sm:$0xff] }
  0x72   : > { %2252 = vmatprep.subr.mxu0 %v6935_v11  ;;  %3012 = vmatpush1.msra.mxu1 %v7074_v49  ;;  %v6712_v11 = vld [vmem:[%s8259_s26 + $0x110] sm:$0xff] }
  0x73   : > { %6768 = vmatmul.mubr.msk.f32.gmra.mxu0 %vm839_vm0, %v8379_v12  ;;  %6824 = vmatmul.mubr.msk.f32.gmra.mxu1 %vm839_vm0, %v8349_v6 }
  0x74   : > { %1126 = vmatprep.mubr.f32.mxu0 %v12017_v50  ;;  %1695 = vmatprep.mubr.f32.mxu1 %v12017_v50 }
  0x75   : > { %2253 = vmatpush1.msra.mxu0 %v6934_v13  ;;  %3013 = vmatprep.subr.mxu1 %v7073_v53  ;;  %v6713_v13 = vld [vmem:[%s8259_s26 + $0x118] sm:$0xff] }
  0x76   : > { %2254 = vmatprep.subr.mxu0 %v6933_v16  ;;  %3014 = vmatpush1.msra.mxu1 %v7072_v54  ;;  %v6714_v16 = vld [vmem:[%s8259_s26 + $0x120] sm:$0xff] }
  0x77   : > { %6769 = vmatmul.mubr.msk.f32.gmra.mxu0 %vm839_vm0, %v8391_v14  ;;  %6825 = vmatmul.mubr.msk.f32.gmra.mxu1 %vm839_vm0, %v8364_v9 }
  0x78   : > { %1132 = vmatprep.mubr.f32.mxu0 %v12017_v50  ;;  %1701 = vmatprep.mubr.f32.mxu1 %v12017_v50 }
  0x79   : > { %2255 = vmatpush1.msra.mxu0 %v6932_v17  ;;  %3015 = vmatprep.subr.mxu1 %v7071_v56  ;;  %v6715_v17 = vld [vmem:[%s8259_s26 + $0x128] sm:$0xff] }
  0x7a   : > { %2256 = vmatprep.subr.mxu0 %v6931_v23  ;;  %3016 = vmatpush1.msra.mxu1 %v7070_v57  ;;  %v6719_v23 = vld [vmem:[%s8259_s26 + $0x148] sm:$0xff] }
  0x7b   : > { %6770 = vmatmul.mubr.msk.f32.gmra.mxu0 %vm839_vm0, %v8400_v15  ;;  %6826 = vmatmul.mubr.msk.f32.gmra.mxu1 %vm839_vm0, %v8379_v12 }
  0x7c   : > { %1138 = vmatprep.mubr.f32.mxu0 %v12017_v50  ;;  %1707 = vmatprep.mubr.f32.mxu1 %v12017_v50 }
  0x7d   : > { %2257 = vmatpush1.msra.mxu0 %v6930_v24  ;;  %3017 = vmatprep.subr.mxu1 %v7069_v60  ;;  %v6720_v24 = vld [vmem:[%s8259_s26 + $0x150] sm:$0xff] }
  0x7e   : > { %2258 = vmatprep.subr.mxu0 %v6929_v34  ;;  %3018 = vmatpush1.msra.mxu1 %v7068_v62 }
  0x7f   : > { %6771 = vmatmul.mubr.msk.f32.gmra.mxu0 %vm839_vm0, %v8415_v18  ;;  %6827 = vmatmul.mubr.msk.f32.gmra.mxu1 %vm839_vm0, %v8391_v14 }
  0x80   : > { %1144 = vmatprep.mubr.f32.mxu0 %v12017_v50  ;;  %1713 = vmatprep.mubr.f32.mxu1 %v12017_v50 }
  0x81   : > { %2259 = vmatpush1.msra.mxu0 %v6928_v36  ;;  %3019 = vmatprep.subr.mxu1 %v7067_v1  ;;  %v6729_v36 = vld [vmem:[%s8259_s26 + $0x198] sm:$0xff] }
  0x82   : > { %3762 = vmatprep.subr.mxu0 %v7223_v52  ;;  %3020 = vmatpush1.msra.mxu1 %v7066_v2 }
  0x83   : > { %6772 = vmatmul.mubr.msk.f32.gmra.mxu0 %vm839_vm0, %v8424_v19  ;;  %6828 = vmatmul.mubr.msk.f32.gmra.mxu1 %vm839_vm0, %v8400_v15 }
  0x84   : > { %1150 = vmatprep.mubr.f32.mxu0 %v12017_v50  ;;  %1719 = vmatprep.mubr.f32.mxu1 %v12017_v50 }
  0x85   : > { %3021 = vmatprep.subr.mxu1 %v7065_v5  ;;  %v6733_v5 = vld [vmem:[%s8259_s26 + $0x1b8] sm:$0xff] }
  0x86   : > { %3022 = vmatpush1.msra.mxu1 %v7064_v7 }
  0x87   : > { %6773 = vmatmul.mubr.msk.f32.gmra.mxu0 %vm839_vm0, %v6693_v20  ;;  %6829 = vmatmul.mubr.msk.f32.gmra.mxu1 %vm839_vm0, %v8415_v18 }
  0x88   : > { %1156 = vmatprep.mubr.f32.mxu0 %v12017_v50  ;;  %1725 = vmatprep.mubr.f32.mxu1 %v12017_v50 }
  0x8b   : > { %6774 = vmatmul.mubr.msk.f32.gmra.mxu0 %vm839_vm0, %v6694_v21  ;;  %6830 = vmatmul.mubr.msk.f32.gmra.mxu1 %vm839_vm0, %v8424_v19 }
  0x8c   : > { %1162 = vmatprep.mubr.f32.mxu0 %v12017_v50  ;;  %1731 = vmatprep.mubr.f32.mxu1 %v12017_v50 }
  0x8f   : > { %6775 = vmatmul.mubr.msk.f32.gmra.mxu0 %vm839_vm0, %v6695_v22  ;;  %6831 = vmatmul.mubr.msk.f32.gmra.mxu1 %vm839_vm0, %v6693_v20  ;;  %v6716_v20 = vld [vmem:[%s8259_s26 + $0x130] sm:$0xff] }
  0x90   : > { %1168 = vmatprep.mubr.f32.mxu0 %v12017_v50  ;;  %1737 = vmatprep.mubr.f32.mxu1 %v12017_v50 }
  0x93   : > { %6776 = vmatmul.mubr.msk.f32.gmra.mxu0 %vm839_vm0, %v6696_v25  ;;  %6832 = vmatmul.mubr.msk.f32.gmra.mxu1 %vm839_vm0, %v6694_v21  ;;  %v6717_v21 = vld [vmem:[%s8259_s26 + $0x138] sm:$0xff] }
  0x94   : > { %1174 = vmatprep.mubr.f32.mxu0 %v12017_v50  ;;  %1743 = vmatprep.mubr.f32.mxu1 %v12017_v50 }
  0x97   : > { %6777 = vmatmul.mubr.msk.f32.gmra.mxu0 %vm839_vm0, %v6697_v26  ;;  %6833 = vmatmul.mubr.msk.f32.gmra.mxu1 %vm839_vm0, %v6695_v22  ;;  %v6718_v22 = vld [vmem:[%s8259_s26 + $0x140] sm:$0xff] }
  0x98   : > { %1180 = vmatprep.mubr.f32.mxu0 %v12017_v50  ;;  %1749 = vmatprep.mubr.f32.mxu1 %v12017_v50 }
  0x9b   : > { %6778 = vmatmul.mubr.msk.f32.gmra.mxu0 %vm839_vm0, %v6698_v27  ;;  %6834 = vmatmul.mubr.msk.f32.gmra.mxu1 %vm839_vm0, %v6696_v25  ;;  %v6721_v25 = vld [vmem:[%s8259_s26 + $0x158] sm:$0xff] }
  0x9c   : > { %1186 = vmatprep.mubr.f32.mxu0 %v12017_v50  ;;  %1755 = vmatprep.mubr.f32.mxu1 %v12017_v50 }
  0x9f   : > { %6779 = vmatmul.mubr.msk.f32.gmra.mxu0 %vm839_vm0, %v6699_v28  ;;  %6835 = vmatmul.mubr.msk.f32.gmra.mxu1 %vm839_vm0, %v6697_v26  ;;  %v6722_v26 = vld [vmem:[%s8259_s26 + $0x160] sm:$0xff] }
  0xa0   : > { %1192 = vmatprep.mubr.f32.mxu0 %v12017_v50  ;;  %1761 = vmatprep.mubr.f32.mxu1 %v12017_v50 }
  0xa3   : > { %6780 = vmatmul.mubr.msk.f32.gmra.mxu0 %vm839_vm0, %v6700_v33  ;;  %6836 = vmatmul.mubr.msk.f32.gmra.mxu1 %vm839_vm0, %v6698_v27  ;;  %v6723_v27 = vld [vmem:[%s8259_s26 + $0x168] sm:$0xff] }
  0xa4   : > { %1198 = vmatprep.mubr.f32.mxu0 %v12017_v50  ;;  %1767 = vmatprep.mubr.f32.mxu1 %v12017_v50 }
  0xa7   : > { %6781 = vmatmul.mubr.msk.f32.gmra.mxu0 %vm839_vm0, %v6701_v38  ;;  %6837 = vmatmul.mubr.msk.f32.gmra.mxu1 %vm839_vm0, %v6699_v28  ;;  %v6724_v28 = vld [vmem:[%s8259_s26 + $0x170] sm:$0xff] }
  0xa8   : > { %1204 = vmatprep.mubr.f32.mxu0 %v12017_v50  ;;  %1773 = vmatprep.mubr.f32.mxu1 %v12017_v50 }
  0xab   : > { %6782 = vmatmul.mubr.msk.f32.gmra.mxu0 %vm839_vm0, %v6702_v41  ;;  %6838 = vmatmul.mubr.msk.f32.gmra.mxu1 %vm839_vm0, %v6700_v33 }
  0xac   : > { %1210 = vmatprep.mubr.f32.mxu0 %v12017_v50  ;;  %1779 = vmatprep.mubr.f32.mxu1 %v12017_v50 }
  0xaf   : > { %6783 = vmatmul.mubr.msk.f32.gmra.mxu0 %vm839_vm0, %v6703_v44  ;;  %6839 = vmatmul.mubr.msk.f32.gmra.mxu1 %vm839_vm0, %v6701_v38 }
  0xb0   : > { %1216 = vmatprep.mubr.f32.mxu0 %v12017_v50  ;;  %1785 = vmatprep.mubr.f32.mxu1 %v12017_v50 }
  0xb3   : > { %6784 = vmatmul.mubr.msk.f32.gmra.mxu0 %vm839_vm0, %v6704_v47  ;;  %6840 = vmatmul.mubr.msk.f32.gmra.mxu1 %vm839_vm0, %v6702_v41 }
  0xb4   : > { %1222 = vmatprep.mubr.f32.mxu0 %v12017_v50  ;;  %1791 = vmatprep.mubr.f32.mxu1 %v12017_v50 }
  0xb7   : > { %6785 = vmatmul.mubr.msk.f32.gmra.mxu0 %vm839_vm0, %v6705_v51  ;;  %6841 = vmatmul.mubr.msk.f32.gmra.mxu1 %vm839_vm0, %v6703_v44 }
  0xb8   : > { %1228 = vmatprep.mubr.f32.mxu0 %v12017_v50  ;;  %1797 = vmatprep.mubr.f32.mxu1 %v12017_v50 }
  0xbb   : > { %6786 = vmatmul.mubr.msk.f32.gmra.mxu0 %vm839_vm0, %v6706_v55  ;;  %6842 = vmatmul.mubr.msk.f32.gmra.mxu1 %vm839_vm0, %v6704_v47 }
  0xbc   : > { %1234 = vmatprep.mubr.f32.mxu0 %v12017_v50  ;;  %1803 = vmatprep.mubr.f32.mxu1 %v12017_v50 }
  0xbf   : > { %6787 = vmatmul.mubr.msk.f32.gmra.mxu0 %vm839_vm0, %v6707_v59  ;;  %6843 = vmatmul.mubr.msk.f32.gmra.mxu1 %vm839_vm0, %v6705_v51  ;;  %v6731_v51 = vld [vmem:[%s8259_s26 + $0x1a8] sm:$0xff] }
  0xc0   : > { %1240 = vmatprep.mubr.f32.mxu0 %v12017_v50  ;;  %1809 = vmatprep.mubr.f32.mxu1 %v12017_v50 }
  0xc3   : > { %6788 = vmatmul.mubr.msk.f32.gmra.mxu0 %vm839_vm0, %v6708_v63  ;;  %6844 = vmatmul.mubr.msk.f32.gmra.mxu1 %vm839_vm0, %v6706_v55 }
  0xc4   : > { %1246 = vmatprep.mubr.f32.mxu0 %v12017_v50  ;;  %1815 = vmatprep.mubr.f32.mxu1 %v12017_v50 }
  0xc7   : > { %6789 = vmatmul.mubr.msk.f32.gmra.mxu0 %vm839_vm0, %v6709_v4  ;;  %6845 = vmatmul.mubr.msk.f32.gmra.mxu1 %vm839_vm0, %v6707_v59  ;;  %v6732_v59 = vld [vmem:[%s8259_s26 + $0x1b0] sm:$0xff] }
  0xc8   : > { %1252 = vmatprep.mubr.f32.mxu0 %v12017_v50  ;;  %1821 = vmatprep.mubr.f32.mxu1 %v12017_v50 }
  0xcb   : > { %6790 = vmatmul.mubr.msk.f32.gmra.mxu0 %vm839_vm0, %v6710_v8  ;;  %6846 = vmatmul.mubr.msk.f32.gmra.mxu1 %vm839_vm0, %v6708_v63 }
  0xcc   : > { %1258 = vmatprep.mubr.f32.mxu0 %v12017_v50  ;;  %1827 = vmatprep.mubr.f32.mxu1 %v12017_v50 }
  0xcf   : > { %6791 = vmatmul.mubr.msk.f32.gmra.mxu0 %vm839_vm0, %v6711_v10  ;;  %6847 = vmatmul.mubr.msk.f32.gmra.mxu1 %vm839_vm0, %v6709_v4 }
  0xd0   : > { %1264 = vmatprep.mubr.f32.mxu0 %v12017_v50  ;;  %1833 = vmatprep.mubr.f32.mxu1 %v12017_v50 }
  0xd3   : > { %6792 = vmatmul.mubr.msk.f32.gmra.mxu0 %vm839_vm0, %v6712_v11  ;;  %6848 = vmatmul.mubr.msk.f32.gmra.mxu1 %vm839_vm0, %v6710_v8 }
  0xd4   : > { %1270 = vmatprep.mubr.f32.mxu0 %v12017_v50  ;;  %1839 = vmatprep.mubr.f32.mxu1 %v12017_v50 }
  0xd7   : > { %6793 = vmatmul.mubr.msk.f32.gmra.mxu0 %vm839_vm0, %v6713_v13  ;;  %6849 = vmatmul.mubr.msk.f32.gmra.mxu1 %vm839_vm0, %v6711_v10 }
  0xd8   : > { %1276 = vmatprep.mubr.f32.mxu0 %v12017_v50  ;;  %1845 = vmatprep.mubr.f32.mxu1 %v12017_v50 }
  0xdb   : > { %6794 = vmatmul.mubr.msk.f32.gmra.mxu0 %vm839_vm0, %v6714_v16  ;;  %6850 = vmatmul.mubr.msk.f32.gmra.mxu1 %vm839_vm0, %v6712_v11 }
  0xdc   : > { %1282 = vmatprep.mubr.f32.mxu0 %v12017_v50  ;;  %1851 = vmatprep.mubr.f32.mxu1 %v12017_v50 }
  0xdf   : > { %6795 = vmatmul.mubr.msk.f32.gmra.mxu0 %vm839_vm0, %v6715_v17  ;;  %6851 = vmatmul.mubr.msk.f32.gmra.mxu1 %vm839_vm0, %v6713_v13 }
  0xe0   : > { %1288 = vmatprep.mubr.f32.mxu0 %v12017_v50  ;;  %1857 = vmatprep.mubr.f32.mxu1 %v12017_v50 }
  0xe3   : > { %6796 = vmatmul.mubr.msk.f32.gmra.mxu0 %vm839_vm0, %v6716_v20  ;;  %6852 = vmatmul.mubr.msk.f32.gmra.mxu1 %vm839_vm0, %v6714_v16 }
  0xe4   : > { %1294 = vmatprep.mubr.f32.mxu0 %v12017_v50  ;;  %1863 = vmatprep.mubr.f32.mxu1 %v12017_v50 }
  0xe7   : > { %6797 = vmatmul.mubr.msk.f32.gmra.mxu0 %vm839_vm0, %v6717_v21  ;;  %6853 = vmatmul.mubr.msk.f32.gmra.mxu1 %vm839_vm0, %v6715_v17  ;;  %v6734_v17 = vld [vmem:[%s8259_s26 + $0x1c0] sm:$0xff] }
  0xe8   : > { %1300 = vmatprep.mubr.f32.mxu0 %v12017_v50  ;;  %1869 = vmatprep.mubr.f32.mxu1 %v12017_v50 }
  0xeb   : > { %6798 = vmatmul.mubr.msk.f32.gmra.mxu0 %vm839_vm0, %v6718_v22  ;;  %6854 = vmatmul.mubr.msk.f32.gmra.mxu1 %vm839_vm0, %v6716_v20 }
  0xec   : > { %1306 = vmatprep.mubr.f32.mxu0 %v12017_v50  ;;  %1875 = vmatprep.mubr.f32.mxu1 %v12017_v50 }
  0xef   : > { %6799 = vmatmul.mubr.msk.f32.gmra.mxu0 %vm839_vm0, %v6719_v23  ;;  %6855 = vmatmul.mubr.msk.f32.gmra.mxu1 %vm839_vm0, %v6717_v21 }
  0xf0   : > { %1312 = vmatprep.mubr.f32.mxu0 %v12017_v50  ;;  %1881 = vmatprep.mubr.f32.mxu1 %v12017_v50 }
  0xf3   : > { %6800 = vmatmul.mubr.msk.f32.gmra.mxu0 %vm839_vm0, %v6720_v24  ;;  %6856 = vmatmul.mubr.msk.f32.gmra.mxu1 %vm839_vm0, %v6718_v22 }
  0xf4   : > { %1318 = vmatprep.mubr.f32.mxu0 %v12017_v50  ;;  %1887 = vmatprep.mubr.f32.mxu1 %v12017_v50 }
  0xf7   : > { %6801 = vmatmul.mubr.msk.f32.gmra.mxu0 %vm839_vm0, %v6721_v25  ;;  %6857 = vmatmul.mubr.msk.f32.gmra.mxu1 %vm839_vm0, %v6719_v23 }
  0xf8   : > { %1324 = vmatprep.mubr.f32.mxu0 %v12017_v50  ;;  %1893 = vmatprep.mubr.f32.mxu1 %v12017_v50 }
  0xfb   : > { %6802 = vmatmul.mubr.msk.f32.gmra.mxu0 %vm839_vm0, %v6722_v26  ;;  %6858 = vmatmul.mubr.msk.f32.gmra.mxu1 %vm839_vm0, %v6720_v24 }
  0xfc   : > { %1330 = vmatprep.mubr.f32.mxu0 %v12017_v50  ;;  %1899 = vmatprep.mubr.f32.mxu1 %v12017_v50 }
  0xff   : > { %6803 = vmatmul.mubr.msk.f32.gmra.mxu0 %vm839_vm0, %v6723_v27  ;;  %6859 = vmatmul.mubr.msk.f32.gmra.mxu1 %vm839_vm0, %v6721_v25 }
 0x100   : > { %1336 = vmatprep.mubr.f32.mxu0 %v12017_v50  ;;  %1905 = vmatprep.mubr.f32.mxu1 %v12017_v50 }
 0x103   : > { %6804 = vmatmul.mubr.msk.f32.gmra.mxu0 %vm839_vm0, %v6724_v28  ;;  %6860 = vmatmul.mubr.msk.f32.gmra.mxu1 %vm839_vm0, %v6722_v26  ;;  %v6735_v26 = vld [vmem:[%s8259_s26 + $0x1c8] sm:$0xff] }
 0x104   : > { %1342 = vmatprep.mubr.f32.mxu0 %v12017_v50  ;;  %1911 = vmatprep.mubr.f32.mxu1 %v12017_v50 }
 0x107   : > { %6805 = vmatmul.mubr.msk.f32.gmra.mxu0 %vm839_vm0, %v6725_v29  ;;  %6861 = vmatmul.mubr.msk.f32.gmra.mxu1 %vm839_vm0, %v6723_v27 }
 0x108   : > { %1348 = vmatprep.mubr.f32.mxu0 %v12017_v50  ;;  %1917 = vmatprep.mubr.f32.mxu1 %v12017_v50 }
 0x10b   : > { %6806 = vmatmul.mubr.msk.f32.gmra.mxu0 %vm839_vm0, %v6726_v30  ;;  %6862 = vmatmul.mubr.msk.f32.gmra.mxu1 %vm839_vm0, %v6724_v28 }
 0x10c   : > { %1354 = vmatprep.mubr.f32.mxu0 %v12017_v50  ;;  %1923 = vmatprep.mubr.f32.mxu1 %v12017_v50 }
 0x10f   : > { %6807 = vmatmul.mubr.msk.f32.gmra.mxu0 %vm839_vm0, %v6727_v31  ;;  %6863 = vmatmul.mubr.msk.f32.gmra.mxu1 %vm839_vm0, %v6725_v29 }
 0x110   : > { %1360 = vmatprep.mubr.f32.mxu0 %v12017_v50  ;;  %1929 = vmatprep.mubr.f32.mxu1 %v12017_v50 }
 0x113   : > { %v1074_v33 = vpop.f32.mrf.mxu0  ;;  %6808 = vmatmul.mubr.msk.f32.gmra.mxu0 %vm839_vm0, %v6728_v32  ;;  %v1643_v34 = vpop.f32.mrf.mxu1  ;;  %6864 = vmatmul.mubr.msk.f32.gmra.mxu1 %vm839_vm0, %v6726_v30 }
 0x114   : > { %v8699_v35 = vadd.f32 %v1643_v34, %v1074_v33  ;;  %1366 = vmatprep.mubr.f32.mxu0 %v12017_v50  ;;  %1935 = vmatprep.mubr.f32.mxu1 %v12017_v50 }
 0x115   : > { %v1076_v37 = vpop.f32.mrf.mxu0  ;;  %v1645_v38 = vpop.f32.mrf.mxu1 }
 0x116   : > { %v8704_v39 = vadd.f32 %v1645_v38, %v1076_v37  ;;  %v7221_v38 = vld [vmem:[%s12006_s1 + $0x3a8] sm:$0xff] }
 0x117   : > { %v1080_v40 = vpop.f32.mrf.mxu0  ;;  %6809 = vmatmul.mubr.msk.f32.gmra.mxu0 %vm839_vm0, %v6729_v36  ;;  %v1649_v41 = vpop.f32.mrf.mxu1  ;;  %6865 = vmatmul.mubr.msk.f32.gmra.mxu1 %vm839_vm0, %v6727_v31 }
 0x118   : > { %v8708_v42 = vadd.f32 %v1649_v41, %v1080_v40  ;;  %1372 = vmatprep.mubr.f32.mxu0 %v12017_v50  ;;  %1941 = vmatprep.mubr.f32.mxu1 %v12017_v50 }
 0x119   : > { %v1082_v44 = vpop.f32.mrf.mxu0  ;;  %v1651_v45 = vpop.f32.mrf.mxu1 }
 0x11a   : > { %v8713_v46 = vadd.f32 %v1651_v45, %v1082_v44 }
 0x11b   : > { %v1086_v47 = vpop.f32.mrf.mxu0  ;;  %6810 = vmatmul.mubr.msk.f32.gmra.mxu0 %vm839_vm0, %v6730_v43  ;;  %v1655_v48 = vpop.f32.mrf.mxu1  ;;  %6866 = vmatmul.mubr.msk.f32.gmra.mxu1 %vm839_vm0, %v6728_v32 }
 0x11c   : > { %v8717_v49 = vadd.f32 %v1655_v48, %v1086_v47  ;;  %1378 = vmatprep.mubr.f32.mxu0 %v12017_v50  ;;  %1947 = vmatprep.mubr.f32.mxu1 %v12017_v50 }
 0x11d   : > { %v1088_v52 = vpop.f32.mrf.mxu0  ;;  %v1657_v53 = vpop.f32.mrf.mxu1 }
 0x11e   : > { %v8722_v54 = vadd.f32 %v1657_v53, %v1088_v52  ;;  %v7218_v53 = vld [vmem:[%s12006_s1 + $0x390] sm:$0xff] }
 0x11f   : > { %v1092_v55 = vpop.f32.mrf.mxu0  ;;  %6811 = vmatmul.mubr.msk.f32.gmra.mxu0 %vm839_vm0, %v6731_v51  ;;  %v1661_v56 = vpop.f32.mrf.mxu1  ;;  %6867 = vmatmul.mubr.msk.f32.gmra.mxu1 %vm839_vm0, %v6729_v36  ;;  %v7222_v36 = vld [vmem:[%s12006_s1 + $0x3b0] sm:$0xff] }
 0x120   : > { %v8726_v57 = vadd.f32 %v1661_v56, %v1092_v55  ;;  %1384 = vmatprep.mubr.f32.mxu0 %v12017_v50  ;;  %1953 = vmatprep.mubr.f32.mxu1 %v12017_v50 }
 0x121   : > { %v1094_v60 = vpop.f32.mrf.mxu0  ;;  %v1663_v62 = vpop.f32.mrf.mxu1 }
 0x122   : > { %v8731_v63 = vadd.f32 %v1663_v62, %v1094_v60 }
 0x123   : > { %v1098_v1 = vpop.f32.mrf.mxu0  ;;  %6812 = vmatmul.mubr.msk.f32.gmra.mxu0 %vm839_vm0, %v6732_v59  ;;  %v1667_v2 = vpop.f32.mrf.mxu1  ;;  %6868 = vmatmul.mubr.msk.f32.gmra.mxu1 %vm839_vm0, %v6730_v43  ;;  %v7220_v43 = vld [vmem:[%s12006_s1 + $0x3a0] sm:$0xff] }
 0x124   : > { %v8735_v4 = vadd.f32 %v1667_v2, %v1098_v1  ;;  %1390 = vmatprep.mubr.f32.mxu0 %v12017_v50  ;;  %1959 = vmatprep.mubr.f32.mxu1 %v12017_v50  ;;  %v7216_v2 = vld [vmem:[%s12006_s1 + $0x380] sm:$0xff] }
 0x125   : > { %v1100_v7 = vpop.f32.mrf.mxu0  ;;  %v1669_v8 = vpop.f32.mrf.mxu1 }
 0x126   : > { %v8740_v10 = vadd.f32 %v1669_v8, %v1100_v7 }
 0x127   : > { %v1104_v11 = vpop.f32.mrf.mxu0  ;;  %6813 = vmatmul.mubr.msk.f32.gmra.mxu0 %vm839_vm0, %v6733_v5  ;;  %v1673_v13 = vpop.f32.mrf.mxu1  ;;  %6869 = vmatmul.mubr.msk.f32.gmra.mxu1 %vm839_vm0, %v6731_v51 }
 0x128   : > { %v8744_v16 = vadd.f32 %v1673_v13, %v1104_v11  ;;  %1396 = vmatprep.mubr.f32.mxu0 %v12017_v50  ;;  %1965 = vmatprep.mubr.f32.mxu1 %v12017_v50 }
 0x129   : > { %v1106_v20 = vpop.f32.mrf.mxu0  ;;  %v1675_v21 = vpop.f32.mrf.mxu1 }
 0x12a   : > { %v8749_v22 = vadd.f32 %v1675_v21, %v1106_v20  ;;  %v7214_v20 = vld [vmem:[%s12006_s1 + $0x370] sm:$0xff] }
 0x12b   : > { %v1110_v23 = vpop.f32.mrf.mxu0  ;;  %6814 = vmatmul.mubr.msk.f32.gmra.mxu0 %vm839_vm0, %v6734_v17  ;;  %v1679_v24 = vpop.f32.mrf.mxu1  ;;  %6870 = vmatmul.mubr.msk.f32.gmra.mxu1 %vm839_vm0, %v6732_v59 }
 0x12c   : > { %v8753_v25 = vadd.f32 %v1679_v24, %v1110_v23  ;;  %1402 = vmatprep.mubr.f32.mxu0 %v12017_v50  ;;  %1971 = vmatprep.mubr.f32.mxu1 %v12017_v50 }
 0x12d   : > { %v1112_v27 = vpop.f32.mrf.mxu0  ;;  %v1681_v28 = vpop.f32.mrf.mxu1 }
 0x12e   : > { %v8758_v29 = vadd.f32 %v1681_v28, %v1112_v27 }
 0x12f   : > { %v1116_v30 = vpop.f32.mrf.mxu0  ;;  %6815 = vmatmul.mubr.msk.f32.gmra.mxu0 %vm839_vm0, %v6735_v26  ;;  %v1685_v31 = vpop.f32.mrf.mxu1  ;;  %6871 = vmatmul.mubr.msk.f32.gmra.mxu1 %vm839_vm0, %v6733_v5 }
 0x130   : > { %v8762_v32 = vadd.f32 %v1685_v31, %v1116_v30  ;;  %2292 = vmatprep.mubr.f32.mxu0 %v12017_v50  ;;  %3055 = vmatprep.mubr.f32.mxu1 %v12017_v50  ;;  %v7212_v30 = vld [vmem:[%s12006_s1 + $0x360] sm:$0xff] }
 0x131   : > { %v1118_v33 = vpop.f32.mrf.mxu0  ;;  %v1687_v34 = vpop.f32.mrf.mxu1 }
 0x132   : > { %v8769_v37 = vadd.f32 %v1687_v34, %v1118_v33 }
 0x133   : > { %v1122_v40 = vpop.f32.mrf.mxu0  ;;  %v1691_v41 = vpop.f32.mrf.mxu1  ;;  %6952 = vmatmul.mubr.msk.f32.vlgmr.msra.gmra.mxu0 %vm839_vm0, %v8291_v58  ;;  %7088 = vmatmul.mubr.msk.f32.vlgmr.msra.gmra.mxu1 %vm839_vm0, %v8319_v0  ;;  %v7219_v58 = vld [vmem:[%s12006_s1 + $0x398] sm:$0xff] }
 0x134   : > { %v8781_v44 = vadd.f32 %v1691_v41, %v1122_v40  ;;  %3763 = vmatpush1.msra.mxu0 %v7222_v36  ;;  %2298 = vmatprep.mubr.f32.mxu0 %v12017_v50  ;;  %v7210_v41 = vld [vmem:[%s12006_s1 + $0x350] sm:$0xff] }
 0x135   : > { %v1124_v45 = vpop.f32.mrf.mxu0  ;;  %v1693_v47 = vpop.f32.mrf.mxu1  ;;  %3061 = vmatprep.mubr.f32.mxu1 %v12017_v50  ;;  %3764 = vmatprep.subr.mxu0 %v7221_v38 }
 0x136   : > { %v8785_v48 = vadd.f32 %v1693_v47, %v1124_v45  ;;  %3765 = vmatpush1.msra.mxu0 %v7220_v43 }
 0x137   : > { %v1128_v51 = vpop.f32.mrf.mxu0  ;;  %v1697_v52 = vpop.f32.mrf.mxu1  ;;  %6953 = vmatmul.mubr.msk.f32.gmra.mxu0 %vm839_vm0, %v8305_v61  ;;  %7089 = vmatmul.mubr.msk.f32.gmra.mxu1 %vm839_vm0, %v8334_v3  ;;  %v7217_v61 = vld [vmem:[%s12006_s1 + $0x388] sm:$0xff] }
 0x138   : > { %v8797_v55 = vadd.f32 %v1697_v52, %v1128_v51  ;;  %2304 = vmatprep.mubr.f32.mxu0 %v12017_v50  ;;  %3067 = vmatprep.mubr.f32.mxu1 %v12017_v50 }
 0x139   : > { %v1130_v56 = vpop.f32.mrf.mxu0  ;;  %v1699_v59 = vpop.f32.mrf.mxu1  ;;  %3766 = vmatprep.subr.mxu0 %v7219_v58 }
 0x13a   : > { %v8801_v60 = vadd.f32 %v1699_v59, %v1130_v56  ;;  %3767 = vmatpush1.msra.mxu0 %v7218_v53  ;;  %v7208_v53 = vld [vmem:[%s12006_s1 + $0x340] sm:$0xff] }
 0x13b   : > { %v1134_v62 = vpop.f32.mrf.mxu0  ;;  %v1703_v1 = vpop.f32.mrf.mxu1  ;;  %6954 = vmatmul.mubr.msk.f32.gmra.mxu0 %vm839_vm0, %v8319_v0  ;;  %7090 = vmatmul.mubr.msk.f32.gmra.mxu1 %vm839_vm0, %v8349_v6  ;;  %v7215_v0 = vld [vmem:[%s12006_s1 + $0x378] sm:$0xff] }
 0x13c   : > { %v8813_v5 = vadd.f32 %v1703_v1, %v1134_v62  ;;  %2310 = vmatprep.mubr.f32.mxu0 %v12017_v50  ;;  %3073 = vmatprep.mubr.f32.mxu1 %v12017_v50 }
 0x13d   : > { %v1136_v7 = vpop.f32.mrf.mxu0  ;;  %v1705_v8 = vpop.f32.mrf.mxu1  ;;  %3768 = vmatprep.subr.mxu0 %v7217_v61 }
 0x13e   : > { %v8817_v11 = vadd.f32 %v1705_v8, %v1136_v7  ;;  %3769 = vmatpush1.msra.mxu0 %v7216_v2  ;;  %v7206_v2 = vld [vmem:[%s12006_s1 + $0x330] sm:$0xff]  ;;  %v6880_v8 = vld [vmem:[%s8259_s26 + $0x60] sm:$0xff] }
 0x13f   : > { %v1140_v13 = vpop.f32.mrf.mxu0  ;;  %v1709_v17 = vpop.f32.mrf.mxu1  ;;  %6955 = vmatmul.mubr.msk.f32.gmra.mxu0 %vm839_vm0, %v8334_v3  ;;  %7091 = vmatmul.mubr.msk.f32.gmra.mxu1 %vm839_vm0, %v8364_v9  ;;  %v7213_v3 = vld [vmem:[%s12006_s1 + $0x368] sm:$0xff] }
 0x140   : > { %v8829_v21 = vadd.f32 %v1709_v17, %v1140_v13  ;;  %2316 = vmatprep.mubr.f32.mxu0 %v12017_v50  ;;  %3079 = vmatprep.mubr.f32.mxu1 %v12017_v50 }
 0x141   : > { %v1142_v23 = vpop.f32.mrf.mxu0  ;;  %v1711_v24 = vpop.f32.mrf.mxu1  ;;  %3770 = vmatprep.subr.mxu0 %v7215_v0 }
 0x142   : > { %v8833_v26 = vadd.f32 %v1711_v24, %v1142_v23  ;;  %3771 = vmatpush1.msra.mxu0 %v7214_v20  ;;  %v6881_v23 = vld [vmem:[%s8259_s26 + $0x68] sm:$0xff]  ;;  %v7017_v24 = vld [vmem:[%s8259_s26 + $0x78] sm:$0xff] }
 0x143   : > { %v1146_v27 = vpop.f32.mrf.mxu0  ;;  %v1715_v28 = vpop.f32.mrf.mxu1  ;;  %6956 = vmatmul.mubr.msk.f32.gmra.mxu0 %vm839_vm0, %v8349_v6  ;;  %7092 = vmatmul.mubr.msk.f32.gmra.mxu1 %vm839_vm0, %v8379_v12  ;;  %v7211_v6 = vld [vmem:[%s12006_s1 + $0x358] sm:$0xff] }
 0x144   : > { %v8845_v31 = vadd.f32 %v1715_v28, %v1146_v27  ;;  %2322 = vmatprep.mubr.f32.mxu0 %v12017_v50  ;;  %3085 = vmatprep.mubr.f32.mxu1 %v12017_v50 }
 0x145   : > { %v1148_v33 = vpop.f32.mrf.mxu0  ;;  %v1717_v34 = vpop.f32.mrf.mxu1  ;;  %3772 = vmatprep.subr.mxu0 %v7213_v3 }
 0x146   : > { %v8849_v36 = vadd.f32 %v1717_v34, %v1148_v33  ;;  %3773 = vmatpush1.msra.mxu0 %v7212_v30  ;;  %v6882_v34 = vld [vmem:[%s8259_s26 + $0x70] sm:$0xff] }
 0x147   : > { %v1152_v38 = vpop.f32.mrf.mxu0  ;;  %v1721_v40 = vpop.f32.mrf.mxu1  ;;  %6957 = vmatmul.mubr.msk.f32.gmra.mxu0 %vm839_vm0, %v8364_v9  ;;  %7093 = vmatmul.mubr.msk.f32.gmra.mxu1 %vm839_vm0, %v8391_v14  ;;  %v7209_v9 = vld [vmem:[%s12006_s1 + $0x348] sm:$0xff] }
 0x148   : > { %v8861_v43 = vadd.f32 %v1721_v40, %v1152_v38  ;;  %2328 = vmatprep.mubr.f32.mxu0 %v12017_v50  ;;  %3091 = vmatprep.mubr.f32.mxu1 %v12017_v50 }
 0x149   : > { %v1154_v45 = vpop.f32.mrf.mxu0  ;;  %v1723_v47 = vpop.f32.mrf.mxu1  ;;  %3774 = vmatprep.subr.mxu0 %v7211_v6  ;;  %v7018_v6 = vld [vmem:[%s8259_s26 + $0x80] sm:$0xff] }
 0x14a   : > { %v8865_v58 = vadd.f32 %v1723_v47, %v1154_v45  ;;  %3775 = vmatpush1.msra.mxu0 %v7210_v41 }
 0x14b   : > { %v1158_v51 = vpop.f32.mrf.mxu0  ;;  %v1727_v52 = vpop.f32.mrf.mxu1  ;;  %6958 = vmatmul.mubr.msk.f32.gmra.mxu0 %vm839_vm0, %v8379_v12  ;;  %7094 = vmatmul.mubr.msk.f32.gmra.mxu1 %vm839_vm0, %v8400_v15  ;;  %v7207_v12 = vld [vmem:[%s12006_s1 + $0x338] sm:$0xff] }
 0x14c   : > { %v8877_v56 = vadd.f32 %v1727_v52, %v1158_v51  ;;  %2334 = vmatprep.mubr.f32.mxu0 %v12017_v50  ;;  %3097 = vmatprep.mubr.f32.mxu1 %v12017_v50  ;;  %v7019_v51 = vld [vmem:[%s8259_s26 + $0x88] sm:$0xff] }
 0x14d   : > { %v1160_v59 = vpop.f32.mrf.mxu0  ;;  %v1729_v61 = vpop.f32.mrf.mxu1  ;;  %3776 = vmatprep.subr.mxu0 %v7209_v9  ;;  %v7205_v52 = vld [vmem:[%s12006_s1 + $0x328] sm:$0xff] }
 0x14e   : > { %v8881_v62 = vadd.f32 %v1729_v61, %v1160_v59  ;;  %3777 = vmatpush1.msra.mxu0 %v7208_v53  ;;  %v7204_v53 = vld [vmem:[%s12006_s1 + $0x320] sm:$0xff] }
 0x14f   : > { %v1164_v15 = vpop.f32.mrf.mxu0  ;;  %v1733_v1 = vpop.f32.mrf.mxu1  ;;  %6959 = vmatmul.mubr.msk.f32.gmra.mxu0 %vm839_vm0, %v8391_v14  ;;  %7095 = vmatmul.mubr.msk.f32.gmra.mxu1 %vm839_vm0, %v8415_v18 }
 0x150   : > { %v8893_v7 = vadd.f32 %v1733_v1, %v1164_v15  ;;  %2340 = vmatprep.mubr.f32.mxu0 %v12017_v50  ;;  %3103 = vmatprep.mubr.f32.mxu1 %v12017_v50 }
 0x151   : > { %v1166_v0 = vpop.f32.mrf.mxu0  ;;  %v1735_v13 = vpop.f32.mrf.mxu1  ;;  %3778 = vmatprep.subr.mxu0 %v7207_v12 }
 0x152   : > { %v8898_v14 = vadd.f32 %v1735_v13, %v1166_v0  ;;  %3779 = vmatpush1.msra.mxu0 %v7206_v2 }
 0x153   : > { %v1170_v18 = vpop.f32.mrf.mxu0  ;;  %v1739_v17 = vpop.f32.mrf.mxu1  ;;  %6960 = vmatmul.mubr.msk.f32.gmra.mxu0 %vm839_vm0, %v6880_v8  ;;  %7096 = vmatmul.mubr.msk.f32.gmra.mxu1 %vm839_vm0, %v8424_v19  ;;  %v7020_v8 = vld [vmem:[%s8259_s26 + $0x90] sm:$0xff] }
 0x154   : > { %v8903_v20 = vadd.f32 %v1739_v17, %v1170_v18  ;;  %2346 = vmatprep.mubr.f32.mxu0 %v12017_v50  ;;  %3109 = vmatprep.mubr.f32.mxu1 %v12017_v50 }
 0x155   : > { %v1172_v3 = vpop.f32.mrf.mxu0  ;;  %v1741_v27 = vpop.f32.mrf.mxu1  ;;  %3780 = vmatprep.subr.mxu0 %v7205_v52 }
 0x156   : > { %v8909_v28 = vadd.f32 %v1741_v27, %v1172_v3  ;;  %3781 = vmatpush1.msra.mxu0 %v7204_v53  ;;  %v7021_v3 = vld [vmem:[%s8259_s26 + $0x98] sm:$0xff] }
 0x157   : > { %v1176_v30 = vpop.f32.mrf.mxu0  ;;  %v1745_v33 = vpop.f32.mrf.mxu1  ;;  %6961 = vmatmul.mubr.msk.f32.gmra.mxu0 %vm839_vm0, %v6881_v23  ;;  %7097 = vmatmul.mubr.msk.f32.gmra.mxu1 %vm839_vm0, %v7017_v24 }
 0x158   : > { %v8913_v19 = vadd.f32 %v1745_v33, %v1176_v30  ;;  %2352 = vmatprep.mubr.f32.mxu0 %v12017_v50  ;;  %3115 = vmatprep.mubr.f32.mxu1 %v12017_v50 }
 0x159   : > { %v1178_v38 = vpop.f32.mrf.mxu0  ;;  %v1747_v40 = vpop.f32.mrf.mxu1 }
 0x15a   : > { %v8919_v41 = vadd.f32 %v1747_v40, %v1178_v38  ;;  %v7022_v40 = vld [vmem:[%s8259_s26 + $0xa0] sm:$0xff] }
 0x15b   : > { %v1182_v45 = vpop.f32.mrf.mxu0  ;;  %v1751_v47 = vpop.f32.mrf.mxu1  ;;  %6962 = vmatmul.mubr.msk.f32.gmra.mxu0 %vm839_vm0, %v6882_v34  ;;  %7098 = vmatmul.mubr.msk.f32.gmra.mxu1 %vm839_vm0, %v7018_v6 }
 0x15c   : > { %v8923_v9 = vadd.f32 %v1751_v47, %v1182_v45  ;;  %2358 = vmatprep.mubr.f32.mxu0 %v12017_v50  ;;  %3121 = vmatprep.mubr.f32.mxu1 %v12017_v50 }
 0x15d   : > { %v1184_v59 = vpop.f32.mrf.mxu0  ;;  %v1753_v61 = vpop.f32.mrf.mxu1 }
 0x15e   : > { %v8934_v12 = vadd.f32 %v1753_v61, %v1184_v59  ;;  %v7023_v61 = vld [vmem:[%s8259_s26 + $0xa8] sm:$0xff] }
 0x15f   : > { %v1188_v15 = vpop.f32.mrf.mxu0  ;;  %v1757_v1 = vpop.f32.mrf.mxu1  ;;  %6963 = vmatmul.mubr.msk.f32.gmra.mxu0 %vm839_vm0, %v7017_v24  ;;  %7099 = vmatmul.mubr.msk.f32.gmra.mxu1 %vm839_vm0, %v7019_v51 }
 0x160   : > { %v8938_v2 = vadd.f32 %v1757_v1, %v1188_v15  ;;  %2364 = vmatprep.mubr.f32.mxu0 %v12017_v50  ;;  %3127 = vmatprep.mubr.f32.mxu1 %v12017_v50 }
 0x161   : > { %v1190_v0 = vpop.f32.mrf.mxu0  ;;  %v1759_v13 = vpop.f32.mrf.mxu1 }
 0x162   : > { %v8943_v18 = vadd.f32 %v1759_v13, %v1190_v0  ;;  %v7203_v13 = vld [vmem:[%s12006_s1 + $0x318] sm:$0xff] }
 0x163   : > { %v1194_v17 = vpop.f32.mrf.mxu0  ;;  %v1763_v23 = vpop.f32.mrf.mxu1  ;;  %6964 = vmatmul.mubr.msk.f32.gmra.mxu0 %vm839_vm0, %v7018_v6  ;;  %7100 = vmatmul.mubr.msk.f32.gmra.mxu1 %vm839_vm0, %v7020_v8 }
 0x164   : > { %v8947_v24 = vadd.f32 %v1763_v23, %v1194_v17  ;;  %2370 = vmatprep.mubr.f32.mxu0 %v12017_v50  ;;  %3133 = vmatprep.mubr.f32.mxu1 %v12017_v50 }
 0x165   : > { %v1196_v27 = vpop.f32.mrf.mxu0  ;;  %v1765_v30 = vpop.f32.mrf.mxu1  ;;  %3782 = vmatprep.subr.mxu0 %v7203_v13 }
 0x166   : > { %v8952_v33 = vadd.f32 %v1765_v30, %v1196_v27  ;;  %v7024_v27 = vld [vmem:[%s8259_s26 + $0xb0] sm:$0xff] }
 0x167   : > { %v1200_v34 = vpop.f32.mrf.mxu0  ;;  %v1769_v38 = vpop.f32.mrf.mxu1  ;;  %6965 = vmatmul.mubr.msk.f32.gmra.mxu0 %vm839_vm0, %v7019_v51  ;;  %7101 = vmatmul.mubr.msk.f32.gmra.mxu1 %vm839_vm0, %v7021_v3  ;;  %v7202_v30 = vld [vmem:[%s12006_s1 + $0x310] sm:$0xff] }
 0x168   : > { %v8956_v6 = vadd.f32 %v1769_v38, %v1200_v34  ;;  %2376 = vmatprep.mubr.f32.mxu0 %v12017_v50  ;;  %3139 = vmatprep.mubr.f32.mxu1 %v12017_v50 }
 0x169   : > { %v1202_v45 = vpop.f32.mrf.mxu0  ;;  %v1771_v47 = vpop.f32.mrf.mxu1  ;;  %3783 = vmatpush1.msra.mxu0 %v7202_v30  ;;  %v7026_v30 = vld [vmem:[%s8259_s26 + $0xc0] sm:$0xff] }
 0x16a   : > { %v8961_v52 = vadd.f32 %v1771_v47, %v1202_v45 }
 0x16b   : > { %v1206_v53 = vpop.f32.mrf.mxu0  ;;  %v1775_v59 = vpop.f32.mrf.mxu1  ;;  %6966 = vmatmul.mubr.msk.f32.gmra.mxu0 %vm839_vm0, %v7020_v8  ;;  %7102 = vmatmul.mubr.msk.f32.gmra.mxu1 %vm839_vm0, %v7022_v40 }
 0x16c   : > { %v8965_v51 = vadd.f32 %v1775_v59, %v1206_v53  ;;  %2382 = vmatprep.mubr.f32.mxu0 %v12017_v50  ;;  %3145 = vmatprep.mubr.f32.mxu1 %v12017_v50  ;;  %v7025_v59 = vld [vmem:[%s8259_s26 + $0xb8] sm:$0xff] }
 0x16d   : > { %v1208_v15 = vpop.f32.mrf.mxu0  ;;  %v1777_v1 = vpop.f32.mrf.mxu1 }
 0x16e   : > { %v8970_v0 = vadd.f32 %v1777_v1, %v1208_v15 }
 0x16f   : > { %v1212_v17 = vpop.f32.mrf.mxu0  ;;  %v1781_v8 = vpop.f32.mrf.mxu1  ;;  %6967 = vmatmul.mubr.msk.f32.gmra.mxu0 %vm839_vm0, %v7021_v3  ;;  %7103 = vmatmul.mubr.msk.f32.gmra.mxu1 %vm839_vm0, %v7023_v61 }
 0x170   : > { %v8977_v23 = vadd.f32 %v1781_v8, %v1212_v17  ;;  %2388 = vmatprep.mubr.f32.mxu0 %v12017_v50  ;;  %3151 = vmatprep.mubr.f32.mxu1 %v12017_v50 }
 0x171   : > { %v1214_v34 = vpop.f32.mrf.mxu0  ;;  %v1783_v38 = vpop.f32.mrf.mxu1 }
 0x172   : > { %v8985_v45 = vadd.f32 %v1783_v38, %v1214_v34 }
 0x173   : > { %v1218_v3 = vpop.f32.mrf.mxu0  ;;  %v1787_v47 = vpop.f32.mrf.mxu1  ;;  %6968 = vmatmul.mubr.msk.f32.gmra.mxu0 %vm839_vm0, %v7022_v40  ;;  %7104 = vmatmul.mubr.msk.f32.gmra.mxu1 %vm839_vm0, %v7024_v27 }
 0x174   : > { %v8989_v53 = vadd.f32 %v1787_v47, %v1218_v3  ;;  %2394 = vmatprep.mubr.f32.mxu0 %v12017_v50  ;;  %3157 = vmatprep.mubr.f32.mxu1 %v12017_v50 }
 0x175   : > { %v1220_v15 = vpop.f32.mrf.mxu0  ;;  %v1789_v1 = vpop.f32.mrf.mxu1 }
 0x176   : > { %v8994_v13 = vadd.f32 %v1789_v1, %v1220_v15  ;;  %v7027_v1 = vld [vmem:[%s8259_s26 + $0xc8] sm:$0xff] }
 0x177   : > { %v1224_v17 = vpop.f32.mrf.mxu0  ;;  %v1793_v8 = vpop.f32.mrf.mxu1  ;;  %6969 = vmatmul.mubr.msk.f32.gmra.mxu0 %vm839_vm0, %v7023_v61  ;;  %7105 = vmatmul.mubr.msk.f32.gmra.mxu1 %vm839_vm0, %v7025_v59 }
 0x178   : > { %12025 = vst [vmem:[#allocation3_spill] sm:$0xff] %v8994_v13  ;;  %v8998_v40 = vadd.f32 %v1793_v8, %v1224_v17  ;;  %2400 = vmatprep.mubr.f32.mxu0 %v12017_v50  ;;  %3163 = vmatprep.mubr.f32.mxu1 %v12017_v50 }
 0x179   : > { %v1226_v34 = vpop.f32.mrf.mxu0  ;;  %v1795_v38 = vpop.f32.mrf.mxu1 }
 0x17a   : > { %12026 = vst [vmem:[#allocation4_spill] sm:$0xff] %v8998_v40  ;;  %v9003_v3 = vadd.f32 %v1795_v38, %v1226_v34 }
 0x17b   : > { %v1230_v47 = vpop.f32.mrf.mxu0  ;;  %v1799_v15 = vpop.f32.mrf.mxu1  ;;  %6970 = vmatmul.mubr.msk.f32.gmra.mxu0 %vm839_vm0, %v7024_v27  ;;  %7106 = vmatmul.mubr.msk.f32.gmra.mxu1 %vm839_vm0, %v7026_v30 }
 0x17c   : > { %12027 = vst [vmem:[#allocation5_spill] sm:$0xff] %v9003_v3  ;;  %v9007_v61 = vadd.f32 %v1799_v15, %v1230_v47  ;;  %2406 = vmatprep.mubr.f32.mxu0 %v12017_v50  ;;  %3169 = vmatprep.mubr.f32.mxu1 %v12017_v50  ;;  %v7028_v47 = vld [vmem:[%s8259_s26 + $0xd0] sm:$0xff] }
 0x17d   : > { %v1232_v17 = vpop.f32.mrf.mxu0  ;;  %v1801_v8 = vpop.f32.mrf.mxu1 }
 0x17e   : > { %12028 = vst [vmem:[#allocation6_spill] sm:$0xff] %v9007_v61  ;;  %v9012_v40 = vadd.f32 %v1801_v8, %v1232_v17  ;;  %v7201_v17 = vld [vmem:[%s12006_s1 + $0x308] sm:$0xff] }
 0x17f   : > { %v1236_v34 = vpop.f32.mrf.mxu0  ;;  %v1805_v38 = vpop.f32.mrf.mxu1  ;;  %6971 = vmatmul.mubr.msk.f32.gmra.mxu0 %vm839_vm0, %v7025_v59  ;;  %7107 = vmatmul.mubr.msk.f32.gmra.mxu1 %vm839_vm0, %v7027_v1 }
 0x180   : > { %12029 = vst [vmem:[#allocation7_spill] sm:$0xff] %v9012_v40  ;;  %v9016_v27 = vadd.f32 %v1805_v38, %v1236_v34  ;;  %2412 = vmatprep.mubr.f32.mxu0 %v12017_v50  ;;  %3175 = vmatprep.mubr.f32.mxu1 %v12017_v50  ;;  %v7200_v34 = vld [vmem:[%s12006_s1 + $0x300] sm:$0xff] }
 0x181   : > { %v1238_v15 = vpop.f32.mrf.mxu0  ;;  %v1807_v61 = vpop.f32.mrf.mxu1  ;;  %3784 = vmatprep.subr.mxu0 %v7201_v17 }
 0x182   : > { %12030 = vst [vmem:[#allocation8_spill] sm:$0xff] %v9016_v27  ;;  %v9021_v3 = vadd.f32 %v1807_v61, %v1238_v15  ;;  %v7029_v61 = vld [vmem:[%s8259_s26 + $0xd8] sm:$0xff]  ;;  %3785 = vmatpush1.msra.mxu0 %v7200_v34 }
 0x183   : > { %v1242_v8 = vpop.f32.mrf.mxu0  ;;  %v1811_v59 = vpop.f32.mrf.mxu1  ;;  %6972 = vmatmul.mubr.msk.f32.gmra.mxu0 %vm839_vm0, %v7026_v30  ;;  %7108 = vmatmul.mubr.msk.f32.gmra.mxu1 %vm839_vm0, %v7028_v47 }
 0x184   : > { %12031 = vst [vmem:[#allocation9_spill] sm:$0xff] %v9021_v3  ;;  %v9031_v38 = vadd.f32 %v1811_v59, %v1242_v8  ;;  %2418 = vmatprep.mubr.f32.mxu0 %v12017_v50  ;;  %3181 = vmatprep.mubr.f32.mxu1 %v12017_v50  ;;  %v7030_v59 = vld [vmem:[%s8259_s26 + $0xe0] sm:$0xff] }
 0x185   : > { %v1244_v15 = vpop.f32.mrf.mxu0  ;;  %v1813_v3 = vpop.f32.mrf.mxu1 }
 0x186   : > { %12032 = vst [vmem:[#allocation10_spill] sm:$0xff] %v9031_v38  ;;  %v9036_v27 = vadd.f32 %v1813_v3, %v1244_v15 }
 0x187   : > { %v1248_v30 = vpop.f32.mrf.mxu0  ;;  %v1817_v40 = vpop.f32.mrf.mxu1  ;;  %6973 = vmatmul.mubr.msk.f32.gmra.mxu0 %vm839_vm0, %v7027_v1  ;;  %7109 = vmatmul.mubr.msk.f32.gmra.mxu1 %vm839_vm0, %v7029_v61 }
 0x188   : > { %12033 = vst [vmem:[#allocation11_spill] sm:$0xff] %v9036_v27  ;;  %v9040_v8 = vadd.f32 %v1817_v40, %v1248_v30  ;;  %2424 = vmatprep.mubr.f32.mxu0 %v12017_v50  ;;  %3187 = vmatprep.mubr.f32.mxu1 %v12017_v50  ;;  %v7031_v40 = vld [vmem:[%s8259_s26 + $0xe8] sm:$0xff] }
 0x189   : > { %v1250_v38 = vpop.f32.mrf.mxu0  ;;  %v1819_v13 = vpop.f32.mrf.mxu1 }
 0x18a   : > { %12034 = vst [vmem:[#allocation12_spill] sm:$0xff] %v9040_v8  ;;  %v9045_v17 = vadd.f32 %v1819_v13, %v1250_v38 }
 0x18b   : > { %v1254_v3 = vpop.f32.mrf.mxu0  ;;  %v1823_v34 = vpop.f32.mrf.mxu1  ;;  %6974 = vmatmul.mubr.msk.f32.gmra.mxu0 %vm839_vm0, %v7028_v47  ;;  %7110 = vmatmul.mubr.msk.f32.gmra.mxu1 %vm839_vm0, %v7030_v59 }
 0x18c   : > { %12035 = vst [vmem:[#allocation13_spill] sm:$0xff] %v9045_v17  ;;  %v9049_v1 = vadd.f32 %v1823_v34, %v1254_v3  ;;  %2430 = vmatprep.mubr.f32.mxu0 %v12017_v50  ;;  %3193 = vmatprep.mubr.f32.mxu1 %v12017_v50  ;;  %v7032_v3 = vld [vmem:[%s8259_s26 + $0xf0] sm:$0xff] }
 0x18d   : > { %v1256_v15 = vpop.f32.mrf.mxu0  ;;  %v1825_v30 = vpop.f32.mrf.mxu1 }
 0x18e   : > { %12036 = vst [vmem:[#allocation14_spill] sm:$0xff] %v9049_v1  ;;  %v9054_v8 = vadd.f32 %v1825_v30, %v1256_v15 }
 0x18f   : > { %v1260_v13 = vpop.f32.mrf.mxu0  ;;  %v1829_v38 = vpop.f32.mrf.mxu1  ;;  %6975 = vmatmul.mubr.msk.f32.gmra.mxu0 %vm839_vm0, %v7029_v61  ;;  %7111 = vmatmul.mubr.msk.f32.gmra.mxu1 %vm839_vm0, %v7031_v40 }
 0x190   : > { %12037 = vst [vmem:[#allocation15_spill] sm:$0xff] %v9054_v8  ;;  %v9058_v47 = vadd.f32 %v1829_v38, %v1260_v13  ;;  %2436 = vmatprep.mubr.f32.mxu0 %v12017_v50  ;;  %3199 = vmatprep.mubr.f32.mxu1 %v12017_v50  ;;  %v7033_v13 = vld [vmem:[%s8259_s26 + $0xf8] sm:$0xff] }
 0x191   : > { %v1262_v34 = vpop.f32.mrf.mxu0  ;;  %v1831_v1 = vpop.f32.mrf.mxu1 }
 0x192   : > { %12038 = vst [vmem:[#allocation16_spill] sm:$0xff] %v9058_v47  ;;  %v9063_v17 = vadd.f32 %v1831_v1, %v1262_v34 }
 0x193   : > { %v1266_v15 = vpop.f32.mrf.mxu0  ;;  %v1835_v30 = vpop.f32.mrf.mxu1  ;;  %6976 = vmatmul.mubr.msk.f32.gmra.mxu0 %vm839_vm0, %v7030_v59  ;;  %7112 = vmatmul.mubr.msk.f32.gmra.mxu1 %vm839_vm0, %v7032_v3 }
 0x194   : > { %12039 = vst [vmem:[#allocation17_spill] sm:$0xff] %v9063_v17  ;;  %v9067_v61 = vadd.f32 %v1835_v30, %v1266_v15  ;;  %2442 = vmatprep.mubr.f32.mxu0 %v12017_v50  ;;  %3205 = vmatprep.mubr.f32.mxu1 %v12017_v50  ;;  %v7034_v15 = vld [vmem:[%s8259_s26 + $0x100] sm:$0xff] }
 0x195   : > { %v1268_v38 = vpop.f32.mrf.mxu0  ;;  %v1837_v47 = vpop.f32.mrf.mxu1 }
 0x196   : > { %12040 = vst [vmem:[#allocation18_spill] sm:$0xff] %v9067_v61  ;;  %v9072_v8 = vadd.f32 %v1837_v47, %v1268_v38 }
 0x197   : > { %v1272_v1 = vpop.f32.mrf.mxu0  ;;  %v1841_v34 = vpop.f32.mrf.mxu1  ;;  %6977 = vmatmul.mubr.msk.f32.gmra.mxu0 %vm839_vm0, %v7031_v40  ;;  %7113 = vmatmul.mubr.msk.f32.gmra.mxu1 %vm839_vm0, %v7033_v13 }
 0x198   : > { %12041 = vst [vmem:[#allocation19_spill] sm:$0xff] %v9072_v8  ;;  %v9076_v59 = vadd.f32 %v1841_v34, %v1272_v1  ;;  %2448 = vmatprep.mubr.f32.mxu0 %v12017_v50  ;;  %3211 = vmatprep.mubr.f32.mxu1 %v12017_v50  ;;  %v7035_v1 = vld [vmem:[%s8259_s26 + $0x108] sm:$0xff] }
 0x199   : > { %v1274_v30 = vpop.f32.mrf.mxu0  ;;  %v1843_v61 = vpop.f32.mrf.mxu1 }
 0x19a   : > { %12042 = vst [vmem:[#allocation20_spill] sm:$0xff] %v9076_v59  ;;  %v9081_v17 = vadd.f32 %v1843_v61, %v1274_v30 }
 0x19b   : > { %v1278_v47 = vpop.f32.mrf.mxu0  ;;  %v1847_v38 = vpop.f32.mrf.mxu1  ;;  %6978 = vmatmul.mubr.msk.f32.gmra.mxu0 %vm839_vm0, %v7032_v3  ;;  %7114 = vmatmul.mubr.msk.f32.gmra.mxu1 %vm839_vm0, %v7034_v15 }
 0x19c   : > { %12043 = vst [vmem:[#allocation21_spill] sm:$0xff] %v9081_v17  ;;  %v9085_v40 = vadd.f32 %v1847_v38, %v1278_v47  ;;  %2454 = vmatprep.mubr.f32.mxu0 %v12017_v50  ;;  %3217 = vmatprep.mubr.f32.mxu1 %v12017_v50  ;;  %v7036_v47 = vld [vmem:[%s8259_s26 + $0x110] sm:$0xff] }
 0x19d   : > { %v1280_v34 = vpop.f32.mrf.mxu0  ;;  %v1849_v59 = vpop.f32.mrf.mxu1 }
 0x19e   : > { %12044 = vst [vmem:[#allocation22_spill] sm:$0xff] %v9085_v40  ;;  %v9090_v8 = vadd.f32 %v1849_v59, %v1280_v34 }
 0x19f   : > { %v1284_v61 = vpop.f32.mrf.mxu0  ;;  %v1853_v30 = vpop.f32.mrf.mxu1  ;;  %6979 = vmatmul.mubr.msk.f32.gmra.mxu0 %vm839_vm0, %v7033_v13  ;;  %7115 = vmatmul.mubr.msk.f32.gmra.mxu1 %vm839_vm0, %v7035_v1 }
 0x1a0   : > { %12045 = vst [vmem:[#allocation23_spill] sm:$0xff] %v9090_v8  ;;  %v9094_v3 = vadd.f32 %v1853_v30, %v1284_v61  ;;  %2460 = vmatprep.mubr.f32.mxu0 %v12017_v50  ;;  %3223 = vmatprep.mubr.f32.mxu1 %v12017_v50  ;;  %v7037_v61 = vld [vmem:[%s8259_s26 + $0x118] sm:$0xff] }
 0x1a1   : > { %v1286_v38 = vpop.f32.mrf.mxu0  ;;  %v1855_v40 = vpop.f32.mrf.mxu1 }
 0x1a2   : > { %12046 = vst [vmem:[#allocation24_spill] sm:$0xff] %v9094_v3  ;;  %v9099_v17 = vadd.f32 %v1855_v40, %v1286_v38 }
 0x1a3   : > { %v1290_v59 = vpop.f32.mrf.mxu0  ;;  %v1859_v34 = vpop.f32.mrf.mxu1  ;;  %6980 = vmatmul.mubr.msk.f32.gmra.mxu0 %vm839_vm0, %v7034_v15  ;;  %7116 = vmatmul.mubr.msk.f32.gmra.mxu1 %vm839_vm0, %v7036_v47 }
 0x1a4   : > { %12047 = vst [vmem:[#allocation25_spill] sm:$0xff] %v9099_v17  ;;  %v9103_v13 = vadd.f32 %v1859_v34, %v1290_v59  ;;  %2466 = vmatprep.mubr.f32.mxu0 %v12017_v50  ;;  %3229 = vmatprep.mubr.f32.mxu1 %v12017_v50  ;;  %v7038_v59 = vld [vmem:[%s8259_s26 + $0x120] sm:$0xff] }
 0x1a5   : > { %v1292_v30 = vpop.f32.mrf.mxu0  ;;  %v1861_v3 = vpop.f32.mrf.mxu1 }
 0x1a6   : > { %12048 = vst [vmem:[#allocation26_spill] sm:$0xff] %v9103_v13  ;;  %v9108_v8 = vadd.f32 %v1861_v3, %v1292_v30 }
 0x1a7   : > { %v1296_v40 = vpop.f32.mrf.mxu0  ;;  %v1865_v38 = vpop.f32.mrf.mxu1  ;;  %6981 = vmatmul.mubr.msk.f32.gmra.mxu0 %vm839_vm0, %v7035_v1  ;;  %7117 = vmatmul.mubr.msk.f32.gmra.mxu1 %vm839_vm0, %v7037_v61 }
 0x1a8   : > { %12049 = vst [vmem:[#allocation27_spill] sm:$0xff] %v9108_v8  ;;  %v9112_v15 = vadd.f32 %v1865_v38, %v1296_v40  ;;  %2472 = vmatprep.mubr.f32.mxu0 %v12017_v50  ;;  %3235 = vmatprep.mubr.f32.mxu1 %v12017_v50  ;;  %v7039_v40 = vld [vmem:[%s8259_s26 + $0x128] sm:$0xff] }
 0x1a9   : > { %v1298_v34 = vpop.f32.mrf.mxu0  ;;  %v1867_v13 = vpop.f32.mrf.mxu1 }
 0x1aa   : > { %12050 = vst [vmem:[#allocation28_spill] sm:$0xff] %v9112_v15  ;;  %v9117_v17 = vadd.f32 %v1867_v13, %v1298_v34 }
 0x1ab   : > { %v1302_v3 = vpop.f32.mrf.mxu0  ;;  %v1871_v30 = vpop.f32.mrf.mxu1  ;;  %6982 = vmatmul.mubr.msk.f32.gmra.mxu0 %vm839_vm0, %v7036_v47  ;;  %7118 = vmatmul.mubr.msk.f32.gmra.mxu1 %vm839_vm0, %v7038_v59 }
 0x1ac   : > { %12051 = vst [vmem:[#allocation29_spill] sm:$0xff] %v9117_v17  ;;  %v9121_v1 = vadd.f32 %v1871_v30, %v1302_v3  ;;  %2478 = vmatprep.mubr.f32.mxu0 %v12017_v50  ;;  %3241 = vmatprep.mubr.f32.mxu1 %v12017_v50  ;;  %v7040_v3 = vld [vmem:[%s8259_s26 + $0x130] sm:$0xff] }
 0x1ad   : > { %v1304_v38 = vpop.f32.mrf.mxu0  ;;  %v1873_v15 = vpop.f32.mrf.mxu1 }
 0x1ae   : > { %12052 = vst [vmem:[#allocation30_spill] sm:$0xff] %v9121_v1  ;;  %v9126_v8 = vadd.f32 %v1873_v15, %v1304_v38 }
 0x1af   : > { %v1308_v13 = vpop.f32.mrf.mxu0  ;;  %v1877_v34 = vpop.f32.mrf.mxu1  ;;  %6983 = vmatmul.mubr.msk.f32.gmra.mxu0 %vm839_vm0, %v7037_v61  ;;  %7119 = vmatmul.mubr.msk.f32.gmra.mxu1 %vm839_vm0, %v7039_v40 }
 0x1b0   : > { %12053 = vst [vmem:[#allocation31_spill] sm:$0xff] %v9126_v8  ;;  %v9130_v47 = vadd.f32 %v1877_v34, %v1308_v13  ;;  %2484 = vmatprep.mubr.f32.mxu0 %v12017_v50  ;;  %3247 = vmatprep.mubr.f32.mxu1 %v12017_v50  ;;  %v7041_v13 = vld [vmem:[%s8259_s26 + $0x138] sm:$0xff] }
 0x1b1   : > { %v1310_v30 = vpop.f32.mrf.mxu0  ;;  %v1879_v1 = vpop.f32.mrf.mxu1 }
 0x1b2   : > { %12054 = vst [vmem:[#allocation32_spill] sm:$0xff] %v9130_v47  ;;  %v9135_v17 = vadd.f32 %v1879_v1, %v1310_v30 }
 0x1b3   : > { %v1314_v15 = vpop.f32.mrf.mxu0  ;;  %v1883_v38 = vpop.f32.mrf.mxu1  ;;  %6984 = vmatmul.mubr.msk.f32.gmra.mxu0 %vm839_vm0, %v7038_v59  ;;  %7120 = vmatmul.mubr.msk.f32.gmra.mxu1 %vm839_vm0, %v7040_v3 }
 0x1b4   : > { %12055 = vst [vmem:[#allocation33_spill] sm:$0xff] %v9135_v17  ;;  %v9139_v61 = vadd.f32 %v1883_v38, %v1314_v15  ;;  %2490 = vmatprep.mubr.f32.mxu0 %v12017_v50  ;;  %3253 = vmatprep.mubr.f32.mxu1 %v12017_v50  ;;  %v7042_v15 = vld [vmem:[%s8259_s26 + $0x140] sm:$0xff] }
 0x1b5   : > { %v1316_v34 = vpop.f32.mrf.mxu0  ;;  %v1885_v47 = vpop.f32.mrf.mxu1 }
 0x1b6   : > { %12056 = vst [vmem:[#allocation34_spill] sm:$0xff] %v9139_v61  ;;  %v9144_v8 = vadd.f32 %v1885_v47, %v1316_v34 }
 0x1b7   : > { %v1320_v1 = vpop.f32.mrf.mxu0  ;;  %v1889_v30 = vpop.f32.mrf.mxu1  ;;  %6985 = vmatmul.mubr.msk.f32.gmra.mxu0 %vm839_vm0, %v7039_v40  ;;  %7121 = vmatmul.mubr.msk.f32.gmra.mxu1 %vm839_vm0, %v7041_v13 }
 0x1b8   : > { %12057 = vst [vmem:[#allocation35_spill] sm:$0xff] %v9144_v8  ;;  %v9148_v59 = vadd.f32 %v1889_v30, %v1320_v1  ;;  %2496 = vmatprep.mubr.f32.mxu0 %v12017_v50  ;;  %3259 = vmatprep.mubr.f32.mxu1 %v12017_v50  ;;  %v7043_v1 = vld [vmem:[%s8259_s26 + $0x148] sm:$0xff] }
 0x1b9   : > { %v1322_v38 = vpop.f32.mrf.mxu0  ;;  %v1891_v61 = vpop.f32.mrf.mxu1 }
 0x1ba   : > { %12058 = vst [vmem:[#allocation36_spill] sm:$0xff] %v9148_v59  ;;  %v9153_v17 = vadd.f32 %v1891_v61, %v1322_v38 }
 0x1bb   : > { %v1326_v47 = vpop.f32.mrf.mxu0  ;;  %v1895_v34 = vpop.f32.mrf.mxu1  ;;  %6986 = vmatmul.mubr.msk.f32.gmra.mxu0 %vm839_vm0, %v7040_v3  ;;  %7122 = vmatmul.mubr.msk.f32.gmra.mxu1 %vm839_vm0, %v7042_v15 }
 0x1bc   : > { %12059 = vst [vmem:[#allocation37_spill] sm:$0xff] %v9153_v17  ;;  %v9157_v40 = vadd.f32 %v1895_v34, %v1326_v47  ;;  %2502 = vmatprep.mubr.f32.mxu0 %v12017_v50  ;;  %3265 = vmatprep.mubr.f32.mxu1 %v12017_v50  ;;  %v7044_v47 = vld [vmem:[%s8259_s26 + $0x150] sm:$0xff] }
 0x1bd   : > { %v1328_v30 = vpop.f32.mrf.mxu0  ;;  %v1897_v59 = vpop.f32.mrf.mxu1 }
 0x1be   : > { %12060 = vst [vmem:[#allocation38_spill] sm:$0xff] %v9157_v40  ;;  %v9162_v8 = vadd.f32 %v1897_v59, %v1328_v30 }
 0x1bf   : > { %v1332_v61 = vpop.f32.mrf.mxu0  ;;  %v1901_v38 = vpop.f32.mrf.mxu1  ;;  %6987 = vmatmul.mubr.msk.f32.gmra.mxu0 %vm839_vm0, %v7041_v13  ;;  %7123 = vmatmul.mubr.msk.f32.gmra.mxu1 %vm839_vm0, %v7043_v1 }
 0x1c0   : > { %12061 = vst [vmem:[#allocation39_spill] sm:$0xff] %v9162_v8  ;;  %v9166_v3 = vadd.f32 %v1901_v38, %v1332_v61  ;;  %2508 = vmatprep.mubr.f32.mxu0 %v12017_v50  ;;  %3271 = vmatprep.mubr.f32.mxu1 %v12017_v50  ;;  %v7045_v61 = vld [vmem:[%s8259_s26 + $0x158] sm:$0xff] }
 0x1c1   : > { %v1334_v34 = vpop.f32.mrf.mxu0  ;;  %v1903_v40 = vpop.f32.mrf.mxu1 }
 0x1c2   : > { %12062 = vst [vmem:[#allocation40_spill] sm:$0xff] %v9166_v3  ;;  %v9171_v17 = vadd.f32 %v1903_v40, %v1334_v34 }
 0x1c3   : > { %v1338_v59 = vpop.f32.mrf.mxu0  ;;  %v1907_v30 = vpop.f32.mrf.mxu1  ;;  %6988 = vmatmul.mubr.msk.f32.gmra.mxu0 %vm839_vm0, %v7042_v15  ;;  %7124 = vmatmul.mubr.msk.f32.gmra.mxu1 %vm839_vm0, %v7044_v47 }
 0x1c4   : > { %12063 = vst [vmem:[#allocation41_spill] sm:$0xff] %v9171_v17  ;;  %v9175_v13 = vadd.f32 %v1907_v30, %v1338_v59  ;;  %2514 = vmatprep.mubr.f32.mxu0 %v12017_v50  ;;  %3277 = vmatprep.mubr.f32.mxu1 %v12017_v50  ;;  %v7046_v59 = vld [vmem:[%s8259_s26 + $0x160] sm:$0xff] }
 0x1c5   : > { %v1340_v38 = vpop.f32.mrf.mxu0  ;;  %v1909_v3 = vpop.f32.mrf.mxu1 }
 0x1c6   : > { %12064 = vst [vmem:[#allocation42_spill] sm:$0xff] %v9175_v13  ;;  %v9180_v8 = vadd.f32 %v1909_v3, %v1340_v38 }
 0x1c7   : > { %v1344_v40 = vpop.f32.mrf.mxu0  ;;  %v1913_v34 = vpop.f32.mrf.mxu1  ;;  %6989 = vmatmul.mubr.msk.f32.gmra.mxu0 %vm839_vm0, %v7043_v1  ;;  %7125 = vmatmul.mubr.msk.f32.gmra.mxu1 %vm839_vm0, %v7045_v61 }
 0x1c8   : > { %12065 = vst [vmem:[#allocation43_spill] sm:$0xff] %v9180_v8  ;;  %v9184_v15 = vadd.f32 %v1913_v34, %v1344_v40  ;;  %2520 = vmatprep.mubr.f32.mxu0 %v12017_v50  ;;  %3283 = vmatprep.mubr.f32.mxu1 %v12017_v50  ;;  %v7047_v40 = vld [vmem:[%s8259_s26 + $0x168] sm:$0xff] }
 0x1c9   : > { %v1346_v30 = vpop.f32.mrf.mxu0  ;;  %v1915_v13 = vpop.f32.mrf.mxu1 }
 0x1ca   : > { %12066 = vst [vmem:[#allocation44_spill] sm:$0xff] %v9184_v15  ;;  %v9189_v17 = vadd.f32 %v1915_v13, %v1346_v30 }
 0x1cb   : > { %v1350_v3 = vpop.f32.mrf.mxu0  ;;  %v1919_v38 = vpop.f32.mrf.mxu1  ;;  %6990 = vmatmul.mubr.msk.f32.gmra.mxu0 %vm839_vm0, %v7044_v47  ;;  %7126 = vmatmul.mubr.msk.f32.gmra.mxu1 %vm839_vm0, %v7046_v59 }
 0x1cc   : > { %12067 = vst [vmem:[#allocation45_spill] sm:$0xff] %v9189_v17  ;;  %v9193_v1 = vadd.f32 %v1919_v38, %v1350_v3  ;;  %2526 = vmatprep.mubr.f32.mxu0 %v12017_v50  ;;  %3289 = vmatprep.mubr.f32.mxu1 %v12017_v50  ;;  %v7048_v3 = vld [vmem:[%s8259_s26 + $0x170] sm:$0xff] }
 0x1cd   : > { %v1352_v34 = vpop.f32.mrf.mxu0  ;;  %v1921_v15 = vpop.f32.mrf.mxu1 }
 0x1ce   : > { %12068 = vst [vmem:[#allocation46_spill] sm:$0xff] %v9193_v1  ;;  %v9198_v8 = vadd.f32 %v1921_v15, %v1352_v34 }
 0x1cf   : > { %v1356_v13 = vpop.f32.mrf.mxu0  ;;  %v1925_v30 = vpop.f32.mrf.mxu1  ;;  %6991 = vmatmul.mubr.msk.f32.gmra.mxu0 %vm839_vm0, %v7045_v61  ;;  %7127 = vmatmul.mubr.msk.f32.gmra.mxu1 %vm839_vm0, %v7047_v40 }
 0x1d0   : > { %12069 = vst [vmem:[#allocation47_spill] sm:$0xff] %v9198_v8  ;;  %v9202_v47 = vadd.f32 %v1925_v30, %v1356_v13  ;;  %2532 = vmatprep.mubr.f32.mxu0 %v12017_v50  ;;  %3295 = vmatprep.mubr.f32.mxu1 %v12017_v50  ;;  %v7049_v13 = vld [vmem:[%s8259_s26 + $0x178] sm:$0xff] }
 0x1d1   : > { %v1358_v38 = vpop.f32.mrf.mxu0  ;;  %v1927_v1 = vpop.f32.mrf.mxu1 }
 0x1d2   : > { %12070 = vst [vmem:[#allocation48_spill] sm:$0xff] %v9202_v47  ;;  %v9207_v17 = vadd.f32 %v1927_v1, %v1358_v38 }
 0x1d3   : > { %v1362_v15 = vpop.f32.mrf.mxu0  ;;  %v1931_v34 = vpop.f32.mrf.mxu1  ;;  %6992 = vmatmul.mubr.msk.f32.gmra.mxu0 %vm839_vm0, %v7046_v59  ;;  %7128 = vmatmul.mubr.msk.f32.gmra.mxu1 %vm839_vm0, %v7048_v3 }
 0x1d4   : > { %12071 = vst [vmem:[#allocation49_spill] sm:$0xff] %v9207_v17  ;;  %v9211_v61 = vadd.f32 %v1931_v34, %v1362_v15  ;;  %2538 = vmatprep.mubr.f32.mxu0 %v12017_v50  ;;  %3301 = vmatprep.mubr.f32.mxu1 %v12017_v50  ;;  %v7050_v15 = vld [vmem:[%s8259_s26 + $0x180] sm:$0xff] }
 0x1d5   : > { %v1364_v30 = vpop.f32.mrf.mxu0  ;;  %v1933_v47 = vpop.f32.mrf.mxu1 }
 0x1d6   : > { %12072 = vst [vmem:[#allocation50_spill] sm:$0xff] %v9211_v61  ;;  %v9216_v8 = vadd.f32 %v1933_v47, %v1364_v30 }
 0x1d7   : > { %v1368_v1 = vpop.f32.mrf.mxu0  ;;  %v1937_v38 = vpop.f32.mrf.mxu1  ;;  %6993 = vmatmul.mubr.msk.f32.gmra.mxu0 %vm839_vm0, %v7047_v40  ;;  %7129 = vmatmul.mubr.msk.f32.gmra.mxu1 %vm839_vm0, %v7049_v13 }
 0x1d8   : > { %12073 = vst [vmem:[#allocation51_spill] sm:$0xff] %v9216_v8  ;;  %v9220_v59 = vadd.f32 %v1937_v38, %v1368_v1  ;;  %2544 = vmatprep.mubr.f32.mxu0 %v12017_v50  ;;  %3307 = vmatprep.mubr.f32.mxu1 %v12017_v50  ;;  %v7051_v1 = vld [vmem:[%s8259_s26 + $0x188] sm:$0xff] }
 0x1d9   : > { %v1370_v34 = vpop.f32.mrf.mxu0  ;;  %v1939_v61 = vpop.f32.mrf.mxu1 }
 0x1da   : > { %12074 = vst [vmem:[#allocation52_spill] sm:$0xff] %v9220_v59  ;;  %v9225_v17 = vadd.f32 %v1939_v61, %v1370_v34 }
 0x1db   : > { %v1374_v47 = vpop.f32.mrf.mxu0  ;;  %v1943_v30 = vpop.f32.mrf.mxu1  ;;  %6994 = vmatmul.mubr.msk.f32.gmra.mxu0 %vm839_vm0, %v7048_v3  ;;  %7130 = vmatmul.mubr.msk.f32.gmra.mxu1 %vm839_vm0, %v7050_v15 }
 0x1dc   : > { %12075 = vst [vmem:[#allocation53_spill] sm:$0xff] %v9225_v17  ;;  %v9229_v40 = vadd.f32 %v1943_v30, %v1374_v47  ;;  %2550 = vmatprep.mubr.f32.mxu0 %v12017_v50  ;;  %3313 = vmatprep.mubr.f32.mxu1 %v12017_v50  ;;  %v7052_v47 = vld [vmem:[%s8259_s26 + $0x190] sm:$0xff]  ;;  %v7311_v30 = vld [vmem:[%s12008_s3 + $0x1f8] sm:$0xff] }
 0x1dd   : > { %v1376_v38 = vpop.f32.mrf.mxu0  ;;  %v1945_v59 = vpop.f32.mrf.mxu1  ;;  %4652 = vmatprep.subr.mxu1 %v7311_v30  ;;  %v7053_v30 = vld [vmem:[%s8259_s26 + $0x198] sm:$0xff] }
 0x1de   : > { %12076 = vst [vmem:[#allocation54_spill] sm:$0xff] %v9229_v40  ;;  %v9234_v8 = vadd.f32 %v1945_v59, %v1376_v38 }
 0x1df   : > { %v1380_v61 = vpop.f32.mrf.mxu0  ;;  %v1949_v34 = vpop.f32.mrf.mxu1  ;;  %6995 = vmatmul.mubr.msk.f32.gmra.mxu0 %vm839_vm0, %v7049_v13  ;;  %7131 = vmatmul.mubr.msk.f32.gmra.mxu1 %vm839_vm0, %v7051_v1  ;;  %v7310_v13 = vld [vmem:[%s12008_s3 + $0x1f0] sm:$0xff] }
 0x1e0   : > { %12077 = vst [vmem:[#allocation55_spill] sm:$0xff] %v9234_v8  ;;  %v9238_v3 = vadd.f32 %v1949_v34, %v1380_v61  ;;  %2556 = vmatprep.mubr.f32.mxu0 %v12017_v50  ;;  %3319 = vmatprep.mubr.f32.mxu1 %v12017_v50 }
 0x1e1   : > { %v1382_v59 = vpop.f32.mrf.mxu0  ;;  %v1951_v38 = vpop.f32.mrf.mxu1  ;;  %4653 = vmatpush1.msra.mxu1 %v7310_v13 }
 0x1e2   : > { %12078 = vst [vmem:[#allocation56_spill] sm:$0xff] %v9238_v3  ;;  %v9246_v8 = vadd.f32 %v1951_v38, %v1382_v59  ;;  %v12081_v3 = vmov 0.0  }
 0x1e3   : > { %v1386_v61 = vpop.f32.mrf.mxu0  ;;  %v1955_v34 = vpop.f32.mrf.mxu1  ;;  %6996 = vmatmul.mubr.msk.f32.gmra.mxu0 %vm839_vm0, %v7050_v15  ;;  %7132 = vmatmul.mubr.msk.f32.gmra.mxu1 %vm839_vm0, %v7052_v47 }
 0x1e4   : > { %12079 = vst [vmem:[#allocation57_spill] sm:$0xff] %v9246_v8  ;;  %v9253_v50 = vadd.f32 %v1955_v34, %v1386_v61  ;;  %2562 = vmatprep.mubr.f32.mxu0 %v12081_v3  ;;  %3325 = vmatprep.mubr.f32.mxu1 %v12081_v3  ;;  %v7054_v61 = vld [vmem:[%s8259_s26 + $0x1a0] sm:$0xff] }
 0x1e5   : > { %v1388_v59 = vpop.f32.mrf.mxu0  ;;  %v1957_v38 = vpop.f32.mrf.mxu1 }
 0x1e6   : > { %12080 = vst [vmem:[#allocation58_spill] sm:$0xff] %v9253_v50  ;;  %v9258_v8 = vadd.f32 %v1957_v38, %v1388_v59 }
 0x1e7   : > { %v1392_v40 = vpop.f32.mrf.mxu0  ;;  %v1961_v17 = vpop.f32.mrf.mxu1  ;;  %6997 = vmatmul.mubr.msk.f32.gmra.mxu0 %vm839_vm0, %v7051_v1  ;;  %7133 = vmatmul.mubr.msk.f32.gmra.mxu1 %vm839_vm0, %v7053_v30 }
 0x1e8   : > { %12082 = vst [vmem:[#allocation59_spill] sm:$0xff] %v9258_v8  ;;  %v9262_v15 = vadd.f32 %v1961_v17, %v1392_v40  ;;  %2568 = vmatprep.mubr.f32.mxu0 %v12081_v3  ;;  %3331 = vmatprep.mubr.f32.mxu1 %v12081_v3  ;;  %v7055_v17 = vld [vmem:[%s8259_s26 + $0x1a8] sm:$0xff] }
 0x1e9   : > { %v1394_v34 = vpop.f32.mrf.mxu0  ;;  %v1963_v50 = vpop.f32.mrf.mxu1 }
 0x1ea   : > { %12083 = vst [vmem:[#allocation60_spill] sm:$0xff] %v9262_v15  ;;  %v9267_v27 = vadd.f32 %v1963_v50, %v1394_v34  ;;  %v7309_v50 = vld [vmem:[%s12008_s3 + $0x1e8] sm:$0xff] }
 0x1eb   : > { %v1398_v13 = vpop.f32.mrf.mxu0  ;;  %v1967_v59 = vpop.f32.mrf.mxu1  ;;  %6998 = vmatmul.mubr.msk.f32.gmra.mxu0 %vm839_vm0, %v7052_v47  ;;  %7134 = vmatmul.mubr.msk.f32.gmra.mxu1 %vm839_vm0, %v7054_v61 }
 0x1ec   : > { %12084 = vst [vmem:[#allocation61_spill] sm:$0xff] %v9267_v27  ;;  %v9271_v1 = vadd.f32 %v1967_v59, %v1398_v13  ;;  %2574 = vmatprep.mubr.f32.mxu0 %v12081_v3  ;;  %3337 = vmatprep.mubr.f32.mxu1 %v12081_v3  ;;  %v7056_v59 = vld [vmem:[%s8259_s26 + $0x1b0] sm:$0xff] }
 0x1ed   : > { %v1400_v40 = vpop.f32.mrf.mxu0  ;;  %v1969_v38 = vpop.f32.mrf.mxu1  ;;  %4654 = vmatprep.subr.mxu1 %v7309_v50 }
 0x1ee   : > { %12085 = vst [vmem:[#allocation62_spill] sm:$0xff] %v9271_v1  ;;  %v9276_v15 = vadd.f32 %v1969_v38, %v1400_v40  ;;  %v7308_v40 = vld [vmem:[%s12008_s3 + $0x1e0] sm:$0xff] }
 0x1ef   : > { %v1404_v34 = vpop.f32.mrf.mxu0  ;;  %v1973_v47 = vpop.f32.mrf.mxu1  ;;  %6999 = vmatmul.mubr.msk.f32.gmra.mxu0 %vm839_vm0, %v7053_v30  ;;  %7135 = vmatmul.mubr.msk.f32.gmra.mxu1 %vm839_vm0, %v7055_v17 }
 0x1f0   : > { %12086 = vst [vmem:[#allocation63_spill] sm:$0xff] %v9276_v15  ;;  %v9283_v13 = vadd.f32 %v1973_v47, %v1404_v34  ;;  %2580 = vmatprep.mubr.f32.mxu0 %v12081_v3  ;;  %3343 = vmatprep.mubr.f32.mxu1 %v12081_v3 }
 0x1f1   : > { %v1406_v38 = vpop.f32.mrf.mxu0  ;;  %v1975_v15 = vpop.f32.mrf.mxu1  ;;  %4655 = vmatpush1.msra.mxu1 %v7308_v40 }
 0x1f2   : > { %12087 = vst [vmem:[#allocation64_spill] sm:$0xff] %v9283_v13  ;;  %v9291_v1 = vadd.f32 %v1975_v15, %v1406_v38  ;;  %v7057_v13 = vld [vmem:[%s8259_s26 + $0x1b8] sm:$0xff]  ;;  %v7058_v38 = vld [vmem:[%s8259_s26 + $0x1c0] sm:$0xff] }
 0x1f3   : > { %v2294_v30 = vpop.f32.mrf.mxu0  ;;  %7000 = vmatmul.mubr.msk.f32.gmra.mxu0 %vm839_vm0, %v7054_v61  ;;  %v3057_v34 = vpop.f32.mrf.mxu1  ;;  %7136 = vmatmul.mubr.msk.f32.gmra.mxu1 %vm839_vm0, %v7056_v59 }
 0x1f4   : > { %v2629_v47 = vadd.f32 %v2294_v30, %v8699_v35  ;;  %2586 = vmatprep.mubr.f32.mxu0 %v12081_v3  ;;  %3349 = vmatprep.mubr.f32.mxu1 %v12081_v3 }
 0x1f5   : > { %v2296_v27 = vpop.f32.mrf.mxu0  ;;  %v9299_v8 = vpop.f32.mrf.mxu1 }
 0x1f6   : > { %12088 = vst [vmem:[#allocation65_spill] sm:$0xff] %v9299_v8  ;;  %v9302_v15 = vadd.f32 %v2296_v27, %v8704_v39  ;;  %v9304_v50 = vadd.f32 %v3057_v34, %v2629_v47  ;;  %v7059_v47 = vld [vmem:[%s8259_s26 + $0x1c8] sm:$0xff] }
 0x1f7   : > { %v2300_v61 = vpop.f32.mrf.mxu0  ;;  %7001 = vmatmul.mubr.msk.f32.gmra.mxu0 %vm839_vm0, %v7055_v17  ;;  %v3063_v40 = vpop.f32.mrf.mxu1  ;;  %7137 = vmatmul.mubr.msk.f32.gmra.mxu1 %vm839_vm0, %v7057_v13 }
 0x1f8   : > { %v2631_v35 = vadd.f32 %v2300_v61, %v8708_v42  ;;  %2592 = vmatprep.mubr.f32.mxu0 %v12081_v3  ;;  %3355 = vmatprep.mubr.f32.mxu1 %v12081_v3 }
 0x1f9   : > { %v2302_v30 = vpop.f32.mrf.mxu0  ;;  %v9312_v8 = vpop.f32.mrf.mxu1 }
 0x1fa   : > { %12089 = vst [vmem:[#allocation66_spill] sm:$0xff] %v9312_v8  ;;  %v9315_v39 = vadd.f32 %v2302_v30, %v8713_v46  ;;  %v9317_v27 = vadd.f32 %v3063_v40, %v2631_v35  ;;  %v7307_v46 = vld [vmem:[%s12008_s3 + $0x1d8] sm:$0xff] }
 0x1fb   : > { %v2306_v17 = vpop.f32.mrf.mxu0  ;;  %7002 = vmatmul.mubr.msk.f32.gmra.mxu0 %vm839_vm0, %v7056_v59  ;;  %v3069_v34 = vpop.f32.mrf.mxu1  ;;  %7138 = vmatmul.mubr.msk.f32.gmra.mxu1 %vm839_vm0, %v7058_v38 }
 0x1fc   : > { %v2633_v42 = vadd.f32 %v2306_v17, %v8717_v49  ;;  %2598 = vmatprep.mubr.f32.mxu0 %v12081_v3  ;;  %3361 = vmatprep.mubr.f32.mxu1 %v12081_v3  ;;  %v7306_v49 = vld [vmem:[%s12008_s3 + $0x1d0] sm:$0xff] }
 0x1fd   : > { %v2308_v61 = vpop.f32.mrf.mxu0  ;;  %v9328_v40 = vpop.f32.mrf.mxu1  ;;  %4656 = vmatprep.subr.mxu1 %v7307_v46 }
 0x1fe   : > { %v9331_v59 = vadd.f32 %v2308_v61, %v8722_v54  ;;  %v9333_v35 = vadd.f32 %v3069_v34, %v2633_v42  ;;  %v7060_v54 = vld [vmem:[%s8259_s26 + $0x1d0] sm:$0xff]  ;;  %4657 = vmatpush1.msra.mxu1 %v7306_v49  ;;  %v7061_v49 = vld [vmem:[%s8259_s26 + $0x1d8] sm:$0xff] }
 0x1ff   : > { %v2312_v30 = vpop.f32.mrf.mxu0  ;;  %7003 = vmatmul.mubr.msk.f32.gmra.mxu0 %vm839_vm0, %v7057_v13  ;;  %v3075_v17 = vpop.f32.mrf.mxu1  ;;  %7139 = vmatmul.mubr.msk.f32.gmra.mxu1 %vm839_vm0, %v7059_v47 }
 0x200   : > { %12090 = vst [vmem:[#allocation67_spill] sm:$0xff] %v9333_v35  ;;  %v2635_v8 = vadd.f32 %v2312_v30, %v8726_v57  ;;  %2604 = vmatprep.mubr.f32.mxu0 %v12081_v3  ;;  %3367 = vmatprep.mubr.f32.mxu1 %v12081_v3 }
 0x201   : > { %v2314_v34 = vpop.f32.mrf.mxu0  ;;  %v9344_v42 = vpop.f32.mrf.mxu1 }
 0x202   : > { %v9347_v46 = vadd.f32 %v2314_v34, %v8731_v63  ;;  %v9349_v61 = vadd.f32 %v3075_v17, %v2635_v8  ;;  %v7062_v34 = vld [vmem:[%s8259_s26 + $0x1e0] sm:$0xff] }
 0x203   : > { %v2318_v13 = vpop.f32.mrf.mxu0  ;;  %7004 = vmatmul.mubr.msk.f32.gmra.mxu0 %vm839_vm0, %v7058_v38  ;;  %v9352_v35 = vpop.f32.mrf.mxu1  ;;  %7140 = vmatmul.mubr.msk.f32.gmra.mxu1 %vm839_vm0, %v7060_v54 }
 0x204   : > { %v9356_v57 = vadd.f32 %v2318_v13, %v8735_v4  ;;  %2610 = vmatprep.mubr.f32.mxu0 %v12081_v3  ;;  %3373 = vmatprep.mubr.f32.mxu1 %v12081_v3 }
 0x205   : > { %v2320_v63 = vpop.f32.mrf.mxu0  ;;  %v9361_v30 = vpop.f32.mrf.mxu1 }
 0x206   : > { %12091 = vst [vmem:[#allocation68_spill] sm:$0xff] %v9361_v30  ;;  %v9364_v8 = vadd.f32 %v2320_v63, %v8740_v10 }
 0x207   : > { %v2324_v38 = vpop.f32.mrf.mxu0  ;;  %7005 = vmatmul.mubr.msk.f32.gmra.mxu0 %vm839_vm0, %v7059_v47  ;;  %v9367_v17 = vpop.f32.mrf.mxu1  ;;  %7141 = vmatmul.mubr.msk.f32.gmra.mxu1 %vm839_vm0, %v7061_v49  ;;  %v7305_v47 = vld [vmem:[%s12008_s3 + $0x1c8] sm:$0xff] }
 0x208   : > { %v9371_v4 = vadd.f32 %v2324_v38, %v8744_v16  ;;  %2616 = vmatprep.mubr.f32.mxu0 %v12081_v3  ;;  %3379 = vmatprep.mubr.f32.mxu1 %v12081_v3 }
 0x209   : > { %v2326_v13 = vpop.f32.mrf.mxu0  ;;  %v9376_v30 = vpop.f32.mrf.mxu1  ;;  %4658 = vmatprep.subr.mxu1 %v7305_v47 }
 0x20a   : > { %12092 = vst [vmem:[#allocation69_spill] sm:$0xff] %v9376_v30  ;;  %v9379_v10 = vadd.f32 %v2326_v13, %v8749_v22  ;;  %v7063_v22 = vld [vmem:[%s8259_s26 + $0x1e8] sm:$0xff]  ;;  %v7304_v13 = vld [vmem:[%s12008_s3 + $0x1c0] sm:$0xff] }
 0x20b   : > { %v2330_v63 = vpop.f32.mrf.mxu0  ;;  %7006 = vmatmul.mubr.msk.f32.gmra.mxu0 %vm839_vm0, %v7060_v54  ;;  %v9385_v16 = vpop.f32.mrf.mxu1  ;;  %7142 = vmatmul.mubr.msk.f32.gmra.mxu1 %vm839_vm0, %v7062_v34 }
 0x20c   : > { %12093 = vst [vmem:[#allocation70_spill] sm:$0xff] %v9379_v10  ;;  %12094 = vst [vmem:[#allocation71_spill] sm:$0xff] %v9385_v16  ;;  %v9389_v38 = vadd.f32 %v2330_v63, %v8753_v25  ;;  %2622 = vmatprep.mubr.f32.mxu0 %v12081_v3  ;;  %3385 = vmatprep.mubr.f32.mxu1 %v12081_v3  ;;  %v7144_v16 = vld [vmem:[%s8259_s26 + $0x40] sm:$0xff] }
 0x20d   : > { %v2332_v30 = vpop.f32.mrf.mxu0  ;;  %v9397_v10 = vpop.f32.mrf.mxu1  ;;  %4659 = vmatpush1.msra.mxu1 %v7304_v13 }
 0x20e   : > { %v9400_v54 = vadd.f32 %v2332_v30, %v8758_v29 }
 0x20f   : > { %v2336_v25 = vpop.f32.mrf.mxu0  ;;  %7007 = vmatmul.mubr.msk.f32.gmra.mxu0 %vm839_vm0, %v7061_v49  ;;  %v9403_v34 = vpop.f32.mrf.mxu1  ;;  %7143 = vmatmul.mubr.msk.f32.gmra.mxu1 %vm839_vm0, %v7063_v22  ;;  %v7145_v22 = vld [vmem:[%s8259_s26 + $0x48] sm:$0xff] }
 0x210   : > { %12095 = vst [vmem:[#allocation72_spill] sm:$0xff] %v9403_v34  ;;  %v9407_v63 = vadd.f32 %v2336_v25, %v8762_v32  ;;  %3818 = vmatprep.mubr.f32.mxu0 %v12081_v3  ;;  %4716 = vmatprep.mubr.f32.mxu1 %v12081_v3 }
 0x211   : > { %v2338_v47 = vpop.f32.mrf.mxu0  ;;  %v9412_v29 = vpop.f32.mrf.mxu1 }
 0x212   : > { %12096 = vst [vmem:[#allocation73_spill] sm:$0xff] %v9407_v63  ;;  %12097 = vst [vmem:[#allocation74_spill] sm:$0xff] %v9412_v29  ;;  %v9415_v30 = vadd.f32 %v2338_v47, %v8769_v37  ;;  %v7303_v47 = vld [vmem:[%s12008_s3 + $0x1b8] sm:$0xff] }
 0x213   : > { %v2342_v49 = vpop.f32.mrf.mxu0  ;;  %7224 = vmatmul.mubr.msk.f32.vlgmr.msra.gmra.mxu0 %vm839_vm0, %v7144_v16  ;;  %v9418_v13 = vpop.f32.mrf.mxu1  ;;  %4660 = vmatprep.subr.mxu1 %v7303_v47  ;;  %v7147_v47 = vld [vmem:[%s8259_s26 + $0x58] sm:$0xff] }
 0x214   : > { %v9421_v32 = vadd.f32 %v2342_v49, %v8781_v44  ;;  %3824 = vmatprep.mubr.f32.mxu0 %v12081_v3  ;;  %v7146_v44 = vld [vmem:[%s8259_s26 + $0x50] sm:$0xff] }
 0x215   : > { %v2344_v25 = vpop.f32.mrf.mxu0  ;;  %v9425_v34 = vpop.f32.mrf.mxu1 }
 0x216   : > { %12098 = vst [vmem:[#allocation75_spill] sm:$0xff] %v9425_v34  ;;  %v9428_v29 = vadd.f32 %v2344_v25, %v8785_v48 }
 0x217   : > { %v2348_v63 = vpop.f32.mrf.mxu0  ;;  %7225 = vmatmul.mubr.msk.f32.gmra.mxu0 %vm839_vm0, %v7145_v22  ;;  %v9431_v37 = vpop.f32.mrf.mxu1  ;;  %v7302_v22 = vld [vmem:[%s12008_s3 + $0x1b0] sm:$0xff] }
 0x218   : > { %v9434_v16 = vadd.f32 %v2348_v63, %v8797_v55  ;;  %3830 = vmatprep.mubr.f32.mxu0 %v12081_v3  ;;  %4661 = vmatpush1.msra.mxu1 %v7302_v22 }
 0x219   : > { %v2350_v49 = vpop.f32.mrf.mxu0  ;;  %v9441_v34 = vpop.f32.mrf.mxu1 }
 0x21a   : > { %12099 = vst [vmem:[#allocation76_spill] sm:$0xff] %v9441_v34  ;;  %v9444_v48 = vadd.f32 %v2350_v49, %v8801_v60 }
 0x21b   : > { %v2354_v55 = vpop.f32.mrf.mxu0  ;;  %7226 = vmatmul.mubr.msk.f32.gmra.mxu0 %vm839_vm0, %v7146_v44  ;;  %v9450_v63 = vpop.f32.mrf.mxu1 }
 0x21c   : > { %12100 = vst [vmem:[#allocation77_spill] sm:$0xff] %v9444_v48  ;;  %12101 = vst [vmem:[#allocation78_spill] sm:$0xff] %v9450_v63  ;;  %v9453_v25 = vadd.f32 %v2354_v55, %v8813_v5  ;;  %3836 = vmatprep.mubr.f32.mxu0 %v12081_v3  ;;  %v7148_v5 = vld [vmem:[%s8259_s26 + $0x60] sm:$0xff] }
 0x21d   : > { %v2356_v34 = vpop.f32.mrf.mxu0  ;;  %v9457_v60 = vpop.f32.mrf.mxu1 }
 0x21e   : > { %12102 = vst [vmem:[#allocation79_spill] sm:$0xff] %v9453_v25  ;;  %12103 = vst [vmem:[#allocation80_spill] sm:$0xff] %v9457_v60  ;;  %v9460_v49 = vadd.f32 %v2356_v34, %v8817_v11 }
 0x21f   : > { %v2360_v48 = vpop.f32.mrf.mxu0  ;;  %7227 = vmatmul.mubr.msk.f32.gmra.mxu0 %vm839_vm0, %v7147_v47  ;;  %v9463_v44 = vpop.f32.mrf.mxu1 }
 0x220   : > { %v9466_v22 = vadd.f32 %v2360_v48, %v8829_v21  ;;  %3842 = vmatprep.mubr.f32.mxu0 %v12081_v3  ;;  %v7149_v21 = vld [vmem:[%s8259_s26 + $0x68] sm:$0xff] }
 0x221   : > { %v2362_v55 = vpop.f32.mrf.mxu0  ;;  %v9470_v63 = vpop.f32.mrf.mxu1 }
 0x222   : > { %12104 = vst [vmem:[#allocation81_spill] sm:$0xff] %v9470_v63  ;;  %v9473_v60 = vadd.f32 %v2362_v55, %v8833_v26  ;;  %v7301_v26 = vld [vmem:[%s12008_s3 + $0x1a8] sm:$0xff] }
 0x223   : > { %v2366_v25 = vpop.f32.mrf.mxu0  ;;  %7228 = vmatmul.mubr.msk.f32.gmra.mxu0 %vm839_vm0, %v7148_v5  ;;  %v9476_v11 = vpop.f32.mrf.mxu1  ;;  %4662 = vmatprep.subr.mxu1 %v7301_v26 }
 0x224   : > { %v9479_v34 = vadd.f32 %v2366_v25, %v8845_v31  ;;  %3848 = vmatprep.mubr.f32.mxu0 %v12081_v3  ;;  %v7150_v25 = vld [vmem:[%s8259_s26 + $0x70] sm:$0xff] }
 0x225   : > { %v2368_v48 = vpop.f32.mrf.mxu0  ;;  %v9483_v47 = vpop.f32.mrf.mxu1 }
 0x226   : > { %12105 = vst [vmem:[#allocation82_spill] sm:$0xff] %v9483_v47  ;;  %v9486_v63 = vadd.f32 %v2368_v48, %v8849_v36  ;;  %v7300_v36 = vld [vmem:[%s12008_s3 + $0x1a0] sm:$0xff] }
 0x227   : > { %v2372_v55 = vpop.f32.mrf.mxu0  ;;  %7229 = vmatmul.mubr.msk.f32.gmra.mxu0 %vm839_vm0, %v7149_v21  ;;  %v9492_v5 = vpop.f32.mrf.mxu1  ;;  %4663 = vmatpush1.msra.mxu1 %v7300_v36 }
 0x228   : > { %12106 = vst [vmem:[#allocation83_spill] sm:$0xff] %v9486_v63  ;;  %12107 = vst [vmem:[#allocation84_spill] sm:$0xff] %v9492_v5  ;;  %v9495_v31 = vadd.f32 %v2372_v55, %v8861_v43  ;;  %3854 = vmatprep.mubr.f32.mxu0 %v12081_v3  ;;  %v7151_v55 = vld [vmem:[%s8259_s26 + $0x78] sm:$0xff] }
 0x229   : > { %v2374_v48 = vpop.f32.mrf.mxu0  ;;  %v9502_v47 = vpop.f32.mrf.mxu1 }
 0x22a   : > { %12108 = vst [vmem:[#allocation85_spill] sm:$0xff] %v9495_v31  ;;  %12109 = vst [vmem:[#allocation86_spill] sm:$0xff] %v9502_v47  ;;  %v9505_v21 = vadd.f32 %v2374_v48, %v8865_v58 }
 0x22b   : > { %v2378_v5 = vpop.f32.mrf.mxu0  ;;  %7230 = vmatmul.mubr.msk.f32.gmra.mxu0 %vm839_vm0, %v7150_v25  ;;  %v9508_v43 = vpop.f32.mrf.mxu1 }
 0x22c   : > { %12110 = vst [vmem:[#allocation87_spill] sm:$0xff] %v9505_v21  ;;  %v9511_v26 = vadd.f32 %v2378_v5, %v8877_v56  ;;  %3860 = vmatprep.mubr.f32.mxu0 %v12081_v3  ;;  %v7152_v56 = vld [vmem:[%s8259_s26 + $0x80] sm:$0xff] }
 0x22d   : > { %v2380_v31 = vpop.f32.mrf.mxu0  ;;  %v9515_v63 = vpop.f32.mrf.mxu1 }
 0x22e   : > { %12111 = vst [vmem:[#allocation88_spill] sm:$0xff] %v9515_v63  ;;  %v9518_v36 = vadd.f32 %v2380_v31, %v8881_v62 }
 0x22f   : > { %v2384_v58 = vpop.f32.mrf.mxu0  ;;  %7231 = vmatmul.mubr.msk.f32.gmra.mxu0 %vm839_vm0, %v7151_v55  ;;  %v9521_v48 = vpop.f32.mrf.mxu1  ;;  %v7299_v55 = vld [vmem:[%s12008_s3 + $0x198] sm:$0xff] }
 0x230   : > { %v9524_v25 = vadd.f32 %v2384_v58, %v8893_v7  ;;  %3866 = vmatprep.mubr.f32.mxu0 %v12081_v3  ;;  %v7153_v7 = vld [vmem:[%s8259_s26 + $0x88] sm:$0xff]  ;;  %4664 = vmatprep.subr.mxu1 %v7299_v55  ;;  %v7154_v55 = vld [vmem:[%s8259_s26 + $0x90] sm:$0xff] }
 0x231   : > { %v2386_v5 = vpop.f32.mrf.mxu0  ;;  %v9528_v47 = vpop.f32.mrf.mxu1 }
 0x232   : > { %12112 = vst [vmem:[#allocation89_spill] sm:$0xff] %v9528_v47  ;;  %v9531_v63 = vadd.f32 %v2386_v5, %v8898_v14 }
 0x233   : > { %v2390_v21 = vpop.f32.mrf.mxu0  ;;  %7232 = vmatmul.mubr.msk.f32.gmra.mxu0 %vm839_vm0, %v7152_v56  ;;  %v9534_v62 = vpop.f32.mrf.mxu1  ;;  %v7298_v56 = vld [vmem:[%s12008_s3 + $0x190] sm:$0xff] }
 0x234   : > { %v9537_v31 = vadd.f32 %v2390_v21, %v8903_v20  ;;  %3872 = vmatprep.mubr.f32.mxu0 %v12081_v3  ;;  %4665 = vmatpush1.msra.mxu1 %v7298_v56 }
 0x235   : > { %v2392_v58 = vpop.f32.mrf.mxu0  ;;  %v9544_v47 = vpop.f32.mrf.mxu1 }
 0x236   : > { %12113 = vst [vmem:[#allocation90_spill] sm:$0xff] %v9544_v47  ;;  %v9547_v14 = vadd.f32 %v2392_v58, %v8909_v28 }
 0x237   : > { %v2396_v20 = vpop.f32.mrf.mxu0  ;;  %7233 = vmatmul.mubr.msk.f32.gmra.mxu0 %vm839_vm0, %v7153_v7  ;;  %v9553_v21 = vpop.f32.mrf.mxu1 }
 0x238   : > { %12114 = vst [vmem:[#allocation91_spill] sm:$0xff] %v9547_v14  ;;  %12115 = vst [vmem:[#allocation92_spill] sm:$0xff] %v9553_v21  ;;  %v9556_v5 = vadd.f32 %v2396_v20, %v8913_v19  ;;  %3878 = vmatprep.mubr.f32.mxu0 %v12081_v3  ;;  %v7155_v19 = vld [vmem:[%s8259_s26 + $0x98] sm:$0xff] }
 0x239   : > { %v2398_v47 = vpop.f32.mrf.mxu0  ;;  %v9560_v28 = vpop.f32.mrf.mxu1 }
 0x23a   : > { %12116 = vst [vmem:[#allocation93_spill] sm:$0xff] %v9556_v5  ;;  %12117 = vst [vmem:[#allocation94_spill] sm:$0xff] %v9560_v28  ;;  %v9563_v58 = vadd.f32 %v2398_v47, %v8919_v41 }
 0x23b   : > { %v2402_v14 = vpop.f32.mrf.mxu0  ;;  %7234 = vmatmul.mubr.msk.f32.gmra.mxu0 %vm839_vm0, %v7154_v55  ;;  %v9566_v7 = vpop.f32.mrf.mxu1 }
 0x23c   : > { %v9569_v56 = vadd.f32 %v2402_v14, %v8923_v9  ;;  %3884 = vmatprep.mubr.f32.mxu0 %v12081_v3  ;;  %v7156_v9 = vld [vmem:[%s8259_s26 + $0xa0] sm:$0xff] }
 0x23d   : > { %v2404_v20 = vpop.f32.mrf.mxu0  ;;  %v9573_v21 = vpop.f32.mrf.mxu1 }
 0x23e   : > { %12118 = vst [vmem:[#allocation95_spill] sm:$0xff] %v9573_v21  ;;  %v9576_v28 = vadd.f32 %v2404_v20, %v8934_v12  ;;  %v7297_v12 = vld [vmem:[%s12008_s3 + $0x188] sm:$0xff] }
 0x23f   : > { %v2408_v5 = vpop.f32.mrf.mxu0  ;;  %7235 = vmatmul.mubr.msk.f32.gmra.mxu0 %vm839_vm0, %v7155_v19  ;;  %v9579_v41 = vpop.f32.mrf.mxu1  ;;  %4666 = vmatprep.subr.mxu1 %v7297_v12 }
 0x240   : > { %v9582_v47 = vadd.f32 %v2408_v5, %v8938_v2  ;;  %3890 = vmatprep.mubr.f32.mxu0 %v12081_v3  ;;  %v7157_v5 = vld [vmem:[%s8259_s26 + $0xa8] sm:$0xff] }
 0x241   : > { %v2410_v14 = vpop.f32.mrf.mxu0  ;;  %v9586_v55 = vpop.f32.mrf.mxu1 }
 0x242   : > { %12119 = vst [vmem:[#allocation96_spill] sm:$0xff] %v9586_v55  ;;  %v9589_v21 = vadd.f32 %v2410_v14, %v8943_v18  ;;  %v7296_v18 = vld [vmem:[%s12008_s3 + $0x180] sm:$0xff] }
 0x243   : > { %v2414_v20 = vpop.f32.mrf.mxu0  ;;  %7236 = vmatmul.mubr.msk.f32.gmra.mxu0 %vm839_vm0, %v7156_v9  ;;  %v9595_v19 = vpop.f32.mrf.mxu1  ;;  %4667 = vmatpush1.msra.mxu1 %v7296_v18 }
 0x244   : > { %12120 = vst [vmem:[#allocation97_spill] sm:$0xff] %v9589_v21  ;;  %12121 = vst [vmem:[#allocation98_spill] sm:$0xff] %v9595_v19  ;;  %v9598_v2 = vadd.f32 %v2414_v20, %v8947_v24  ;;  %3896 = vmatprep.mubr.f32.mxu0 %v12081_v3  ;;  %v7158_v20 = vld [vmem:[%s8259_s26 + $0xb0] sm:$0xff] }
 0x245   : > { %v2416_v14 = vpop.f32.mrf.mxu0  ;;  %v9605_v55 = vpop.f32.mrf.mxu1 }
 0x246   : > { %12122 = vst [vmem:[#allocation99_spill] sm:$0xff] %v9598_v2  ;;  %v9608_v9 = vadd.f32 %v2416_v14, %v8952_v33 }
 0x247   : > { %v2420_v19 = vpop.f32.mrf.mxu0  ;;  %7237 = vmatmul.mubr.msk.f32.gmra.mxu0 %vm839_vm0, %v7157_v5  ;;  %v9611_v24 = vpop.f32.mrf.mxu1 }
 0x248   : > { %12123 = vst [vmem:[#allocation100_spill] sm:$0xff] %v9611_v24  ;;  %v9614_v12 = vadd.f32 %v2420_v19, %v8956_v6  ;;  %3902 = vmatprep.mubr.f32.mxu0 %v12081_v3  ;;  %v7159_v6 = vld [vmem:[%s8259_s26 + $0xb8] sm:$0xff] }
 0x249   : > { %v2422_v2 = vpop.f32.mrf.mxu0  ;;  %v9618_v21 = vpop.f32.mrf.mxu1 }
 0x24a   : > { %12124 = vst [vmem:[#allocation101_spill] sm:$0xff] %v9614_v12  ;;  %12125 = vst [vmem:[#allocation102_spill] sm:$0xff] %v9618_v21  ;;  %v9621_v18 = vadd.f32 %v2422_v2, %v8961_v52 }
 0x24b   : > { %v2426_v33 = vpop.f32.mrf.mxu0  ;;  %7238 = vmatmul.mubr.msk.f32.gmra.mxu0 %vm839_vm0, %v7158_v20  ;;  %v9624_v14 = vpop.f32.mrf.mxu1  ;;  %v7295_v20 = vld [vmem:[%s12008_s3 + $0x178] sm:$0xff] }
 0x24c   : > { %12126 = vst [vmem:[#allocation103_spill] sm:$0xff] %v9621_v18  ;;  %12127 = vst [vmem:[#allocation104_spill] sm:$0xff] %v9624_v14  ;;  %v9627_v5 = vadd.f32 %v2426_v33, %v8965_v51  ;;  %3908 = vmatprep.mubr.f32.mxu0 %v12081_v3  ;;  %v7160_v51 = vld [vmem:[%s8259_s26 + $0xc0] sm:$0xff]  ;;  %4668 = vmatprep.subr.mxu1 %v7295_v20  ;;  %v7161_v20 = vld [vmem:[%s8259_s26 + $0xc8] sm:$0xff] }
 0x24d   : > { %v2428_v19 = vpop.f32.mrf.mxu0  ;;  %v9631_v24 = vpop.f32.mrf.mxu1 }
 0x24e   : > { %12128 = vst [vmem:[#allocation105_spill] sm:$0xff] %v9627_v5  ;;  %12129 = vst [vmem:[#allocation106_spill] sm:$0xff] %v9631_v24  ;;  %v9634_v21 = vadd.f32 %v2428_v19, %v8970_v0 }
 0x24f   : > { %v2432_v12 = vpop.f32.mrf.mxu0  ;;  %7239 = vmatmul.mubr.msk.f32.gmra.mxu0 %vm839_vm0, %v7159_v6  ;;  %v9637_v52 = vpop.f32.mrf.mxu1  ;;  %v7294_v6 = vld [vmem:[%s12008_s3 + $0x170] sm:$0xff] }
 0x250   : > { %12130 = vst [vmem:[#allocation107_spill] sm:$0xff] %v9634_v21  ;;  %12131 = vst [vmem:[#allocation108_spill] sm:$0xff] %v9637_v52  ;;  %v9640_v2 = vadd.f32 %v2432_v12, %v8977_v23  ;;  %3914 = vmatprep.mubr.f32.mxu0 %v12081_v3  ;;  %4669 = vmatpush1.msra.mxu1 %v7294_v6 }
 0x251   : > { %v2434_v33 = vpop.f32.mrf.mxu0  ;;  %v9647_v24 = vpop.f32.mrf.mxu1 }
 0x252   : > { %12132 = vst [vmem:[#allocation109_spill] sm:$0xff] %v9640_v2  ;;  %12133 = vst [vmem:[#allocation110_spill] sm:$0xff] %v9647_v24  ;;  %v9650_v0 = vadd.f32 %v2434_v33, %v8985_v45  ;;  %v12138_v33 = vld [vmem:[#allocation3_spill] sm:$0xff]  ;;  %v12144_v2 = vld [vmem:[#allocation5_spill] sm:$0xff] }
 0x253   : > { %v2438_v23 = vpop.f32.mrf.mxu0  ;;  %7240 = vmatmul.mubr.msk.f32.gmra.mxu0 %vm839_vm0, %v7160_v51  ;;  %v9656_v12 = vpop.f32.mrf.mxu1 }
 0x254   : > { %12134 = vst [vmem:[#allocation111_spill] sm:$0xff] %v9650_v0  ;;  %12135 = vst [vmem:[#allocation112_spill] sm:$0xff] %v9656_v12  ;;  %v9659_v19 = vadd.f32 %v2438_v23, %v8989_v53  ;;  %3920 = vmatprep.mubr.f32.mxu0 %v12081_v3  ;;  %v12141_v12 = vld [vmem:[#allocation4_spill] sm:$0xff]  ;;  %v7162_v53 = vld [vmem:[%s8259_s26 + $0xd0] sm:$0xff] }
 0x255   : > { %v2440_v24 = vpop.f32.mrf.mxu0  ;;  %v9663_v45 = vpop.f32.mrf.mxu1 }
 0x256   : > { %12136 = vst [vmem:[#allocation113_spill] sm:$0xff] %v9659_v19  ;;  %12137 = vst [vmem:[#allocation114_spill] sm:$0xff] %v9663_v45  ;;  %v9666_v0 = vadd.f32 %v2440_v24, %v12138_v33 }
 0x257   : > { %v2444_v52 = vpop.f32.mrf.mxu0  ;;  %7241 = vmatmul.mubr.msk.f32.gmra.mxu0 %vm839_vm0, %v7161_v20  ;;  %v9669_v51 = vpop.f32.mrf.mxu1  ;;  %v12147_v20 = vld [vmem:[#allocation6_spill] sm:$0xff] }
 0x258   : > { %12139 = vst [vmem:[#allocation3_spill] sm:$0xff] %v9666_v0  ;;  %12140 = vst [vmem:[#allocation115_spill] sm:$0xff] %v9669_v51  ;;  %v9672_v6 = vadd.f32 %v2444_v52, %v12141_v12  ;;  %3926 = vmatprep.mubr.f32.mxu0 %v12081_v3  ;;  %v7163_v52 = vld [vmem:[%s8259_s26 + $0xd8] sm:$0xff]  ;;  %v12150_v0 = vld [vmem:[#allocation7_spill] sm:$0xff] }
 0x259   : > { %v2446_v23 = vpop.f32.mrf.mxu0  ;;  %v9676_v19 = vpop.f32.mrf.mxu1 }
 0x25a   : > { %12142 = vst [vmem:[#allocation4_spill] sm:$0xff] %v9672_v6  ;;  %12143 = vst [vmem:[#allocation116_spill] sm:$0xff] %v9676_v19  ;;  %v9679_v45 = vadd.f32 %v2446_v23, %v12144_v2 }
 0x25b   : > { %v2450_v24 = vpop.f32.mrf.mxu0  ;;  %7242 = vmatmul.mubr.msk.f32.gmra.mxu0 %vm839_vm0, %v7162_v53  ;;  %v9682_v33 = vpop.f32.mrf.mxu1  ;;  %v12153_v53 = vld [vmem:[#allocation8_spill] sm:$0xff] }
 0x25c   : > { %12145 = vst [vmem:[#allocation5_spill] sm:$0xff] %v9679_v45  ;;  %12146 = vst [vmem:[#allocation117_spill] sm:$0xff] %v9682_v33  ;;  %v9685_v51 = vadd.f32 %v2450_v24, %v12147_v20  ;;  %3932 = vmatprep.mubr.f32.mxu0 %v12081_v3  ;;  %v7164_v24 = vld [vmem:[%s8259_s26 + $0xe0] sm:$0xff] }
 0x25d   : > { %v2452_v12 = vpop.f32.mrf.mxu0  ;;  %v9689_v6 = vpop.f32.mrf.mxu1 }
 0x25e   : > { %12148 = vst [vmem:[#allocation6_spill] sm:$0xff] %v9685_v51  ;;  %12149 = vst [vmem:[#allocation118_spill] sm:$0xff] %v9689_v6  ;;  %v9692_v19 = vadd.f32 %v2452_v12, %v12150_v0  ;;  %v12156_v51 = vld [vmem:[#allocation9_spill] sm:$0xff] }
 0x25f   : > { %v2456_v2 = vpop.f32.mrf.mxu0  ;;  %7243 = vmatmul.mubr.msk.f32.gmra.mxu0 %vm839_vm0, %v7163_v52  ;;  %v9695_v23 = vpop.f32.mrf.mxu1  ;;  %v12159_v52 = vld [vmem:[#allocation10_spill] sm:$0xff] }
 0x260   : > { %12151 = vst [vmem:[#allocation7_spill] sm:$0xff] %v9692_v19  ;;  %12152 = vst [vmem:[#allocation119_spill] sm:$0xff] %v9695_v23  ;;  %v9698_v45 = vadd.f32 %v2456_v2, %v12153_v53  ;;  %3938 = vmatprep.mubr.f32.mxu0 %v12081_v3  ;;  %v7165_v2 = vld [vmem:[%s8259_s26 + $0xe8] sm:$0xff] }
 0x261   : > { %v2458_v20 = vpop.f32.mrf.mxu0  ;;  %v9702_v33 = vpop.f32.mrf.mxu1 }
 0x262   : > { %12154 = vst [vmem:[#allocation8_spill] sm:$0xff] %v9698_v45  ;;  %12155 = vst [vmem:[#allocation120_spill] sm:$0xff] %v9702_v33  ;;  %v9705_v6 = vadd.f32 %v2458_v20, %v12156_v51  ;;  %v12162_v45 = vld [vmem:[#allocation11_spill] sm:$0xff]  ;;  %v7293_v51 = vld [vmem:[%s12008_s3 + $0x168] sm:$0xff] }
 0x263   : > { %v2462_v21 = vpop.f32.mrf.mxu0  ;;  %7244 = vmatmul.mubr.msk.f32.gmra.mxu0 %vm839_vm0, %v7164_v24  ;;  %v9708_v0 = vpop.f32.mrf.mxu1  ;;  %v7292_v24 = vld [vmem:[%s12008_s3 + $0x160] sm:$0xff]  ;;  %4670 = vmatprep.subr.mxu1 %v7293_v51 }
 0x264   : > { %12157 = vst [vmem:[#allocation9_spill] sm:$0xff] %v9705_v6  ;;  %12158 = vst [vmem:[#allocation121_spill] sm:$0xff] %v9708_v0  ;;  %v9711_v12 = vadd.f32 %v2462_v21, %v12159_v52  ;;  %3944 = vmatprep.mubr.f32.mxu0 %v12081_v3  ;;  %v12165_v52 = vld [vmem:[#allocation12_spill] sm:$0xff]  ;;  %4671 = vmatpush1.msra.mxu1 %v7292_v24  ;;  %v12168_v0 = vld [vmem:[#allocation13_spill] sm:$0xff] }
 0x265   : > { %v2464_v53 = vpop.f32.mrf.mxu0  ;;  %v9715_v23 = vpop.f32.mrf.mxu1  ;;  %v7291_v24 = vld [vmem:[%s12008_s3 + $0x158] sm:$0xff] }
 0x266   : > { %12160 = vst [vmem:[#allocation10_spill] sm:$0xff] %v9711_v12  ;;  %12161 = vst [vmem:[#allocation122_spill] sm:$0xff] %v9715_v23  ;;  %v9718_v33 = vadd.f32 %v2464_v53, %v12162_v45  ;;  %v7166_v45 = vld [vmem:[%s8259_s26 + $0xf0] sm:$0xff]  ;;  %4672 = vmatprep.subr.mxu1 %v7291_v24  ;;  %v7288_v24 = vld [vmem:[%s12008_s3 + $0x140] sm:$0xff] }
 0x267   : > { %v2468_v20 = vpop.f32.mrf.mxu0  ;;  %7245 = vmatmul.mubr.msk.f32.gmra.mxu0 %vm839_vm0, %v7165_v2  ;;  %v9727_v21 = vpop.f32.mrf.mxu1 }
 0x268   : > { %12163 = vst [vmem:[#allocation11_spill] sm:$0xff] %v9718_v33  ;;  %12164 = vst [vmem:[#allocation123_spill] sm:$0xff] %v9727_v21  ;;  %v9730_v23 = vadd.f32 %v2468_v20, %v12165_v52  ;;  %3950 = vmatprep.mubr.f32.mxu0 %v12081_v3  ;;  %v12171_v21 = vld [vmem:[#allocation14_spill] sm:$0xff] }
 0x269   : > { %v2470_v53 = vpop.f32.mrf.mxu0  ;;  %v9734_v33 = vpop.f32.mrf.mxu1  ;;  %v7167_v20 = vld [vmem:[%s8259_s26 + $0xf8] sm:$0xff] }
 0x26a   : > { %12166 = vst [vmem:[#allocation12_spill] sm:$0xff] %v9730_v23  ;;  %12167 = vst [vmem:[#allocation124_spill] sm:$0xff] %v9734_v33  ;;  %v9737_v12 = vadd.f32 %v2470_v53, %v12168_v0  ;;  %v7290_v0 = vld [vmem:[%s12008_s3 + $0x150] sm:$0xff] }
 0x26b   : > { %v2474_v6 = vpop.f32.mrf.mxu0  ;;  %7246 = vmatmul.mubr.msk.f32.gmra.mxu0 %vm839_vm0, %v7166_v45  ;;  %v9740_v2 = vpop.f32.mrf.mxu1  ;;  %v12174_v45 = vld [vmem:[#allocation15_spill] sm:$0xff]  ;;  %4673 = vmatpush1.msra.mxu1 %v7290_v0  ;;  %v7287_v0 = vld [vmem:[%s12008_s3 + $0x138] sm:$0xff] }
 0x26c   : > { %12169 = vst [vmem:[#allocation13_spill] sm:$0xff] %v9737_v12  ;;  %12170 = vst [vmem:[#allocation125_spill] sm:$0xff] %v9740_v2  ;;  %v9743_v51 = vadd.f32 %v2474_v6, %v12171_v21  ;;  %3956 = vmatprep.mubr.f32.mxu0 %v12081_v3  ;;  %v7289_v6 = vld [vmem:[%s12008_s3 + $0x148] sm:$0xff] }
 0x26d   : > { %v2476_v52 = vpop.f32.mrf.mxu0  ;;  %v9750_v33 = vpop.f32.mrf.mxu1  ;;  %4674 = vmatprep.subr.mxu1 %v7289_v6  ;;  %v7286_v6 = vld [vmem:[%s12008_s3 + $0x130] sm:$0xff] }
 0x26e   : > { %12172 = vst [vmem:[#allocation14_spill] sm:$0xff] %v9743_v51  ;;  %12173 = vst [vmem:[#allocation126_spill] sm:$0xff] %v9750_v33  ;;  %v9756_v53 = vadd.f32 %v2476_v52, %v12174_v45  ;;  %v12177_v33 = vld [vmem:[#allocation16_spill] sm:$0xff]  ;;  %v7168_v52 = vld [vmem:[%s8259_s26 + $0x100] sm:$0xff]  ;;  %4675 = vmatpush1.msra.mxu1 %v7288_v24 }
 0x26f   : > { %v2480_v21 = vpop.f32.mrf.mxu0  ;;  %7247 = vmatmul.mubr.msk.f32.gmra.mxu0 %vm839_vm0, %v7167_v20  ;;  %v9762_v12 = vpop.f32.mrf.mxu1  ;;  %4676 = vmatprep.subr.mxu1 %v7287_v0  ;;  %v7284_v0 = vld [vmem:[%s12008_s3 + $0x120] sm:$0xff]  ;;  %v12243_v51 = vld [vmem:[#allocation38_spill] sm:$0xff] }
 0x270   : > { %12175 = vst [vmem:[#allocation15_spill] sm:$0xff] %v9756_v53  ;;  %12176 = vst [vmem:[#allocation127_spill] sm:$0xff] %v9762_v12  ;;  %v9768_v2 = vadd.f32 %v2480_v21, %v12177_v33  ;;  %3962 = vmatprep.mubr.f32.mxu0 %v12081_v3  ;;  %v12180_v12 = vld [vmem:[#allocation17_spill] sm:$0xff]  ;;  %4677 = vmatpush1.msra.mxu1 %v7286_v6  ;;  %v7285_v21 = vld [vmem:[%s12008_s3 + $0x128] sm:$0xff] }
 0x271   : > { %v2482_v20 = vpop.f32.mrf.mxu0  ;;  %v9775_v45 = vpop.f32.mrf.mxu1  ;;  %4678 = vmatprep.subr.mxu1 %v7285_v21  ;;  %v7282_v21 = vld [vmem:[%s12008_s3 + $0x110] sm:$0xff] }
 0x272   : > { %12178 = vst [vmem:[#allocation16_spill] sm:$0xff] %v9768_v2  ;;  %12179 = vst [vmem:[#allocation128_spill] sm:$0xff] %v9775_v45  ;;  %v9781_v33 = vadd.f32 %v2482_v20, %v12180_v12  ;;  %v12183_v45 = vld [vmem:[#allocation18_spill] sm:$0xff]  ;;  %v7169_v12 = vld [vmem:[%s8259_s26 + $0x108] sm:$0xff]  ;;  %4679 = vmatpush1.msra.mxu1 %v7284_v0 }
 0x273   : > { %v2486_v24 = vpop.f32.mrf.mxu0  ;;  %7248 = vmatmul.mubr.msk.f32.gmra.mxu0 %vm839_vm0, %v7168_v52  ;;  %v9787_v2 = vpop.f32.mrf.mxu1  ;;  %v7283_v20 = vld [vmem:[%s12008_s3 + $0x118] sm:$0xff] }
 0x274   : > { %12181 = vst [vmem:[#allocation17_spill] sm:$0xff] %v9781_v33  ;;  %12182 = vst [vmem:[#allocation129_spill] sm:$0xff] %v9787_v2  ;;  %v9793_v53 = vadd.f32 %v2486_v24, %v12183_v45  ;;  %3968 = vmatprep.mubr.f32.mxu0 %v12081_v3  ;;  %4680 = vmatprep.subr.mxu1 %v7283_v20  ;;  %v12186_v2 = vld [vmem:[#allocation19_spill] sm:$0xff]  ;;  %v7281_v24 = vld [vmem:[%s12008_s3 + $0x108] sm:$0xff] }
 0x275   : > { %v2488_v52 = vpop.f32.mrf.mxu0  ;;  %v9800_v6 = vpop.f32.mrf.mxu1  ;;  %4681 = vmatpush1.msra.mxu1 %v7282_v21  ;;  %v7280_v20 = vld [vmem:[%s12008_s3 + $0x100] sm:$0xff] }
 0x276   : > { %12184 = vst [vmem:[#allocation18_spill] sm:$0xff] %v9793_v53  ;;  %12185 = vst [vmem:[#allocation130_spill] sm:$0xff] %v9800_v6  ;;  %v9806_v45 = vadd.f32 %v2488_v52, %v12186_v2  ;;  %4682 = vmatprep.subr.mxu1 %v7281_v24  ;;  %v12189_v6 = vld [vmem:[#allocation20_spill] sm:$0xff]  ;;  %v7170_v2 = vld [vmem:[%s8259_s26 + $0x110] sm:$0xff] }
 0x277   : > { %v2492_v0 = vpop.f32.mrf.mxu0  ;;  %7249 = vmatmul.mubr.msk.f32.gmra.mxu0 %vm839_vm0, %v7169_v12  ;;  %v9812_v53 = vpop.f32.mrf.mxu1  ;;  %4683 = vmatpush1.msra.mxu1 %v7280_v20  ;;  %v7375_v52 = vld [vmem:[%s12008_s3 + $0x3f8] sm:$0xff]  ;;  %v7374_v24 = vld [vmem:[%s12008_s3 + $0x3f0] sm:$0xff] }
 0x278   : > { %12187 = vst [vmem:[#allocation19_spill] sm:$0xff] %v9806_v45  ;;  %12188 = vst [vmem:[#allocation131_spill] sm:$0xff] %v9812_v53  ;;  %v9818_v33 = vadd.f32 %v2492_v0, %v12189_v6  ;;  %3974 = vmatprep.mubr.f32.mxu0 %v12081_v3  ;;  %5313 = vmatprep.subr.mxu0 %v7375_v52  ;;  %v12192_v53 = vld [vmem:[#allocation21_spill] sm:$0xff]  ;;  %v7373_v0 = vld [vmem:[%s12008_s3 + $0x3e8] sm:$0xff] }
 0x279   : > { %v2494_v12 = vpop.f32.mrf.mxu0  ;;  %v9825_v21 = vpop.f32.mrf.mxu1  ;;  %5314 = vmatpush1.msra.mxu0 %v7374_v24  ;;  %v7372_v52 = vld [vmem:[%s12008_s3 + $0x3e0] sm:$0xff] }
 0x27a   : > { %12190 = vst [vmem:[#allocation20_spill] sm:$0xff] %v9818_v33  ;;  %12191 = vst [vmem:[#allocation132_spill] sm:$0xff] %v9825_v21  ;;  %v9831_v6 = vadd.f32 %v2494_v12, %v12192_v53  ;;  %5315 = vmatprep.subr.mxu0 %v7373_v0  ;;  %v12195_v21 = vld [vmem:[#allocation22_spill] sm:$0xff]  ;;  %v7370_v0 = vld [vmem:[%s12008_s3 + $0x3d0] sm:$0xff] }
 0x27b   : > { %v2498_v20 = vpop.f32.mrf.mxu0  ;;  %7250 = vmatmul.mubr.msk.f32.gmra.mxu0 %vm839_vm0, %v7170_v2  ;;  %v9837_v33 = vpop.f32.mrf.mxu1  ;;  %v7171_v53 = vld [vmem:[%s8259_s26 + $0x118] sm:$0xff] }
 0x27c   : > { %12193 = vst [vmem:[#allocation21_spill] sm:$0xff] %v9831_v6  ;;  %12194 = vst [vmem:[#allocation133_spill] sm:$0xff] %v9837_v33  ;;  %v9843_v45 = vadd.f32 %v2498_v20, %v12195_v21  ;;  %3980 = vmatprep.mubr.f32.mxu0 %v12081_v3  ;;  %5316 = vmatpush1.msra.mxu0 %v7372_v52  ;;  %v7371_v12 = vld [vmem:[%s12008_s3 + $0x3d8] sm:$0xff]  ;;  %v12198_v6 = vld [vmem:[#allocation23_spill] sm:$0xff] }
 0x27d   : > { %v2500_v2 = vpop.f32.mrf.mxu0  ;;  %v9850_v24 = vpop.f32.mrf.mxu1  ;;  %5317 = vmatprep.subr.mxu0 %v7371_v12  ;;  %v7369_v20 = vld [vmem:[%s12008_s3 + $0x3c8] sm:$0xff]  ;;  %v7368_v12 = vld [vmem:[%s12008_s3 + $0x3c0] sm:$0xff] }
 0x27e   : > { %12196 = vst [vmem:[#allocation22_spill] sm:$0xff] %v9843_v45  ;;  %12197 = vst [vmem:[#allocation134_spill] sm:$0xff] %v9850_v24  ;;  %v9856_v21 = vadd.f32 %v2500_v2, %v12198_v6  ;;  %5318 = vmatpush1.msra.mxu0 %v7370_v0  ;;  %v12201_v24 = vld [vmem:[#allocation24_spill] sm:$0xff]  ;;  %v7172_v6 = vld [vmem:[%s8259_s26 + $0x120] sm:$0xff] }
 0x27f   : > { %v2504_v52 = vpop.f32.mrf.mxu0  ;;  %7251 = vmatmul.mubr.msk.f32.gmra.mxu0 %vm839_vm0, %v7171_v53  ;;  %v9862_v33 = vpop.f32.mrf.mxu1  ;;  %5319 = vmatprep.subr.mxu0 %v7369_v20  ;;  %v7367_v2 = vld [vmem:[%s12008_s3 + $0x3b8] sm:$0xff]  ;;  %v7366_v20 = vld [vmem:[%s12008_s3 + $0x3b0] sm:$0xff] }
 0x280   : > { %12199 = vst [vmem:[#allocation23_spill] sm:$0xff] %v9856_v21  ;;  %12200 = vst [vmem:[#allocation135_spill] sm:$0xff] %v9862_v33  ;;  %v9868_v45 = vadd.f32 %v2504_v52, %v12201_v24  ;;  %3986 = vmatprep.mubr.f32.mxu0 %v12081_v3  ;;  %5320 = vmatpush1.msra.mxu0 %v7368_v12  ;;  %v12204_v33 = vld [vmem:[#allocation25_spill] sm:$0xff]  ;;  %v7365_v52 = vld [vmem:[%s12008_s3 + $0x3a8] sm:$0xff] }
 0x281   : > { %v2506_v53 = vpop.f32.mrf.mxu0  ;;  %v9875_v0 = vpop.f32.mrf.mxu1  ;;  %5321 = vmatprep.subr.mxu0 %v7367_v2  ;;  %v7364_v2 = vld [vmem:[%s12008_s3 + $0x3a0] sm:$0xff] }
 0x282   : > { %12202 = vst [vmem:[#allocation24_spill] sm:$0xff] %v9868_v45  ;;  %12203 = vst [vmem:[#allocation136_spill] sm:$0xff] %v9875_v0  ;;  %v9881_v24 = vadd.f32 %v2506_v53, %v12204_v33  ;;  %5322 = vmatpush1.msra.mxu0 %v7366_v20  ;;  %v12207_v0 = vld [vmem:[#allocation26_spill] sm:$0xff]  ;;  %v7173_v33 = vld [vmem:[%s8259_s26 + $0x128] sm:$0xff] }
 0x283   : > { %v2510_v12 = vpop.f32.mrf.mxu0  ;;  %7252 = vmatmul.mubr.msk.f32.gmra.mxu0 %vm839_vm0, %v7172_v6  ;;  %v9887_v45 = vpop.f32.mrf.mxu1  ;;  %5323 = vmatprep.subr.mxu0 %v7365_v52  ;;  %v7363_v53 = vld [vmem:[%s12008_s3 + $0x398] sm:$0xff]  ;;  %v7362_v52 = vld [vmem:[%s12008_s3 + $0x390] sm:$0xff] }
 0x284   : > { %12205 = vst [vmem:[#allocation25_spill] sm:$0xff] %v9881_v24  ;;  %12206 = vst [vmem:[#allocation137_spill] sm:$0xff] %v9887_v45  ;;  %v9893_v21 = vadd.f32 %v2510_v12, %v12207_v0  ;;  %3992 = vmatprep.mubr.f32.mxu0 %v12081_v3  ;;  %5324 = vmatpush1.msra.mxu0 %v7364_v2  ;;  %v12210_v45 = vld [vmem:[#allocation27_spill] sm:$0xff]  ;;  %v7361_v12 = vld [vmem:[%s12008_s3 + $0x388] sm:$0xff] }
 0x285   : > { %v2512_v6 = vpop.f32.mrf.mxu0  ;;  %v9900_v20 = vpop.f32.mrf.mxu1  ;;  %5325 = vmatprep.subr.mxu0 %v7363_v53  ;;  %v7360_v53 = vld [vmem:[%s12008_s3 + $0x380] sm:$0xff] }
 0x286   : > { %12208 = vst [vmem:[#allocation26_spill] sm:$0xff] %v9893_v21  ;;  %12209 = vst [vmem:[#allocation138_spill] sm:$0xff] %v9900_v20  ;;  %v9906_v0 = vadd.f32 %v2512_v6, %v12210_v45  ;;  %5326 = vmatpush1.msra.mxu0 %v7362_v52  ;;  %v12213_v20 = vld [vmem:[#allocation28_spill] sm:$0xff]  ;;  %v7174_v45 = vld [vmem:[%s8259_s26 + $0x130] sm:$0xff] }
 0x287   : > { %v2516_v2 = vpop.f32.mrf.mxu0  ;;  %7253 = vmatmul.mubr.msk.f32.gmra.mxu0 %vm839_vm0, %v7173_v33  ;;  %v9912_v21 = vpop.f32.mrf.mxu1  ;;  %5327 = vmatprep.subr.mxu0 %v7361_v12  ;;  %v7359_v6 = vld [vmem:[%s12008_s3 + $0x378] sm:$0xff]  ;;  %v7358_v12 = vld [vmem:[%s12008_s3 + $0x370] sm:$0xff] }
 0x288   : > { %12211 = vst [vmem:[#allocation27_spill] sm:$0xff] %v9906_v0  ;;  %12212 = vst [vmem:[#allocation139_spill] sm:$0xff] %v9912_v21  ;;  %v9918_v24 = vadd.f32 %v2516_v2, %v12213_v20  ;;  %3998 = vmatprep.mubr.f32.mxu0 %v12081_v3  ;;  %5328 = vmatpush1.msra.mxu0 %v7360_v53  ;;  %v12216_v21 = vld [vmem:[#allocation29_spill] sm:$0xff]  ;;  %v7357_v2 = vld [vmem:[%s12008_s3 + $0x368] sm:$0xff] }
 0x289   : > { %v2518_v33 = vpop.f32.mrf.mxu0  ;;  %v9925_v52 = vpop.f32.mrf.mxu1  ;;  %5329 = vmatprep.subr.mxu0 %v7359_v6  ;;  %v7356_v6 = vld [vmem:[%s12008_s3 + $0x360] sm:$0xff] }
 0x28a   : > { %12214 = vst [vmem:[#allocation28_spill] sm:$0xff] %v9918_v24  ;;  %12215 = vst [vmem:[#allocation140_spill] sm:$0xff] %v9925_v52  ;;  %v9931_v20 = vadd.f32 %v2518_v33, %v12216_v21  ;;  %5330 = vmatpush1.msra.mxu0 %v7358_v12  ;;  %v12219_v52 = vld [vmem:[#allocation30_spill] sm:$0xff] }
 0x28b   : > { %v2522_v53 = vpop.f32.mrf.mxu0  ;;  %7254 = vmatmul.mubr.msk.f32.gmra.mxu0 %vm839_vm0, %v7174_v45  ;;  %v9937_v24 = vpop.f32.mrf.mxu1  ;;  %5331 = vmatprep.subr.mxu0 %v7357_v2  ;;  %v7175_v21 = vld [vmem:[%s8259_s26 + $0x138] sm:$0xff]  ;;  %v7354_v2 = vld [vmem:[%s12008_s3 + $0x350] sm:$0xff] }
 0x28c   : > { %12217 = vst [vmem:[#allocation29_spill] sm:$0xff] %v9931_v20  ;;  %12218 = vst [vmem:[#allocation141_spill] sm:$0xff] %v9937_v24  ;;  %v9943_v0 = vadd.f32 %v2522_v53, %v12219_v52  ;;  %4004 = vmatprep.mubr.f32.mxu0 %v12081_v3  ;;  %5332 = vmatpush1.msra.mxu0 %v7356_v6  ;;  %v7355_v33 = vld [vmem:[%s12008_s3 + $0x358] sm:$0xff]  ;;  %v12222_v20 = vld [vmem:[#allocation31_spill] sm:$0xff] }
 0x28d   : > { %v2524_v45 = vpop.f32.mrf.mxu0  ;;  %v9950_v12 = vpop.f32.mrf.mxu1  ;;  %5333 = vmatprep.subr.mxu0 %v7355_v33  ;;  %v7353_v53 = vld [vmem:[%s12008_s3 + $0x348] sm:$0xff]  ;;  %v7352_v33 = vld [vmem:[%s12008_s3 + $0x340] sm:$0xff] }
 0x28e   : > { %12220 = vst [vmem:[#allocation30_spill] sm:$0xff] %v9943_v0  ;;  %12221 = vst [vmem:[#allocation142_spill] sm:$0xff] %v9950_v12  ;;  %v9956_v52 = vadd.f32 %v2524_v45, %v12222_v20  ;;  %5334 = vmatpush1.msra.mxu0 %v7354_v2  ;;  %v12225_v12 = vld [vmem:[#allocation32_spill] sm:$0xff]  ;;  %v7176_v20 = vld [vmem:[%s8259_s26 + $0x140] sm:$0xff] }
 0x28f   : > { %v2528_v6 = vpop.f32.mrf.mxu0  ;;  %7255 = vmatmul.mubr.msk.f32.gmra.mxu0 %vm839_vm0, %v7175_v21  ;;  %v9962_v24 = vpop.f32.mrf.mxu1  ;;  %5335 = vmatprep.subr.mxu0 %v7353_v53  ;;  %v7351_v45 = vld [vmem:[%s12008_s3 + $0x338] sm:$0xff]  ;;  %v7350_v53 = vld [vmem:[%s12008_s3 + $0x330] sm:$0xff] }
 0x290   : > { %12223 = vst [vmem:[#allocation31_spill] sm:$0xff] %v9956_v52  ;;  %12224 = vst [vmem:[#allocation143_spill] sm:$0xff] %v9962_v24  ;;  %v9968_v0 = vadd.f32 %v2528_v6, %v12225_v12  ;;  %4010 = vmatprep.mubr.f32.mxu0 %v12081_v3  ;;  %5336 = vmatpush1.msra.mxu0 %v7352_v33  ;;  %v12228_v24 = vld [vmem:[#allocation33_spill] sm:$0xff]  ;;  %v7349_v6 = vld [vmem:[%s12008_s3 + $0x328] sm:$0xff] }
 0x291   : > { %v2530_v21 = vpop.f32.mrf.mxu0  ;;  %v9975_v2 = vpop.f32.mrf.mxu1  ;;  %5337 = vmatprep.subr.mxu0 %v7351_v45  ;;  %v7348_v45 = vld [vmem:[%s12008_s3 + $0x320] sm:$0xff] }
 0x292   : > { %12226 = vst [vmem:[#allocation32_spill] sm:$0xff] %v9968_v0  ;;  %12227 = vst [vmem:[#allocation144_spill] sm:$0xff] %v9975_v2  ;;  %v9981_v12 = vadd.f32 %v2530_v21, %v12228_v24  ;;  %5338 = vmatpush1.msra.mxu0 %v7350_v53  ;;  %v12231_v2 = vld [vmem:[#allocation34_spill] sm:$0xff]  ;;  %v7177_v24 = vld [vmem:[%s8259_s26 + $0x148] sm:$0xff] }
 0x293   : > { %v2534_v33 = vpop.f32.mrf.mxu0  ;;  %7256 = vmatmul.mubr.msk.f32.gmra.mxu0 %vm839_vm0, %v7176_v20  ;;  %v9987_v0 = vpop.f32.mrf.mxu1  ;;  %5339 = vmatprep.subr.mxu0 %v7349_v6  ;;  %v7347_v21 = vld [vmem:[%s12008_s3 + $0x318] sm:$0xff]  ;;  %v7346_v6 = vld [vmem:[%s12008_s3 + $0x310] sm:$0xff] }
 0x294   : > { %12229 = vst [vmem:[#allocation33_spill] sm:$0xff] %v9981_v12  ;;  %12230 = vst [vmem:[#allocation145_spill] sm:$0xff] %v9987_v0  ;;  %v9993_v52 = vadd.f32 %v2534_v33, %v12231_v2  ;;  %4016 = vmatprep.mubr.f32.mxu0 %v12081_v3  ;;  %5340 = vmatpush1.msra.mxu0 %v7348_v45  ;;  %v12234_v0 = vld [vmem:[#allocation35_spill] sm:$0xff]  ;;  %v7345_v33 = vld [vmem:[%s12008_s3 + $0x308] sm:$0xff] }
 0x295   : > { %v2536_v20 = vpop.f32.mrf.mxu0  ;;  %v10000_v53 = vpop.f32.mrf.mxu1  ;;  %5341 = vmatprep.subr.mxu0 %v7347_v21  ;;  %v7344_v21 = vld [vmem:[%s12008_s3 + $0x300] sm:$0xff] }
 0x296   : > { %12232 = vst [vmem:[#allocation34_spill] sm:$0xff] %v9993_v52  ;;  %12233 = vst [vmem:[#allocation146_spill] sm:$0xff] %v10000_v53  ;;  %v10006_v2 = vadd.f32 %v2536_v20, %v12234_v0  ;;  %5342 = vmatpush1.msra.mxu0 %v7346_v6  ;;  %v12237_v53 = vld [vmem:[#allocation36_spill] sm:$0xff]  ;;  %v7178_v0 = vld [vmem:[%s8259_s26 + $0x150] sm:$0xff] }
 0x297   : > { %v2540_v45 = vpop.f32.mrf.mxu0  ;;  %7257 = vmatmul.mubr.msk.f32.gmra.mxu0 %vm839_vm0, %v7177_v24  ;;  %v10012_v52 = vpop.f32.mrf.mxu1  ;;  %5343 = vmatprep.subr.mxu0 %v7345_v33 }
 0x298   : > { %12235 = vst [vmem:[#allocation35_spill] sm:$0xff] %v10006_v2  ;;  %12236 = vst [vmem:[#allocation147_spill] sm:$0xff] %v10012_v52  ;;  %v10018_v12 = vadd.f32 %v2540_v45, %v12237_v53  ;;  %4022 = vmatprep.mubr.f32.mxu0 %v12081_v3  ;;  %5344 = vmatpush1.msra.mxu0 %v7344_v21  ;;  %v12240_v2 = vld [vmem:[#allocation37_spill] sm:$0xff]  ;;  %v7179_v53 = vld [vmem:[%s8259_s26 + $0x158] sm:$0xff] }
 0x299   : > { %v2542_v20 = vpop.f32.mrf.mxu0  ;;  %v10022_v6 = vpop.f32.mrf.mxu1 }
 0x29a   : > { %12238 = vst [vmem:[#allocation36_spill] sm:$0xff] %v10018_v12  ;;  %12239 = vst [vmem:[#allocation148_spill] sm:$0xff] %v10022_v6  ;;  %v10025_v24 = vadd.f32 %v2542_v20, %v12240_v2  ;;  %v12246_v12 = vld [vmem:[#allocation39_spill] sm:$0xff] }
 0x29b   : > { %v2546_v52 = vpop.f32.mrf.mxu0  ;;  %7258 = vmatmul.mubr.msk.f32.gmra.mxu0 %vm839_vm0, %v7178_v0  ;;  %v10028_v33 = vpop.f32.mrf.mxu1  ;;  %v12249_v0 = vld [vmem:[#allocation40_spill] sm:$0xff] }
 0x29c   : > { %12241 = vst [vmem:[#allocation37_spill] sm:$0xff] %v10025_v24  ;;  %12242 = vst [vmem:[#allocation149_spill] sm:$0xff] %v10028_v33  ;;  %v10031_v23 = vadd.f32 %v2546_v52, %v12243_v51  ;;  %4028 = vmatprep.mubr.f32.mxu0 %v12081_v3  ;;  %v7180_v51 = vld [vmem:[%s8259_s26 + $0x160] sm:$0xff] }
 0x29d   : > { %v2548_v45 = vpop.f32.mrf.mxu0  ;;  %v10035_v21 = vpop.f32.mrf.mxu1 }
 0x29e   : > { %12244 = vst [vmem:[#allocation38_spill] sm:$0xff] %v10031_v23  ;;  %12245 = vst [vmem:[#allocation150_spill] sm:$0xff] %v10035_v21  ;;  %v10038_v6 = vadd.f32 %v2548_v45, %v12246_v12  ;;  %v12252_v23 = vld [vmem:[#allocation41_spill] sm:$0xff] }
 0x29f   : > { %v2552_v2 = vpop.f32.mrf.mxu0  ;;  %7259 = vmatmul.mubr.msk.f32.gmra.mxu0 %vm839_vm0, %v7179_v53  ;;  %v10041_v20 = vpop.f32.mrf.mxu1  ;;  %v12255_v53 = vld [vmem:[#allocation42_spill] sm:$0xff] }
 0x2a0   : > { %12247 = vst [vmem:[#allocation39_spill] sm:$0xff] %v10038_v6  ;;  %12248 = vst [vmem:[#allocation151_spill] sm:$0xff] %v10041_v20  ;;  %v10044_v24 = vadd.f32 %v2552_v2, %v12249_v0  ;;  %4034 = vmatprep.mubr.f32.mxu0 %v12081_v3  ;;  %v7181_v2 = vld [vmem:[%s8259_s26 + $0x168] sm:$0xff]  ;;  %v12258_v6 = vld [vmem:[#allocation43_spill] sm:$0xff] }
 0x2a1   : > { %v2554_v52 = vpop.f32.mrf.mxu0  ;;  %v10048_v33 = vpop.f32.mrf.mxu1 }
 0x2a2   : > { %12250 = vst [vmem:[#allocation40_spill] sm:$0xff] %v10044_v24  ;;  %12251 = vst [vmem:[#allocation152_spill] sm:$0xff] %v10048_v33  ;;  %v10051_v21 = vadd.f32 %v2554_v52, %v12252_v23 }
 0x2a3   : > { %v2558_v12 = vpop.f32.mrf.mxu0  ;;  %7260 = vmatmul.mubr.msk.f32.gmra.mxu0 %vm839_vm0, %v7180_v51  ;;  %v10054_v45 = vpop.f32.mrf.mxu1  ;;  %v12261_v51 = vld [vmem:[#allocation44_spill] sm:$0xff] }
 0x2a4   : > { %12253 = vst [vmem:[#allocation41_spill] sm:$0xff] %v10051_v21  ;;  %12254 = vst [vmem:[#allocation153_spill] sm:$0xff] %v10054_v45  ;;  %v10057_v20 = vadd.f32 %v2558_v12, %v12255_v53  ;;  %4040 = vmatprep.mubr.f32.mxu0 %v12081_v3  ;;  %v7182_v12 = vld [vmem:[%s8259_s26 + $0x170] sm:$0xff] }
 0x2a5   : > { %v2560_v0 = vpop.f32.mrf.mxu0  ;;  %v10061_v24 = vpop.f32.mrf.mxu1  ;;  %v12264_v21 = vld [vmem:[#allocation45_spill] sm:$0xff] }
 0x2a6   : > { %12256 = vst [vmem:[#allocation42_spill] sm:$0xff] %v10057_v20  ;;  %12257 = vst [vmem:[#allocation154_spill] sm:$0xff] %v10061_v24  ;;  %v10064_v33 = vadd.f32 %v2560_v0, %v12258_v6 }
 0x2a7   : > { %v2564_v23 = vpop.f32.mrf.mxu0  ;;  %7261 = vmatmul.mubr.msk.f32.gmra.mxu0 %vm839_vm0, %v7181_v2  ;;  %v10067_v52 = vpop.f32.mrf.mxu1  ;;  %v12267_v2 = vld [vmem:[#allocation46_spill] sm:$0xff] }
 0x2a8   : > { %12259 = vst [vmem:[#allocation43_spill] sm:$0xff] %v10064_v33  ;;  %12260 = vst [vmem:[#allocation155_spill] sm:$0xff] %v10067_v52  ;;  %v10070_v45 = vadd.f32 %v2564_v23, %v12261_v51  ;;  %4046 = vmatprep.mubr.f32.mxu0 %v12081_v3  ;;  %v7183_v23 = vld [vmem:[%s8259_s26 + $0x178] sm:$0xff]  ;;  %v12270_v33 = vld [vmem:[#allocation47_spill] sm:$0xff] }
 0x2a9   : > { %v2566_v53 = vpop.f32.mrf.mxu0  ;;  %v10074_v20 = vpop.f32.mrf.mxu1 }
 0x2aa   : > { %12262 = vst [vmem:[#allocation44_spill] sm:$0xff] %v10070_v45  ;;  %12263 = vst [vmem:[#allocation156_spill] sm:$0xff] %v10074_v20  ;;  %v10077_v24 = vadd.f32 %v2566_v53, %v12264_v21 }
 0x2ab   : > { %v2570_v6 = vpop.f32.mrf.mxu0  ;;  %7262 = vmatmul.mubr.msk.f32.gmra.mxu0 %vm839_vm0, %v7182_v12  ;;  %v10080_v0 = vpop.f32.mrf.mxu1  ;;  %v12273_v12 = vld [vmem:[#allocation48_spill] sm:$0xff] }
 0x2ac   : > { %12265 = vst [vmem:[#allocation45_spill] sm:$0xff] %v10077_v24  ;;  %12266 = vst [vmem:[#allocation157_spill] sm:$0xff] %v10080_v0  ;;  %v10083_v52 = vadd.f32 %v2570_v6, %v12267_v2  ;;  %4052 = vmatprep.mubr.f32.mxu0 %v12081_v3  ;;  %v7184_v6 = vld [vmem:[%s8259_s26 + $0x180] sm:$0xff] }
 0x2ad   : > { %v2572_v51 = vpop.f32.mrf.mxu0  ;;  %v10087_v45 = vpop.f32.mrf.mxu1 }
 0x2ae   : > { %12268 = vst [vmem:[#allocation46_spill] sm:$0xff] %v10083_v52  ;;  %12269 = vst [vmem:[#allocation158_spill] sm:$0xff] %v10087_v45  ;;  %v10090_v20 = vadd.f32 %v2572_v51, %v12270_v33  ;;  %v12276_v52 = vld [vmem:[#allocation49_spill] sm:$0xff] }
 0x2af   : > { %v2576_v21 = vpop.f32.mrf.mxu0  ;;  %7263 = vmatmul.mubr.msk.f32.gmra.mxu0 %vm839_vm0, %v7183_v23  ;;  %v10093_v53 = vpop.f32.mrf.mxu1  ;;  %v12279_v23 = vld [vmem:[#allocation50_spill] sm:$0xff] }
 0x2b0   : > { %12271 = vst [vmem:[#allocation47_spill] sm:$0xff] %v10090_v20  ;;  %12272 = vst [vmem:[#allocation159_spill] sm:$0xff] %v10093_v53  ;;  %v10096_v24 = vadd.f32 %v2576_v21, %v12273_v12  ;;  %4058 = vmatprep.mubr.f32.mxu0 %v12081_v3  ;;  %v7185_v21 = vld [vmem:[%s8259_s26 + $0x188] sm:$0xff]  ;;  %v12282_v20 = vld [vmem:[#allocation51_spill] sm:$0xff] }
 0x2b1   : > { %v2578_v2 = vpop.f32.mrf.mxu0  ;;  %v10100_v0 = vpop.f32.mrf.mxu1 }
 0x2b2   : > { %12274 = vst [vmem:[#allocation48_spill] sm:$0xff] %v10096_v24  ;;  %12275 = vst [vmem:[#allocation160_spill] sm:$0xff] %v10100_v0  ;;  %v10103_v45 = vadd.f32 %v2578_v2, %v12276_v52 }
 0x2b3   : > { %v2582_v33 = vpop.f32.mrf.mxu0  ;;  %7264 = vmatmul.mubr.msk.f32.gmra.mxu0 %vm839_vm0, %v7184_v6  ;;  %v10106_v51 = vpop.f32.mrf.mxu1  ;;  %v12285_v6 = vld [vmem:[#allocation52_spill] sm:$0xff] }
 0x2b4   : > { %12277 = vst [vmem:[#allocation49_spill] sm:$0xff] %v10103_v45  ;;  %12278 = vst [vmem:[#allocation161_spill] sm:$0xff] %v10106_v51  ;;  %v10109_v53 = vadd.f32 %v2582_v33, %v12279_v23  ;;  %4064 = vmatprep.mubr.f32.mxu0 %v12081_v3  ;;  %v7186_v33 = vld [vmem:[%s8259_s26 + $0x190] sm:$0xff] }
 0x2b5   : > { %v2584_v12 = vpop.f32.mrf.mxu0  ;;  %v10113_v24 = vpop.f32.mrf.mxu1  ;;  %v12288_v45 = vld [vmem:[#allocation53_spill] sm:$0xff] }
 0x2b6   : > { %12280 = vst [vmem:[#allocation50_spill] sm:$0xff] %v10109_v53  ;;  %12281 = vst [vmem:[#allocation162_spill] sm:$0xff] %v10113_v24  ;;  %v10116_v0 = vadd.f32 %v2584_v12, %v12282_v20 }
 0x2b7   : > { %v2588_v52 = vpop.f32.mrf.mxu0  ;;  %7265 = vmatmul.mubr.msk.f32.gmra.mxu0 %vm839_vm0, %v7185_v21  ;;  %v10119_v2 = vpop.f32.mrf.mxu1  ;;  %v12291_v21 = vld [vmem:[#allocation54_spill] sm:$0xff] }
 0x2b8   : > { %12283 = vst [vmem:[#allocation51_spill] sm:$0xff] %v10116_v0  ;;  %12284 = vst [vmem:[#allocation163_spill] sm:$0xff] %v10119_v2  ;;  %v10122_v51 = vadd.f32 %v2588_v52, %v12285_v6  ;;  %4070 = vmatprep.mubr.f32.mxu0 %v12081_v3  ;;  %v7187_v52 = vld [vmem:[%s8259_s26 + $0x198] sm:$0xff]  ;;  %v12294_v0 = vld [vmem:[#allocation55_spill] sm:$0xff] }
 0x2b9   : > { %v2590_v23 = vpop.f32.mrf.mxu0  ;;  %v10126_v53 = vpop.f32.mrf.mxu1 }
 0x2ba   : > { %12286 = vst [vmem:[#allocation52_spill] sm:$0xff] %v10122_v51  ;;  %12287 = vst [vmem:[#allocation164_spill] sm:$0xff] %v10126_v53  ;;  %v10129_v24 = vadd.f32 %v2590_v23, %v12288_v45 }
 0x2bb   : > { %v2594_v20 = vpop.f32.mrf.mxu0  ;;  %7266 = vmatmul.mubr.msk.f32.gmra.mxu0 %vm839_vm0, %v7186_v33  ;;  %v10132_v12 = vpop.f32.mrf.mxu1  ;;  %v12297_v33 = vld [vmem:[#allocation56_spill] sm:$0xff] }
 0x2bc   : > { %12289 = vst [vmem:[#allocation53_spill] sm:$0xff] %v10129_v24  ;;  %12290 = vst [vmem:[#allocation165_spill] sm:$0xff] %v10132_v12  ;;  %v10135_v2 = vadd.f32 %v2594_v20, %v12291_v21  ;;  %4076 = vmatprep.mubr.f32.mxu0 %v12081_v3  ;;  %v7188_v20 = vld [vmem:[%s8259_s26 + $0x1a0] sm:$0xff] }
 0x2bd   : > { %v2596_v6 = vpop.f32.mrf.mxu0  ;;  %v10139_v51 = vpop.f32.mrf.mxu1 }
 0x2be   : > { %12292 = vst [vmem:[#allocation54_spill] sm:$0xff] %v10135_v2  ;;  %12293 = vst [vmem:[#allocation166_spill] sm:$0xff] %v10139_v51  ;;  %v10142_v53 = vadd.f32 %v2596_v6, %v12294_v0  ;;  %v12300_v2 = vld [vmem:[#allocation57_spill] sm:$0xff] }
 0x2bf   : > { %v2600_v45 = vpop.f32.mrf.mxu0  ;;  %7267 = vmatmul.mubr.msk.f32.gmra.mxu0 %vm839_vm0, %v7187_v52  ;;  %v10145_v23 = vpop.f32.mrf.mxu1  ;;  %v12302_v52 = vld [vmem:[#allocation58_spill] sm:$0xff] }
 0x2c0   : > { %12295 = vst [vmem:[#allocation55_spill] sm:$0xff] %v10142_v53  ;;  %12296 = vst [vmem:[#allocation167_spill] sm:$0xff] %v10145_v23  ;;  %v10148_v24 = vadd.f32 %v2600_v45, %v12297_v33  ;;  %4082 = vmatprep.mubr.f32.mxu0 %v12081_v3  ;;  %v7189_v45 = vld [vmem:[%s8259_s26 + $0x1a8] sm:$0xff] }
 0x2c1   : > { %v2602_v21 = vpop.f32.mrf.mxu0  ;;  %v10152_v12 = vpop.f32.mrf.mxu1 }
 0x2c2   : > { %12298 = vst [vmem:[#allocation56_spill] sm:$0xff] %v10148_v24  ;;  %12299 = vst [vmem:[#allocation168_spill] sm:$0xff] %v10152_v12  ;;  %v10155_v51 = vadd.f32 %v2602_v21, %v12300_v2  ;;  %v12304_v24 = vld [vmem:[#allocation59_spill] sm:$0xff]  ;;  %v4618_v2 = vld [vmem:[%s12008_s3 + $0xf8] sm:$0xff] }
 0x2c3   : > { %v2606_v19 = vpop.f32.mrf.mxu0  ;;  %7268 = vmatmul.mubr.msk.f32.gmra.mxu0 %vm839_vm0, %v7188_v20  ;;  %v3369_v0 = vpop.f32.mrf.mxu1  ;;  %4837 = vmatprep.subr.mxu1 %v4618_v2  ;;  %v12307_v21 = vld [vmem:[#allocation60_spill] sm:$0xff]  ;;  %v12311_v2 = vld [vmem:[#allocation62_spill] sm:$0xff] }
 0x2c4   : > { %12301 = vst [vmem:[#allocation57_spill] sm:$0xff] %v10155_v51  ;;  %v2733_v6 = vadd.f32 %v2606_v19, %v12302_v52  ;;  %4088 = vmatprep.mubr.f32.mxu0 %v12081_v3 }
 0x2c5   : > { %v2608_v33 = vpop.f32.mrf.mxu0  ;;  %v10161_v23 = vpop.f32.mrf.mxu1 }
 0x2c6   : > { %12303 = vst [vmem:[#allocation58_spill] sm:$0xff] %v10161_v23  ;;  %v10164_v53 = vadd.f32 %v2608_v33, %v12304_v24  ;;  %v10166_v12 = vadd.f32 %v3369_v0, %v2733_v6  ;;  %v7190_v23 = vld [vmem:[%s8259_s26 + $0x1b0] sm:$0xff] }
 0x2c7   : > { %v2612_v20 = vpop.f32.mrf.mxu0  ;;  %7269 = vmatmul.mubr.msk.f32.gmra.mxu0 %vm839_vm0, %v7189_v45  ;;  %v3375_v19 = vpop.f32.mrf.mxu1  ;;  %v12309_v0 = vld [vmem:[#allocation61_spill] sm:$0xff] }
 0x2c8   : > { %12305 = vst [vmem:[#allocation59_spill] sm:$0xff] %v10164_v53  ;;  %12306 = vst [vmem:[#allocation169_spill] sm:$0xff] %v10166_v12  ;;  %v2735_v52 = vadd.f32 %v2612_v20, %v12307_v21  ;;  %4094 = vmatprep.mubr.f32.mxu0 %v12081_v3  ;;  %v4269_v53 = vlaneseq  ;;  %v7191_v20 = vld [vmem:[%s8259_s26 + $0x1b8] sm:$0xff] }
 0x2c9   : > { %v2614_v51 = vpop.f32.mrf.mxu0  ;;  %v10175_v24 = vpop.f32.mrf.mxu1 }
 0x2ca   : > { %12308 = vst [vmem:[#allocation60_spill] sm:$0xff] %v10175_v24  ;;  %v10178_v6 = vadd.f32 %v2614_v51, %v12309_v0  ;;  %v10180_v33 = vadd.f32 %v3375_v19, %v2735_v52  ;;  %v12313_v24 = vld [vmem:[#allocation63_spill] sm:$0xff]  ;;  %v10194_v52 = vshrl.u32 %v4269_v53, 7  ;;  %v12316_v0 = vld [vmem:[#allocation64_spill] sm:$0xff] }
 0x2cb   : > { %v2618_v12 = vpop.f32.mrf.mxu0  ;;  %7270 = vmatmul.mubr.msk.f32.gmra.mxu0 %vm839_vm0, %v7190_v23  ;;  %v3381_v45 = vpop.f32.mrf.mxu1 }
 0x2cc   : > { %12310 = vst [vmem:[#allocation61_spill] sm:$0xff] %v10180_v33  ;;  %v2737_v18 = vadd.f32 %v2618_v12, %v12311_v2  ;;  %4100 = vmatprep.mubr.f32.mxu0 %v12081_v3  ;;  %12315 = vst [vmem:[#allocation170_spill] sm:$0xff] %v10194_v52  ;;  %v7192_v2 = vld [vmem:[%s8259_s26 + $0x1c0] sm:$0xff] }
 0x2cd   : > { %v2620_v21 = vpop.f32.mrf.mxu0  ;;  %v10186_v14 = vpop.f32.mrf.mxu1 }
 0x2ce   : > { %12312 = vst [vmem:[#allocation62_spill] sm:$0xff] %v10186_v14  ;;  %v10189_v5 = vadd.f32 %v2620_v21, %v12313_v24  ;;  %v10191_v51 = vadd.f32 %v3381_v45, %v2737_v18  ;;  %v12019_v45 = vsub.s32 0, %v10194_v52  ;;  %v7193_v21 = vld [vmem:[%s8259_s26 + $0x1c8] sm:$0xff] }
 0x2cf   : > { %v2624_v19 = vpop.f32.mrf.mxu0  ;;  %7271 = vmatmul.mubr.msk.f32.gmra.mxu0 %vm839_vm0, %v7191_v20  ;;  %v3387_v23 = vpop.f32.mrf.mxu1  ;;  %v4267_v20 = vld [vmem:[%s12007_s2] sm:$0x3] }
 0x2d0   : > { %12314 = vst [vmem:[#allocation63_spill] sm:$0xff] %v10191_v51  ;;  %v2739_v12 = vadd.f32 %v2624_v19, %v12316_v0  ;;  %4106 = vmatprep.mubr.f32.mxu0 %v12081_v3  ;;  %v10217_v0 = vrot.slane %v4267_v20, %v12019_v45 }
 0x2d1   : > { %v2626_v33 = vpop.f32.mrf.mxu0 }
 0x2d2   : > { %v10200_v14 = vadd.f32 %v2626_v33, %v9291_v1  ;;  %v10202_v24 = vadd.f32 %v3387_v23, %v2739_v12  ;;  %v12020_v1 = vsub.s32 1, %v10194_v52  ;;  %v12319_v33 = vld [vmem:[#allocation65_spill] sm:$0xff] }
 0x2d3   : > { %v3820_v18 = vpop.f32.mrf.mxu0  ;;  %7272 = vmatmul.mubr.msk.f32.gmra.mxu0 %vm839_vm0, %v7192_v2  ;;  %v3393_v23 = vadd.f32 %v12319_v33, %v9302_v15  ;;  %v7194_v2 = vld [vmem:[%s8259_s26 + $0x1d0] sm:$0xff]  ;;  %v12320_v15 = vld [vmem:[#allocation66_spill] sm:$0xff] }
 0x2d4   : > { %12317 = vst [vmem:[#allocation64_spill] sm:$0xff] %v10200_v14  ;;  %12318 = vst [vmem:[#allocation171_spill] sm:$0xff] %v10202_v24  ;;  %v4155_v53 = vadd.f32 %v3820_v18, %v9304_v50  ;;  %4112 = vmatprep.mubr.f32.mxu0 %v12081_v3  ;;  %v10225_v24 = vrot.slane %v4267_v20, %v12020_v1  ;;  %v3395_v33 = vadd.f32 %v12320_v15, %v9315_v39 }
 0x2d5   : > { %v3822_v19 = vpop.f32.mrf.mxu0 }
 0x2d6   : > { %v4156_v18 = vadd.f32 %v3822_v19, %v3393_v23  ;;  %v4279_v45 = vadd.f32 %v10217_v0, %v4155_v53  ;;  %v7195_v19 = vld [vmem:[%s8259_s26 + $0x1d8] sm:$0xff]  ;;  %v3399_v53 = vadd.f32 %v9344_v42, %v9347_v46 }
 0x2d7   : > { %v3826_v12 = vpop.f32.mrf.mxu0  ;;  %7273 = vmatmul.mubr.msk.f32.gmra.mxu0 %vm839_vm0, %v7193_v21  ;;  %v12321_v21 = vld [vmem:[#allocation67_spill] sm:$0xff] }
 0x2d8   : > { %v4157_v50 = vadd.f32 %v3826_v12, %v9317_v27  ;;  %4118 = vmatprep.mubr.f32.mxu0 %v12081_v3  ;;  %v3397_v27 = vadd.f32 %v9328_v40, %v9331_v59  ;;  %v4280_v20 = vadd.f32 %v10225_v24, %v4156_v18 }
 0x2d9   : > { %v3828_v14 = vpop.f32.mrf.mxu0 }
 0x2da   : > { %v4158_v23 = vadd.f32 %v3828_v14, %v3395_v33  ;;  %v4281_v40 = vadd.f32 %v10217_v0, %v4157_v50  ;;  %v7196_v14 = vld [vmem:[%s8259_s26 + $0x1e0] sm:$0xff]  ;;  %v4392_v18 = vmax.f32 %v4280_v20, 0.0  ;;  %v7197_v20 = vld [vmem:[%s8259_s26 + $0x1e8] sm:$0xff] }
 0x2db   : > { %v3832_v51 = vpop.f32.mrf.mxu0  ;;  %7274 = vmatmul.mubr.msk.f32.gmra.mxu0 %vm839_vm0, %v7194_v2  ;;  %v4391_v2 = vmax.f32 %v4279_v45, 0.0 }
 0x2dc   : > { %v4159_v12 = vadd.f32 %v3832_v51, %v12321_v21  ;;  %4124 = vmatprep.mubr.f32.mxu0 %v12081_v3 }
 0x2dd   : > { %v3834_v1 = vpop.f32.mrf.mxu0 }
 0x2de   : > { %v4283_v39 = vadd.f32 %v10217_v0, %v4159_v12  ;;  %v4160_v15 = vadd.f32 %v3834_v1, %v3397_v27  ;;  %v4282_v1 = vadd.f32 %v10225_v24, %v4158_v23  ;;  %v4393_v12 = vmax.f32 %v4281_v40, 0.0 }
 0x2df   : > { %v3838_v52 = vpop.f32.mrf.mxu0  ;;  %7275 = vmatmul.mubr.msk.f32.gmra.mxu0 %vm839_vm0, %v7195_v19  ;;  %v3400_v23 = vadd.f32 %v9352_v35, %v9356_v57  ;;  %v7198_v35 = vld [vmem:[%s8259_s26 + $0x1f0] sm:$0xff] }
 0x2e0   : > { %v4395_v59 = vmax.f32 %v4283_v39, 0.0  ;;  %v4284_v51 = vadd.f32 %v10225_v24, %v4160_v15  ;;  %v4161_v21 = vadd.f32 %v3838_v52, %v9349_v61  ;;  %4130 = vmatprep.mubr.f32.mxu0 %v12081_v3  ;;  %v4394_v15 = vmax.f32 %v4282_v1, 0.0 }
 0x2e1   : > { %v3840_v33 = vpop.f32.mrf.mxu0 }
 0x2e2   : > { %v10247_v42 = vmax.f32 %v4391_v2, %v4395_v59  ;;  %v4396_v46 = vmax.f32 %v4284_v51, 0.0  ;;  %v4285_v45 = vadd.f32 %v10217_v0, %v4161_v21  ;;  %v4162_v27 = vadd.f32 %v3840_v33, %v3399_v53  ;;  %v12322_v59 = vld [vmem:[#allocation68_spill] sm:$0xff] }
 0x2e3   : > { %v3844_v50 = vpop.f32.mrf.mxu0  ;;  %7276 = vmatmul.mubr.msk.f32.gmra.mxu0 %vm839_vm0, %v7196_v14  ;;  %v3401_v51 = vadd.f32 %v12322_v59, %v9364_v8  ;;  %v3402_v33 = vadd.f32 %v9367_v17, %v9371_v4  ;;  %v7199_v17 = vld [vmem:[%s8259_s26 + $0x1f8] sm:$0xff]  ;;  %v12327_v59 = vld [vmem:[#allocation72_spill] sm:$0xff] }
 0x2e4   : > { %v10251_v19 = vmax.f32 %v4392_v18, %v4396_v46  ;;  %v4397_v61 = vmax.f32 %v4285_v45, 0.0  ;;  %v4286_v52 = vadd.f32 %v10225_v24, %v4162_v27  ;;  %4136 = vmatprep.mubr.f32.mxu0 %v12081_v3  ;;  %v4163_v21 = vadd.f32 %v3844_v50, %v3400_v23  ;;  %v12323_v46 = vld [vmem:[#allocation71_spill] sm:$0xff]  ;;  %v12324_v27 = vld [vmem:[#allocation70_spill] sm:$0xff]  ;;  %v12325_v50 = vld [vmem:[#allocation69_spill] sm:$0xff] }
 0x2e5   : > { %v3846_v39 = vpop.f32.mrf.mxu0  ;;  %v3404_v45 = vadd.f32 %v12323_v46, %v9389_v38 }
 0x2e6   : > { %v4559_v53 = vmax.f32 %v10247_v42, %v10251_v19  ;;  %v10260_v2 = vmax.f32 %v4393_v12, %v4397_v61  ;;  %v4398_v40 = vmax.f32 %v4286_v52, 0.0  ;;  %v4164_v57 = vadd.f32 %v3846_v39, %v3401_v51 }
 0x2e7   : > { %v3850_v14 = vpop.f32.mrf.mxu0  ;;  %7277 = vmatmul.mubr.msk.f32.gmra.mxu0 %vm839_vm0, %v7197_v20  ;;  %v3403_v12 = vadd.f32 %v12325_v50, %v12324_v27  ;;  %v4287_v61 = vadd.f32 %v10217_v0, %v4163_v21  ;;  %v3405_v20 = vadd.f32 %v9397_v10, %v9400_v54 }
 0x2e8   : > { %v10265_v18 = vmax.f32 %v4394_v15, %v4398_v40  ;;  %4142 = vmatprep.mubr.f32.mxu0 %v12081_v3  ;;  %v4165_v23 = vadd.f32 %v3850_v14, %v3402_v33  ;;  %v4288_v4 = vadd.f32 %v10225_v24, %v4164_v57  ;;  %v12326_v40 = vld [vmem:[#allocation73_spill] sm:$0xff] }
 0x2e9   : > { %v3852_v1 = vpop.f32.mrf.mxu0  ;;  %v3406_v51 = vadd.f32 %v12327_v59, %v12326_v40  ;;  %v4399_v50 = vmax.f32 %v4287_v61, 0.0  ;;  %v3408_v59 = vadd.f32 %v9418_v13, %v9421_v32  ;;  %v4615_v32 = vld [vmem:[%s12008_s3 + $0xe0] sm:$0xff] }
 0x2ea   : > { %v4560_v8 = vmax.f32 %v10260_v2, %v10265_v18  ;;  %v4166_v38 = vadd.f32 %v3852_v1, %v3403_v12  ;;  %v4289_v54 = vadd.f32 %v10217_v0, %v4165_v23  ;;  %v4400_v33 = vmax.f32 %v4288_v4, 0.0  ;;  %v12464_v2 = vld [vmem:[#allocation51_spill] sm:$0xff]  ;;  %v12465_v18 = vld [vmem:[#allocation162_spill] sm:$0xff] }
 0x2eb   : > { %v3856_v52 = vpop.f32.mrf.mxu0  ;;  %7278 = vmatmul.mubr.msk.f32.gmra.mxu0 %vm839_vm0, %v7198_v35  ;;  %v12328_v35 = vld [vmem:[#allocation74_spill] sm:$0xff] }
 0x2ec   : > { %v4167_v39 = vadd.f32 %v3856_v52, %v3404_v45  ;;  %4148 = vmatprep.mubr.f32.mxu0 %v12081_v3  ;;  %v3407_v27 = vadd.f32 %v12328_v35, %v9415_v30  ;;  %v4290_v45 = vadd.f32 %v10225_v24, %v4166_v38  ;;  %v4617_v35 = vld [vmem:[%s12008_s3 + $0xf0] sm:$0xff] }
 0x2ed   : > { %v3858_v15 = vpop.f32.mrf.mxu0 }
 0x2ee   : > { %v4291_v21 = vadd.f32 %v10217_v0, %v4167_v39  ;;  %v4168_v46 = vadd.f32 %v3858_v15, %v3405_v20  ;;  %v4401_v15 = vmax.f32 %v4289_v54, 0.0 }
 0x2ef   : > { %v3862_v10 = vpop.f32.mrf.mxu0  ;;  %7279 = vmatmul.mubr.msk.f32.gmra.mxu0 %vm839_vm0, %v7199_v17 }
 0x2f0   : > { %v4403_v14 = vmax.f32 %v4291_v21, 0.0  ;;  %v4292_v57 = vadd.f32 %v10225_v24, %v4168_v46  ;;  %v4169_v1 = vadd.f32 %v3862_v10, %v3406_v51  ;;  %5377 = vmatprep.mubr.f32.mxu0 %v12081_v3  ;;  %v4402_v21 = vmax.f32 %v4290_v45, 0.0  ;;  %v12330_v45 = vld [vmem:[#allocation79_spill] sm:$0xff] }
 0x2f1   : > { %v3864_v12 = vpop.f32.mrf.mxu0 }
 0x2f2   : > { %v4507_v52 = vmax.f32 %v4399_v50, %v4403_v14  ;;  %v4404_v20 = vmax.f32 %v4292_v57, 0.0  ;;  %v4293_v30 = vadd.f32 %v10217_v0, %v4169_v1  ;;  %v4170_v61 = vadd.f32 %v3864_v12, %v3407_v27  ;;  %v12329_v27 = vld [vmem:[#allocation75_spill] sm:$0xff]  ;;  %v4616_v14 = vld [vmem:[%s12008_s3 + $0xe8] sm:$0xff]  ;;  %v12331_v12 = vld [vmem:[#allocation78_spill] sm:$0xff] }
 0x2f3   : > { %v3868_v39 = vpop.f32.mrf.mxu0  ;;  %v3409_v50 = vadd.f32 %v12329_v27, %v9428_v29  ;;  %v4614_v29 = vld [vmem:[%s12008_s3 + $0xd8] sm:$0xff]  ;;  %v3414_v27 = vadd.f32 %v9463_v44, %v9466_v22 }
 0x2f4   : > { %v4508_v17 = vmax.f32 %v4400_v33, %v4404_v20  ;;  %v4405_v40 = vmax.f32 %v4293_v30, 0.0  ;;  %v4294_v23 = vadd.f32 %v10225_v24, %v4170_v61  ;;  %v4171_v10 = vadd.f32 %v3868_v39, %v3408_v59  ;;  %v4613_v30 = vld [vmem:[%s12008_s3 + $0xd0] sm:$0xff]  ;;  %v12333_v39 = vld [vmem:[#allocation76_spill] sm:$0xff] }
 0x2f5   : > { %v3870_v51 = vpop.f32.mrf.mxu0  ;;  %v3410_v33 = vadd.f32 %v9431_v37, %v9434_v16  ;;  %v12332_v61 = vld [vmem:[#allocation77_spill] sm:$0xff]  ;;  %v4612_v37 = vld [vmem:[%s12008_s3 + $0xc8] sm:$0xff] }
 0x2f6   : > { %v10298_v4 = vmax.f32 %v4507_v52, %v4508_v17  ;;  %v4509_v38 = vmax.f32 %v4401_v15, %v4405_v40  ;;  %v4406_v46 = vmax.f32 %v4294_v23, 0.0  ;;  %v4172_v57 = vadd.f32 %v3870_v51, %v3409_v50  ;;  %v12334_v16 = vld [vmem:[#allocation80_spill] sm:$0xff] }
 0x2f7   : > { %v3874_v54 = vpop.f32.mrf.mxu0  ;;  %v3412_v52 = vadd.f32 %v12331_v12, %v12330_v45  ;;  %v3411_v15 = vadd.f32 %v12333_v39, %v12332_v61  ;;  %v4295_v17 = vadd.f32 %v10217_v0, %v4171_v10  ;;  %v3413_v23 = vadd.f32 %v12334_v16, %v9460_v49  ;;  %v4610_v49 = vld [vmem:[%s12008_s3 + $0xb8] sm:$0xff]  ;;  %v4607_v45 = vld [vmem:[%s12008_s3 + $0xa0] sm:$0xff]  ;;  %v4604_v16 = vld [vmem:[%s12008_s3 + $0x88] sm:$0xff] }
 0x2f8   : > { %v4510_v13 = vmax.f32 %v4402_v21, %v4406_v46  ;;  %4717 = vmatmul.mubr.f32.vlgmr.msra.gmra.mxu1 %v10298_v4  ;;  %v4173_v59 = vadd.f32 %v3874_v54, %v3410_v33  ;;  %v4611_v21 = vld [vmem:[%s12008_s3 + $0xc0] sm:$0xff]  ;;  %v4609_v54 = vld [vmem:[%s12008_s3 + $0xb0] sm:$0xff] }
 0x2f9   : > { %v3876_v1 = vpop.f32.mrf.mxu0  ;;  %4722 = vmatprep.mubr.f32.mxu1 %v12081_v3  ;;  %4838 = vmatpush1.msra.mxu1 %v4617_v35 }
 0x2fa   : > { %v10320_v20 = vmax.f32 %v4509_v38, %v4510_v13  ;;  %4839 = vmatprep.subr.mxu1 %v4616_v14  ;;  %v4296_v38 = vadd.f32 %v10225_v24, %v4172_v57  ;;  %v4174_v46 = vadd.f32 %v3876_v1, %v3411_v15  ;;  %v12335_v14 = vld [vmem:[#allocation81_spill] sm:$0xff]  ;;  %v4608_v1 = vld [vmem:[%s12008_s3 + $0xa8] sm:$0xff]  ;;  %v4297_v44 = vadd.f32 %v10217_v0, %v4173_v59 }
 0x2fb   : > { %v3880_v40 = vpop.f32.mrf.mxu0  ;;  %4840 = vmatpush1.msra.mxu1 %v4615_v32  ;;  %v3415_v13 = vadd.f32 %v12335_v14, %v9473_v60  ;;  %v4407_v32 = vmax.f32 %v4295_v17, 0.0  ;;  %v12337_v14 = vld [vmem:[#allocation82_spill] sm:$0xff] }
 0x2fc   : > { %v4175_v51 = vadd.f32 %v3880_v40, %v3412_v52  ;;  %4723 = vmatmul.mubr.f32.gmra.mxu1 %v10320_v20  ;;  %4841 = vmatprep.subr.mxu1 %v4614_v29  ;;  %v4408_v12 = vmax.f32 %v4296_v38, 0.0  ;;  %v4298_v60 = vadd.f32 %v10225_v24, %v4174_v46  ;;  %v4605_v40 = vld [vmem:[%s12008_s3 + $0x90] sm:$0xff]  ;;  %v4603_v38 = vld [vmem:[%s12008_s3 + $0x80] sm:$0xff]  ;;  %v3416_v46 = vadd.f32 %v9476_v11, %v9479_v34 }
 0x2fd   : > { %v3882_v35 = vpop.f32.mrf.mxu0  ;;  %4728 = vmatprep.mubr.f32.mxu1 %v12081_v3  ;;  %4842 = vmatpush1.msra.mxu1 %v4613_v30  ;;  %v4606_v30 = vld [vmem:[%s12008_s3 + $0x98] sm:$0xff]  ;;  %v4601_v11 = vld [vmem:[%s12008_s3 + $0x70] sm:$0xff] }
 0x2fe   : > { %v4299_v50 = vadd.f32 %v10217_v0, %v4175_v51  ;;  %v4176_v10 = vadd.f32 %v3882_v35, %v3413_v23  ;;  %4843 = vmatprep.subr.mxu1 %v4612_v37  ;;  %v4409_v23 = vmax.f32 %v4297_v44, 0.0  ;;  %v4600_v44 = vld [vmem:[%s12008_s3 + $0x68] sm:$0xff] }
 0x2ff   : > { %v3886_v57 = vpop.f32.mrf.mxu0  ;;  %4844 = vmatpush1.msra.mxu1 %v4611_v21 }
 0x300   : > { %v4411_v22 = vmax.f32 %v4299_v50, 0.0  ;;  %v4300_v29 = vadd.f32 %v10225_v24, %v4176_v10  ;;  %v4177_v33 = vadd.f32 %v3886_v57, %v3414_v27  ;;  %4845 = vmatprep.subr.mxu1 %v4610_v49  ;;  %v4602_v49 = vld [vmem:[%s12008_s3 + $0x78] sm:$0xff]  ;;  %v4410_v27 = vmax.f32 %v4298_v60, 0.0 }
 0x301   : > { %v3888_v52 = vpop.f32.mrf.mxu0  ;;  %4846 = vmatpush1.msra.mxu1 %v4609_v54  ;;  %v12336_v54 = vld [vmem:[#allocation83_spill] sm:$0xff] }
 0x302   : > { %v4511_v61 = vmax.f32 %v4407_v32, %v4411_v22  ;;  %v4412_v39 = vmax.f32 %v4300_v29, 0.0  ;;  %v4301_v15 = vadd.f32 %v10217_v0, %v4177_v33  ;;  %v4178_v17 = vadd.f32 %v3888_v52, %v3415_v13  ;;  %4847 = vmatprep.subr.mxu1 %v4608_v1  ;;  %v4599_v33 = vld [vmem:[%s12008_s3 + $0x60] sm:$0xff] }
 0x303   : > { %v3892_v37 = vpop.f32.mrf.mxu0  ;;  %4848 = vmatpush1.msra.mxu1 %v4607_v45  ;;  %v3417_v13 = vadd.f32 %v12337_v14, %v12336_v54  ;;  %v12338_v45 = vld [vmem:[#allocation85_spill] sm:$0xff]  ;;  %v3420_v52 = vadd.f32 %v9508_v43, %v9511_v26  ;;  %v12342_v26 = vld [vmem:[#allocation88_spill] sm:$0xff] }
 0x304   : > { %v4512_v59 = vmax.f32 %v4408_v12, %v4412_v39  ;;  %v4413_v51 = vmax.f32 %v4301_v15, 0.0  ;;  %v4302_v21 = vadd.f32 %v10225_v24, %v4178_v17  ;;  %4849 = vmatprep.subr.mxu1 %v4606_v30  ;;  %v4179_v32 = vadd.f32 %v3892_v37, %v3416_v46  ;;  %v12339_v12 = vld [vmem:[#allocation84_spill] sm:$0xff]  ;;  %v12340_v39 = vld [vmem:[#allocation87_spill] sm:$0xff]  ;;  %v12341_v15 = vld [vmem:[#allocation86_spill] sm:$0xff] }
 0x305   : > { %v3894_v35 = vpop.f32.mrf.mxu0  ;;  %4850 = vmatpush1.msra.mxu1 %v4605_v40  ;;  %v3418_v60 = vadd.f32 %v12339_v12, %v12338_v45  ;;  %v3419_v17 = vadd.f32 %v12341_v15, %v12340_v39  ;;  %v4597_v43 = vld [vmem:[%s12008_s3 + $0x50] sm:$0xff] }
 0x306   : > { %v4513_v50 = vmax.f32 %v4409_v23, %v4413_v51  ;;  %v4414_v10 = vmax.f32 %v4302_v21, 0.0  ;;  %4851 = vmatprep.subr.mxu1 %v4604_v16  ;;  %v10380_v1 = vmax.f32 %v4511_v61, %v4512_v59  ;;  %v4180_v22 = vadd.f32 %v3894_v35, %v3417_v13  ;;  %v4598_v61 = vld [vmem:[%s12008_s3 + $0x58] sm:$0xff]  ;;  %v4596_v51 = vld [vmem:[%s12008_s3 + $0x48] sm:$0xff]  ;;  %v4595_v35 = vld [vmem:[%s12008_s3 + $0x40] sm:$0xff] }
 0x307   : > { %v3898_v57 = vpop.f32.mrf.mxu0  ;;  %4852 = vmatpush1.msra.mxu1 %v4603_v38  ;;  %v4303_v40 = vadd.f32 %v10217_v0, %v4179_v32  ;;  %v3421_v16 = vadd.f32 %v12342_v26, %v9518_v36  ;;  %v3422_v36 = vadd.f32 %v9521_v48, %v9524_v25  ;;  %v4593_v48 = vld [vmem:[%s12008_s3 + $0x30] sm:$0xff]  ;;  %v3424_v26 = vadd.f32 %v9534_v62, %v9537_v31  ;;  %v7343_v62 = vld [vmem:[%s12008_s3 + $0x2f8] sm:$0xff] }
 0x308   : > { %v4514_v34 = vmax.f32 %v4410_v27, %v4414_v10  ;;  %4853 = vmatprep.subr.mxu1 %v4602_v49  ;;  %4729 = vmatmul.mubr.f32.gmra.mxu1 %v10380_v1  ;;  %v4181_v23 = vadd.f32 %v3898_v57, %v3418_v60  ;;  %v4304_v21 = vadd.f32 %v10225_v24, %v4180_v22  ;;  %v12343_v10 = vld [vmem:[#allocation89_spill] sm:$0xff] }
 0x309   : > { %v3900_v29 = vpop.f32.mrf.mxu0  ;;  %4734 = vmatprep.mubr.f32.mxu1 %v12081_v3  ;;  %4854 = vmatpush1.msra.mxu1 %v4601_v11  ;;  %v3423_v54 = vadd.f32 %v12343_v10, %v9531_v63  ;;  %v4415_v14 = vmax.f32 %v4303_v40, 0.0  ;;  %v4589_v39 = vld [vmem:[%s12008_s3 + $0x10] sm:$0xff] }
 0x30a   : > { %v10397_v30 = vmax.f32 %v4513_v50, %v4514_v34  ;;  %4855 = vmatprep.subr.mxu1 %v4600_v44  ;;  %v4182_v38 = vadd.f32 %v3900_v29, %v3419_v17  ;;  %v4594_v50 = vld [vmem:[%s12008_s3 + $0x38] sm:$0xff]  ;;  %v4305_v25 = vadd.f32 %v10217_v0, %v4181_v23  ;;  %v4592_v34 = vld [vmem:[%s12008_s3 + $0x28] sm:$0xff]  ;;  %v4416_v44 = vmax.f32 %v4304_v21, 0.0  ;;  %v4591_v29 = vld [vmem:[%s12008_s3 + $0x20] sm:$0xff] }
 0x30b   : > { %v3904_v37 = vpop.f32.mrf.mxu0  ;;  %4856 = vmatpush1.msra.mxu1 %v4599_v33  ;;  %v4587_v23 = vld [vmem:[%s12008_s3] sm:$0xff] }
 0x30c   : > { %v4183_v59 = vadd.f32 %v3904_v37, %v3420_v52  ;;  %4735 = vmatmul.mubr.f32.gmra.mxu1 %v10397_v30  ;;  %4857 = vmatprep.subr.mxu1 %v4598_v61  ;;  %v4306_v63 = vadd.f32 %v10225_v24, %v4182_v38  ;;  %v4590_v52 = vld [vmem:[%s12008_s3 + $0x18] sm:$0xff]  ;;  %v4417_v15 = vmax.f32 %v4305_v25, 0.0  ;;  %v12344_v38 = vld [vmem:[#allocation91_spill] sm:$0xff] }
 0x30d   : > { %v3906_v46 = vpop.f32.mrf.mxu0  ;;  %4740 = vmatprep.mubr.f32.mxu1 %v12081_v3  ;;  %4858 = vmatpush1.msra.mxu1 %v4597_v43  ;;  %v4588_v43 = vld [vmem:[%s12008_s3 + $0x8] sm:$0xff] }
 0x30e   : > { %v4307_v49 = vadd.f32 %v10217_v0, %v4183_v59  ;;  %v4184_v27 = vadd.f32 %v3906_v46, %v3421_v16  ;;  %4859 = vmatprep.subr.mxu1 %v4596_v51  ;;  %v4418_v59 = vmax.f32 %v4306_v63, 0.0  ;;  %v12345_v46 = vld [vmem:[#allocation90_spill] sm:$0xff] }
 0x30f   : > { %v3910_v13 = vpop.f32.mrf.mxu0  ;;  %4860 = vmatpush1.msra.mxu1 %v4595_v35  ;;  %v3425_v35 = vadd.f32 %v12345_v46, %v12344_v38 }
 0x310   : > { %v4419_v32 = vmax.f32 %v4307_v49, 0.0  ;;  %v4308_v57 = vadd.f32 %v10225_v24, %v4184_v27  ;;  %v4185_v11 = vadd.f32 %v3910_v13, %v3422_v36  ;;  %4861 = vmatprep.subr.mxu1 %v4594_v50 }
 0x311   : > { %v3912_v22 = vpop.f32.mrf.mxu0  ;;  %4862 = vmatpush1.msra.mxu1 %v4593_v48  ;;  %v3428_v48 = vadd.f32 %v9566_v7, %v9569_v56 }
 0x312   : > { %v4515_v33 = vmax.f32 %v4415_v14, %v4419_v32  ;;  %v4420_v45 = vmax.f32 %v4308_v57, 0.0  ;;  %v4309_v12 = vadd.f32 %v10217_v0, %v4185_v11  ;;  %v4186_v60 = vadd.f32 %v3912_v22, %v3423_v54  ;;  %4863 = vmatprep.subr.mxu1 %v4592_v34  ;;  %v12346_v54 = vld [vmem:[#allocation93_spill] sm:$0xff]  ;;  %v12347_v14 = vld [vmem:[#allocation92_spill] sm:$0xff]  ;;  %v12348_v32 = vld [vmem:[#allocation94_spill] sm:$0xff] }
 0x313   : > { %v3916_v61 = vpop.f32.mrf.mxu0  ;;  %4864 = vmatpush1.msra.mxu1 %v4591_v29  ;;  %v3426_v13 = vadd.f32 %v12347_v14, %v12346_v54  ;;  %v3427_v57 = vadd.f32 %v12348_v32, %v9563_v58  ;;  %v3430_v58 = vadd.f32 %v9579_v41, %v9582_v47 }
 0x314   : > { %v4516_v17 = vmax.f32 %v4416_v44, %v4420_v45  ;;  %v4421_v40 = vmax.f32 %v4309_v12, 0.0  ;;  %v4310_v37 = vadd.f32 %v10225_v24, %v4186_v60  ;;  %4865 = vmatprep.subr.mxu1 %v4590_v52  ;;  %v4187_v36 = vadd.f32 %v3916_v61, %v3424_v26  ;;  %v12349_v44 = vld [vmem:[#allocation95_spill] sm:$0xff]  ;;  %v12351_v60 = vld [vmem:[#allocation96_spill] sm:$0xff] }
 0x315   : > { %v3918_v16 = vpop.f32.mrf.mxu0  ;;  %4866 = vmatpush1.msra.mxu1 %v4589_v39  ;;  %v3429_v63 = vadd.f32 %v12349_v44, %v9576_v28  ;;  %v12350_v28 = vld [vmem:[#allocation97_spill] sm:$0xff] }
 0x316   : > { %v4517_v51 = vmax.f32 %v4417_v15, %v4421_v40  ;;  %v4422_v21 = vmax.f32 %v4310_v37, 0.0  ;;  %v10457_v27 = vmax.f32 %v4515_v33, %v4516_v17  ;;  %4867 = vmatprep.subr.mxu1 %v4588_v43  ;;  %v4188_v31 = vadd.f32 %v3918_v16, %v3425_v35  ;;  %v12354_v44 = vld [vmem:[#allocation101_spill] sm:$0xff] }
 0x317   : > { %v3922_v49 = vpop.f32.mrf.mxu0  ;;  %4868 = vmatpush1.msra.mxu1 %v4587_v23  ;;  %v4311_v11 = vadd.f32 %v10217_v0, %v4187_v36  ;;  %v3431_v52 = vadd.f32 %v12351_v60, %v12350_v28  ;;  %v12352_v36 = vld [vmem:[#allocation99_spill] sm:$0xff]  ;;  %v12361_v60 = vld [vmem:[#allocation106_spill] sm:$0xff] }
 0x318   : > { %v4518_v50 = vmax.f32 %v4418_v59, %v4422_v21  ;;  %4741 = vmatmul.mubr.f32.gmra.mxu1 %v10457_v27  ;;  %5378 = vmatmul.mubr.f32.vlgmr.msra.gmra.mxu0 %v10457_v27  ;;  %v4189_v22 = vadd.f32 %v3922_v49, %v3426_v13  ;;  %v4312_v7 = vadd.f32 %v10225_v24, %v4188_v31  ;;  %v12353_v49 = vld [vmem:[#allocation98_spill] sm:$0xff]  ;;  %v12360_v28 = vld [vmem:[#allocation107_spill] sm:$0xff] }
 0x319   : > { %v3924_v10 = vpop.f32.mrf.mxu0  ;;  %4746 = vmatprep.mubr.f32.mxu1 %v12081_v3  ;;  %5383 = vmatprep.mubr.f32.mxu0 %v12081_v3  ;;  %v4423_v61 = vmax.f32 %v4311_v11, 0.0  ;;  %v3433_v13 = vadd.f32 %v9605_v55, %v9608_v9  ;;  %v12358_v9 = vld [vmem:[#allocation103_spill] sm:$0xff] }
 0x31a   : > { %v10470_v25 = vmax.f32 %v4517_v51, %v4518_v50  ;;  %5055 = vmatprep.subr.mxu1 %v7343_v62  ;;  %v4190_v56 = vadd.f32 %v3924_v10, %v3427_v57  ;;  %v4313_v15 = vadd.f32 %v10217_v0, %v4189_v22  ;;  %v4424_v43 = vmax.f32 %v4312_v7, 0.0  ;;  %v12357_v7 = vld [vmem:[#allocation104_spill] sm:$0xff] }
 0x31b   : > { %v3928_v34 = vpop.f32.mrf.mxu0  ;;  %v3432_v50 = vadd.f32 %v12353_v49, %v12352_v36 }
 0x31c   : > { %v4191_v29 = vadd.f32 %v3928_v34, %v3428_v48  ;;  %4747 = vmatmul.mubr.f32.gmra.mxu1 %v10470_v25  ;;  %5384 = vmatmul.mubr.f32.gmra.mxu0 %v10470_v25  ;;  %v4314_v41 = vadd.f32 %v10225_v24, %v4190_v56  ;;  %v4425_v21 = vmax.f32 %v4313_v15, 0.0 }
 0x31d   : > { %v3930_v33 = vpop.f32.mrf.mxu0  ;;  %4752 = vmatprep.mubr.f32.mxu1 %v12081_v3  ;;  %5389 = vmatprep.mubr.f32.mxu0 %v12081_v3 }
 0x31e   : > { %v4315_v45 = vadd.f32 %v10217_v0, %v4191_v29  ;;  %v4192_v12 = vadd.f32 %v3930_v33, %v3429_v63  ;;  %v4426_v31 = vmax.f32 %v4314_v41, 0.0  ;;  %v12355_v63 = vld [vmem:[#allocation100_spill] sm:$0xff]  ;;  %v12356_v29 = vld [vmem:[#allocation105_spill] sm:$0xff]  ;;  %v12359_v33 = vld [vmem:[#allocation102_spill] sm:$0xff] }
 0x31f   : > { %v3934_v39 = vpop.f32.mrf.mxu0  ;;  %v3434_v22 = vadd.f32 %v12355_v63, %v12354_v44  ;;  %v3436_v56 = vadd.f32 %v12357_v7, %v12356_v29  ;;  %v12366_v44 = vld [vmem:[#allocation113_spill] sm:$0xff]  ;;  %v12367_v63 = vld [vmem:[#allocation112_spill] sm:$0xff] }
 0x320   : > { %v4427_v17 = vmax.f32 %v4315_v45, 0.0  ;;  %v4316_v40 = vadd.f32 %v10225_v24, %v4192_v12  ;;  %v4193_v37 = vadd.f32 %v3934_v39, %v3430_v58  ;;  %v3435_v58 = vadd.f32 %v12359_v33, %v12358_v9 }
 0x321   : > { %v3936_v47 = vpop.f32.mrf.mxu0 }
 0x322   : > { %v4519_v26 = vmax.f32 %v4423_v61, %v4427_v17  ;;  %v4428_v16 = vmax.f32 %v4316_v40, 0.0  ;;  %v4317_v23 = vadd.f32 %v10217_v0, %v4193_v37  ;;  %v4194_v59 = vadd.f32 %v3936_v47, %v3431_v52  ;;  %v12362_v37 = vld [vmem:[#allocation109_spill] sm:$0xff] }
 0x323   : > { %v3940_v51 = vpop.f32.mrf.mxu0  ;;  %v3437_v52 = vadd.f32 %v12361_v60, %v12360_v28 }
 0x324   : > { %v4520_v38 = vmax.f32 %v4424_v43, %v4428_v16  ;;  %v4429_v46 = vmax.f32 %v4317_v23, 0.0  ;;  %v4318_v35 = vadd.f32 %v10225_v24, %v4194_v59  ;;  %v4195_v48 = vadd.f32 %v3940_v51, %v3432_v50  ;;  %v12363_v43 = vld [vmem:[#allocation108_spill] sm:$0xff]  ;;  %v12364_v16 = vld [vmem:[#allocation111_spill] sm:$0xff]  ;;  %v12365_v23 = vld [vmem:[#allocation110_spill] sm:$0xff] }
 0x325   : > { %v3942_v62 = vpop.f32.mrf.mxu0  ;;  %v3438_v41 = vadd.f32 %v12363_v43, %v12362_v37  ;;  %v3439_v59 = vadd.f32 %v12365_v23, %v12364_v16  ;;  %v12372_v37 = vld [vmem:[#allocation6_spill] sm:$0xff]  ;;  %v12373_v43 = vld [vmem:[#allocation117_spill] sm:$0xff]  ;;  %v12375_v16 = vld [vmem:[#allocation116_spill] sm:$0xff] }
 0x326   : > { %v10494_v10 = vmax.f32 %v4519_v26, %v4520_v38  ;;  %v4521_v54 = vmax.f32 %v4425_v21, %v4429_v46  ;;  %v4430_v14 = vmax.f32 %v4318_v35, 0.0  ;;  %v4196_v11 = vadd.f32 %v3942_v62, %v3433_v13 }
 0x327   : > { %v3946_v32 = vpop.f32.mrf.mxu0  ;;  %v4319_v45 = vadd.f32 %v10217_v0, %v4195_v48 }
 0x328   : > { %v4522_v57 = vmax.f32 %v4426_v31, %v4430_v14  ;;  %4753 = vmatmul.mubr.f32.gmra.mxu1 %v10494_v10  ;;  %5390 = vmatmul.mubr.f32.gmra.mxu0 %v10494_v10  ;;  %v4197_v61 = vadd.f32 %v3946_v32, %v3434_v22  ;;  %v4320_v15 = vadd.f32 %v10225_v24, %v4196_v11 }
 0x329   : > { %v3948_v34 = vpop.f32.mrf.mxu0  ;;  %4758 = vmatprep.mubr.f32.mxu1 %v12081_v3  ;;  %5395 = vmatprep.mubr.f32.mxu0 %v12081_v3  ;;  %v4431_v51 = vmax.f32 %v4319_v45, 0.0  ;;  %v3440_v22 = vadd.f32 %v12367_v63, %v12366_v44  ;;  %v12369_v45 = vld [vmem:[#allocation114_spill] sm:$0xff] }
 0x32a   : > { %v10506_v55 = vmax.f32 %v4521_v54, %v4522_v57  ;;  %v4198_v17 = vadd.f32 %v3948_v34, %v3435_v58  ;;  %v4321_v38 = vadd.f32 %v10217_v0, %v4197_v61  ;;  %v4432_v49 = vmax.f32 %v4320_v15, 0.0  ;;  %v12368_v58 = vld [vmem:[#allocation3_spill] sm:$0xff]  ;;  %v12370_v15 = vld [vmem:[#allocation4_spill] sm:$0xff] }
 0x32b   : > { %v3952_v12 = vpop.f32.mrf.mxu0 }
 0x32c   : > { %v4199_v39 = vadd.f32 %v3952_v12, %v3436_v56  ;;  %4759 = vmatmul.mubr.f32.gmra.mxu1 %v10506_v55  ;;  %5396 = vmatmul.mubr.f32.gmra.mxu0 %v10506_v55  ;;  %v4322_v50 = vadd.f32 %v10225_v24, %v4198_v17  ;;  %v4433_v32 = vmax.f32 %v4321_v38, 0.0  ;;  %v3441_v12 = vadd.f32 %v12369_v45, %v12368_v58  ;;  %v12371_v17 = vld [vmem:[#allocation115_spill] sm:$0xff]  ;;  %v12377_v38 = vld [vmem:[#allocation118_spill] sm:$0xff] }
 0x32d   : > { %v3954_v40 = vpop.f32.mrf.mxu0  ;;  %4764 = vmatprep.mubr.f32.mxu1 %v12081_v3  ;;  %5401 = vmatprep.mubr.f32.mxu0 %v12081_v3 }
 0x32e   : > { %v4323_v47 = vadd.f32 %v10217_v0, %v4199_v39  ;;  %v4200_v26 = vadd.f32 %v3954_v40, %v3437_v52  ;;  %v4434_v7 = vmax.f32 %v4322_v50, 0.0  ;;  %v3442_v40 = vadd.f32 %v12371_v17, %v12370_v15 }
 0x32f   : > { %v3958_v21 = vpop.f32.mrf.mxu0 }
 0x330   : > { %v4435_v46 = vmax.f32 %v4323_v47, 0.0  ;;  %v4324_v35 = vadd.f32 %v10225_v24, %v4200_v26  ;;  %v4201_v36 = vadd.f32 %v3958_v21, %v3438_v41  ;;  %v3444_v41 = vadd.f32 %v12373_v43, %v12372_v37  ;;  %v12374_v26 = vld [vmem:[#allocation5_spill] sm:$0xff]  ;;  %v12376_v21 = vld [vmem:[#allocation7_spill] sm:$0xff] }
 0x331   : > { %v3960_v62 = vpop.f32.mrf.mxu0  ;;  %v3443_v23 = vadd.f32 %v12375_v16, %v12374_v26  ;;  %v12383_v37 = vld [vmem:[#allocation121_spill] sm:$0xff] }
 0x332   : > { %v4523_v31 = vmax.f32 %v4431_v51, %v4435_v46  ;;  %v4436_v54 = vmax.f32 %v4324_v35, 0.0  ;;  %v4325_v14 = vadd.f32 %v10217_v0, %v4201_v36  ;;  %v4202_v13 = vadd.f32 %v3960_v62, %v3439_v59 }
 0x333   : > { %v3964_v48 = vpop.f32.mrf.mxu0  ;;  %v3445_v46 = vadd.f32 %v12377_v38, %v12376_v21  ;;  %v12385_v21 = vld [vmem:[#allocation122_spill] sm:$0xff] }
 0x334   : > { %v4524_v57 = vmax.f32 %v4432_v49, %v4436_v54  ;;  %v4437_v11 = vmax.f32 %v4325_v14, 0.0  ;;  %v4326_v34 = vadd.f32 %v10225_v24, %v4202_v13  ;;  %v4203_v28 = vadd.f32 %v3964_v48, %v3440_v22  ;;  %v12379_v54 = vld [vmem:[#allocation119_spill] sm:$0xff] }
 0x335   : > { %v3966_v29 = vpop.f32.mrf.mxu0 }
 0x336   : > { %v10530_v56 = vmax.f32 %v4523_v31, %v4524_v57  ;;  %v4525_v9 = vmax.f32 %v4433_v32, %v4437_v11  ;;  %v4438_v33 = vmax.f32 %v4326_v34, 0.0  ;;  %v4204_v61 = vadd.f32 %v3966_v29, %v3441_v12  ;;  %v12378_v31 = vld [vmem:[#allocation8_spill] sm:$0xff]  ;;  %v12380_v32 = vld [vmem:[#allocation9_spill] sm:$0xff] }
 0x337   : > { %v3970_v60 = vpop.f32.mrf.mxu0  ;;  %v4327_v59 = vadd.f32 %v10217_v0, %v4203_v28  ;;  %v3446_v14 = vadd.f32 %v12379_v54, %v12378_v31  ;;  %v12381_v57 = vld [vmem:[#allocation120_spill] sm:$0xff]  ;;  %v12387_v31 = vld [vmem:[#allocation123_spill] sm:$0xff] }
 0x338   : > { %v4526_v52 = vmax.f32 %v4434_v7, %v4438_v33  ;;  %4765 = vmatmul.mubr.f32.gmra.mxu1 %v10530_v56  ;;  %5402 = vmatmul.mubr.f32.gmra.mxu0 %v10530_v56  ;;  %v4205_v35 = vadd.f32 %v3970_v60, %v3442_v40  ;;  %v4328_v49 = vadd.f32 %v10225_v24, %v4204_v61  ;;  %v12382_v40 = vld [vmem:[#allocation10_spill] sm:$0xff] }
 0x339   : > { %v3972_v39 = vpop.f32.mrf.mxu0  ;;  %4770 = vmatprep.mubr.f32.mxu1 %v12081_v3  ;;  %5407 = vmatprep.mubr.f32.mxu0 %v12081_v3  ;;  %v3447_v11 = vadd.f32 %v12381_v57, %v12380_v32  ;;  %v4439_v34 = vmax.f32 %v4327_v59, 0.0  ;;  %v3448_v43 = vadd.f32 %v12383_v37, %v12382_v40  ;;  %v12390_v57 = vld [vmem:[#allocation13_spill] sm:$0xff] }
 0x33a   : > { %v10542_v47 = vmax.f32 %v4525_v9, %v4526_v52  ;;  %v4206_v50 = vadd.f32 %v3972_v39, %v3443_v23  ;;  %v4329_v63 = vadd.f32 %v10217_v0, %v4205_v35  ;;  %v4440_v9 = vmax.f32 %v4328_v49, 0.0 }
 0x33b   : > { %v3976_v51 = vpop.f32.mrf.mxu0 }
 0x33c   : > { %v4207_v36 = vadd.f32 %v3976_v51, %v3444_v41  ;;  %4771 = vmatmul.mubr.f32.gmra.mxu1 %v10542_v47  ;;  %5408 = vmatmul.mubr.f32.gmra.mxu0 %v10542_v47  ;;  %v4330_v33 = vadd.f32 %v10225_v24, %v4206_v50  ;;  %v4441_v61 = vmax.f32 %v4329_v63, 0.0  ;;  %v12384_v51 = vld [vmem:[#allocation11_spill] sm:$0xff] }
 0x33d   : > { %v3978_v62 = vpop.f32.mrf.mxu0  ;;  %4776 = vmatprep.mubr.f32.mxu1 %v12081_v3  ;;  %5413 = vmatprep.mubr.f32.mxu0 %v12081_v3  ;;  %v3449_v38 = vadd.f32 %v12385_v21, %v12384_v51 }
 0x33e   : > { %v4331_v13 = vadd.f32 %v10217_v0, %v4207_v36  ;;  %v4208_v48 = vadd.f32 %v3978_v62, %v3445_v46  ;;  %v4442_v26 = vmax.f32 %v4330_v33, 0.0  ;;  %v12386_v62 = vld [vmem:[#allocation12_spill] sm:$0xff] }
 0x33f   : > { %v3982_v44 = vpop.f32.mrf.mxu0  ;;  %v3450_v54 = vadd.f32 %v12387_v31, %v12386_v62 }
 0x340   : > { %v4443_v22 = vmax.f32 %v4331_v13, 0.0  ;;  %v4332_v29 = vadd.f32 %v10225_v24, %v4208_v48  ;;  %v4209_v7 = vadd.f32 %v3982_v44, %v3446_v14  ;;  %v12388_v14 = vld [vmem:[#allocation14_spill] sm:$0xff]  ;;  %v12389_v13 = vld [vmem:[#allocation125_spill] sm:$0xff] }
 0x341   : > { %v3984_v58 = vpop.f32.mrf.mxu0  ;;  %v3452_v48 = vadd.f32 %v12389_v13, %v12388_v14  ;;  %v12398_v13 = vld [vmem:[#allocation18_spill] sm:$0xff] }
 0x342   : > { %v4527_v45 = vmax.f32 %v4439_v34, %v4443_v22  ;;  %v4444_v12 = vmax.f32 %v4332_v29, 0.0  ;;  %v4333_v28 = vadd.f32 %v10217_v0, %v4209_v7  ;;  %v4210_v60 = vadd.f32 %v3984_v58, %v3447_v11  ;;  %v12391_v11 = vld [vmem:[#allocation124_spill] sm:$0xff]  ;;  %v12392_v22 = vld [vmem:[#allocation15_spill] sm:$0xff]  ;;  %v12393_v29 = vld [vmem:[#allocation126_spill] sm:$0xff] }
 0x343   : > { %v3988_v52 = vpop.f32.mrf.mxu0  ;;  %v3451_v34 = vadd.f32 %v12391_v11, %v12390_v57  ;;  %v3453_v7 = vadd.f32 %v12393_v29, %v12392_v22  ;;  %v12400_v29 = vld [vmem:[#allocation19_spill] sm:$0xff] }
 0x344   : > { %v4528_v39 = vmax.f32 %v4440_v9, %v4444_v12  ;;  %v4445_v15 = vmax.f32 %v4333_v28, 0.0  ;;  %v4334_v17 = vadd.f32 %v10225_v24, %v4210_v60  ;;  %v4211_v46 = vadd.f32 %v3988_v52, %v3448_v43  ;;  %v12394_v28 = vld [vmem:[#allocation16_spill] sm:$0xff]  ;;  %v12395_v60 = vld [vmem:[#allocation127_spill] sm:$0xff] }
 0x345   : > { %v3990_v41 = vpop.f32.mrf.mxu0  ;;  %v3454_v52 = vadd.f32 %v12395_v60, %v12394_v28  ;;  %v12402_v60 = vld [vmem:[#allocation20_spill] sm:$0xff] }
 0x346   : > { %v10566_v16 = vmax.f32 %v4527_v45, %v4528_v39  ;;  %v4529_v23 = vmax.f32 %v4441_v61, %v4445_v15  ;;  %v4446_v59 = vmax.f32 %v4334_v17, 0.0  ;;  %v4212_v49 = vadd.f32 %v3990_v41, %v3449_v38  ;;  %v12396_v15 = vld [vmem:[#allocation17_spill] sm:$0xff]  ;;  %v12397_v17 = vld [vmem:[#allocation128_spill] sm:$0xff] }
 0x347   : > { %v3994_v35 = vpop.f32.mrf.mxu0  ;;  %v4335_v44 = vadd.f32 %v10217_v0, %v4211_v46  ;;  %v3455_v40 = vadd.f32 %v12397_v17, %v12396_v15  ;;  %v12405_v15 = vld [vmem:[#allocation133_spill] sm:$0xff] }
 0x348   : > { %v4530_v36 = vmax.f32 %v4442_v26, %v4446_v59  ;;  %4777 = vmatmul.mubr.f32.gmra.mxu1 %v10566_v16  ;;  %5414 = vmatmul.mubr.f32.gmra.mxu0 %v10566_v16  ;;  %v4213_v9 = vadd.f32 %v3994_v35, %v3450_v54  ;;  %v4336_v58 = vadd.f32 %v10225_v24, %v4212_v49 }
 0x349   : > { %v3996_v50 = vpop.f32.mrf.mxu0  ;;  %4782 = vmatprep.mubr.f32.mxu1 %v12081_v3  ;;  %5419 = vmatprep.mubr.f32.mxu0 %v12081_v3  ;;  %v4447_v37 = vmax.f32 %v4335_v44, 0.0 }
 0x34a   : > { %v10578_v32 = vmax.f32 %v4529_v23, %v4530_v36  ;;  %v4214_v45 = vadd.f32 %v3996_v50, %v3451_v34  ;;  %v4337_v41 = vadd.f32 %v10217_v0, %v4213_v9  ;;  %v4448_v51 = vmax.f32 %v4336_v58, 0.0 }
 0x34b   : > { %v4000_v63 = vpop.f32.mrf.mxu0 }
 0x34c   : > { %v4215_v33 = vadd.f32 %v4000_v63, %v3452_v48  ;;  %4783 = vmatmul.mubr.f32.gmra.mxu1 %v10578_v32  ;;  %5420 = vmatmul.mubr.f32.gmra.mxu0 %v10578_v32  ;;  %v4338_v21 = vadd.f32 %v10225_v24, %v4214_v45  ;;  %v4449_v62 = vmax.f32 %v4337_v41, 0.0  ;;  %v12399_v48 = vld [vmem:[#allocation129_spill] sm:$0xff] }
 0x34d   : > { %v4002_v12 = vpop.f32.mrf.mxu0  ;;  %4788 = vmatprep.mubr.f32.mxu1 %v12081_v3  ;;  %5425 = vmatprep.mubr.f32.mxu0 %v12081_v3  ;;  %v3456_v57 = vadd.f32 %v12399_v48, %v12398_v13  ;;  %v12412_v13 = vld [vmem:[#allocation25_spill] sm:$0xff]  ;;  %v12413_v48 = vld [vmem:[#allocation136_spill] sm:$0xff] }
 0x34e   : > { %v4339_v61 = vadd.f32 %v10217_v0, %v4215_v33  ;;  %v4216_v39 = vadd.f32 %v4002_v12, %v3453_v7  ;;  %v4450_v34 = vmax.f32 %v4338_v21, 0.0  ;;  %v12401_v7 = vld [vmem:[#allocation130_spill] sm:$0xff] }
 0x34f   : > { %v4006_v43 = vpop.f32.mrf.mxu0  ;;  %v3457_v9 = vadd.f32 %v12401_v7, %v12400_v29 }
 0x350   : > { %v4451_v26 = vmax.f32 %v4339_v61, 0.0  ;;  %v4340_v23 = vadd.f32 %v10225_v24, %v4216_v39  ;;  %v4217_v59 = vadd.f32 %v4006_v43, %v3454_v52  ;;  %v12403_v52 = vld [vmem:[#allocation131_spill] sm:$0xff]  ;;  %v12404_v39 = vld [vmem:[#allocation22_spill] sm:$0xff]  ;;  %v12407_v43 = vld [vmem:[#allocation132_spill] sm:$0xff] }
 0x351   : > { %v4008_v38 = vpop.f32.mrf.mxu0  ;;  %v3458_v61 = vadd.f32 %v12403_v52, %v12402_v60  ;;  %v3460_v17 = vadd.f32 %v12405_v15, %v12404_v39 }
 0x352   : > { %v4531_v46 = vmax.f32 %v4447_v37, %v4451_v26  ;;  %v4452_v35 = vmax.f32 %v4340_v23, 0.0  ;;  %v4341_v36 = vadd.f32 %v10217_v0, %v4217_v59  ;;  %v4218_v49 = vadd.f32 %v4008_v38, %v3455_v40  ;;  %v12406_v37 = vld [vmem:[#allocation21_spill] sm:$0xff]  ;;  %v12408_v59 = vld [vmem:[#allocation23_spill] sm:$0xff] }
 0x353   : > { %v4012_v50 = vpop.f32.mrf.mxu0  ;;  %v3459_v41 = vadd.f32 %v12407_v43, %v12406_v37  ;;  %v12414_v37 = vld [vmem:[#allocation26_spill] sm:$0xff]  ;;  %v12415_v43 = vld [vmem:[#allocation137_spill] sm:$0xff] }
 0x354   : > { %v4532_v31 = vmax.f32 %v4448_v51, %v4452_v35  ;;  %v4453_v54 = vmax.f32 %v4341_v36, 0.0  ;;  %v4342_v14 = vadd.f32 %v10225_v24, %v4218_v49  ;;  %v4219_v33 = vadd.f32 %v4012_v50, %v3456_v57  ;;  %v12409_v51 = vld [vmem:[#allocation134_spill] sm:$0xff]  ;;  %v12410_v50 = vld [vmem:[#allocation24_spill] sm:$0xff] }
 0x355   : > { %v4014_v11 = vpop.f32.mrf.mxu0  ;;  %v3461_v21 = vadd.f32 %v12409_v51, %v12408_v59  ;;  %v3463_v57 = vadd.f32 %v12413_v48, %v12412_v13  ;;  %v12420_v48 = vld [vmem:[#allocation30_spill] sm:$0xff] }
 0x356   : > { %v10602_v44 = vmax.f32 %v4531_v46, %v4532_v31  ;;  %v4533_v63 = vmax.f32 %v4449_v62, %v4453_v54  ;;  %v4454_v22 = vmax.f32 %v4342_v14, 0.0  ;;  %v4220_v12 = vadd.f32 %v4014_v11, %v3457_v9  ;;  %v12411_v62 = vld [vmem:[#allocation135_spill] sm:$0xff] }
 0x357   : > { %v4018_v58 = vpop.f32.mrf.mxu0  ;;  %v4343_v26 = vadd.f32 %v10217_v0, %v4219_v33  ;;  %v3462_v31 = vadd.f32 %v12411_v62, %v12410_v50 }
 0x358   : > { %v4534_v45 = vmax.f32 %v4450_v34, %v4454_v22  ;;  %4789 = vmatmul.mubr.f32.gmra.mxu1 %v10602_v44  ;;  %5426 = vmatmul.mubr.f32.gmra.mxu0 %v10602_v44  ;;  %v4221_v38 = vadd.f32 %v4018_v58, %v3458_v61  ;;  %v4344_v35 = vadd.f32 %v10225_v24, %v4220_v12 }
 0x359   : > { %v4020_v28 = vpop.f32.mrf.mxu0  ;;  %4794 = vmatprep.mubr.f32.mxu1 %v12081_v3  ;;  %5431 = vmatprep.mubr.f32.mxu0 %v12081_v3  ;;  %v4455_v11 = vmax.f32 %v4343_v26, 0.0 }
 0x35a   : > { %v10614_v40 = vmax.f32 %v4533_v63, %v4534_v45  ;;  %v4222_v36 = vadd.f32 %v4020_v28, %v3459_v41  ;;  %v4345_v63 = vadd.f32 %v10217_v0, %v4221_v38  ;;  %v4456_v9 = vmax.f32 %v4344_v35, 0.0  ;;  %v12416_v38 = vld [vmem:[#allocation27_spill] sm:$0xff] }
 0x35b   : > { %v4024_v23 = vpop.f32.mrf.mxu0  ;;  %v3464_v41 = vadd.f32 %v12415_v43, %v12414_v37 }
 0x35c   : > { %v4223_v46 = vadd.f32 %v4024_v23, %v3460_v17  ;;  %4795 = vmatmul.mubr.f32.gmra.mxu1 %v10614_v40  ;;  %5432 = vmatmul.mubr.f32.gmra.mxu0 %v10614_v40  ;;  %v4346_v33 = vadd.f32 %v10225_v24, %v4222_v36  ;;  %v4457_v61 = vmax.f32 %v4345_v63, 0.0  ;;  %v12422_v63 = vld [vmem:[#allocation29_spill] sm:$0xff] }
 0x35d   : > { %v4026_v49 = vpop.f32.mrf.mxu0  ;;  %4800 = vmatprep.mubr.f32.mxu1 %v12081_v3  ;;  %5437 = vmatprep.mubr.f32.mxu0 %v12081_v3 }
 0x35e   : > { %v4347_v54 = vadd.f32 %v10217_v0, %v4223_v46  ;;  %v4224_v14 = vadd.f32 %v4026_v49, %v3461_v21  ;;  %v4458_v23 = vmax.f32 %v4346_v33, 0.0  ;;  %v12417_v46 = vld [vmem:[#allocation138_spill] sm:$0xff]  ;;  %v12424_v33 = vld [vmem:[#allocation31_spill] sm:$0xff] }
 0x35f   : > { %v4030_v34 = vpop.f32.mrf.mxu0  ;;  %v3465_v35 = vadd.f32 %v12417_v46, %v12416_v38 }
 0x360   : > { %v4459_v22 = vmax.f32 %v4347_v54, 0.0  ;;  %v4348_v29 = vadd.f32 %v10225_v24, %v4224_v14  ;;  %v4225_v7 = vadd.f32 %v4030_v34, %v3462_v31  ;;  %v12418_v54 = vld [vmem:[#allocation28_spill] sm:$0xff]  ;;  %v12419_v14 = vld [vmem:[#allocation139_spill] sm:$0xff] }
 0x361   : > { %v4032_v58 = vpop.f32.mrf.mxu0  ;;  %v3466_v13 = vadd.f32 %v12419_v14, %v12418_v54 }
 0x362   : > { %v4535_v45 = vmax.f32 %v4455_v11, %v4459_v22  ;;  %v4460_v12 = vmax.f32 %v4348_v29, 0.0  ;;  %v4349_v28 = vadd.f32 %v10217_v0, %v4225_v7  ;;  %v4226_v60 = vadd.f32 %v4032_v58, %v3463_v57  ;;  %v12421_v57 = vld [vmem:[#allocation141_spill] sm:$0xff]  ;;  %v12423_v22 = vld [vmem:[#allocation140_spill] sm:$0xff]  ;;  %v12425_v58 = vld [vmem:[#allocation142_spill] sm:$0xff] }
 0x363   : > { %v4036_v52 = vpop.f32.mrf.mxu0  ;;  %v3468_v11 = vadd.f32 %v12421_v57, %v12420_v48  ;;  %v3467_v29 = vadd.f32 %v12423_v22, %v12422_v63 }
 0x364   : > { %v4536_v39 = vmax.f32 %v4456_v9, %v4460_v12  ;;  %v4461_v15 = vmax.f32 %v4349_v28, 0.0  ;;  %v4350_v17 = vadd.f32 %v10225_v24, %v4226_v60  ;;  %v4227_v36 = vadd.f32 %v4036_v52, %v3464_v41  ;;  %v12428_v41 = vld [vmem:[#allocation33_spill] sm:$0xff] }
 0x365   : > { %v4038_v26 = vpop.f32.mrf.mxu0 }
 0x366   : > { %v10638_v59 = vmax.f32 %v4535_v45, %v4536_v39  ;;  %v4537_v51 = vmax.f32 %v4457_v61, %v4461_v15  ;;  %v4462_v21 = vmax.f32 %v4350_v17, 0.0  ;;  %v4228_v62 = vadd.f32 %v4038_v26, %v3465_v35  ;;  %v12426_v39 = vld [vmem:[#allocation32_spill] sm:$0xff]  ;;  %v12427_v15 = vld [vmem:[#allocation143_spill] sm:$0xff] }
 0x367   : > { %v4042_v49 = vpop.f32.mrf.mxu0  ;;  %v4351_v7 = vadd.f32 %v10217_v0, %v4227_v36  ;;  %v3469_v45 = vadd.f32 %v12425_v58, %v12424_v33  ;;  %v3470_v17 = vadd.f32 %v12427_v15, %v12426_v39  ;;  %v12429_v26 = vld [vmem:[#allocation144_spill] sm:$0xff] }
 0x368   : > { %v4538_v50 = vmax.f32 %v4458_v23, %v4462_v21  ;;  %4801 = vmatmul.mubr.f32.gmra.mxu1 %v10638_v59  ;;  %5438 = vmatmul.mubr.f32.gmra.mxu0 %v10638_v59  ;;  %v4229_v12 = vadd.f32 %v4042_v49, %v3466_v13  ;;  %v4352_v60 = vadd.f32 %v10225_v24, %v4228_v62 }
 0x369   : > { %v4044_v31 = vpop.f32.mrf.mxu0  ;;  %4806 = vmatprep.mubr.f32.mxu1 %v12081_v3  ;;  %5443 = vmatprep.mubr.f32.mxu0 %v12081_v3  ;;  %v3471_v23 = vadd.f32 %v12429_v26, %v12428_v41  ;;  %v12434_v41 = vld [vmem:[#allocation36_spill] sm:$0xff]  ;;  %v12435_v26 = vld [vmem:[#allocation147_spill] sm:$0xff] }
 0x36a   : > { %v10650_v34 = vmax.f32 %v4537_v51, %v4538_v50  ;;  %v4230_v52 = vadd.f32 %v4044_v31, %v3467_v29  ;;  %v4463_v51 = vmax.f32 %v4351_v7, 0.0  ;;  %v4353_v38 = vadd.f32 %v10217_v0, %v4229_v12  ;;  %v12430_v29 = vld [vmem:[#allocation34_spill] sm:$0xff]  ;;  %v12431_v7 = vld [vmem:[#allocation145_spill] sm:$0xff] }
 0x36b   : > { %v4048_v9 = vpop.f32.mrf.mxu0  ;;  %v4464_v49 = vmax.f32 %v4352_v60, 0.0  ;;  %v12432_v60 = vld [vmem:[#allocation35_spill] sm:$0xff] }
 0x36c   : > { %v4231_v28 = vadd.f32 %v4048_v9, %v3468_v11  ;;  %4807 = vmatmul.mubr.f32.gmra.mxu1 %v10650_v34  ;;  %5444 = vmatmul.mubr.f32.gmra.mxu0 %v10650_v34  ;;  %v4354_v50 = vadd.f32 %v10225_v24, %v4230_v52  ;;  %v4465_v57 = vmax.f32 %v4353_v38, 0.0  ;;  %v3472_v9 = vadd.f32 %v12431_v7, %v12430_v29  ;;  %v12433_v52 = vld [vmem:[#allocation146_spill] sm:$0xff]  ;;  %v12443_v29 = vld [vmem:[#allocation151_spill] sm:$0xff] }
 0x36d   : > { %v4050_v61 = vpop.f32.mrf.mxu0  ;;  %4812 = vmatprep.mubr.f32.mxu1 %v12081_v3  ;;  %5449 = vmatprep.mubr.f32.mxu0 %v12081_v3 }
 0x36e   : > { %v4355_v37 = vadd.f32 %v10217_v0, %v4231_v28  ;;  %v4232_v43 = vadd.f32 %v4050_v61, %v3469_v45  ;;  %v4466_v58 = vmax.f32 %v4354_v50, 0.0  ;;  %v3473_v61 = vadd.f32 %v12433_v52, %v12432_v60 }
 0x36f   : > { %v4054_v21 = vpop.f32.mrf.mxu0 }
 0x370   : > { %v4467_v46 = vmax.f32 %v4355_v37, 0.0  ;;  %v4356_v35 = vadd.f32 %v10225_v24, %v4232_v43  ;;  %v4233_v36 = vadd.f32 %v4054_v21, %v3470_v17  ;;  %v12437_v21 = vld [vmem:[#allocation149_spill] sm:$0xff] }
 0x371   : > { %v4056_v62 = vpop.f32.mrf.mxu0 }
 0x372   : > { %v4539_v31 = vmax.f32 %v4463_v51, %v4467_v46  ;;  %v4468_v54 = vmax.f32 %v4356_v35, 0.0  ;;  %v4357_v14 = vadd.f32 %v10217_v0, %v4233_v36  ;;  %v4234_v13 = vadd.f32 %v4056_v62, %v3471_v23  ;;  %v12436_v51 = vld [vmem:[#allocation38_spill] sm:$0xff]  ;;  %v12438_v35 = vld [vmem:[#allocation37_spill] sm:$0xff]  ;;  %v12439_v36 = vld [vmem:[#allocation148_spill] sm:$0xff] }
 0x373   : > { %v4060_v48 = vpop.f32.mrf.mxu0  ;;  %v3474_v23 = vadd.f32 %v12435_v26, %v12434_v41  ;;  %v3476_v38 = vadd.f32 %v12437_v21, %v12436_v51 }
 0x374   : > { %v4540_v11 = vmax.f32 %v4464_v49, %v4468_v54  ;;  %v4469_v63 = vmax.f32 %v4357_v14, 0.0  ;;  %v4358_v22 = vadd.f32 %v10225_v24, %v4234_v13  ;;  %v4235_v39 = vadd.f32 %v4060_v48, %v3472_v9  ;;  %v12441_v54 = vld [vmem:[#allocation150_spill] sm:$0xff] }
 0x375   : > { %v4062_v33 = vpop.f32.mrf.mxu0  ;;  %v3475_v49 = vadd.f32 %v12439_v36, %v12438_v35 }
 0x376   : > { %v10674_v45 = vmax.f32 %v4539_v31, %v4540_v11  ;;  %v4541_v12 = vmax.f32 %v4465_v57, %v4469_v63  ;;  %v4470_v28 = vmax.f32 %v4358_v22, 0.0  ;;  %v4236_v37 = vadd.f32 %v4062_v33, %v3473_v61  ;;  %v12440_v31 = vld [vmem:[#allocation39_spill] sm:$0xff]  ;;  %v12442_v22 = vld [vmem:[#allocation40_spill] sm:$0xff] }
 0x377   : > { %v4066_v15 = vpop.f32.mrf.mxu0  ;;  %v4359_v50 = vadd.f32 %v10217_v0, %v4235_v39  ;;  %v3477_v14 = vadd.f32 %v12441_v54, %v12440_v31  ;;  %v3478_v7 = vadd.f32 %v12443_v29, %v12442_v22  ;;  %v12447_v31 = vld [vmem:[#allocation153_spill] sm:$0xff]  ;;  %v12449_v22 = vld [vmem:[#allocation154_spill] sm:$0xff] }
 0x378   : > { %v4542_v17 = vmax.f32 %v4466_v58, %v4470_v28  ;;  %4813 = vmatmul.mubr.f32.gmra.mxu1 %v10674_v45  ;;  %5450 = vmatmul.mubr.f32.gmra.mxu0 %v10674_v45  ;;  %v4237_v13 = vadd.f32 %v4066_v15, %v3474_v23  ;;  %v4360_v57 = vadd.f32 %v10225_v24, %v4236_v37  ;;  %v12444_v58 = vld [vmem:[#allocation41_spill] sm:$0xff] }
 0x379   : > { %v4068_v43 = vpop.f32.mrf.mxu0  ;;  %4818 = vmatprep.mubr.f32.mxu1 %v12081_v3  ;;  %5455 = vmatprep.mubr.f32.mxu0 %v12081_v3  ;;  %v4471_v60 = vmax.f32 %v4359_v50, 0.0 }
 0x37a   : > { %v10686_v46 = vmax.f32 %v4541_v12, %v4542_v17  ;;  %v4238_v11 = vadd.f32 %v4068_v43, %v3475_v49  ;;  %v12445_v12 = vld [vmem:[#allocation152_spill] sm:$0xff]  ;;  %v4361_v61 = vadd.f32 %v10217_v0, %v4237_v13  ;;  %v4472_v37 = vmax.f32 %v4360_v57, 0.0 }
 0x37b   : > { %v4072_v62 = vpop.f32.mrf.mxu0  ;;  %v3479_v28 = vadd.f32 %v12445_v12, %v12444_v58 }
 0x37c   : > { %v4239_v48 = vadd.f32 %v4072_v62, %v3476_v38  ;;  %4819 = vmatmul.mubr.f32.gmra.mxu1 %v10686_v46  ;;  %5456 = vmatmul.mubr.f32.gmra.mxu0 %v10686_v46  ;;  %v4362_v43 = vadd.f32 %v10225_v24, %v4238_v11  ;;  %v4473_v35 = vmax.f32 %v4361_v61, 0.0  ;;  %v12446_v62 = vld [vmem:[#allocation42_spill] sm:$0xff] }
 0x37d   : > { %v4074_v63 = vpop.f32.mrf.mxu0  ;;  %4824 = vmatprep.mubr.f32.mxu1 %v12081_v3  ;;  %5461 = vmatprep.mubr.f32.mxu0 %v12081_v3  ;;  %v3480_v54 = vadd.f32 %v12447_v31, %v12446_v62  ;;  %v12452_v61 = vld [vmem:[#allocation46_spill] sm:$0xff]  ;;  %v12458_v31 = vld [vmem:[#allocation48_spill] sm:$0xff] }
 0x37e   : > { %v4363_v9 = vadd.f32 %v10217_v0, %v4239_v48  ;;  %v4240_v33 = vadd.f32 %v4074_v63, %v3477_v14  ;;  %v4474_v13 = vmax.f32 %v4362_v43, 0.0  ;;  %v12448_v63 = vld [vmem:[#allocation43_spill] sm:$0xff]  ;;  %v12455_v43 = vld [vmem:[#allocation156_spill] sm:$0xff] }
 0x37f   : > { %v4078_v52 = vpop.f32.mrf.mxu0  ;;  %v3481_v29 = vadd.f32 %v12449_v22, %v12448_v63  ;;  %v12460_v63 = vld [vmem:[#allocation49_spill] sm:$0xff]  ;;  %v12461_v22 = vld [vmem:[#allocation160_spill] sm:$0xff] }
 0x380   : > { %v4475_v39 = vmax.f32 %v4363_v9, 0.0  ;;  %v4364_v15 = vadd.f32 %v10225_v24, %v4240_v33  ;;  %v4241_v17 = vadd.f32 %v4078_v52, %v3478_v7 }
 0x381   : > { %v4080_v41 = vpop.f32.mrf.mxu0 }
 0x382   : > { %v4543_v26 = vmax.f32 %v4471_v60, %v4475_v39  ;;  %v4476_v23 = vmax.f32 %v4364_v15, 0.0  ;;  %v4365_v51 = vadd.f32 %v10217_v0, %v4241_v17  ;;  %v4242_v21 = vadd.f32 %v4080_v41, %v3479_v28  ;;  %v12450_v28 = vld [vmem:[#allocation44_spill] sm:$0xff]  ;;  %v12451_v60 = vld [vmem:[#allocation155_spill] sm:$0xff]  ;;  %v12453_v39 = vld [vmem:[#allocation157_spill] sm:$0xff] }
 0x383   : > { %v4084_v38 = vpop.f32.mrf.mxu0  ;;  %v3482_v52 = vadd.f32 %v12451_v60, %v12450_v28  ;;  %v3484_v15 = vadd.f32 %v12453_v39, %v12452_v61 }
 0x384   : > { %v4544_v36 = vmax.f32 %v4472_v37, %v4476_v23  ;;  %v4477_v49 = vmax.f32 %v4365_v51, 0.0  ;;  %v4366_v50 = vadd.f32 %v10225_v24, %v4242_v21  ;;  %v4243_v7 = vadd.f32 %v4084_v38, %v3480_v54  ;;  %v12454_v37 = vld [vmem:[#allocation45_spill] sm:$0xff]  ;;  %v12456_v51 = vld [vmem:[#allocation47_spill] sm:$0xff]  ;;  %v12457_v21 = vld [vmem:[#allocation158_spill] sm:$0xff] }
 0x385   : > { %v4086_v14 = vpop.f32.mrf.mxu0  ;;  %v3483_v41 = vadd.f32 %v12455_v43, %v12454_v37  ;;  %v3485_v38 = vadd.f32 %v12457_v21, %v12456_v51  ;;  %v12459_v54 = vld [vmem:[#allocation159_spill] sm:$0xff]  ;;  %v7339_v37 = vld [vmem:[%s12008_s3 + $0x2d8] sm:$0xff] }
 0x386   : > { %v10710_v48 = vmax.f32 %v4543_v26, %v4544_v36  ;;  %v4545_v57 = vmax.f32 %v4473_v35, %v4477_v49  ;;  %v4478_v11 = vmax.f32 %v4366_v50, 0.0  ;;  %v4244_v58 = vadd.f32 %v4086_v14, %v3481_v29 }
 0x387   : > { %v4090_v9 = vpop.f32.mrf.mxu0  ;;  %v4367_v26 = vadd.f32 %v10217_v0, %v4243_v7  ;;  %v3486_v14 = vadd.f32 %v12459_v54, %v12458_v31  ;;  %v3487_v29 = vadd.f32 %v12461_v22, %v12460_v63  ;;  %v7335_v22 = vld [vmem:[%s12008_s3 + $0x2b8] sm:$0xff] }
 0x388   : > { %v4546_v33 = vmax.f32 %v4474_v13, %v4478_v11  ;;  %4825 = vmatmul.mubr.f32.gmra.mxu1 %v10710_v48  ;;  %5462 = vmatmul.mubr.f32.gmra.mxu0 %v10710_v48  ;;  %v4245_v35 = vadd.f32 %v4090_v9, %v3482_v52  ;;  %v4368_v49 = vadd.f32 %v10225_v24, %v4244_v58  ;;  %v7342_v11 = vld [vmem:[%s12008_s3 + $0x2f0] sm:$0xff]  ;;  %v7340_v52 = vld [vmem:[%s12008_s3 + $0x2e0] sm:$0xff] }
 0x389   : > { %v4092_v12 = vpop.f32.mrf.mxu0  ;;  %4830 = vmatprep.mubr.f32.mxu1 %v12081_v3  ;;  %5467 = vmatprep.mubr.f32.mxu0 %v12081_v3  ;;  %v4479_v7 = vmax.f32 %v4367_v26, 0.0 }
 0x38a   : > { %v10722_v17 = vmax.f32 %v4545_v57, %v4546_v33  ;;  %v4246_v50 = vadd.f32 %v4092_v12, %v3483_v41  ;;  %v7341_v33 = vld [vmem:[%s12008_s3 + $0x2e8] sm:$0xff]  ;;  %v4369_v58 = vadd.f32 %v10217_v0, %v4245_v35  ;;  %v4480_v61 = vmax.f32 %v4368_v49, 0.0  ;;  %v12462_v49 = vld [vmem:[#allocation50_spill] sm:$0xff] }
 0x38b   : > { %v4096_v23 = vpop.f32.mrf.mxu0 }
 0x38c   : > { %v4247_v36 = vadd.f32 %v4096_v23, %v3484_v15  ;;  %4831 = vmatmul.mubr.f32.gmra.mxu1 %v10722_v17  ;;  %5468 = vmatmul.mubr.f32.gmra.mxu0 %v10722_v17  ;;  %v4370_v39 = vadd.f32 %v10225_v24, %v4246_v50  ;;  %v7337_v23 = vld [vmem:[%s12008_s3 + $0x2c8] sm:$0xff]  ;;  %v4481_v51 = vmax.f32 %v4369_v58, 0.0  ;;  %v12463_v50 = vld [vmem:[#allocation161_spill] sm:$0xff] }
 0x38d   : > { %v4098_v62 = vpop.f32.mrf.mxu0  ;;  %4901 = vmatprep.mubr.f32.mxu1 %v12081_v3  ;;  %5473 = vmatprep.mubr.f32.mxu0 %v12081_v3  ;;  %v12466_v58 = vld [vmem:[#allocation52_spill] sm:$0xff] }
 0x38e   : > { %v4371_v13 = vadd.f32 %v10217_v0, %v4247_v36  ;;  %v4248_v57 = vadd.f32 %v4098_v62, %v3485_v38  ;;  %v7336_v36 = vld [vmem:[%s12008_s3 + $0x2c0] sm:$0xff]  ;;  %v3488_v62 = vadd.f32 %v12463_v50, %v12462_v49  ;;  %v4482_v54 = vmax.f32 %v4370_v39, 0.0  ;;  %v7331_v49 = vld [vmem:[%s12008_s3 + $0x298] sm:$0xff]  ;;  %v12474_v50 = vld [vmem:[#allocation56_spill] sm:$0xff] }
 0x38f   : > { %v4102_v9 = vpop.f32.mrf.mxu0 }
 0x390   : > { %v4483_v12 = vmax.f32 %v4371_v13, 0.0  ;;  %v4372_v28 = vadd.f32 %v10225_v24, %v4248_v57  ;;  %v4249_v60 = vadd.f32 %v4102_v9, %v3486_v14  ;;  %4902 = vmatmul.mubr.f32.vlgmr.msra.gmra.mxu1 %v4559_v53  ;;  %v7338_v53 = vld [vmem:[%s12008_s3 + $0x2d0] sm:$0xff] }
 0x391   : > { %v4104_v15 = vpop.f32.mrf.mxu0  ;;  %5056 = vmatpush1.msra.mxu1 %v7342_v11  ;;  %4907 = vmatprep.mubr.f32.mxu1 %v12081_v3 }
 0x392   : > { %v4547_v43 = vmax.f32 %v4479_v7, %v4483_v12  ;;  %v4484_v41 = vmax.f32 %v4372_v28, 0.0  ;;  %v4373_v42 = vadd.f32 %v10217_v0, %v4249_v60  ;;  %v4250_v19 = vadd.f32 %v4104_v15, %v3487_v29  ;;  %5057 = vmatprep.subr.mxu1 %v7341_v33  ;;  %v7334_v7 = vld [vmem:[%s12008_s3 + $0x2b0] sm:$0xff]  ;;  %v12467_v12 = vld [vmem:[#allocation163_spill] sm:$0xff]  ;;  %v12468_v60 = vld [vmem:[#allocation54_spill] sm:$0xff] }
 0x393   : > { %v4108_v26 = vpop.f32.mrf.mxu0  ;;  %5058 = vmatpush1.msra.mxu1 %v7340_v52  ;;  %v3490_v28 = vadd.f32 %v12467_v12, %v12466_v58  ;;  %v12469_v52 = vld [vmem:[#allocation165_spill] sm:$0xff]  ;;  %v12471_v15 = vld [vmem:[#allocation164_spill] sm:$0xff] }
 0x394   : > { %v4548_v21 = vmax.f32 %v4480_v61, %v4484_v41  ;;  %v4485_v38 = vmax.f32 %v4373_v42, 0.0  ;;  %v4374_v35 = vadd.f32 %v10225_v24, %v4250_v19  ;;  %4908 = vmatmul.mubr.f32.gmra.mxu1 %v4560_v8  ;;  %5059 = vmatprep.subr.mxu1 %v7339_v37  ;;  %v3489_v8 = vadd.f32 %v12465_v18, %v12464_v2  ;;  %v7333_v42 = vld [vmem:[%s12008_s3 + $0x2a8] sm:$0xff]  ;;  %v12472_v19 = vld [vmem:[#allocation55_spill] sm:$0xff] }
 0x395   : > { %v4110_v31 = vpop.f32.mrf.mxu0  ;;  %4913 = vmatprep.mubr.f32.mxu1 %v12081_v3  ;;  %5060 = vmatpush1.msra.mxu1 %v7338_v53  ;;  %v4251_v11 = vadd.f32 %v4108_v26, %v3488_v62  ;;  %v3492_v61 = vadd.f32 %v12469_v52, %v12468_v60  ;;  %v12473_v53 = vld [vmem:[#allocation166_spill] sm:$0xff]  ;;  %v12477_v2 = vld [vmem:[#allocation168_spill] sm:$0xff] }
 0x396   : > { %v10775_v14 = vmax.f32 %v4547_v43, %v4548_v21  ;;  %v4549_v13 = vmax.f32 %v4481_v51, %v4485_v38  ;;  %v4486_v57 = vmax.f32 %v4374_v35, 0.0  ;;  %5061 = vmatprep.subr.mxu1 %v7337_v23  ;;  %v4252_v9 = vadd.f32 %v4110_v31, %v3489_v8  ;;  %v7332_v21 = vld [vmem:[%s12008_s3 + $0x2a0] sm:$0xff]  ;;  %v7327_v60 = vld [vmem:[%s12008_s3 + $0x278] sm:$0xff] }
 0x397   : > { %v4114_v63 = vpop.f32.mrf.mxu0  ;;  %5062 = vmatpush1.msra.mxu1 %v7336_v36  ;;  %v4375_v43 = vadd.f32 %v10217_v0, %v4251_v11  ;;  %v3493_v26 = vadd.f32 %v12473_v53, %v12472_v19 }
 0x398   : > { %v4550_v29 = vmax.f32 %v4482_v54, %v4486_v57  ;;  %4914 = vmatmul.mubr.f32.gmra.mxu1 %v10298_v4  ;;  %5474 = vmatmul.mubr.f32.gmra.mxu0 %v10775_v14  ;;  %v12470_v4 = vld [vmem:[#allocation53_spill] sm:$0xff]  ;;  %v4253_v23 = vadd.f32 %v4114_v63, %v3490_v28  ;;  %v4376_v38 = vadd.f32 %v10225_v24, %v4252_v9  ;;  %v7329_v63 = vld [vmem:[%s12008_s3 + $0x288] sm:$0xff] }
 0x399   : > { %v4116_v33 = vpop.f32.mrf.mxu0  ;;  %4919 = vmatprep.mubr.f32.mxu1 %v12081_v3  ;;  %5479 = vmatprep.mubr.f32.mxu0 %v12081_v3  ;;  %v3491_v37 = vadd.f32 %v12471_v15, %v12470_v4  ;;  %v12476_v57 = vld [vmem:[#allocation57_spill] sm:$0xff]  ;;  %v4487_v8 = vmax.f32 %v4375_v43, 0.0 }
 0x39a   : > { %v10793_v39 = vmax.f32 %v4549_v13, %v4550_v29  ;;  %5063 = vmatprep.subr.mxu1 %v7335_v22  ;;  %v7330_v13 = vld [vmem:[%s12008_s3 + $0x290] sm:$0xff]  ;;  %v3495_v18 = vadd.f32 %v12477_v2, %v12476_v57  ;;  %v4377_v22 = vadd.f32 %v10217_v0, %v4253_v23  ;;  %v4488_v58 = vmax.f32 %v4376_v38, 0.0  ;;  %v7324_v23 = vld [vmem:[%s12008_s3 + $0x260] sm:$0xff] }
 0x39b   : > { %v4120_v41 = vpop.f32.mrf.mxu0  ;;  %5064 = vmatpush1.msra.mxu1 %v7334_v7  ;;  %v4254_v35 = vadd.f32 %v4116_v33, %v3491_v37  ;;  %v7328_v33 = vld [vmem:[%s12008_s3 + $0x280] sm:$0xff]  ;;  %v7326_v37 = vld [vmem:[%s12008_s3 + $0x270] sm:$0xff] }
 0x39c   : > { %v4255_v51 = vadd.f32 %v4120_v41, %v3492_v61  ;;  %4920 = vmatmul.mubr.f32.gmra.mxu1 %v10320_v20  ;;  %5480 = vmatmul.mubr.f32.gmra.mxu0 %v10793_v39  ;;  %v12475_v20 = vld [vmem:[#allocation167_spill] sm:$0xff]  ;;  %v7325_v41 = vld [vmem:[%s12008_s3 + $0x268] sm:$0xff]  ;;  %v7322_v2 = vld [vmem:[%s12008_s3 + $0x250] sm:$0xff] }
 0x39d   : > { %v4122_v36 = vpop.f32.mrf.mxu0  ;;  %4925 = vmatprep.mubr.f32.mxu1 %v12081_v3  ;;  %5485 = vmatprep.mubr.f32.mxu0 %v12081_v3  ;;  %v3494_v62 = vadd.f32 %v12475_v20, %v12474_v50  ;;  %v4378_v12 = vadd.f32 %v10225_v24, %v4254_v35  ;;  %v12479_v50 = vld [vmem:[#allocation58_spill] sm:$0xff] }
 0x39e   : > { %v4379_v31 = vadd.f32 %v10217_v0, %v4255_v51  ;;  %v4256_v54 = vadd.f32 %v4122_v36, %v3493_v26  ;;  %5065 = vmatprep.subr.mxu1 %v7333_v42  ;;  %v4489_v42 = vmax.f32 %v4377_v22, 0.0  ;;  %v12481_v22 = vld [vmem:[#allocation60_spill] sm:$0xff] }
 0x39f   : > { %v4126_v11 = vpop.f32.mrf.mxu0  ;;  %5066 = vmatpush1.msra.mxu1 %v7332_v21  ;;  %v4490_v21 = vmax.f32 %v4378_v12, 0.0 }
 0x3a0   : > { %v4491_v29 = vmax.f32 %v4379_v31, 0.0  ;;  %v4380_v7 = vadd.f32 %v10225_v24, %v4256_v54  ;;  %v4257_v9 = vadd.f32 %v4126_v11, %v3494_v62  ;;  %4926 = vmatmul.mubr.f32.gmra.mxu1 %v10380_v1  ;;  %5067 = vmatprep.subr.mxu1 %v7331_v49  ;;  %v12478_v49 = vld [vmem:[#allocation59_spill] sm:$0xff]  ;;  %v12480_v62 = vld [vmem:[#allocation169_spill] sm:$0xff] }
 0x3a1   : > { %v4128_v28 = vpop.f32.mrf.mxu0  ;;  %4931 = vmatprep.mubr.f32.mxu1 %v12081_v3  ;;  %5068 = vmatpush1.msra.mxu1 %v7330_v13  ;;  %v3497_v20 = vadd.f32 %v12479_v50, %v12478_v49  ;;  %v7323_v13 = vld [vmem:[%s12008_s3 + $0x258] sm:$0xff]  ;;  %v12486_v49 = vld [vmem:[#allocation171_spill] sm:$0xff] }
 0x3a2   : > { %v4551_v52 = vmax.f32 %v4487_v8, %v4491_v29  ;;  %v4492_v61 = vmax.f32 %v4380_v7, 0.0  ;;  %v4381_v4 = vadd.f32 %v10217_v0, %v4257_v9  ;;  %v4258_v15 = vadd.f32 %v4128_v28, %v3495_v18  ;;  %5069 = vmatprep.subr.mxu1 %v7329_v63  ;;  %v7321_v63 = vld [vmem:[%s12008_s3 + $0x248] sm:$0xff]  ;;  %v3389_v28 = vpop.f32.mrf.mxu1 }
 0x3a3   : > { %v4132_v43 = vpop.f32.mrf.mxu0  ;;  %5070 = vmatpush1.msra.mxu1 %v7328_v33  ;;  %v3499_v29 = vadd.f32 %v12481_v22, %v10178_v6  ;;  %v7320_v33 = vld [vmem:[%s12008_s3 + $0x240] sm:$0xff]  ;;  %v7319_v6 = vld [vmem:[%s12008_s3 + $0x238] sm:$0xff]  ;;  %v7313_v22 = vld [vmem:[%s12008_s3 + $0x208] sm:$0xff] }
 0x3a4   : > { %v4552_v19 = vmax.f32 %v4488_v58, %v4492_v61  ;;  %v4493_v53 = vmax.f32 %v4381_v4, 0.0  ;;  %v4382_v26 = vadd.f32 %v10225_v24, %v4258_v15  ;;  %4932 = vmatmul.mubr.f32.gmra.mxu1 %v10397_v30  ;;  %5071 = vmatprep.subr.mxu1 %v7327_v60  ;;  %v4259_v31 = vadd.f32 %v4132_v43, %v12480_v62  ;;  %v12482_v58 = vld [vmem:[#allocation62_spill] sm:$0xff]  ;;  %v12483_v60 = vld [vmem:[#allocation61_spill] sm:$0xff]  ;;  %v12484_v61 = vld [vmem:[#allocation63_spill] sm:$0xff] }
 0x3a5   : > { %v4134_v51 = vpop.f32.mrf.mxu0  ;;  %4937 = vmatprep.mubr.f32.mxu1 %v12081_v3  ;;  %5072 = vmatpush1.msra.mxu1 %v7326_v37  ;;  %v3501_v12 = vadd.f32 %v12482_v58, %v10189_v5  ;;  %v7407_v58 = vld [vmem:[%s12008_s3 + $0x4f8] sm:$0xff] }
 0x3a6   : > { %v10849_v38 = vmax.f32 %v4551_v52, %v4552_v19  ;;  %v4553_v35 = vmax.f32 %v4489_v42, %v4493_v53  ;;  %v4494_v36 = vmax.f32 %v4382_v26, 0.0  ;;  %5073 = vmatprep.subr.mxu1 %v7325_v41  ;;  %v4260_v18 = vadd.f32 %v4134_v51, %v3497_v20  ;;  %v7318_v42 = vld [vmem:[%s12008_s3 + $0x230] sm:$0xff]  ;;  %v12485_v19 = vld [vmem:[#allocation64_spill] sm:$0xff]  ;;  %v7316_v20 = vld [vmem:[%s12008_s3 + $0x220] sm:$0xff] }
 0x3a7   : > { %v4138_v54 = vpop.f32.mrf.mxu0  ;;  %5074 = vmatpush1.msra.mxu1 %v7324_v23  ;;  %v4383_v7 = vadd.f32 %v10217_v0, %v4259_v31  ;;  %v3503_v53 = vadd.f32 %v3389_v28, %v12485_v19  ;;  %v7317_v51 = vld [vmem:[%s12008_s3 + $0x228] sm:$0xff] }
 0x3a8   : > { %v4554_v57 = vmax.f32 %v4490_v21, %v4494_v36  ;;  %4938 = vmatmul.mubr.f32.gmra.mxu1 %v10457_v27  ;;  %5486 = vmatmul.mubr.f32.gmra.mxu0 %v10849_v38  ;;  %v4261_v52 = vadd.f32 %v4138_v54, %v12483_v60  ;;  %v4384_v15 = vadd.f32 %v10225_v24, %v4260_v18 }
 0x3a9   : > { %v4140_v8 = vpop.f32.mrf.mxu0  ;;  %4943 = vmatprep.mubr.f32.mxu1 %v12081_v3  ;;  %5491 = vmatprep.mubr.f32.mxu0 %v12081_v3  ;;  %v4495_v26 = vmax.f32 %v4383_v7, 0.0 }
 0x3aa   : > { %v10864_v11 = vmax.f32 %v4553_v35, %v4554_v57  ;;  %5075 = vmatprep.subr.mxu1 %v7323_v13  ;;  %v4262_v37 = vadd.f32 %v4140_v8, %v3499_v29  ;;  %v4385_v21 = vadd.f32 %v10217_v0, %v4261_v52  ;;  %v4496_v62 = vmax.f32 %v4384_v15, 0.0  ;;  %v7315_v13 = vld [vmem:[%s12008_s3 + $0x218] sm:$0xff] }
 0x3ab   : > { %v4144_v9 = vpop.f32.mrf.mxu0  ;;  %5076 = vmatpush1.msra.mxu1 %v7322_v2 }
 0x3ac   : > { %v4263_v4 = vadd.f32 %v4144_v9, %v12484_v61  ;;  %4944 = vmatmul.mubr.f32.gmra.mxu1 %v10470_v25  ;;  %5492 = vmatmul.mubr.f32.gmra.mxu0 %v10864_v11  ;;  %v4386_v31 = vadd.f32 %v10225_v24, %v4262_v37  ;;  %v4497_v29 = vmax.f32 %v4385_v21, 0.0  ;;  %v7400_v21 = vld [vmem:[%s12008_s3 + $0x4c0] sm:$0xff] }
 0x3ad   : > { %v4146_v43 = vpop.f32.mrf.mxu0  ;;  %4949 = vmatprep.mubr.f32.mxu1 %v12081_v3  ;;  %5077 = vmatprep.subr.mxu1 %v7321_v63  ;;  %v7314_v63 = vld [vmem:[%s12008_s3 + $0x210] sm:$0xff] }
 0x3ae   : > { %v4387_v5 = vadd.f32 %v10217_v0, %v4263_v4  ;;  %v4264_v41 = vadd.f32 %v4146_v43, %v3501_v12  ;;  %5078 = vmatpush1.msra.mxu1 %v7320_v33  ;;  %v4498_v12 = vmax.f32 %v4386_v31, 0.0  ;;  %v7394_v31 = vld [vmem:[%s12008_s3 + $0x490] sm:$0xff] }
 0x3af   : > { %v4150_v23 = vpop.f32.mrf.mxu0  ;;  %5079 = vmatprep.subr.mxu1 %v7319_v6 }
 0x3b0   : > { %v4499_v35 = vmax.f32 %v4387_v5, 0.0  ;;  %v4388_v36 = vadd.f32 %v10225_v24, %v4264_v41  ;;  %v4265_v50 = vadd.f32 %v4150_v23, %v12486_v49  ;;  %4950 = vmatmul.mubr.f32.gmra.mxu1 %v10494_v10  ;;  %v7406_v41 = vld [vmem:[%s12008_s3 + $0x4f0] sm:$0xff] }
 0x3b1   : > { %v4152_v54 = vpop.f32.mrf.mxu0  ;;  %4955 = vmatprep.mubr.f32.mxu1 %v12081_v3  ;;  %5080 = vmatpush1.msra.mxu1 %v7318_v42  ;;  %v7405_v42 = vld [vmem:[%s12008_s3 + $0x4e8] sm:$0xff]  ;;  %v7402_v23 = vld [vmem:[%s12008_s3 + $0x4d0] sm:$0xff] }
 0x3b2   : > { %v10906_v57 = vmax.f32 %v4495_v26, %v4499_v35  ;;  %v4500_v2 = vmax.f32 %v4388_v36, 0.0  ;;  %v4389_v18 = vadd.f32 %v10217_v0, %v4265_v50  ;;  %v4266_v8 = vadd.f32 %v4152_v54, %v3503_v53  ;;  %5081 = vmatprep.subr.mxu1 %v7317_v51  ;;  %v7312_v0 = vld [vmem:[%s12008_s3 + $0x200] sm:$0xff]  ;;  %v7403_v26 = vld [vmem:[%s12008_s3 + $0x4d8] sm:$0xff]  ;;  %v7398_v49 = vld [vmem:[%s12008_s3 + $0x4b0] sm:$0xff] }
 0x3b3   : > { %5082 = vmatpush1.msra.mxu1 %v7316_v20  ;;  %v7404_v53 = vld [vmem:[%s12008_s3 + $0x4e0] sm:$0xff]  ;;  %v7399_v35 = vld [vmem:[%s12008_s3 + $0x4b8] sm:$0xff] }
 0x3b4   : > { %v10915_v7 = vmax.f32 %v4496_v62, %v4500_v2  ;;  %v4501_v9 = vmax.f32 %v4389_v18, 0.0  ;;  %v4390_v33 = vadd.f32 %v10225_v24, %v4266_v8  ;;  %4956 = vmatmul.mubr.f32.gmra.mxu1 %v10506_v55  ;;  %5083 = vmatprep.subr.mxu1 %v7315_v13  ;;  %v7396_v50 = vld [vmem:[%s12008_s3 + $0x4a0] sm:$0xff]  ;;  %v7395_v20 = vld [vmem:[%s12008_s3 + $0x498] sm:$0xff]  ;;  %v7390_v18 = vld [vmem:[%s12008_s3 + $0x470] sm:$0xff] }
 0x3b5   : > { %4961 = vmatprep.mubr.f32.mxu1 %v12081_v3  ;;  %5084 = vmatpush1.msra.mxu1 %v7314_v63  ;;  %v7392_v54 = vld [vmem:[%s12008_s3 + $0x480] sm:$0xff]  ;;  %v7391_v13 = vld [vmem:[%s12008_s3 + $0x478] sm:$0xff] }
 0x3b6   : > { %v10928_v60 = vmax.f32 %v4497_v29, %v4501_v9  ;;  %v4502_v24 = vmax.f32 %v4390_v33, 0.0  ;;  %5085 = vmatprep.subr.mxu1 %v7313_v22  ;;  %v7388_v8 = vld [vmem:[%s12008_s3 + $0x460] sm:$0xff]  ;;  %v7387_v63 = vld [vmem:[%s12008_s3 + $0x458] sm:$0xff]  ;;  %v7386_v29 = vld [vmem:[%s12008_s3 + $0x450] sm:$0xff] }
 0x3b7   : > { %5086 = vmatpush1.msra.mxu1 %v7312_v0  ;;  %v7385_v9 = vld [vmem:[%s12008_s3 + $0x448] sm:$0xff]  ;;  %v7384_v0 = vld [vmem:[%s12008_s3 + $0x440] sm:$0xff] }
 0x3b8   : > { %v10930_v52 = vmax.f32 %v4498_v12, %v4502_v24  ;;  %4962 = vmatmul.mubr.f32.gmra.mxu1 %v10530_v56  ;;  %5571 = vmatprep.subr.mxu1 %v7407_v58  ;;  %v10944_v4 = vpop.f32.mrf.mxu1  ;;  %v7383_v58 = vld [vmem:[%s12008_s3 + $0x438] sm:$0xff]  ;;  %v7382_v12 = vld [vmem:[%s12008_s3 + $0x430] sm:$0xff]  ;;  %v7381_v24 = vld [vmem:[%s12008_s3 + $0x428] sm:$0xff] }
 0x3b9   : > { %4967 = vmatprep.mubr.f32.mxu1 %v12081_v3 }
 0x3ba   : > { %v10948_v6 = vpop.f32.mrf.mxu1 }
 0x3bc   : > { %4968 = vmatmul.mubr.f32.gmra.mxu1 %v10542_v47  ;;  %v10952_v15 = vpop.f32.mrf.mxu1 }
 0x3bd   : > { %4973 = vmatprep.mubr.f32.mxu1 %v12081_v3 }
 0x3be   : > { %v10956_v37 = vpop.f32.mrf.mxu1 }
 0x3c0   : > { %4974 = vmatmul.mubr.f32.gmra.mxu1 %v10566_v16 }
 0x3c1   : > { %4979 = vmatprep.mubr.f32.mxu1 %v12081_v3 }
 0x3c4   : > { %4980 = vmatmul.mubr.f32.gmra.mxu1 %v10578_v32 }
 0x3c5   : > { %4985 = vmatprep.mubr.f32.mxu1 %v12081_v3 }
 0x3c8   : > { %4986 = vmatmul.mubr.f32.gmra.mxu1 %v10602_v44  ;;  %v10958_v43 = vpop.f32.mrf.mxu1 }
 0x3c9   : > { %4991 = vmatprep.mubr.f32.mxu1 %v12081_v3 }
 0x3ca   : > { %v10962_v5 = vpop.f32.mrf.mxu1 }
 0x3cc   : > { %4992 = vmatmul.mubr.f32.gmra.mxu1 %v10614_v40  ;;  %v10972_v19 = vpop.f32.mrf.mxu1 }
 0x3cd   : > { %4997 = vmatprep.mubr.f32.mxu1 %v12081_v3 }
 0x3ce   : > { %v10988_v51 = vpop.f32.mrf.mxu1 }
 0x3d0   : > { %4998 = vmatmul.mubr.f32.gmra.mxu1 %v10638_v59 }
 0x3d1   : > { %5003 = vmatprep.mubr.f32.mxu1 %v12081_v3 }
 0x3d4   : > { %5004 = vmatmul.mubr.f32.gmra.mxu1 %v10650_v34 }
 0x3d5   : > { %5009 = vmatprep.mubr.f32.mxu1 %v12081_v3 }
 0x3d8   : > { %5010 = vmatmul.mubr.f32.gmra.mxu1 %v10674_v45  ;;  %v10998_v36 = vpop.f32.mrf.mxu1 }
 0x3d9   : > { %5015 = vmatprep.mubr.f32.mxu1 %v12081_v3 }
 0x3da   : > { %v11014_v62 = vpop.f32.mrf.mxu1 }
 0x3db   : > { %12487 = vst [vmem:[#allocation65_spill] sm:$0xff] %v11014_v62 }
 0x3dc   : > { %5016 = vmatmul.mubr.f32.gmra.mxu1 %v10686_v46  ;;  %v11030_v2 = vpop.f32.mrf.mxu1 }
 0x3dd   : > { %5119 = vmatprep.mubr.f32.mxu1 %v12081_v3 }
 0x3de   : > { %v11046_v22 = vpop.f32.mrf.mxu1 }
 0x3df   : > { %12488 = vst [vmem:[#allocation66_spill] sm:$0xff] %v11046_v22 }
 0x3e0   : > { %5120 = vmatmul.mubr.f32.vlgmr.msra.gmra.mxu1 %v10380_v1  ;;  %v7401_v1 = vld [vmem:[%s12008_s3 + $0x4c8] sm:$0xff] }
 0x3e1   : > { %5572 = vmatpush1.msra.mxu1 %v7406_v41  ;;  %5125 = vmatprep.mubr.f32.mxu1 %v12081_v3 }
 0x3e2   : > { %5573 = vmatprep.subr.mxu1 %v7405_v42  ;;  %v7380_v42 = vld [vmem:[%s12008_s3 + $0x420] sm:$0xff] }
 0x3e3   : > { %5574 = vmatpush1.msra.mxu1 %v7404_v53  ;;  %v7379_v53 = vld [vmem:[%s12008_s3 + $0x418] sm:$0xff] }
 0x3e4   : > { %5126 = vmatmul.mubr.f32.gmra.mxu1 %v10397_v30  ;;  %5575 = vmatprep.subr.mxu1 %v7403_v26  ;;  %v7397_v30 = vld [vmem:[%s12008_s3 + $0x4a8] sm:$0xff]  ;;  %v7378_v26 = vld [vmem:[%s12008_s3 + $0x410] sm:$0xff] }
 0x3e5   : > { %5131 = vmatprep.mubr.f32.mxu1 %v12081_v3  ;;  %5576 = vmatpush1.msra.mxu1 %v7402_v23  ;;  %v7377_v23 = vld [vmem:[%s12008_s3 + $0x408] sm:$0xff] }
 0x3e6   : > { %5577 = vmatprep.subr.mxu1 %v7401_v1 }
 0x3e7   : > { %5578 = vmatpush1.msra.mxu1 %v7400_v21  ;;  %v7376_v21 = vld [vmem:[%s12008_s3 + $0x400] sm:$0xff] }
 0x3e8   : > { %5132 = vmatmul.mubr.f32.gmra.mxu1 %v10457_v27  ;;  %5579 = vmatprep.subr.mxu1 %v7399_v35  ;;  %v7393_v27 = vld [vmem:[%s12008_s3 + $0x488] sm:$0xff]  ;;  %v11054_v33 = vpop.f32.mrf.mxu1 }
 0x3e9   : > { %5137 = vmatprep.mubr.f32.mxu1 %v12081_v3  ;;  %5580 = vmatpush1.msra.mxu1 %v7398_v49 }
 0x3ea   : > { %5581 = vmatprep.subr.mxu1 %v7397_v30  ;;  %v11070_v41 = vpop.f32.mrf.mxu1 }
 0x3eb   : > { %5582 = vmatpush1.msra.mxu1 %v7396_v50  ;;  %12489 = vst [vmem:[#allocation67_spill] sm:$0xff] %v11070_v41  ;;  %v5933_v41 = vld [vmem:[%s12010_s5 + $0x78] sm:$0xff] }
 0x3ec   : > { %5138 = vmatmul.mubr.f32.gmra.mxu1 %v10470_v25  ;;  %5583 = vmatprep.subr.mxu1 %v7395_v20  ;;  %v7389_v25 = vld [vmem:[%s12008_s3 + $0x468] sm:$0xff]  ;;  %v11086_v1 = vpop.f32.mrf.mxu1 }
 0x3ed   : > { %5143 = vmatprep.mubr.f32.mxu1 %v12081_v3  ;;  %5584 = vmatpush1.msra.mxu1 %v7394_v31 }
 0x3ee   : > { %5585 = vmatprep.subr.mxu1 %v7393_v27  ;;  %v11093_v35 = vpop.f32.mrf.mxu1 }
 0x3ef   : > { %5586 = vmatpush1.msra.mxu1 %v7392_v54 }
 0x3f0   : > { %5144 = vmatmul.mubr.f32.gmra.mxu1 %v10494_v10  ;;  %5587 = vmatprep.subr.mxu1 %v7391_v13 }
 0x3f1   : > { %5149 = vmatprep.mubr.f32.mxu1 %v12081_v3  ;;  %5588 = vmatpush1.msra.mxu1 %v7390_v18 }
 0x3f2   : > { %5589 = vmatprep.subr.mxu1 %v7389_v25 }
 0x3f3   : > { %5590 = vmatpush1.msra.mxu1 %v7388_v8 }
 0x3f4   : > { %5150 = vmatmul.mubr.f32.gmra.mxu1 %v10506_v55  ;;  %5591 = vmatprep.subr.mxu1 %v7387_v63 }
 0x3f5   : > { %5155 = vmatprep.mubr.f32.mxu1 %v12081_v3  ;;  %5592 = vmatpush1.msra.mxu1 %v7386_v29 }
 0x3f6   : > { %5593 = vmatprep.subr.mxu1 %v7385_v9 }
 0x3f7   : > { %5594 = vmatpush1.msra.mxu1 %v7384_v0 }
 0x3f8   : > { %5156 = vmatmul.mubr.f32.gmra.mxu1 %v10530_v56  ;;  %5595 = vmatprep.subr.mxu1 %v7383_v58  ;;  %v11097_v49 = vpop.f32.mrf.mxu1 }
 0x3f9   : > { %5161 = vmatprep.mubr.f32.mxu1 %v12081_v3  ;;  %5596 = vmatpush1.msra.mxu1 %v7382_v12 }
 0x3fa   : > { %5597 = vmatprep.subr.mxu1 %v7381_v24  ;;  %v11101_v30 = vpop.f32.mrf.mxu1 }
 0x3fb   : > { %5598 = vmatpush1.msra.mxu1 %v7380_v42 }
 0x3fc   : > { %5162 = vmatmul.mubr.f32.gmra.mxu1 %v10542_v47  ;;  %5599 = vmatprep.subr.mxu1 %v7379_v53  ;;  %v11105_v50 = vpop.f32.mrf.mxu1 }
 0x3fd   : > { %5167 = vmatprep.mubr.f32.mxu1 %v12081_v3  ;;  %5600 = vmatpush1.msra.mxu1 %v7378_v26 }
 0x3fe   : > { %5601 = vmatprep.subr.mxu1 %v7377_v23  ;;  %v11109_v20 = vpop.f32.mrf.mxu1 }
 0x3ff   : > { %5602 = vmatpush1.msra.mxu1 %v7376_v21 }
 0x400   : > { %5168 = vmatmul.mubr.f32.gmra.mxu1 %v10566_v16  ;;  %7638 = vmatprep.subr.mxu1 %v5933_v41 }
 0x401   : > { %5173 = vmatprep.mubr.f32.mxu1 %v12081_v3 }
 0x404   : > { %5174 = vmatmul.mubr.f32.gmra.mxu1 %v10578_v32 }
 0x405   : > { %5179 = vmatprep.mubr.f32.mxu1 %v12081_v3 }
 0x408   : > { %5180 = vmatmul.mubr.f32.gmra.mxu1 %v10602_v44  ;;  %v11111_v31 = vpop.f32.mrf.mxu1 }
 0x409   : > { %5185 = vmatprep.mubr.f32.mxu1 %v12081_v3 }
 0x40a   : > { %v11115_v27 = vpop.f32.mrf.mxu1 }
 0x40c   : > { %5186 = vmatmul.mubr.f32.gmra.mxu1 %v10614_v40  ;;  %v11119_v54 = vpop.f32.mrf.mxu1 }
 0x40d   : > { %5191 = vmatprep.mubr.f32.mxu1 %v12081_v3 }
 0x40e   : > { %v11123_v13 = vpop.f32.mrf.mxu1 }
 0x410   : > { %5192 = vmatmul.mubr.f32.gmra.mxu1 %v10638_v59 }
 0x411   : > { %5197 = vmatprep.mubr.f32.mxu1 %v12081_v3 }
 0x414   : > { %5198 = vmatmul.mubr.f32.gmra.mxu1 %v10650_v34 }
 0x415   : > { %5203 = vmatprep.mubr.f32.mxu1 %v12081_v3 }
 0x418   : > { %5204 = vmatmul.mubr.f32.gmra.mxu1 %v10674_v45  ;;  %v11127_v18 = vpop.f32.mrf.mxu1 }
 0x419   : > { %5209 = vmatprep.mubr.f32.mxu1 %v12081_v3 }
 0x41a   : > { %v11131_v25 = vpop.f32.mrf.mxu1 }
 0x41c   : > { %5210 = vmatmul.mubr.f32.gmra.mxu1 %v10686_v46  ;;  %v11135_v8 = vpop.f32.mrf.mxu1 }
 0x41d   : > { %5215 = vmatprep.mubr.f32.mxu1 %v12081_v3 }
 0x41e   : > { %v11139_v63 = vpop.f32.mrf.mxu1 }
 0x420   : > { %5216 = vmatmul.mubr.f32.gmra.mxu1 %v10710_v48 }
 0x421   : > { %5221 = vmatprep.mubr.f32.mxu1 %v12081_v3 }
 0x424   : > { %5222 = vmatmul.mubr.f32.gmra.mxu1 %v10722_v17 }
 0x425   : > { %5227 = vmatprep.mubr.f32.mxu1 %v12081_v3 }
 0x428   : > { %5228 = vmatmul.mubr.f32.gmra.mxu1 %v10775_v14  ;;  %v11141_v29 = vpop.f32.mrf.mxu1 }
 0x429   : > { %5233 = vmatprep.mubr.f32.mxu1 %v12081_v3 }
 0x42a   : > { %v11145_v9 = vpop.f32.mrf.mxu1 }
 0x42c   : > { %5234 = vmatmul.mubr.f32.gmra.mxu1 %v10793_v39  ;;  %v11149_v0 = vpop.f32.mrf.mxu1 }
 0x42d   : > { %5635 = vmatprep.mubr.f32.mxu1 %v12081_v3  ;;  %12490 = vst [vmem:[#allocation68_spill] sm:$0xff] %v11149_v0 }
 0x42e   : > { %v11153_v58 = vpop.f32.mrf.mxu1 }
 0x42f   : > { %12491 = vst [vmem:[#allocation71_spill] sm:$0xff] %v11153_v58 }
 0x430   : > { %5636 = vmatmul.mubr.f32.vlgmr.msra.gmra.mxu1 %v10494_v10 }
 0x431   : > { %5641 = vmatprep.mubr.f32.mxu1 %v12081_v3  ;;  %7639 = vmatpush3.msra.mxu1 %v5933_v41  ;;  %v5931_v41 = vld [vmem:[%s12010_s5 + $0x68] sm:$0xff] }
 0x434   : > { %5642 = vmatmul.mubr.f32.gmra.mxu1 %v10506_v55 }
 0x435   : > { %5647 = vmatprep.mubr.f32.mxu1 %v12081_v3 }
 0x438   : > { %5648 = vmatmul.mubr.f32.gmra.mxu1 %v10530_v56  ;;  %v11157_v12 = vpop.f32.mrf.mxu1 }
 0x439   : > { %5653 = vmatprep.mubr.f32.mxu1 %v12081_v3  ;;  %12492 = vst [vmem:[#allocation70_spill] sm:$0xff] %v11157_v12 }
 0x43a   : > { %v11161_v10 = vpop.f32.mrf.mxu1 }
 0x43b   : > { %12493 = vst [vmem:[#allocation69_spill] sm:$0xff] %v11161_v10 }
 0x43c   : > { %5654 = vmatmul.mubr.f32.gmra.mxu1 %v10542_v47  ;;  %v11165_v55 = vpop.f32.mrf.mxu1  ;;  %v7423_v47 = vld [vmem:[%s12010_s5 + $0xf8] sm:$0xff] }
 0x43d   : > { %5659 = vmatprep.mubr.f32.mxu1 %v12081_v3  ;;  %12494 = vst [vmem:[#allocation73_spill] sm:$0xff] %v11165_v55  ;;  %7603 = vmatprep.subr.mxu0 %v7423_v47 }
 0x43e   : > { %v11169_v56 = vpop.f32.mrf.mxu1  ;;  %7604 = vmatpush3.msra.mxu0 %v7423_v47  ;;  %v7420_v47 = vld [vmem:[%s12010_s5 + $0xe0] sm:$0xff] }
 0x43f   : > { %12495 = vst [vmem:[#allocation72_spill] sm:$0xff] %v11169_v56 }
 0x440   : > { %5660 = vmatmul.mubr.f32.gmra.mxu1 %v10566_v16 }
 0x441   : > { %5665 = vmatprep.mubr.f32.mxu1 %v12081_v3 }
 0x444   : > { %5666 = vmatmul.mubr.f32.gmra.mxu1 %v10578_v32 }
 0x445   : > { %5671 = vmatprep.mubr.f32.mxu1 %v12081_v3 }
 0x448   : > { %v11171_v24 = vpop.f32.mrf.mxu1  ;;  %5672 = vmatmul.mubr.f32.gmra.mxu1 %v10602_v44  ;;  %v7422_v44 = vld [vmem:[%s12010_s5 + $0xf0] sm:$0xff] }
 0x449   : > { %12496 = vst [vmem:[#allocation74_spill] sm:$0xff] %v11171_v24  ;;  %5677 = vmatprep.mubr.f32.mxu1 %v12081_v3  ;;  %7605 = vmatprep.subr.mxu0 %v7422_v44 }
 0x44a   : > { %v11178_v16 = vpop.f32.mrf.mxu1  ;;  %7606 = vmatpush3.msra.mxu0 %v7422_v44 }
 0x44b   : > { %12497 = vst [vmem:[#allocation75_spill] sm:$0xff] %v11178_v16 }
 0x44c   : > { %v11180_v42 = vpop.f32.mrf.mxu1  ;;  %5678 = vmatmul.mubr.f32.gmra.mxu1 %v10614_v40  ;;  %v7421_v40 = vld [vmem:[%s12010_s5 + $0xe8] sm:$0xff] }
 0x44d   : > { %12498 = vst [vmem:[#allocation79_spill] sm:$0xff] %v11180_v42  ;;  %5683 = vmatprep.mubr.f32.mxu1 %v12081_v3  ;;  %7607 = vmatprep.subr.mxu0 %v7421_v40 }
 0x44e   : > { %v11184_v32 = vpop.f32.mrf.mxu1  ;;  %7608 = vmatpush3.msra.mxu0 %v7421_v40 }
 0x44f   : > { %12499 = vst [vmem:[#allocation78_spill] sm:$0xff] %v11184_v32  ;;  %7609 = vmatprep.subr.mxu0 %v7420_v47  ;;  %v12503_v32 = vmax.f32 %v10906_v57, %v10915_v7  ;;  %v5924_v57 = vld [vmem:[%s12010_s5 + $0x30] sm:$0xff] }
 0x450   : > { %v11189_v53 = vpop.f32.mrf.mxu1  ;;  %5684 = vmatmul.mubr.f32.gmra.mxu1 %v10638_v59  ;;  %7610 = vmatpush3.msra.mxu0 %v7420_v47 }
 0x451   : > { %5689 = vmatprep.mubr.f32.mxu1 %v12081_v3 }
 0x452   : > { %v11193_v26 = vpop.f32.mrf.mxu1 }
 0x454   : > { %v11198_v23 = vpop.f32.mrf.mxu1  ;;  %5690 = vmatmul.mubr.f32.gmra.mxu1 %v10650_v34 }
 0x455   : > { %5695 = vmatprep.mubr.f32.mxu1 %v12081_v3  ;;  %v4910_v0 = vadd.f32 %v11198_v23, %v10952_v15 }
 0x456   : > { %v11202_v21 = vpop.f32.mrf.mxu1 }
 0x458   : > { %v11204_v59 = vpop.f32.mrf.mxu1  ;;  %5696 = vmatmul.mubr.f32.gmra.mxu1 %v10674_v45  ;;  %v7419_v45 = vld [vmem:[%s12010_s5 + $0xd8] sm:$0xff] }
 0x459   : > { %5701 = vmatprep.mubr.f32.mxu1 %v12081_v3  ;;  %7611 = vmatprep.subr.mxu0 %v7419_v45 }
 0x45a   : > { %v11211_v44 = vpop.f32.mrf.mxu1  ;;  %7612 = vmatpush3.msra.mxu0 %v7419_v45 }
 0x45c   : > { %v11213_v34 = vpop.f32.mrf.mxu1  ;;  %5702 = vmatmul.mubr.f32.gmra.mxu1 %v10686_v46  ;;  %v7418_v46 = vld [vmem:[%s12010_s5 + $0xd0] sm:$0xff] }
 0x45d   : > { %5707 = vmatprep.mubr.f32.mxu1 %v12081_v3  ;;  %7613 = vmatprep.subr.mxu0 %v7418_v46 }
 0x45e   : > { %v11220_v40 = vpop.f32.mrf.mxu1  ;;  %7614 = vmatpush3.msra.mxu0 %v7418_v46  ;;  %v5932_v46 = vld [vmem:[%s12010_s5 + $0x70] sm:$0xff] }
 0x45f   : > { %7640 = vmatprep.subr.mxu1 %v5932_v46 }
 0x460   : > { %v11222_v61 = vpop.f32.mrf.mxu1  ;;  %5708 = vmatmul.mubr.f32.gmra.mxu1 %v10710_v48  ;;  %v7417_v48 = vld [vmem:[%s12010_s5 + $0xc8] sm:$0xff] }
 0x461   : > { %5713 = vmatprep.mubr.f32.mxu1 %v12081_v3  ;;  %7615 = vmatprep.subr.mxu0 %v7417_v48 }
 0x462   : > { %v11226_v47 = vpop.f32.mrf.mxu1  ;;  %7616 = vmatpush3.msra.mxu0 %v7417_v48  ;;  %7641 = vmatpush3.msra.mxu1 %v5932_v46  ;;  %v5929_v46 = vld [vmem:[%s12010_s5 + $0x58] sm:$0xff] }
 0x463   : > { %12500 = vst [vmem:[#allocation77_spill] sm:$0xff] %v11226_v47  ;;  %7642 = vmatprep.subr.mxu1 %v5931_v41 }
 0x464   : > { %v11231_v28 = vpop.f32.mrf.mxu1  ;;  %5714 = vmatmul.mubr.f32.gmra.mxu1 %v10722_v17 }
 0x465   : > { %5719 = vmatprep.mubr.f32.mxu1 %v12081_v3  ;;  %7643 = vmatpush3.msra.mxu1 %v5931_v41 }
 0x466   : > { %v11235_v45 = vpop.f32.mrf.mxu1 }
 0x467   : > { %12501 = vst [vmem:[#allocation76_spill] sm:$0xff] %v11235_v45 }
 0x468   : > { %v11243_v22 = vpop.f32.mrf.mxu1  ;;  %5720 = vmatmul.mubr.f32.gmra.mxu1 %v10775_v14  ;;  %v7416_v14 = vld [vmem:[%s12010_s5 + $0xc0] sm:$0xff] }
 0x469   : > { %5725 = vmatprep.mubr.f32.mxu1 %v12081_v3  ;;  %7617 = vmatprep.subr.mxu0 %v7416_v14 }
 0x46a   : > { %v11247_v17 = vpop.f32.mrf.mxu1  ;;  %7618 = vmatpush3.msra.mxu0 %v7416_v14  ;;  %v5928_v14 = vld [vmem:[%s12010_s5 + $0x50] sm:$0xff] }
 0x46b   : > { %12502 = vst [vmem:[#allocation80_spill] sm:$0xff] %v11247_v17 }
 0x46c   : > { %v11252_v45 = vpop.f32.mrf.mxu1  ;;  %5726 = vmatmul.mubr.f32.gmra.mxu1 %v10793_v39  ;;  %v5930_v39 = vld [vmem:[%s12010_s5 + $0x60] sm:$0xff] }
 0x46d   : > { %5731 = vmatprep.mubr.f32.mxu1 %v12081_v3  ;;  %7644 = vmatprep.subr.mxu1 %v5930_v39 }
 0x46e   : > { %v11262_v48 = vpop.f32.mrf.mxu1  ;;  %7645 = vmatpush3.msra.mxu1 %v5930_v39  ;;  %v5927_v39 = vld [vmem:[%s12010_s5 + $0x48] sm:$0xff] }
 0x46f   : > { %7646 = vmatprep.subr.mxu1 %v5929_v46 }
 0x470   : > { %v11267_v17 = vpop.f32.mrf.mxu1  ;;  %5732 = vmatmul.mubr.f32.gmra.mxu1 %v10849_v38  ;;  %v7415_v38 = vld [vmem:[%s12010_s5 + $0xb8] sm:$0xff] }
 0x471   : > { %5737 = vmatprep.mubr.f32.mxu1 %v12081_v3  ;;  %7647 = vmatpush3.msra.mxu1 %v5929_v46 }
 0x472   : > { %v11274_v47 = vpop.f32.mrf.mxu1  ;;  %7648 = vmatprep.subr.mxu1 %v5928_v14  ;;  %7619 = vmatprep.subr.mxu0 %v7415_v38 }
 0x473   : > { %7649 = vmatpush3.msra.mxu1 %v5928_v14  ;;  %7620 = vmatpush3.msra.mxu0 %v7415_v38  ;;  %v5925_v14 = vld [vmem:[%s12010_s5 + $0x38] sm:$0xff] }
 0x474   : > { %v11279_v41 = vpop.f32.mrf.mxu1  ;;  %5738 = vmatmul.mubr.f32.gmra.mxu1 %v10864_v11  ;;  %7650 = vmatprep.subr.mxu1 %v5927_v39  ;;  %v5926_v11 = vld [vmem:[%s12010_s5 + $0x40] sm:$0xff] }
 0x475   : > { %5743 = vmatprep.mubr.f32.mxu1 %v12081_v3  ;;  %7651 = vmatpush3.msra.mxu1 %v5927_v39  ;;  %v7414_v39 = vld [vmem:[%s12010_s5 + $0xb0] sm:$0xff] }
 0x476   : > { %v11289_v46 = vpop.f32.mrf.mxu1  ;;  %7652 = vmatprep.subr.mxu1 %v5926_v11  ;;  %7621 = vmatprep.subr.mxu0 %v7414_v39 }
 0x477   : > { %7653 = vmatpush3.msra.mxu1 %v5926_v11  ;;  %7622 = vmatpush3.msra.mxu0 %v7414_v39 }
 0x478   : > { %v11294_v62 = vpop.f32.mrf.mxu1  ;;  %5744 = vmatmul.mubr.f32.gmra.mxu1 %v12503_v32  ;;  %7654 = vmatprep.subr.mxu1 %v5925_v14  ;;  %v5923_v32 = vld [vmem:[%s12010_s5 + $0x28] sm:$0xff] }
 0x479   : > { %5749 = vmatprep.mubr.f32.mxu1 %v12081_v3  ;;  %7655 = vmatpush3.msra.mxu1 %v5925_v14  ;;  %v12504_v3 = vmax.f32 %v10928_v60, %v10930_v52  ;;  %v5922_v14 = vld [vmem:[%s12010_s5 + $0x20] sm:$0xff]  ;;  %v7413_v60 = vld [vmem:[%s12010_s5 + $0xa8] sm:$0xff]  ;;  %v5921_v52 = vld [vmem:[%s12010_s5 + $0x18] sm:$0xff] }
 0x47a   : > { %v11303_v38 = vpop.f32.mrf.mxu1  ;;  %7656 = vmatprep.subr.mxu1 %v5924_v57  ;;  %7623 = vmatprep.subr.mxu0 %v7413_v60 }
 0x47b   : > { %7657 = vmatpush3.msra.mxu1 %v5924_v57  ;;  %7624 = vmatpush3.msra.mxu0 %v7413_v60  ;;  %v5920_v57 = vld [vmem:[%s12010_s5 + $0x10] sm:$0xff]  ;;  %v5918_v60 = vld [vmem:[%s12010_s5] sm:$0xff] }
 0x47c   : > { %v11311_v7 = vpop.f32.mrf.mxu1  ;;  %5750 = vmatmul.mubr.f32.gmra.mxu1 %v12504_v3  ;;  %7658 = vmatprep.subr.mxu1 %v5923_v32 }
 0x47d   : > { %7659 = vmatpush3.msra.mxu1 %v5923_v32  ;;  %v5919_v32 = vld [vmem:[%s12010_s5 + $0x8] sm:$0xff] }
 0x47e   : > { %v11319_v11 = vpop.f32.mrf.mxu1  ;;  %7660 = vmatprep.subr.mxu1 %v5922_v14 }
 0x47f   : > { %7661 = vmatpush3.msra.mxu1 %v5922_v14  ;;  %v7412_v14 = vld [vmem:[%s12010_s5 + $0xa0] sm:$0xff] }
 0x480   : > { %v11324_v42 = vpop.f32.mrf.mxu1  ;;  %7662 = vmatprep.subr.mxu1 %v5921_v52  ;;  %7625 = vmatprep.subr.mxu0 %v7412_v14 }
 0x481   : > { %7663 = vmatpush3.msra.mxu1 %v5921_v52  ;;  %7626 = vmatpush3.msra.mxu0 %v7412_v14  ;;  %v7411_v52 = vld [vmem:[%s12010_s5 + $0x98] sm:$0xff] }
 0x482   : > { %v11332_v39 = vpop.f32.mrf.mxu1  ;;  %7664 = vmatprep.subr.mxu1 %v5920_v57  ;;  %7627 = vmatprep.subr.mxu0 %v7411_v52 }
 0x483   : > { %7665 = vmatpush3.msra.mxu1 %v5920_v57  ;;  %7628 = vmatpush3.msra.mxu0 %v7411_v52 }
 0x484   : > { %v11337_v3 = vpop.f32.mrf.mxu1  ;;  %7666 = vmatprep.subr.mxu1 %v5919_v32 }
 0x485   : > { %7667 = vmatpush3.msra.mxu1 %v5919_v32  ;;  %v7410_v32 = vld [vmem:[%s12010_s5 + $0x90] sm:$0xff] }
 0x486   : > { %v11342_v16 = vpop.f32.mrf.mxu1  ;;  %7668 = vmatprep.subr.mxu1 %v5918_v60  ;;  %7629 = vmatprep.subr.mxu0 %v7410_v32 }
 0x487   : > { %7669 = vmatpush3.msra.mxu1 %v5918_v60  ;;  %7630 = vmatpush3.msra.mxu0 %v7410_v32  ;;  %v7409_v60 = vld [vmem:[%s12010_s5 + $0x88] sm:$0xff]  ;;  %v11383_v32 = vld [vmem:[%s12010_s5 + $0x178] sm:$0xff] }
 0x488   : > { %v11350_v24 = vpop.f32.mrf.mxu1  ;;  %7631 = vmatprep.subr.mxu0 %v7409_v60  ;;  %12513 = vst [vmem:[#allocation89_spill] sm:$0xff] %v11383_v32 }
 0x489   : > { %7632 = vmatpush3.msra.mxu0 %v7409_v60 }
 0x48a   : > { %v11355_v57 = vpop.f32.mrf.mxu1 }
 0x48b   : > { %12505 = vst [vmem:[#allocation81_spill] sm:$0xff] %v11355_v57 }
 0x48c   : > { %v11357_v56 = vpop.f32.mrf.mxu1 }
 0x48d   : > { %12506 = vst [vmem:[#allocation83_spill] sm:$0xff] %v11357_v56 }
 0x48e   : > { %v11359_v55 = vpop.f32.mrf.mxu1 }
 0x48f   : > { %12507 = vst [vmem:[#allocation82_spill] sm:$0xff] %v11359_v55 }
 0x490   : > { %v11361_v10 = vpop.f32.mrf.mxu1 }
 0x491   : > { %12508 = vst [vmem:[#allocation85_spill] sm:$0xff] %v11361_v10  ;;  %v7408_v10 = vld [vmem:[%s12010_s5 + $0x80] sm:$0xff] }
 0x492   : > { %v11366_v14 = vpop.f32.mrf.mxu1  ;;  %7633 = vmatprep.subr.mxu0 %v7408_v10 }
 0x493   : > { %12509 = vst [vmem:[#allocation84_spill] sm:$0xff] %v11366_v14  ;;  %7634 = vmatpush3.msra.mxu0 %v7408_v10  ;;  %v4904_v10 = vadd.f32 %v11189_v53, %v10944_v4  ;;  %v4916_v4 = vadd.f32 %v11204_v59, %v10958_v43 }
 0x494   : > { %v11368_v12 = vpop.f32.mrf.mxu1  ;;  %7673 = vmatprep.subr.mxu0 %v11383_v32  ;;  %v4906_v32 = vadd.f32 %v11193_v26, %v10948_v6  ;;  %v4918_v26 = vadd.f32 %v11211_v44, %v10962_v5  ;;  %v11432_v44 = vpop.f32.mrf.mxu0 }
 0x495   : > { %12510 = vst [vmem:[#allocation87_spill] sm:$0xff] %v11368_v12 }
 0x496   : > { %v11373_v52 = vpop.f32.mrf.mxu1 }
 0x497   : > { %12511 = vst [vmem:[#allocation86_spill] sm:$0xff] %v11373_v52  ;;  %v11389_v52 = vld [vmem:[%s12010_s5 + $0x1f8] sm:$0xff] }
 0x498   : > { %v11378_v55 = vpop.f32.mrf.mxu1  ;;  %12514 = vst [vmem:[#allocation91_spill] sm:$0xff] %v11389_v52  ;;  %7708 = vmatprep.subr.mxu1 %v11389_v52 }
 0x499   : > { %12512 = vst [vmem:[#allocation88_spill] sm:$0xff] %v11378_v55 }
 0x49a   : > { %v11391_v60 = vpop.f32.mrf.mxu1 }
 0x49b   : > { %12515 = vst [vmem:[#allocation90_spill] sm:$0xff] %v11391_v60 }
 0x49c   : > { %v11394_v12 = vpop.f32.mrf.mxu1 }
 0x49d   : > { %12516 = vst [vmem:[#allocation93_spill] sm:$0xff] %v11394_v12  ;;  %v4912_v12 = vadd.f32 %v11202_v21, %v10956_v37 }
 0x49e   : > { %v11396_v55 = vpop.f32.mrf.mxu1 }
 0x49f   : > { %12517 = vst [vmem:[#allocation92_spill] sm:$0xff] %v11396_v55 }
 0x4a0   : > { %v5121_v14 = vpop.f32.mrf.mxu1 }
 0x4a1   : > { %v11402_v58 = vadd.f32 %v5121_v14, %v4904_v10 }
 0x4a2   : > { %v5123_v56 = vpop.f32.mrf.mxu1 }
 0x4a3   : > { %v11406_v60 = vadd.f32 %v5123_v56, %v4906_v32  ;;  %v4922_v56 = vadd.f32 %v11213_v34, %v10972_v19  ;;  %v4934_v34 = vadd.f32 %v11231_v28, %v11030_v2  ;;  %v4946_v28 = vadd.f32 %v11252_v45, %v11086_v1 }
 0x4a4   : > { %v5127_v52 = vpop.f32.mrf.mxu1  ;;  %v4954_v1 = vadd.f32 %v11274_v47, %v11101_v30  ;;  %v4964_v30 = vadd.f32 %v11294_v62, %v11111_v31  ;;  %v4972_v62 = vadd.f32 %v11319_v11, %v11123_v13  ;;  %v4982_v13 = vadd.f32 %v11337_v3, %v11135_v8  ;;  %v12519_v8 = vld [vmem:[#allocation81_spill] sm:$0xff] }
 0x4a5   : > { %v11410_v55 = vadd.f32 %v5127_v52, %v4910_v0  ;;  %v4924_v0 = vadd.f32 %v11220_v40, %v10988_v51  ;;  %v11440_v51 = vpop.f32.mrf.mxu0  ;;  %v4990_v3 = vadd.f32 %v12519_v8, %v11145_v9  ;;  %v12526_v9 = vld [vmem:[#allocation70_spill] sm:$0xff] }
 0x4a6   : > { %v5129_v57 = vpop.f32.mrf.mxu1 }
 0x4a7   : > { %v11414_v53 = vadd.f32 %v5129_v57, %v4912_v12  ;;  %v4928_v12 = vadd.f32 %v11222_v61, %v10998_v36  ;;  %v4940_v61 = vadd.f32 %v11243_v22, %v11054_v33  ;;  %v11448_v10 = vpop.f32.mrf.mxu0  ;;  %v4952_v33 = vadd.f32 %v11267_v17, %v11097_v49 }
 0x4a8   : > { %v5133_v6 = vpop.f32.mrf.mxu1  ;;  %v4960_v49 = vadd.f32 %v11289_v46, %v11109_v20  ;;  %v4970_v20 = vadd.f32 %v11311_v7, %v11119_v54  ;;  %v4978_v54 = vadd.f32 %v11332_v39, %v11131_v25  ;;  %v4988_v25 = vadd.f32 %v11350_v24, %v11141_v29  ;;  %v12523_v29 = vld [vmem:[#allocation71_spill] sm:$0xff]  ;;  %v12524_v24 = vld [vmem:[#allocation82_spill] sm:$0xff] }
 0x4a9   : > { %v11418_v14 = vadd.f32 %v5133_v6, %v4916_v4 }
 0x4aa   : > { %v5135_v15 = vpop.f32.mrf.mxu1 }
 0x4ab   : > { %v11422_v23 = vadd.f32 %v5135_v15, %v4918_v26  ;;  %v11456_v26 = vpop.f32.mrf.mxu0  ;;  %v4948_v15 = vadd.f32 %v11262_v48, %v11093_v35  ;;  %v4958_v35 = vadd.f32 %v11279_v41, %v11105_v50  ;;  %v4966_v50 = vadd.f32 %v11303_v38, %v11115_v27 }
 0x4ac   : > { %v5139_v37 = vpop.f32.mrf.mxu1  ;;  %v4976_v27 = vadd.f32 %v11324_v42, %v11127_v18  ;;  %v4984_v18 = vadd.f32 %v11342_v16, %v11139_v63  ;;  %v12520_v63 = vld [vmem:[#allocation68_spill] sm:$0xff]  ;;  %v12521_v16 = vld [vmem:[#allocation83_spill] sm:$0xff] }
 0x4ad   : > { %v11426_v21 = vadd.f32 %v5139_v37, %v4922_v56  ;;  %v11462_v22 = vpop.f32.mrf.mxu0 }
 0x4ae   : > { %v5141_v43 = vpop.f32.mrf.mxu1 }
 0x4af   : > { %v11430_v59 = vadd.f32 %v5141_v43, %v4924_v0 }
 0x4b0   : > { %v5145_v5 = vpop.f32.mrf.mxu1 }
 0x4b1   : > { %v11434_v57 = vadd.f32 %v5145_v5, %v4928_v12  ;;  %v11472_v5 = vpop.f32.mrf.mxu0 }
 0x4b2   : > { %v11436_v19 = vpop.f32.mrf.mxu1 }
 0x4b4   : > { %v5151_v52 = vpop.f32.mrf.mxu1 }
 0x4b5   : > { %v11442_v40 = vadd.f32 %v5151_v52, %v4934_v34 }
 0x4b6   : > { %v11444_v32 = vpop.f32.mrf.mxu1 }
 0x4b8   : > { %v5157_v36 = vpop.f32.mrf.mxu1 }
 0x4b9   : > { %v11450_v4 = vadd.f32 %v5157_v36, %v4940_v61  ;;  %v11482_v61 = vpop.f32.mrf.mxu0 }
 0x4ba   : > { %v11452_v6 = vpop.f32.mrf.mxu1 }
 0x4bc   : > { %v5163_v2 = vpop.f32.mrf.mxu1 }
 0x4bd   : > { %v11460_v56 = vadd.f32 %v5163_v2, %v4946_v28  ;;  %v11492_v2 = vpop.f32.mrf.mxu0 }
 0x4be   : > { %v5165_v37 = vpop.f32.mrf.mxu1 }
 0x4bf   : > { %v11466_v0 = vadd.f32 %v5165_v37, %v4948_v15  ;;  %v11498_v37 = vpop.f32.mrf.mxu0 }
 0x4c0   : > { %v5169_v43 = vpop.f32.mrf.mxu1 }
 0x4c1   : > { %v11470_v45 = vadd.f32 %v5169_v43, %v4952_v33 }
 0x4c2   : > { %v5171_v12 = vpop.f32.mrf.mxu1 }
 0x4c3   : > { %v11476_v48 = vadd.f32 %v5171_v12, %v4954_v1  ;;  %v11508_v1 = vpop.f32.mrf.mxu0 }
 0x4c4   : > { %v5175_v34 = vpop.f32.mrf.mxu1 }
 0x4c5   : > { %v11480_v17 = vadd.f32 %v5175_v34, %v4958_v35  ;;  %v11518_v34 = vpop.f32.mrf.mxu0 }
 0x4c6   : > { %v5177_v52 = vpop.f32.mrf.mxu1 }
 0x4c7   : > { %v11486_v47 = vadd.f32 %v5177_v52, %v4960_v49 }
 0x4c8   : > { %v5181_v36 = vpop.f32.mrf.mxu1 }
 0x4c9   : > { %v11490_v41 = vadd.f32 %v5181_v36, %v4964_v30  ;;  %v11528_v30 = vpop.f32.mrf.mxu0 }
 0x4ca   : > { %v5183_v28 = vpop.f32.mrf.mxu1 }
 0x4cb   : > { %v11496_v46 = vadd.f32 %v5183_v28, %v4966_v50  ;;  %v11534_v28 = vpop.f32.mrf.mxu0 }
 0x4cc   : > { %v5187_v15 = vpop.f32.mrf.mxu1 }
 0x4cd   : > { %v11502_v31 = vadd.f32 %v5187_v15, %v4970_v20  ;;  %v4994_v20 = vadd.f32 %v12521_v16, %v12520_v63  ;;  %v12532_v63 = vld [vmem:[#allocation73_spill] sm:$0xff]  ;;  %v12533_v16 = vld [vmem:[#allocation87_spill] sm:$0xff] }
 0x4ce   : > { %v5189_v33 = vpop.f32.mrf.mxu1 }
 0x4cf   : > { %v11506_v38 = vadd.f32 %v5189_v33, %v4972_v62  ;;  %v4996_v33 = vadd.f32 %v12524_v24, %v12523_v29  ;;  %v12535_v24 = vld [vmem:[#allocation72_spill] sm:$0xff] }
 0x4d0   : > { %v5193_v43 = vpop.f32.mrf.mxu1 }
 0x4d1   : > { %v11512_v7 = vadd.f32 %v5193_v43, %v4976_v27 }
 0x4d2   : > { %v5195_v12 = vpop.f32.mrf.mxu1 }
 0x4d3   : > { %v11516_v11 = vadd.f32 %v5195_v12, %v4978_v54  ;;  %v11544_v54 = vpop.f32.mrf.mxu0  ;;  %v12527_v12 = vld [vmem:[#allocation85_spill] sm:$0xff] }
 0x4d4   : > { %v5199_v35 = vpop.f32.mrf.mxu1 }
 0x4d5   : > { %v11522_v42 = vadd.f32 %v5199_v35, %v4982_v13  ;;  %v5000_v13 = vadd.f32 %v12527_v12, %v12526_v9 }
 0x4d6   : > { %v5201_v49 = vpop.f32.mrf.mxu1 }
 0x4d7   : > { %v11526_v39 = vadd.f32 %v5201_v49, %v4984_v18  ;;  %v12529_v49 = vld [vmem:[#allocation69_spill] sm:$0xff] }
 0x4d8   : > { %v5205_v52 = vpop.f32.mrf.mxu1 }
 0x4d9   : > { %12518 = vst [vmem:[#allocation94_spill] sm:$0xff] %v11526_v39  ;;  %v11532_v36 = vadd.f32 %v5205_v52, %v4988_v25  ;;  %v12530_v25 = vld [vmem:[#allocation84_spill] sm:$0xff] }
 0x4da   : > { %v5207_v50 = vpop.f32.mrf.mxu1  ;;  %v5002_v52 = vadd.f32 %v12530_v25, %v12529_v49  ;;  %v12538_v49 = vld [vmem:[#allocation74_spill] sm:$0xff] }
 0x4db   : > { %v11538_v15 = vadd.f32 %v5207_v50, %v4990_v3  ;;  %v11554_v50 = vpop.f32.mrf.mxu0 }
 0x4dc   : > { %v5211_v62 = vpop.f32.mrf.mxu1 }
 0x4dd   : > { %12522 = vst [vmem:[#allocation95_spill] sm:$0xff] %v11538_v15  ;;  %v11542_v27 = vadd.f32 %v5211_v62, %v4994_v20  ;;  %v5006_v20 = vadd.f32 %v12533_v16, %v12532_v63  ;;  %v11564_v12 = vpop.f32.mrf.mxu0  ;;  %v12541_v63 = vld [vmem:[#allocation75_spill] sm:$0xff] }
 0x4de   : > { %v5213_v43 = vpop.f32.mrf.mxu1 }
 0x4df   : > { %12525 = vst [vmem:[#allocation97_spill] sm:$0xff] %v11542_v27  ;;  %v11548_v35 = vadd.f32 %v5213_v43, %v4996_v33  ;;  %v12536_v27 = vld [vmem:[#allocation86_spill] sm:$0xff] }
 0x4e0   : > { %v5217_v18 = vpop.f32.mrf.mxu1  ;;  %v5008_v9 = vadd.f32 %v12536_v27, %v12535_v24  ;;  %v12543_v27 = vld [vmem:[#allocation79_spill] sm:$0xff] }
 0x4e1   : > { %12528 = vst [vmem:[#allocation96_spill] sm:$0xff] %v11548_v35  ;;  %v11552_v8 = vadd.f32 %v5217_v18, %v5000_v13  ;;  %v12539_v13 = vld [vmem:[#allocation88_spill] sm:$0xff]  ;;  %v11570_v35 = vpop.f32.mrf.mxu0 }
 0x4e2   : > { %v5219_v3 = vpop.f32.mrf.mxu1  ;;  %v5012_v18 = vadd.f32 %v12539_v13, %v12538_v49  ;;  %v12546_v49 = vld [vmem:[#allocation78_spill] sm:$0xff] }
 0x4e3   : > { %12531 = vst [vmem:[#allocation99_spill] sm:$0xff] %v11552_v8  ;;  %v11558_v62 = vadd.f32 %v5219_v3, %v5002_v52  ;;  %v12542_v52 = vld [vmem:[#allocation90_spill] sm:$0xff]  ;;  %v11580_v15 = vpop.f32.mrf.mxu0 }
 0x4e4   : > { %v5223_v29 = vpop.f32.mrf.mxu1  ;;  %v5014_v3 = vadd.f32 %v12542_v52, %v12541_v63 }
 0x4e5   : > { %12534 = vst [vmem:[#allocation98_spill] sm:$0xff] %v11558_v62  ;;  %v11562_v33 = vadd.f32 %v5223_v29, %v5006_v20  ;;  %v12544_v20 = vld [vmem:[#allocation93_spill] sm:$0xff] }
 0x4e6   : > { %v5225_v43 = vpop.f32.mrf.mxu1  ;;  %v5018_v29 = vadd.f32 %v12544_v20, %v12543_v27  ;;  %v12550_v27 = vld [vmem:[#allocation170_spill] sm:$0xff] }
 0x4e7   : > { %12537 = vst [vmem:[#allocation101_spill] sm:$0xff] %v11562_v33  ;;  %v11568_v25 = vadd.f32 %v5225_v43, %v5008_v9  ;;  %v12547_v9 = vld [vmem:[#allocation92_spill] sm:$0xff]  ;;  %v12551_v20 = vsub.s32 0, %v12550_v27 }
 0x4e8   : > { %v5229_v8 = vpop.f32.mrf.mxu1  ;;  %v5020_v43 = vadd.f32 %v12547_v9, %v12546_v49 }
 0x4e9   : > { %12540 = vst [vmem:[#allocation100_spill] sm:$0xff] %v11568_v25  ;;  %v11574_v16 = vadd.f32 %v5229_v8, %v5012_v18  ;;  %v11588_v8 = vpop.f32.mrf.mxu0  ;;  %v5796_v18 = vld [vmem:[%s12009_s4] sm:$0x3] }
 0x4ea   : > { %v5231_v62 = vpop.f32.mrf.mxu1  ;;  %v11597_v49 = vrot.slane %v5796_v18, %v12551_v20 }
 0x4eb   : > { %v11578_v24 = vadd.f32 %v5231_v62, %v5014_v3  ;;  %v5498_v62 = vadd.f32 %v11432_v44, %v11402_v58  ;;  %v5500_v58 = vadd.f32 %v11448_v10, %v11410_v55  ;;  %v5502_v44 = vadd.f32 %v11462_v22, %v11418_v14 }
 0x4ec   : > { %v5235_v33 = vpop.f32.mrf.mxu1  ;;  %v5504_v10 = vadd.f32 %v11482_v61, %v11426_v21 }
 0x4ed   : > { %12545 = vst [vmem:[#allocation105_spill] sm:$0xff] %v11578_v24  ;;  %v11584_v13 = vadd.f32 %v5235_v33, %v5018_v29  ;;  %v5499_v33 = vadd.f32 %v11440_v51, %v11406_v60  ;;  %v11601_v29 = vpop.f32.mrf.mxu0  ;;  %v5501_v60 = vadd.f32 %v11456_v26, %v11414_v53  ;;  %v5505_v26 = vadd.f32 %v11492_v2, %v11430_v59 }
 0x4ee   : > { %v5237_v25 = vpop.f32.mrf.mxu1 }
 0x4ef   : > { %12548 = vst [vmem:[#allocation104_spill] sm:$0xff] %v11584_v13  ;;  %v11586_v39 = vadd.f32 %v5237_v25, %v5020_v43  ;;  %v12552_v43 = vsub.s32 1, %v12550_v27  ;;  %v11607_v24 = vpop.f32.mrf.mxu0 }
 0x4f0   : > { %v5637_v63 = vpop.f32.mrf.mxu1 }
 0x4f1   : > { %12549 = vst [vmem:[#allocation103_spill] sm:$0xff] %v11586_v39  ;;  %v5756_v3 = vadd.f32 %v5637_v63, %v5498_v62  ;;  %v11605_v39 = vrot.slane %v5796_v18, %v12552_v43  ;;  %v5503_v18 = vadd.f32 %v11472_v5, %v11422_v23  ;;  %v11619_v43 = vpop.f32.mrf.mxu0 }
 0x4f2   : > { %v5639_v52 = vpop.f32.mrf.mxu1 }
 0x4f3   : > { %v5757_v9 = vadd.f32 %v5639_v52, %v5499_v33  ;;  %v5808_v63 = vadd.f32 %v11597_v49, %v5756_v3 }
 0x4f4   : > { %v5643_v25 = vpop.f32.mrf.mxu1 }
 0x4f5   : > { %v5758_v62 = vadd.f32 %v5643_v25, %v5500_v58  ;;  %v5809_v27 = vadd.f32 %v11605_v39, %v5757_v9  ;;  %v5848_v22 = vmax.f32 %v5808_v63, 0.0  ;;  %v12553_v25 = vld [vmem:[#allocation65_spill] sm:$0xff] }
 0x4f6   : > { %v5645_v13 = vpop.f32.mrf.mxu1  ;;  %v12554_v9 = vld [vmem:[#allocation77_spill] sm:$0xff] }
 0x4f7   : > { %v5759_v20 = vadd.f32 %v5645_v13, %v5501_v60  ;;  %v5810_v3 = vadd.f32 %v11597_v49, %v5758_v62  ;;  %v4930_v58 = vadd.f32 %v12554_v9, %v12553_v25 }
 0x4f8   : > { %v5649_v51 = vpop.f32.mrf.mxu1 }
 0x4f9   : > { %v5760_v52 = vadd.f32 %v5649_v51, %v5502_v44  ;;  %v5849_v44 = vmax.f32 %v5809_v27, 0.0  ;;  %v5811_v60 = vadd.f32 %v11605_v39, %v5759_v20  ;;  %v5249_v2 = vadd.f32 %v11436_v19, %v4930_v58  ;;  %v12556_v27 = vld [vmem:[#allocation76_spill] sm:$0xff] }
 0x4fa   : > { %v5651_v33 = vpop.f32.mrf.mxu1  ;;  %v5506_v20 = vadd.f32 %v11498_v37, %v11434_v57 }
 0x4fb   : > { %v5812_v55 = vadd.f32 %v11597_v49, %v5760_v52  ;;  %v5761_v14 = vadd.f32 %v5651_v33, %v5503_v18  ;;  %v11631_v52 = vpop.f32.mrf.mxu0  ;;  %v5850_v18 = vmax.f32 %v5810_v3, 0.0 }
 0x4fc   : > { %v5655_v53 = vpop.f32.mrf.mxu1 }
 0x4fd   : > { %v5852_v23 = vmax.f32 %v5812_v55, 0.0  ;;  %v5813_v5 = vadd.f32 %v11605_v39, %v5761_v14  ;;  %v5762_v13 = vadd.f32 %v5655_v53, %v5504_v10  ;;  %v12555_v10 = vld [vmem:[#allocation66_spill] sm:$0xff] }
 0x4fe   : > { %v5657_v51 = vpop.f32.mrf.mxu1  ;;  %v4936_v53 = vadd.f32 %v12556_v27, %v12555_v10 }
 0x4ff   : > { %v5888_v21 = vmax.f32 %v5848_v22, %v5852_v23  ;;  %v5853_v61 = vmax.f32 %v5813_v5, 0.0  ;;  %v5814_v63 = vadd.f32 %v11597_v49, %v5762_v13  ;;  %v5763_v59 = vadd.f32 %v5657_v51, %v5505_v26  ;;  %v11640_v22 = vpop.f32.mrf.mxu0  ;;  %v12557_v23 = vld [vmem:[#allocation67_spill] sm:$0xff]  ;;  %v12558_v5 = vld [vmem:[#allocation80_spill] sm:$0xff] }
 0x500   : > { %v5661_v62 = vpop.f32.mrf.mxu1  ;;  %v4942_v26 = vadd.f32 %v12558_v5, %v12557_v23  ;;  %v5851_v13 = vmax.f32 %v5811_v60, 0.0  ;;  %v5251_v3 = vadd.f32 %v11444_v32, %v4936_v53  ;;  %v5508_v60 = vadd.f32 %v11518_v34, %v11442_v40  ;;  %v7452_v5 = vld [vmem:[%s12010_s5 + $0x1e0] sm:$0xff] }
 0x501   : > { %v5889_v33 = vmax.f32 %v5849_v44, %v5853_v61  ;;  %v5854_v55 = vmax.f32 %v5814_v63, 0.0  ;;  %v5815_v14 = vadd.f32 %v11605_v39, %v5763_v59  ;;  %v5764_v58 = vadd.f32 %v5661_v62, %v5506_v20  ;;  %v11646_v63 = vpop.f32.mrf.mxu0 }
 0x502   : > { %v5663_v25 = vpop.f32.mrf.mxu1  ;;  %v5507_v44 = vadd.f32 %v11508_v1, %v5249_v2  ;;  %v5253_v57 = vadd.f32 %v11452_v6, %v4942_v26  ;;  %v5510_v32 = vadd.f32 %v11534_v28, %v11450_v4  ;;  %v5509_v1 = vadd.f32 %v11528_v30, %v5251_v3  ;;  %v7454_v6 = vld [vmem:[%s12010_s5 + $0x1f0] sm:$0xff]  ;;  %v12559_v28 = vld [vmem:[#allocation91_spill] sm:$0xff]  ;;  %v7453_v30 = vld [vmem:[%s12010_s5 + $0x1e8] sm:$0xff] }
 0x503   : > { %v5890_v19 = vmax.f32 %v5850_v18, %v5854_v55  ;;  %v5855_v9 = vmax.f32 %v5815_v14, 0.0  ;;  %v5908_v61 = vmax.f32 %v5888_v21, %v5889_v33  ;;  %v5816_v62 = vadd.f32 %v11597_v49, %v5764_v58  ;;  %v11658_v2 = vpop.f32.mrf.mxu0 }
 0x504   : > { %v5667_v51 = vpop.f32.mrf.mxu1  ;;  %v5765_v59 = vadd.f32 %v5663_v25, %v5507_v44  ;;  %v5511_v55 = vadd.f32 %v11544_v54, %v5253_v57  ;;  %v5512_v20 = vadd.f32 %v11554_v50, %v11460_v56  ;;  %v5513_v54 = vadd.f32 %v11564_v12, %v11466_v0  ;;  %v7451_v0 = vld [vmem:[%s12010_s5 + $0x1d8] sm:$0xff] }
 0x505   : > { %v5891_v37 = vmax.f32 %v5851_v13, %v5855_v9  ;;  %7670 = vmatprep.mubr.f32.mxu1 %v5908_v61  ;;  %v5766_v18 = vadd.f32 %v5667_v51, %v5508_v60  ;;  %v5856_v25 = vmax.f32 %v5816_v62, 0.0  ;;  %v11674_v26 = vpop.f32.mrf.mxu0  ;;  %v5514_v62 = vadd.f32 %v11570_v35, %v11470_v45  ;;  %v7448_v45 = vld [vmem:[%s12010_s5 + $0x1c0] sm:$0xff] }
 0x506   : > { %v5669_v10 = vpop.f32.mrf.mxu1  ;;  %v5817_v40 = vadd.f32 %v11605_v39, %v5765_v59 }
 0x507   : > { %v5909_v27 = vmax.f32 %v5890_v19, %v5891_v37  ;;  %v5767_v34 = vadd.f32 %v5669_v10, %v5509_v1  ;;  %v5818_v13 = vadd.f32 %v11597_v49, %v5766_v18  ;;  %v7450_v37 = vld [vmem:[%s12010_s5 + $0x1d0] sm:$0xff]  ;;  %v11686_v59 = vpop.f32.mrf.mxu0 }
 0x508   : > { %v5673_v21 = vpop.f32.mrf.mxu1  ;;  %v5857_v56 = vmax.f32 %v5817_v40, 0.0 }
 0x509   : > { %v5768_v33 = vadd.f32 %v5673_v21, %v5510_v32  ;;  %7671 = vmatmul.mubr.f32.vlgmr.msra.gmra.mxu1 %v5909_v27  ;;  %v5819_v50 = vadd.f32 %v11605_v39, %v5767_v34  ;;  %v5858_v10 = vmax.f32 %v5818_v13, 0.0  ;;  %v7449_v21 = vld [vmem:[%s12010_s5 + $0x1c8] sm:$0xff]  ;;  %v5515_v34 = vadd.f32 %v11580_v15, %v11476_v48  ;;  %v7438_v13 = vld [vmem:[%s12010_s5 + $0x170] sm:$0xff] }
 0x50a   : > { %v5675_v4 = vpop.f32.mrf.mxu1  ;;  %7709 = vmatpush3.msra.mxu1 %v12559_v28  ;;  %v5516_v15 = vadd.f32 %v11588_v8, %v11480_v17 }
 0x50b   : > { %v5820_v14 = vadd.f32 %v11597_v49, %v5768_v33  ;;  %v5769_v53 = vadd.f32 %v5675_v4, %v5511_v55  ;;  %7710 = vmatprep.subr.mxu1 %v7454_v6  ;;  %v5859_v18 = vmax.f32 %v5819_v50, 0.0 }
 0x50c   : > { %v5679_v23 = vpop.f32.mrf.mxu1  ;;  %7711 = vmatpush3.msra.mxu1 %v7454_v6  ;;  %v11694_v6 = vpop.f32.mrf.mxu0 }
 0x50d   : > { %v5860_v19 = vmax.f32 %v5820_v14, 0.0  ;;  %v5821_v9 = vadd.f32 %v11605_v39, %v5769_v53  ;;  %v5770_v3 = vadd.f32 %v5679_v23, %v5512_v20  ;;  %7712 = vmatprep.subr.mxu1 %v7453_v30  ;;  %v7447_v53 = vld [vmem:[%s12010_s5 + $0x1b8] sm:$0xff] }
 0x50e   : > { %v5681_v58 = vpop.f32.mrf.mxu1  ;;  %7713 = vmatpush3.msra.mxu1 %v7453_v30  ;;  %v11704_v20 = vpop.f32.mrf.mxu0 }
 0x50f   : > { %v5892_v12 = vmax.f32 %v5856_v25, %v5860_v19  ;;  %v5861_v44 = vmax.f32 %v5821_v9, 0.0  ;;  %v5822_v51 = vadd.f32 %v11597_v49, %v5770_v3  ;;  %v5771_v61 = vadd.f32 %v5681_v58, %v5513_v54  ;;  %7714 = vmatprep.subr.mxu1 %v7452_v5  ;;  %v7446_v19 = vld [vmem:[%s12010_s5 + $0x1b0] sm:$0xff]  ;;  %v7437_v3 = vld [vmem:[%s12010_s5 + $0x168] sm:$0xff] }
 0x510   : > { %v5685_v57 = vpop.f32.mrf.mxu1  ;;  %7715 = vmatpush3.msra.mxu1 %v7452_v5  ;;  %v5518_v25 = vadd.f32 %v11607_v24, %v11490_v41  ;;  %v5517_v54 = vadd.f32 %v11601_v29, %v11486_v47  ;;  %v5519_v41 = vadd.f32 %v11619_v43, %v11496_v46  ;;  %v12560_v29 = vld [vmem:[#allocation89_spill] sm:$0xff]  ;;  %v11729_v50 = vpop.f32.mrf.mxu0  ;;  %v5520_v58 = vadd.f32 %v11631_v52, %v11502_v31 }
 0x511   : > { %v5893_v27 = vmax.f32 %v5857_v56, %v5861_v44  ;;  %v5862_v60 = vmax.f32 %v5822_v51, 0.0  ;;  %v5823_v32 = vadd.f32 %v11605_v39, %v5771_v61  ;;  %7716 = vmatprep.subr.mxu1 %v7451_v0  ;;  %v5772_v40 = vadd.f32 %v5685_v57, %v5514_v62  ;;  %v7445_v56 = vld [vmem:[%s12010_s5 + $0x1a8] sm:$0xff]  ;;  %v7436_v51 = vld [vmem:[%s12010_s5 + $0x160] sm:$0xff] }
 0x512   : > { %v5687_v1 = vpop.f32.mrf.mxu1  ;;  %7717 = vmatpush3.msra.mxu1 %v7451_v0  ;;  %v5521_v44 = vadd.f32 %v11640_v22, %v11506_v38  ;;  %v7444_v61 = vld [vmem:[%s12010_s5 + $0x1a0] sm:$0xff] }
 0x513   : > { %v5894_v33 = vmax.f32 %v5858_v10, %v5862_v60  ;;  %v5863_v55 = vmax.f32 %v5823_v32, 0.0  ;;  %7718 = vmatprep.subr.mxu1 %v7450_v37  ;;  %v5910_v28 = vmax.f32 %v5892_v12, %v5893_v27  ;;  %v5773_v30 = vadd.f32 %v5687_v1, %v5515_v34  ;;  %v7435_v27 = vld [vmem:[%s12010_s5 + $0x158] sm:$0xff]  ;;  %v11751_v32 = vpop.f32.mrf.mxu0 }
 0x514   : > { %v5691_v4 = vpop.f32.mrf.mxu1  ;;  %7719 = vmatpush3.msra.mxu1 %v7450_v37  ;;  %v5824_v23 = vadd.f32 %v11597_v49, %v5772_v40  ;;  %v7443_v60 = vld [vmem:[%s12010_s5 + $0x198] sm:$0xff]  ;;  %v7442_v40 = vld [vmem:[%s12010_s5 + $0x190] sm:$0xff] }
 0x515   : > { %v5895_v35 = vmax.f32 %v5859_v18, %v5863_v55  ;;  %7720 = vmatprep.subr.mxu1 %v7449_v21  ;;  %7635 = vmatprep.mubr.f32.mxu0 %v5910_v28  ;;  %v5774_v17 = vadd.f32 %v5691_v4, %v5516_v15  ;;  %v5825_v24 = vadd.f32 %v11605_v39, %v5773_v30  ;;  %v7434_v55 = vld [vmem:[%s12010_s5 + $0x150] sm:$0xff]  ;;  %v11760_v34 = vpop.f32.mrf.mxu0 }
 0x516   : > { %v5693_v14 = vpop.f32.mrf.mxu1  ;;  %7721 = vmatpush3.msra.mxu1 %v7449_v21  ;;  %v5864_v0 = vmax.f32 %v5824_v23, 0.0  ;;  %v5522_v30 = vadd.f32 %v11646_v63, %v11512_v7  ;;  %v5523_v7 = vadd.f32 %v11658_v2, %v11516_v11  ;;  %v7431_v2 = vld [vmem:[%s12010_s5 + $0x138] sm:$0xff] }
 0x517   : > { %v5911_v48 = vmax.f32 %v5894_v33, %v5895_v35  ;;  %7722 = vmatprep.subr.mxu1 %v7448_v45  ;;  %v5775_v47 = vadd.f32 %v5693_v14, %v5517_v54  ;;  %v5826_v57 = vadd.f32 %v11597_v49, %v5774_v17  ;;  %v5865_v10 = vmax.f32 %v5825_v24, 0.0 }
 0x518   : > { %v5697_v5 = vpop.f32.mrf.mxu1  ;;  %7723 = vmatpush3.msra.mxu1 %v7448_v45 }
 0x519   : > { %v5776_v8 = vadd.f32 %v5697_v5, %v5518_v25  ;;  %7636 = vmatmul.mubr.f32.vlgmr.msra.gmra.mxu0 %v5911_v48  ;;  %7724 = vmatprep.subr.mxu1 %v7447_v53  ;;  %v5827_v38 = vadd.f32 %v11605_v39, %v5775_v47  ;;  %v5866_v4 = vmax.f32 %v5826_v57, 0.0  ;;  %v7441_v48 = vld [vmem:[%s12010_s5 + $0x188] sm:$0xff]  ;;  %v5524_v47 = vadd.f32 %v11674_v26, %v11522_v42  ;;  %v12563_v57 = vld [vmem:[#allocation97_spill] sm:$0xff] }
 0x51a   : > { %7674 = vmatpush3.msra.mxu0 %v12560_v29  ;;  %v5699_v9 = vpop.f32.mrf.mxu1  ;;  %7725 = vmatpush3.msra.mxu1 %v7447_v53  ;;  %v7433_v53 = vld [vmem:[%s12010_s5 + $0x148] sm:$0xff]  ;;  %v5526_v29 = vadd.f32 %v11694_v6, %v11532_v36 }
 0x51b   : > { %v5828_v46 = vadd.f32 %v11597_v49, %v5776_v8  ;;  %v5777_v43 = vadd.f32 %v5699_v9, %v5519_v41  ;;  %7675 = vmatprep.subr.mxu0 %v7438_v13  ;;  %7726 = vmatprep.subr.mxu1 %v7446_v19  ;;  %v5867_v15 = vmax.f32 %v5827_v38, 0.0  ;;  %v7440_v8 = vld [vmem:[%s12010_s5 + $0x180] sm:$0xff] }
 0x51c   : > { %7676 = vmatpush3.msra.mxu0 %v7438_v13  ;;  %v5703_v12 = vpop.f32.mrf.mxu1  ;;  %7727 = vmatpush3.msra.mxu1 %v7446_v19  ;;  %v7432_v13 = vld [vmem:[%s12010_s5 + $0x140] sm:$0xff]  ;;  %v11778_v19 = vpop.f32.mrf.mxu0 }
 0x51d   : > { %v5868_v37 = vmax.f32 %v5828_v46, 0.0  ;;  %v5829_v31 = vadd.f32 %v11605_v39, %v5777_v43  ;;  %v5778_v52 = vadd.f32 %v5703_v12, %v5520_v58  ;;  %7677 = vmatprep.subr.mxu0 %v7437_v3  ;;  %7728 = vmatprep.subr.mxu1 %v7445_v56  ;;  %v7430_v43 = vld [vmem:[%s12010_s5 + $0x130] sm:$0xff]  ;;  %v7428_v38 = vld [vmem:[%s12010_s5 + $0x120] sm:$0xff] }
 0x51e   : > { %7678 = vmatpush3.msra.mxu0 %v7437_v3  ;;  %v5705_v22 = vpop.f32.mrf.mxu1  ;;  %7729 = vmatpush3.msra.mxu1 %v7445_v56  ;;  %v12561_v3 = vld [vmem:[#allocation94_spill] sm:$0xff]  ;;  %v11800_v58 = vpop.f32.mrf.mxu0 }
 0x51f   : > { %v5896_v62 = vmax.f32 %v5864_v0, %v5868_v37  ;;  %v5869_v1 = vmax.f32 %v5829_v31, 0.0  ;;  %v5830_v21 = vadd.f32 %v11597_v49, %v5778_v52  ;;  %v5779_v18 = vadd.f32 %v5705_v22, %v5521_v44  ;;  %7679 = vmatprep.subr.mxu0 %v7436_v51  ;;  %7730 = vmatprep.subr.mxu1 %v7444_v61  ;;  %v12562_v0 = vld [vmem:[#allocation95_spill] sm:$0xff]  ;;  %v7429_v44 = vld [vmem:[%s12010_s5 + $0x128] sm:$0xff] }
 0x520   : > { %7680 = vmatpush3.msra.mxu0 %v7436_v51  ;;  %v5709_v33 = vpop.f32.mrf.mxu1  ;;  %7731 = vmatpush3.msra.mxu1 %v7444_v61  ;;  %v5525_v56 = vadd.f32 %v11686_v59, %v12561_v3  ;;  %v5527_v36 = vadd.f32 %v11704_v20, %v12562_v0  ;;  %v5528_v37 = vadd.f32 %v11729_v50, %v12563_v57  ;;  %v12564_v52 = vld [vmem:[#allocation96_spill] sm:$0xff]  ;;  %v5483_v22 = vpop.f32.mrf.mxu0 }
 0x521   : > { %v5897_v28 = vmax.f32 %v5865_v10, %v5869_v1  ;;  %v5870_v45 = vmax.f32 %v5830_v21, 0.0  ;;  %v5831_v35 = vadd.f32 %v11605_v39, %v5779_v18  ;;  %7681 = vmatprep.subr.mxu0 %v7435_v27  ;;  %7732 = vmatprep.subr.mxu1 %v7443_v60  ;;  %v5780_v54 = vadd.f32 %v5709_v33, %v5522_v30 }
 0x522   : > { %7682 = vmatpush3.msra.mxu0 %v7435_v27  ;;  %v5711_v14 = vpop.f32.mrf.mxu1  ;;  %7733 = vmatpush3.msra.mxu1 %v7443_v60  ;;  %v5529_v10 = vadd.f32 %v11751_v32, %v12564_v52  ;;  %v7427_v32 = vld [vmem:[%s12010_s5 + $0x118] sm:$0xff]  ;;  %v5487_v33 = vpop.f32.mrf.mxu0 }
 0x523   : > { %v11771_v25 = vmax.f32 %v5866_v4, %v5870_v45  ;;  %v5871_v23 = vmax.f32 %v5831_v35, 0.0  ;;  %7683 = vmatprep.subr.mxu0 %v7434_v55  ;;  %7734 = vmatprep.subr.mxu1 %v7442_v40  ;;  %v5912_v5 = vmax.f32 %v5896_v62, %v5897_v28  ;;  %v5781_v41 = vadd.f32 %v5711_v14, %v5523_v7  ;;  %v7426_v35 = vld [vmem:[%s12010_s5 + $0x110] sm:$0xff]  ;;  %v7425_v7 = vld [vmem:[%s12010_s5 + $0x108] sm:$0xff] }
 0x524   : > { %7684 = vmatpush3.msra.mxu0 %v7434_v55  ;;  %v5715_v63 = vpop.f32.mrf.mxu1  ;;  %7735 = vmatpush3.msra.mxu1 %v7442_v40  ;;  %v5832_v9 = vadd.f32 %v11597_v49, %v5780_v54  ;;  %v5534_v0 = vadd.f32 %v5487_v33, %v11574_v16 }
 0x525   : > { %v11780_v17 = vmax.f32 %v5867_v15, %v5871_v23  ;;  %7685 = vmatprep.subr.mxu0 %v7433_v53  ;;  %7736 = vmatprep.subr.mxu1 %v7441_v48  ;;  %v5782_v42 = vadd.f32 %v5715_v63, %v5524_v47  ;;  %v5833_v6 = vadd.f32 %v11605_v39, %v5781_v41  ;;  %v12565_v15 = vld [vmem:[#allocation99_spill] sm:$0xff]  ;;  %v5489_v63 = vpop.f32.mrf.mxu0 }
 0x526   : > { %7686 = vmatpush3.msra.mxu0 %v7433_v53  ;;  %7705 = vmatprep.mubr.f32.mxu0 %v5912_v5  ;;  %v5717_v11 = vpop.f32.mrf.mxu1  ;;  %v5872_v31 = vmax.f32 %v5832_v9, 0.0  ;;  %v5530_v23 = vadd.f32 %v11760_v34, %v12565_v15  ;;  %v7424_v34 = vld [vmem:[%s12010_s5 + $0x100] sm:$0xff] }
 0x527   : > { %v5913_v24 = vmax.f32 %v11771_v25, %v11780_v17  ;;  %7687 = vmatprep.subr.mxu0 %v7432_v13  ;;  %7737 = vmatpush3.msra.mxu1 %v7441_v48  ;;  %v5783_v12 = vadd.f32 %v5717_v11, %v5525_v56  ;;  %v5834_v27 = vadd.f32 %v11597_v49, %v5782_v42  ;;  %v5873_v21 = vmax.f32 %v5833_v6, 0.0  ;;  %v12566_v11 = vld [vmem:[#allocation98_spill] sm:$0xff]  ;;  %v12568_v6 = vld [vmem:[#allocation100_spill] sm:$0xff] }
 0x528   : > { %7688 = vmatpush3.msra.mxu0 %v7432_v13  ;;  %v5721_v46 = vpop.f32.mrf.mxu1  ;;  %7738 = vmatprep.subr.mxu1 %v7440_v8  ;;  %v12570_v25 = vld [vmem:[#allocation104_spill] sm:$0xff] }
 0x529   : > { %v5784_v26 = vadd.f32 %v5721_v46, %v5526_v29  ;;  %7689 = vmatprep.subr.mxu0 %v7431_v2  ;;  %7739 = vmatpush3.msra.mxu1 %v7440_v8  ;;  %v5835_v50 = vadd.f32 %v11605_v39, %v5783_v12  ;;  %v5874_v30 = vmax.f32 %v5834_v27, 0.0  ;;  %v7471_v46 = vld [vmem:[%s12010_s5 + $0x278] sm:$0xff]  ;;  %v5533_v12 = vadd.f32 %v5483_v22, %v12568_v6  ;;  %v12571_v27 = vld [vmem:[#allocation103_spill] sm:$0xff]  ;;  %v6399_v6 = vld [vmem:[%s12012_s7 + $0x28] sm:$0xff] }
 0x52a   : > { %7690 = vmatpush3.msra.mxu0 %v7431_v2  ;;  %v5723_v59 = vpop.f32.mrf.mxu1  ;;  %v5531_v2 = vadd.f32 %v11778_v19, %v12566_v11  ;;  %v12567_v19 = vld [vmem:[#allocation101_spill] sm:$0xff]  ;;  %v7461_v11 = vld [vmem:[%s12010_s5 + $0x228] sm:$0xff] }
 0x52b   : > { %v5836_v51 = vadd.f32 %v11597_v49, %v5784_v26  ;;  %v5785_v61 = vadd.f32 %v5723_v59, %v5527_v36  ;;  %7691 = vmatprep.subr.mxu0 %v7430_v43  ;;  %v5875_v5 = vmax.f32 %v5835_v50, 0.0  ;;  %v5532_v26 = vadd.f32 %v11800_v58, %v12567_v19  ;;  %v12569_v58 = vld [vmem:[#allocation105_spill] sm:$0xff]  ;;  %v6403_v19 = vld [vmem:[%s12012_s7 + $0x48] sm:$0xff] }
 0x52c   : > { %7692 = vmatpush3.msra.mxu0 %v7430_v43  ;;  %v5727_v20 = vpop.f32.mrf.mxu1  ;;  %v5493_v43 = vpop.f32.mrf.mxu0  ;;  %v5535_v57 = vadd.f32 %v5489_v63, %v12569_v58  ;;  %v6510_v58 = vld [vmem:[%s12014_s9 + $0x50] sm:$0xf] }
 0x52d   : > { %v5876_v60 = vmax.f32 %v5836_v51, 0.0  ;;  %v5837_v62 = vadd.f32 %v11605_v39, %v5785_v61  ;;  %v5786_v1 = vadd.f32 %v5727_v20, %v5528_v37  ;;  %7693 = vmatprep.subr.mxu0 %v7429_v44  ;;  %v7469_v20 = vld [vmem:[%s12010_s5 + $0x268] sm:$0xff]  ;;  %v5536_v17 = vadd.f32 %v5493_v43, %v12570_v25  ;;  %v6405_v43 = vld [vmem:[%s12012_s7 + $0x58] sm:$0xff] }
 0x52e   : > { %7694 = vmatpush3.msra.mxu0 %v7429_v44  ;;  %v5729_v18 = vpop.f32.mrf.mxu1  ;;  %v7470_v44 = vld [vmem:[%s12010_s5 + $0x270] sm:$0xff]  ;;  %v5495_v52 = vpop.f32.mrf.mxu0 }
 0x52f   : > { %v5900_v55 = vmax.f32 %v5872_v31, %v5876_v60  ;;  %v5877_v40 = vmax.f32 %v5837_v62, 0.0  ;;  %v5838_v4 = vadd.f32 %v11597_v49, %v5786_v1  ;;  %v5787_v28 = vadd.f32 %v5729_v18, %v5529_v10  ;;  %7695 = vmatprep.subr.mxu0 %v7428_v38  ;;  %v7468_v62 = vld [vmem:[%s12010_s5 + $0x260] sm:$0xff] }
 0x530   : > { %7696 = vmatpush3.msra.mxu0 %v7428_v38  ;;  %v5733_v45 = vpop.f32.mrf.mxu1  ;;  %v5537_v60 = vadd.f32 %v5495_v52, %v12571_v27  ;;  %v6504_v52 = vld [vmem:[%s12014_s9 + $0x20] sm:$0xff] }
 0x531   : > { %v5901_v14 = vmax.f32 %v5873_v21, %v5877_v40  ;;  %v5878_v53 = vmax.f32 %v5838_v4, 0.0  ;;  %v5839_v48 = vadd.f32 %v11605_v39, %v5787_v28  ;;  %7697 = vmatprep.subr.mxu0 %v7427_v32  ;;  %v5788_v41 = vadd.f32 %v5733_v45, %v5530_v23  ;;  %v7467_v40 = vld [vmem:[%s12010_s5 + $0x258] sm:$0xff]  ;;  %v7465_v23 = vld [vmem:[%s12010_s5 + $0x248] sm:$0xff] }
 0x532   : > { %7698 = vmatpush3.msra.mxu0 %v7427_v32  ;;  %v5735_v54 = vpop.f32.mrf.mxu1 }
 0x533   : > { %v5902_v13 = vmax.f32 %v5874_v30, %v5878_v53  ;;  %v5879_v8 = vmax.f32 %v5839_v48, 0.0  ;;  %7699 = vmatprep.subr.mxu0 %v7426_v35  ;;  %v5914_v29 = vmax.f32 %v5900_v55, %v5901_v14  ;;  %v5789_v3 = vadd.f32 %v5735_v54, %v5531_v2  ;;  %v7466_v30 = vld [vmem:[%s12010_s5 + $0x250] sm:$0xff]  ;;  %v7460_v2 = vld [vmem:[%s12010_s5 + $0x220] sm:$0xff] }
 0x534   : > { %7700 = vmatpush3.msra.mxu0 %v7426_v35  ;;  %v5739_v47 = vpop.f32.mrf.mxu1  ;;  %v5840_v36 = vadd.f32 %v11597_v49, %v5788_v41  ;;  %v7462_v41 = vld [vmem:[%s12010_s5 + $0x230] sm:$0xff] }
 0x535   : > { %v5903_v9 = vmax.f32 %v5875_v5, %v5879_v8  ;;  %7701 = vmatprep.subr.mxu0 %v7425_v7  ;;  %7740 = vmatprep.mubr.f32.mxu1 %v5914_v29  ;;  %v5790_v51 = vadd.f32 %v5739_v47, %v5532_v26  ;;  %v5841_v16 = vadd.f32 %v11605_v39, %v5789_v3  ;;  %v7464_v5 = vld [vmem:[%s12010_s5 + $0x240] sm:$0xff]  ;;  %v7459_v47 = vld [vmem:[%s12010_s5 + $0x218] sm:$0xff]  ;;  %v7458_v29 = vld [vmem:[%s12010_s5 + $0x210] sm:$0xff] }
 0x536   : > { %7702 = vmatpush3.msra.mxu0 %v7425_v7  ;;  %v5741_v56 = vpop.f32.mrf.mxu1  ;;  %v6408_v3 = vld [vmem:[%s12012_s7 + $0x70] sm:$0xff]  ;;  %v6402_v26 = vld [vmem:[%s12012_s7 + $0x40] sm:$0xff] }
 0x537   : > { %v5915_v42 = vmax.f32 %v5902_v13, %v5903_v9  ;;  %7703 = vmatprep.subr.mxu0 %v7424_v34  ;;  %v5791_v37 = vadd.f32 %v5741_v56, %v5533_v12  ;;  %v5842_v1 = vadd.f32 %v11597_v49, %v5790_v51  ;;  %v5881_v32 = vmax.f32 %v5841_v16, 0.0  ;;  %v7456_v9 = vld [vmem:[%s12010_s5 + $0x200] sm:$0xff]  ;;  %v6407_v56 = vld [vmem:[%s12012_s7 + $0x68] sm:$0xff]  ;;  %7778 = vmatprep.subr.mxu1 %v6408_v3 }
 0x538   : > { %7704 = vmatpush3.msra.mxu0 %v7424_v34  ;;  %v5745_v59 = vpop.f32.mrf.mxu1  ;;  %v7457_v34 = vld [vmem:[%s12010_s5 + $0x208] sm:$0xff]  ;;  %v6398_v12 = vld [vmem:[%s12012_s7 + $0x20] sm:$0xff] }
 0x539   : > { %v5792_v61 = vadd.f32 %v5745_v59, %v5534_v0  ;;  %7706 = vmatmul.mubr.f32.vlgmr.msra.gmra.mxu0 %v5913_v24  ;;  %7743 = vmatprep.subr.mxu0 %v7471_v46  ;;  %v5880_v24 = vmax.f32 %v5840_v36, 0.0  ;;  %v5843_v33 = vadd.f32 %v11605_v39, %v5791_v37  ;;  %v5882_v14 = vmax.f32 %v5842_v1, 0.0  ;;  %v6401_v0 = vld [vmem:[%s12012_s7 + $0x38] sm:$0xff]  ;;  %v6400_v36 = vld [vmem:[%s12012_s7 + $0x30] sm:$0xff]  ;;  %v6395_v51 = vld [vmem:[%s12012_s7 + $0x8] sm:$0xff] }
 0x53a   : > { %7741 = vmatmul.mubr.f32.vlgmr.msra.gmra.mxu1 %v5915_v42  ;;  %7744 = vmatpush3.msra.mxu0 %v7471_v46  ;;  %v5747_v31 = vpop.f32.mrf.mxu1  ;;  %v6406_v46 = vld [vmem:[%s12012_s7 + $0x60] sm:$0xff]  ;;  %v6404_v42 = vld [vmem:[%s12012_s7 + $0x50] sm:$0xff]  ;;  %v6397_v59 = vld [vmem:[%s12012_s7 + $0x18] sm:$0xff] }
 0x53b   : > { %v5844_v10 = vadd.f32 %v11597_v49, %v5792_v61  ;;  %v5793_v38 = vadd.f32 %v5747_v31, %v5535_v57  ;;  %7745 = vmatprep.subr.mxu0 %v7470_v44  ;;  %v5883_v54 = vmax.f32 %v5843_v33, 0.0  ;;  %7779 = vmatpush3.msra.mxu1 %v6408_v3  ;;  %v6394_v61 = vld [vmem:[%s12012_s7] sm:$0xff]  ;;  %v6509_v57 = vld [vmem:[%s12014_s9 + $0x48] sm:$0xff]  ;;  %v6507_v37 = vld [vmem:[%s12014_s9 + $0x38] sm:$0xff] }
 0x53c   : > { %7746 = vmatpush3.msra.mxu0 %v7470_v44  ;;  %v5751_v22 = vpop.f32.mrf.mxu1  ;;  %7780 = vmatprep.subr.mxu1 %v6407_v56  ;;  %v6396_v44 = vld [vmem:[%s12012_s7 + $0x10] sm:$0xff]  ;;  %v6508_v16 = vld [vmem:[%s12014_s9 + $0x40] sm:$0xff] }
 0x53d   : > { %v5884_v21 = vmax.f32 %v5844_v10, 0.0  ;;  %v5845_v50 = vadd.f32 %v11605_v39, %v5793_v38  ;;  %v5794_v18 = vadd.f32 %v5751_v22, %v5536_v17  ;;  %7747 = vmatprep.subr.mxu0 %v7469_v20  ;;  %7781 = vmatpush3.msra.mxu1 %v6407_v56  ;;  %v6506_v31 = vld [vmem:[%s12014_s9 + $0x30] sm:$0xff] }
 0x53e   : > { %7748 = vmatpush3.msra.mxu0 %v7469_v20  ;;  %v5753_v55 = vpop.f32.mrf.mxu1  ;;  %7782 = vmatprep.subr.mxu1 %v6406_v46  ;;  %v6505_v20 = vld [vmem:[%s12014_s9 + $0x28] sm:$0xff] }
 0x53f   : > { %v5904_v4 = vmax.f32 %v5880_v24, %v5884_v21  ;;  %v5885_v28 = vmax.f32 %v5845_v50, 0.0  ;;  %v5846_v45 = vadd.f32 %v11597_v49, %v5794_v18  ;;  %v5795_v35 = vadd.f32 %v5753_v55, %v5537_v60  ;;  %7749 = vmatprep.subr.mxu0 %v7468_v62  ;;  %7783 = vmatpush3.msra.mxu1 %v6406_v46 }
 0x540   : > { %7750 = vmatpush3.msra.mxu0 %v7468_v62  ;;  %7784 = vmatprep.subr.mxu1 %v6405_v43 }
 0x541   : > { %v5905_v53 = vmax.f32 %v5881_v32, %v5885_v28  ;;  %v5886_v48 = vmax.f32 %v5846_v45, 0.0  ;;  %v5847_v15 = vadd.f32 %v11605_v39, %v5795_v35  ;;  %7751 = vmatprep.subr.mxu0 %v7467_v40  ;;  %v7463_v39 = vld [vmem:[%s12010_s5 + $0x238] sm:$0xff]  ;;  %7785 = vmatpush3.msra.mxu1 %v6405_v43 }
 0x542   : > { %7752 = vmatpush3.msra.mxu0 %v7467_v40  ;;  %7786 = vmatprep.subr.mxu1 %v6404_v42  ;;  %v7472_v40 = vld [vmem:[%s12011_s6] ss:$0 sm:$0xff] }
 0x543   : > { %v5906_v49 = vmax.f32 %v5882_v14, %v5886_v48  ;;  %v5887_v7 = vmax.f32 %v5847_v15, 0.0  ;;  %7753 = vmatprep.subr.mxu0 %v7466_v30  ;;  %v5916_v63 = vmax.f32 %v5904_v4, %v5905_v53  ;;  %7787 = vmatpush3.msra.mxu1 %v6404_v42  ;;  %v6503_v53 = vld [vmem:[%s12014_s9 + $0x18] sm:$0xff]  ;;  %v6502_v48 = vld [vmem:[%s12014_s9 + $0x10] sm:$0xff]  ;;  %v6501_v15 = vld [vmem:[%s12014_s9 + $0x8] sm:$0xff] }
 0x544   : > { %7754 = vmatpush3.msra.mxu0 %v7466_v30  ;;  %7788 = vmatprep.subr.mxu1 %v6403_v19 }
 0x545   : > { %v5907_v13 = vmax.f32 %v5883_v54, %v5887_v7  ;;  %7755 = vmatprep.subr.mxu0 %v7465_v23  ;;  %7775 = vmatprep.mubr.f32.mxu0 %v5916_v63  ;;  %v7473_v54 = vld [vmem:[%s12013_s8] ss:$0 sm:$0xff] }
 0x546   : > { %7756 = vmatpush3.msra.mxu0 %v7465_v23  ;;  %7789 = vmatpush3.msra.mxu1 %v6403_v19  ;;  %v6500_v23 = vld [vmem:[%s12014_s9] sm:$0xff] }
 0x547   : > { %v5917_v8 = vmax.f32 %v5906_v49, %v5907_v13  ;;  %7757 = vmatprep.subr.mxu0 %v7464_v5  ;;  %7790 = vmatprep.subr.mxu1 %v6402_v26 }
 0x548   : > { %7758 = vmatpush3.msra.mxu0 %v7464_v5  ;;  %7791 = vmatpush3.msra.mxu1 %v6402_v26 }
 0x549   : > { %7759 = vmatprep.subr.mxu0 %v7463_v39  ;;  %7792 = vmatprep.subr.mxu1 %v6401_v0 }
 0x54a   : > { %7760 = vmatpush3.msra.mxu0 %v7463_v39  ;;  %7793 = vmatpush3.msra.mxu1 %v6401_v0 }
 0x54b   : > { %7761 = vmatprep.subr.mxu0 %v7462_v41  ;;  %7794 = vmatprep.subr.mxu1 %v6400_v36 }
 0x54c   : > { %7762 = vmatpush3.msra.mxu0 %v7462_v41  ;;  %7795 = vmatpush3.msra.mxu1 %v6400_v36  ;;  %v7476_v41 = vld [vmem:[%s12015_s10] ss:$0 sm:$0xff] }
 0x54d   : > { %7763 = vmatprep.subr.mxu0 %v7461_v11  ;;  %7796 = vmatprep.subr.mxu1 %v6399_v6 }
 0x54e   : > { %7764 = vmatpush3.msra.mxu0 %v7461_v11  ;;  %7797 = vmatpush3.msra.mxu1 %v6399_v6 }
 0x54f   : > { %7765 = vmatprep.subr.mxu0 %v7460_v2  ;;  %7798 = vmatprep.subr.mxu1 %v6398_v12 }
 0x550   : > { %7766 = vmatpush3.msra.mxu0 %v7460_v2  ;;  %7799 = vmatpush3.msra.mxu1 %v6398_v12 }
 0x551   : > { %7767 = vmatprep.subr.mxu0 %v7459_v47  ;;  %7800 = vmatprep.subr.mxu1 %v6397_v59 }
 0x552   : > { %7768 = vmatpush3.msra.mxu0 %v7459_v47  ;;  %7801 = vmatpush3.msra.mxu1 %v6397_v59 }
 0x553   : > { %7769 = vmatprep.subr.mxu0 %v7458_v29  ;;  %7802 = vmatprep.subr.mxu1 %v6396_v44 }
 0x554   : > { %7770 = vmatpush3.msra.mxu0 %v7458_v29  ;;  %7803 = vmatpush3.msra.mxu1 %v6396_v44 }
 0x555   : > { %7771 = vmatprep.subr.mxu0 %v7457_v34  ;;  %7804 = vmatprep.subr.mxu1 %v6395_v51 }
 0x556   : > { %7772 = vmatpush3.msra.mxu0 %v7457_v34  ;;  %7805 = vmatpush3.msra.mxu1 %v6395_v51 }
 0x557   : > { %7773 = vmatprep.subr.mxu0 %v7456_v9  ;;  %7806 = vmatprep.subr.mxu1 %v6394_v61 }
 0x558   : > { %7774 = vmatpush3.msra.mxu0 %v7456_v9  ;;  %7807 = vmatpush3.msra.mxu1 %v6394_v61 }
 0x559   : > { %7776 = vmatmul.mubr.f32.vlgmr.msra.gmra.mxu0 %v5917_v8  ;;  %7811 = vmatprep.subr.msk.mxu0 %vm6525_vm1, %v6510_v58 }
 0x55a   : > { %7812 = vmatpush3.msk.msra.mxu0 %vm6525_vm1, %v6510_v58 }
 0x55b   : > { %7813 = vmatprep.subr.mxu0 %v6509_v57 }
 0x55c   : > { %7814 = vmatpush3.msra.mxu0 %v6509_v57 }
 0x55d   : > { %7815 = vmatprep.subr.mxu0 %v6508_v16 }
 0x55e   : > { %7816 = vmatpush3.msra.mxu0 %v6508_v16 }
 0x55f   : > { %7817 = vmatprep.subr.mxu0 %v6507_v37 }
 0x560   : > { %7818 = vmatpush3.msra.mxu0 %v6507_v37 }
 0x561   : > { %7819 = vmatprep.subr.mxu0 %v6506_v31 }
 0x562   : > { %7820 = vmatpush3.msra.mxu0 %v6506_v31 }
 0x563   : > { %7821 = vmatprep.subr.mxu0 %v6505_v20 }
 0x564   : > { %7822 = vmatpush3.msra.mxu0 %v6505_v20 }
 0x565   : > { %7823 = vmatprep.subr.mxu0 %v6504_v52 }
 0x566   : > { %7824 = vmatpush3.msra.mxu0 %v6504_v52 }
 0x567   : > { %7825 = vmatprep.subr.mxu0 %v6503_v53 }
 0x568   : > { %7826 = vmatpush3.msra.mxu0 %v6503_v53 }
 0x569   : > { %7827 = vmatprep.subr.mxu0 %v6502_v48 }
 0x56a   : > { %7828 = vmatpush3.msra.mxu0 %v6502_v48 }
 0x56b   : > { %7829 = vmatprep.subr.mxu0 %v6501_v15 }
 0x56c   : > { %7830 = vmatpush3.msra.mxu0 %v6501_v15 }
 0x56d   : > { %7831 = vmatprep.subr.mxu0 %v6500_v23 }
 0x56e   : > { %7832 = vmatpush3.msra.mxu0 %v6500_v23 }
 0x5c9   : > { %v7672_v38 = vpop.f32.mrf.mxu1 }
 0x5cb   : > { %v6092_v24 = vpop.f32.mrf.mxu1 }
 0x5d9   : > { %v7637_v10 = vpop.f32.mrf.mxu0 }
 0x5da   : > { %v6098_v22 = vadd.f32 %v7672_v38, %v7637_v10 }
 0x5db   : > { %v6017_v25 = vpop.f32.mrf.mxu0 }
 0x5dc   : > { %v6093_v62 = vadd.f32 %v6092_v24, %v6017_v25 }
 0x5f9   : > { %v7707_v17 = vpop.f32.mrf.mxu0 }
 0x5fa   : > { %v7742_v27 = vpop.f32.mrf.mxu1  ;;  %v6194_v1 = vadd.f32 %v7707_v17, %v6098_v22 }
 0x5fb   : > { %v6184_v60 = vpop.f32.mrf.mxu0 }
 0x5fc   : > { %v6193_v21 = vadd.f32 %v6184_v60, %v6093_v62  ;;  %v6278_v50 = vpop.f32.mrf.mxu1  ;;  %v6288_v18 = vadd.f32 %v7742_v27, %v6194_v1 }
 0x5fe   : > { %v6287_v33 = vadd.f32 %v6278_v50, %v6193_v21 }
 0x619   : > { %v7777_v32 = vpop.f32.mrf.mxu0 }
 0x61a   : > { %v6382_v55 = vadd.f32 %v7777_v32, %v6288_v18 }
 0x61b   : > { %v6372_v4 = vpop.f32.mrf.mxu0 }
 0x61c   : > { %v6381_v28 = vadd.f32 %v6372_v4, %v6287_v33  ;;  %v6391_v45 = vadd.f32 %v7472_v40, %v6382_v55 }
 0x61e   : > { %v6390_v35 = vadd.f32 %v7472_v40, %v6381_v28  ;;  %v6393_v14 = vmax.f32 %v6391_v45, 0.0 }
 0x620   : > { %v6392_v30 = vmax.f32 %v6390_v35, 0.0 }
 0x622   : > { %7808 = vmatprep.mubr.msk.f32.mxu1 %vm6416_vm2, %v6392_v30 }
 0x623   : > { %7809 = vmatmul.mubr.msk.f32.vlgmr.msra.gmra.mxu1 %vm6416_vm2, %v6393_v14 }
 0x6e3   : > { %v7810_v49 = vpop.f32.mrf.mxu1 }
 0x6e4   : > { %v6495_v7 = vadd.f32 %v7810_v49, %v7473_v54 }
 0x6e5   : > { %v6489_v63 = vpop.f32.mrf.mxu1 }
 0x6e6   : > { %v6490_v5 = vadd.f32 %v7473_v54, %v6489_v63  ;;  %v6499_v39 = vmax.f32 %v6495_v7, 0.0 }
 0x6e8   : > { %v6498_v13 = vmax.f32 %v6490_v5, 0.0 }
 0x6ea   : > { %7833 = vmatprep.mubr.msk.f32.mxu0 %vm6518_vm3, %v6498_v13 }
 0x6eb   : > { %7834 = vmatmul.mubr.msk.f32.vlgmr.msra.gmra.mxu0 %vm6518_vm3, %v6499_v39 }
 0x7ab   : > { %v7835_v8 = vpop.f32.mrf.mxu0 }
 0x7ac   : > { %v6601_v47 = vadd.f32 %v7835_v8, %v7476_v41 }
 0x7ad   : > { %v6595_v11 = vpop.f32.mrf.mxu0 }
 0x7ae   : > { %v6596_v2 = vadd.f32 %v7476_v41, %v6595_v11  ;;  %6606 = vst.msk [vmem:[%s675_s22 + $0x8] sm:$0xff] %vm6604_vm4, %v6601_v47 }
 0x7b0   : > { %6605 = vst.msk [vmem:[%s675_s22] sm:$0xff] %vm6604_vm4, %v6596_v2 }
 0x7b1 PF: > { %p18_p9 = scmp.ge.s32.totalorder %s7963_s21, 4   ;;  %s12572_s17 = smov %s7879_s18 }
 0x7b2   : > { %s12573_s18 = smov %s7972_s24  ;;  %s12574_s19 = smov %s7963_s21 }
 0x7b3   :  { %20 = sbr.rel (!%p18_p9) target bundleno = 2 (0x2), region = 153 }

</bundles_post_ra>
